<compile_context>
chip_gen: v7x
topology: tpu7x:2x2x1
jax: 0.10.0
libtpu: 0.0.40
codegen_flags: <defaults>
</compile_context>

<pallas_src>
import functools
import math

import jax
import jax.numpy as jnp
from jax.experimental import pallas as pl
from jax.experimental.pallas import tpu as pltpu

_LN_EPS = 1e-5      # torch.nn.LayerNorm default eps
_VMEM_BYTES = 32 * 1024 * 1024   # explicit scoped-VMEM budget (fits v5e/v6e/v7x)


def _cp():
    return pltpu.CompilerParams(dimension_semantics=("parallel",),
                                vmem_limit_bytes=_VMEM_BYTES)


# --------------------------------- helpers ----------------------------------

def _gelu(y):
    # TODO(synk): torch.nn.GELU defaults to the exact erf formulation; the tanh
    # approximation is used in-kernel (max abs error ~1e-3).
    c = math.sqrt(2.0 / math.pi)
    return 0.5 * y * (1.0 + jnp.tanh(c * (y + 0.044715 * y * y * y)))


def _ln(x, g, b, eps):
    mu = jnp.mean(x, axis=-1, keepdims=True)
    xc = x - mu
    var = jnp.mean(xc * xc, axis=-1, keepdims=True)
    return xc * jax.lax.rsqrt(var + eps) * g + b


def _softmax(s):
    s = s - jnp.max(s, axis=-1, keepdims=True)
    p = jnp.exp(s)
    return p * pl.reciprocal(jnp.sum(p, axis=-1, keepdims=True), approx=True)


def _bcast(a):
    """Full-array block replicated across the batch grid."""
    nd = a.ndim
    return pl.BlockSpec(a.shape, lambda i: (0,) * nd)


def _batched(a):
    """(B, ...) array tiled one batch element per grid step."""
    nd = a.ndim
    return pl.BlockSpec((1,) + tuple(a.shape[1:]), lambda i: (i,) + (0,) * (nd - 1))


# ----------------------------- Pallas kernels -------------------------------

def _embed_kernel(x_ref, w_ref, b_ref, cls_ref, pos_ref, o_ref):
    """HybridEmbed + cls-token concat + pos_embed add, one batch element."""
    x = x_ref[0].astype(jnp.bfloat16)                                   # (HW, C4)
    tok = jnp.dot(x, w_ref[...], preferred_element_type=jnp.float32)
    tok = tok + b_ref[...].astype(jnp.float32)                          # (HW, D)
    cls_row = cls_ref[...].astype(jnp.float32)                          # (1, D)
    seq = jnp.concatenate([cls_row, tok], axis=0)                       # (HW+1, D)
    seq = seq + pos_ref[...].astype(jnp.float32)
    o_ref[0] = seq.astype(o_ref.dtype)


def _enc_block_kernel(x_ref, g1_ref, b1_ref, wqkv_ref, bqkv_ref, wp_ref, bp_ref,
                      g2_ref, b2_ref, w1_ref, fb1_ref, w2_ref, fb2_ref, o_ref,
                      *, num_heads, scale, eps):
    """Full encoder block: y = x + proj(MHSA(LN1(x))); out = y + MLP(LN2(y))."""
    x = x_ref[0].astype(jnp.float32)                                    # (N, C)
    _, C = x.shape
    dh = C // num_heads

    h = _ln(x, g1_ref[...].astype(jnp.float32), b1_ref[...].astype(jnp.float32), eps)
    qkv = jnp.dot(h.astype(jnp.bfloat16), wqkv_ref[...],
                  preferred_element_type=jnp.float32)
    qkv = qkv + bqkv_ref[...].astype(jnp.float32)                       # (N, 3C)

    q_all = (qkv[:, :C] * scale).astype(jnp.bfloat16)   # scale folded into q
    kv_b = qkv[:, C:].astype(jnp.bfloat16)               # [k | v], single cast

    acc = x                                              # residual accumulator
    for i in range(num_heads):                           # per-head proj accumulation
        qh = q_all[:, i * dh:(i + 1) * dh]
        kh = kv_b[:, i * dh:(i + 1) * dh]
        vh = kv_b[:, C + i * dh:C + (i + 1) * dh]
        s = jax.lax.dot_general(qh, kh, (((1,), (1,)), ((), ())),
                                preferred_element_type=jnp.float32)     # (N, N)
        p = _softmax(s)
        o_i = jnp.dot(p.astype(jnp.bfloat16), vh,
                      preferred_element_type=jnp.float32)               # (N, dh)
        acc = acc + jnp.dot(o_i.astype(jnp.bfloat16), wp_ref[i * dh:(i + 1) * dh, :],
                            preferred_element_type=jnp.float32)
    y = acc + bp_ref[...].astype(jnp.float32)            # x + proj(MHSA(LN1(x)))

    h2 = _ln(y, g2_ref[...].astype(jnp.float32), b2_ref[...].astype(jnp.float32), eps)
    m = jnp.dot(h2.astype(jnp.bfloat16), w1_ref[...],
                preferred_element_type=jnp.float32)
    m = _gelu(m + fb1_ref[...].astype(jnp.float32))
    z = y + jnp.dot(m.astype(jnp.bfloat16), w2_ref[...],
                    preferred_element_type=jnp.float32) + fb2_ref[...].astype(jnp.float32)
    o_ref[0] = z.astype(o_ref.dtype)


def _final_norm_kernel(x_ref, g_ref, b_ref, o_ref, *, eps):
    """Drop the cls token and apply the final encoder LayerNorm."""
    x = x_ref[0].astype(jnp.float32)[1:, :]                             # (N-1, D)
    y = _ln(x, g_ref[...].astype(jnp.float32), b_ref[...].astype(jnp.float32), eps)
    o_ref[0] = y.astype(o_ref.dtype)


def _dec_block_kernel(q_ref, x_ref,
                      g1_ref, b1_ref, g2_ref, b2_ref,
                      wq_ref, bq_ref, wkv_ref, bkv_ref, wp_ref, bp_ref,
                      g3_ref, b3_ref, w1_ref, fb1_ref, w2_ref, fb2_ref,
                      g4_ref, b4_ref, mw1_ref, mb1_ref, mw2_ref, mb2_ref,
                      attn_ref, qo_ref, *, num_heads, scale, eps):
    """Full decoder block for one batch element:
       cross-attention (class query x feature tokens), attention-map LN/MLP
       (written lane-dense in (Q, nh*HW) consumer layout), output projection +
       residual, query LN/MLP + residual."""
    qin = q_ref[0].astype(jnp.float32)                                  # (Q, C)
    x = x_ref[0].astype(jnp.float32)                                    # (Nf, C)
    _, C = qin.shape
    Nf = x.shape[0]
    dh = C // num_heads

    qn = _ln(qin, g1_ref[...].astype(jnp.float32), b1_ref[...].astype(jnp.float32), eps)
    fn = _ln(x, g2_ref[...].astype(jnp.float32), b2_ref[...].astype(jnp.float32), eps)

    qp = jnp.dot(qn.astype(jnp.bfloat16), wq_ref[...],
                 preferred_element_type=jnp.float32)
    qp = qp + bq_ref[...].astype(jnp.float32)                           # (Q, C)
    kv = jnp.dot(fn.astype(jnp.bfloat16), wkv_ref[...],
                 preferred_element_type=jnp.float32)
    kv = kv + bkv_ref[...].astype(jnp.float32)                          # (Nf, 2C)

    q_all = (qp * scale).astype(jnp.bfloat16)
    kv_b = kv.astype(jnp.bfloat16)

    g4 = g4_ref[...].astype(jnp.float32)
    b4 = b4_ref[...].astype(jnp.float32)
    mb1 = mb1_ref[...].astype(jnp.float32)
    mb2 = mb2_ref[...].astype(jnp.float32)

    acc = qin
    for i in range(num_heads):
        qh = q_all[:, i * dh:(i + 1) * dh]
        kh = kv_b[:, i * dh:(i + 1) * dh]
        vh = kv_b[:, C + i * dh:C + (i + 1) * dh]
        s = jax.lax.dot_general(qh, kh, (((1,), (1,)), ((), ())),
                                preferred_element_type=jnp.float32)     # (Q, Nf)
        p = _softmax(s)
        # TODO(synk): post-softmax attention is emitted as the heat-map (the
        # original Block_Decoder source was not provided); the attention-map
        # LN + MLP + residual refinement is a reconstruction.
        a = _ln(p, g4, b4, eps)
        a = jnp.dot(a.astype(jnp.bfloat16), mw1_ref[...],
                    preferred_element_type=jnp.float32)
        a = _gelu(a + mb1)
        a = p + jnp.dot(a.astype(jnp.bfloat16), mw2_ref[...],
                        preferred_element_type=jnp.float32) + mb2       # (Q, Nf)
        attn_ref[0, :, i * Nf:(i + 1) * Nf] = a.astype(attn_ref.dtype)  # consumer layout
        o_i = jnp.dot(p.astype(jnp.bfloat16), vh,
                      preferred_element_type=jnp.float32)               # (Q, dh)
        acc = acc + jnp.dot(o_i.astype(jnp.bfloat16), wp_ref[i * dh:(i + 1) * dh, :],
                            preferred_element_type=jnp.float32)
    qmid = acc + bp_ref[...].astype(jnp.float32)         # query + proj(attn)

    h = _ln(qmid, g3_ref[...].astype(jnp.float32), b3_ref[...].astype(jnp.float32), eps)
    m = jnp.dot(h.astype(jnp.bfloat16), w1_ref[...],
                preferred_element_type=jnp.float32)
    m = _gelu(m + fb1_ref[...].astype(jnp.float32))
    qout = qmid + jnp.dot(m.astype(jnp.bfloat16), w2_ref[...],
                          preferred_element_type=jnp.float32) + fb2_ref[...].astype(jnp.float32)
    qo_ref[0] = qout.astype(qo_ref.dtype)


# ----------------------------- kernel wrappers ------------------------------

def pallas_embed(tokens, w, b, cls_tok, pos):
    B, HW, C4 = tokens.shape
    D = w.shape[1]
    return pl.pallas_call(
        _embed_kernel,
        out_shape=jax.ShapeDtypeStruct((B, HW + 1, D), jnp.bfloat16),
        grid=(B,),
        in_specs=[_batched(tokens), _bcast(w), _bcast(b), _bcast(cls_tok), _bcast(pos)],
        out_specs=pl.BlockSpec((1, HW + 1, D), lambda i: (i, 0, 0)),
        compiler_params=_cp(),
    )(tokens, w, b, cls_tok, pos)


def pallas_enc_block(x, p, num_heads, eps=_LN_EPS):
    B, N, C = x.shape
    scale = float(C // num_heads) ** -0.5
    ws = (p["ln1_g"], p["ln1_b"], p["qkv_w"], p["qkv_b"], p["proj_w"], p["proj_b"],
          p["ln2_g"], p["ln2_b"], p["fc1_w"], p["fc1_b"], p["fc2_w"], p["fc2_b"])
    return pl.pallas_call(
        functools.partial(_enc_block_kernel, num_heads=num_heads, scale=scale, eps=eps),
        out_shape=jax.ShapeDtypeStruct((B, N, C), jnp.bfloat16),
        grid=(B,),
        in_specs=[_batched(x)] + [_bcast(w) for w in ws],
        out_specs=pl.BlockSpec((1, N, C), lambda i: (i, 0, 0)),
        compiler_params=_cp(),
    )(x, *ws)


def pallas_final_norm(z, g, b, eps=_LN_EPS):
    B, N, D = z.shape
    return pl.pallas_call(
        functools.partial(_final_norm_kernel, eps=eps),
        out_shape=jax.ShapeDtypeStruct((B, N - 1, D), jnp.float32),
        grid=(B,),
        in_specs=[_batched(z), _bcast(g), _bcast(b)],
        out_specs=pl.BlockSpec((1, N - 1, D), lambda i: (i, 0, 0)),
        compiler_params=_cp(),
    )(z, g, b)


def pallas_dec_block(query, feat, p, num_heads, eps=_LN_EPS):
    B, Q, C = query.shape
    Nf = feat.shape[1]
    scale = float(C // num_heads) ** -0.5
    ws = (p["ln1_g"], p["ln1_b"], p["ln2_g"], p["ln2_b"],
          p["q_w"], p["q_b"], p["kv_w"], p["kv_b"], p["proj_w"], p["proj_b"],
          p["ln3_g"], p["ln3_b"], p["fc1_w"], p["fc1_b"], p["fc2_w"], p["fc2_b"],
          p["ln4_g"], p["ln4_b"], p["mlp2_fc1_w"], p["mlp2_fc1_b"],
          p["mlp2_fc2_w"], p["mlp2_fc2_b"])
    attn, qout = pl.pallas_call(
        functools.partial(_dec_block_kernel, num_heads=num_heads, scale=scale, eps=eps),
        out_shape=(jax.ShapeDtypeStruct((B, Q, num_heads * Nf), jnp.float32),
                   jax.ShapeDtypeStruct((B, Q, C), jnp.bfloat16)),
        grid=(B,),
        in_specs=[_batched(query), _batched(feat)] + [_bcast(w) for w in ws],
        out_specs=(pl.BlockSpec((1, Q, num_heads * Nf), lambda i: (i, 0, 0)),
                   pl.BlockSpec((1, Q, C), lambda i: (i, 0, 0))),
        compiler_params=_cp(),
    )(query, feat, *ws)
    return attn, qout


# ------------------------------ model forward -------------------------------

def transformer_forward(params, x, cfg, nclass):
    B, C4, H, W = x.shape
    D = cfg["embed_dim"]
    nh = cfg["num_heads"]
    assert H * W == cfg["decoder_feat_HxW"]

    # HybridEmbed + cls-token concat + pos_embed add (single fused kernel).
    tokens = jnp.transpose(x.reshape(B, C4, H * W), (0, 2, 1))          # (B, HW, C4)
    z = pallas_embed(tokens, params["embed_w"], params["embed_b"],
                     params["cls_token"], params["pos_embed"])          # (B, HW+1, D) bf16

    # forward_encoder: one fused kernel per block.
    for bp in params["enc_blocks"]:
        z = pallas_enc_block(z, bp, nh)
    feat = pallas_final_norm(z, params["norm_g"], params["norm_b"])     # (B, HW, D) f32

    # forward_decoder: one fused kernel per block.
    # TODO(synk): residual wiring of Trans2Seg's Block_Decoder reconstructed as
    # standard pre-norm residuals (the original repo code was not provided).
    attns_list = []
    query = jnp.broadcast_to(params["cls_query"], (B, nclass, D)).astype(jnp.bfloat16)
    for bp in params["dec_blocks"]:
        attn_flat, query = pallas_dec_block(query, feat, bp, nh)        # (B, ncls, nh*HW)
        attns_list.append(attn_flat.reshape(B, nclass, nh, H * W))      # free reshape

    # x.reshape(n, h, w, -1).permute(0, 3, 1, 2)
    x_out = jnp.transpose(feat.reshape(B, H, W, D), (0, 3, 1, 2))
    return x_out, attns_list


# -------------------------------- param init --------------------------------

def init_params(key, cfg, c4_channels, nclass):
    D = cfg["embed_dim"]
    depth = cfg["depth"]
    hidden = int(D * cfg["mlp_ratio"])
    hw = cfg["decoder_feat_HxW"]
    keys = iter(jax.random.split(key, 64))

    def dense(kin, kout):
        w = jax.random.normal(next(keys), (kin, kout), jnp.float32) * 0.02
        return w.astype(jnp.bfloat16)   # bf16 weights: MXU-native, half the DMA bytes

    def zeros(n):
        return jnp.zeros((1, n), jnp.float32)

    def ones(n):
        return jnp.ones((1, n), jnp.float32)

    p = {
        "embed_w": dense(c4_channels, D),
        "embed_b": zeros(D),
        "cls_token": jax.random.normal(next(keys), (1, D), jnp.float32) * 0.02,
        "pos_embed": jax.random.normal(next(keys), (hw + 1, D), jnp.float32) * 0.02,
        "cls_query": jax.random.normal(next(keys), (nclass, D), jnp.float32) * 0.02,
        "norm_g": ones(D), "norm_b": zeros(D),
        "enc_blocks": [], "dec_blocks": [],
    }
    for _ in range(depth):
        p["enc_blocks"].append({
            "ln1_g": ones(D), "ln1_b": zeros(D),
            "qkv_w": dense(D, 3 * D), "qkv_b": zeros(3 * D),   # qkv_bias=False -> zeros
            "proj_w": dense(D, D), "proj_b": zeros(D),
            "ln2_g": ones(D), "ln2_b": zeros(D),
            "fc1_w": dense(D, hidden), "fc1_b": zeros(hidden),
            "fc2_w": dense(hidden, D), "fc2_b": zeros(D),
        })
    for _ in range(depth):
        p["dec_blocks"].append({
            "ln1_g": ones(D), "ln1_b": zeros(D),
            "ln2_g": ones(D), "ln2_b": zeros(D),
            "q_w": dense(D, D), "q_b": zeros(D),
            "kv_w": dense(D, 2 * D), "kv_b": zeros(2 * D),
            "proj_w": dense(D, D), "proj_b": zeros(D),
            "ln3_g": ones(D), "ln3_b": zeros(D),
            "fc1_w": dense(D, hidden), "fc1_b": zeros(hidden),
            "fc2_w": dense(hidden, D), "fc2_b": zeros(D),
            "ln4_g": ones(hw), "ln4_b": zeros(hw),
            "mlp2_fc1_w": dense(hw, 3 * hw), "mlp2_fc1_b": zeros(3 * hw),
            "mlp2_fc2_w": dense(3 * hw, hw), "mlp2_fc2_b": zeros(hw),
        })
    return p


# ----------------------------------- main ------------------------------------

if __name__ == "__main__":
    B, C4, H, W = 2, 16, 8, 8
    NCLASS = 4
    vit_params = {
        "embed_dim": 32,
        "depth": 2,
        "num_heads": 4,
        "mlp_ratio": 2.0,
        "decoder_feat_HxW": H * W,
    }

    root = jax.random.PRNGKey(0)
    k_param, k_input = jax.random.split(root)
    params = init_params(k_param, vit_params, c4_channels=C4, nclass=NCLASS)
    x = jax.random.normal(k_input, (B, C4, H, W), jnp.float32)

    fwd = jax.jit(lambda p, xx: transformer_forward(p, xx, vit_params, NCLASS))
    x_out, attns_list = fwd(params, x)
    jax.block_until_ready((x_out, attns_list))

    assert x_out.shape == (B, vit_params["embed_dim"], H, W)
    assert len(attns_list) == vit_params["depth"]
    for a in attns_list:
        assert a.shape == (B, NCLASS, vit_params["num_heads"], H * W)
        assert bool(jnp.all(jnp.isfinite(a)))
    assert bool(jnp.all(jnp.isfinite(x_out)))
    print("KERNEL_OK")
</pallas_src>

<mosaic_0001>
module attributes {stable_mosaic.version = 11 : i64} {
  func.func @_enc_block_kernel(%arg0: i32, %arg1: memref<1x65x32xbf16, #tpu.memory_space<vmem>>, %arg2: memref<1x32xf32, #tpu.memory_space<vmem>>, %arg3: memref<1x32xf32, #tpu.memory_space<vmem>>, %arg4: memref<32x96xbf16, #tpu.memory_space<vmem>>, %arg5: memref<1x96xf32, #tpu.memory_space<vmem>>, %arg6: memref<32x32xbf16, #tpu.memory_space<vmem>>, %arg7: memref<1x32xf32, #tpu.memory_space<vmem>>, %arg8: memref<1x32xf32, #tpu.memory_space<vmem>>, %arg9: memref<1x32xf32, #tpu.memory_space<vmem>>, %arg10: memref<32x64xbf16, #tpu.memory_space<vmem>>, %arg11: memref<1x64xf32, #tpu.memory_space<vmem>>, %arg12: memref<64x32xbf16, #tpu.memory_space<vmem>>, %arg13: memref<1x32xf32, #tpu.memory_space<vmem>>, %arg14: memref<1x65x32xbf16, #tpu.memory_space<vmem>>) attributes {dimension_semantics = [#tpu.dimension_semantics<parallel>], iteration_bounds = array<i64: 2>, scalar_prefetch = 0 : i64, scratch_operands = 0 : i64, tpu.core_type = #tpu.core_type<tc>, window_params = [{transform_indices = @transform_0, window_bounds = array<i64: 1, 65, 32>}, {pipeline_mode = #tpu.pipeline_mode<synchronous>, transform_indices = @transform_1, window_bounds = array<i64: 1, 32>}, {pipeline_mode = #tpu.pipeline_mode<synchronous>, transform_indices = @transform_2, window_bounds = array<i64: 1, 32>}, {pipeline_mode = #tpu.pipeline_mode<synchronous>, transform_indices = @transform_3, window_bounds = array<i64: 32, 96>}, {pipeline_mode = #tpu.pipeline_mode<synchronous>, transform_indices = @transform_4, window_bounds = array<i64: 1, 96>}, {pipeline_mode = #tpu.pipeline_mode<synchronous>, transform_indices = @transform_5, window_bounds = array<i64: 32, 32>}, {pipeline_mode = #tpu.pipeline_mode<synchronous>, transform_indices = @transform_6, window_bounds = array<i64: 1, 32>}, {pipeline_mode = #tpu.pipeline_mode<synchronous>, transform_indices = @transform_7, window_bounds = array<i64: 1, 32>}, {pipeline_mode = #tpu.pipeline_mode<synchronous>, transform_indices = @transform_8, window_bounds = array<i64: 1, 32>}, {pipeline_mode = #tpu.pipeline_mode<synchronous>, transform_indices = @transform_9, window_bounds = array<i64: 32, 64>}, {pipeline_mode = #tpu.pipeline_mode<synchronous>, transform_indices = @transform_10, window_bounds = array<i64: 1, 64>}, {pipeline_mode = #tpu.pipeline_mode<synchronous>, transform_indices = @transform_11, window_bounds = array<i64: 64, 32>}, {pipeline_mode = #tpu.pipeline_mode<synchronous>, transform_indices = @transform_12, window_bounds = array<i64: 1, 32>}, {transform_indices = @transform_13, window_bounds = array<i64: 1, 65, 32>}]} {
    %c0 = arith.constant 0 : index
    %c0_0 = arith.constant 0 : index
    %c0_1 = arith.constant 0 : index
    %0 = vector.load %arg1[%c0, %c0_0, %c0_1] : memref<1x65x32xbf16, #tpu.memory_space<vmem>>, vector<1x65x32xbf16>
    %1 = vector.shape_cast %0 : vector<1x65x32xbf16> to vector<65x32xbf16>
    %2 = arith.extf %1 : vector<65x32xbf16> to vector<65x32xf32>
    %c0_2 = arith.constant 0 : index
    %c0_3 = arith.constant 0 : index
    %3 = vector.load %arg2[%c0_2, %c0_3] : memref<1x32xf32, #tpu.memory_space<vmem>>, vector<1x32xf32>
    %c0_4 = arith.constant 0 : index
    %c0_5 = arith.constant 0 : index
    %4 = vector.load %arg3[%c0_4, %c0_5] : memref<1x32xf32, #tpu.memory_space<vmem>>, vector<1x32xf32>
    %cst = arith.constant dense<0.000000e+00> : vector<65xf32>
    %5 = vector.multi_reduction <add>, %2, %cst [1] : vector<65x32xf32> to vector<65xf32>
    %6 = vector.shape_cast %5 : vector<65xf32> to vector<65x1xf32>
    %cst_6 = arith.constant 3.200000e+01 : f32
    %7 = vector.broadcast %cst_6 : f32 to vector<65x1xf32>
    %8 = arith.divf %6, %7 : vector<65x1xf32>
    %9 = vector.broadcast %8 : vector<65x1xf32> to vector<65x32xf32>
    %10 = arith.subf %2, %9 : vector<65x32xf32>
    %11 = arith.mulf %10, %10 : vector<65x32xf32>
    %cst_7 = arith.constant dense<0.000000e+00> : vector<65xf32>
    %12 = vector.multi_reduction <add>, %11, %cst_7 [1] : vector<65x32xf32> to vector<65xf32>
    %13 = vector.shape_cast %12 : vector<65xf32> to vector<65x1xf32>
    %cst_8 = arith.constant 3.200000e+01 : f32
    %14 = vector.broadcast %cst_8 : f32 to vector<65x1xf32>
    %15 = arith.divf %13, %14 : vector<65x1xf32>
    %cst_9 = arith.constant 9.99999974E-6 : f32
    %16 = vector.broadcast %cst_9 : f32 to vector<65x1xf32>
    %17 = arith.addf %15, %16 : vector<65x1xf32>
    %18 = math.rsqrt %17 : vector<65x1xf32>
    %19 = vector.broadcast %18 : vector<65x1xf32> to vector<65x32xf32>
    %20 = arith.mulf %10, %19 : vector<65x32xf32>
    %21 = vector.broadcast %3 : vector<1x32xf32> to vector<65x32xf32>
    %22 = arith.mulf %20, %21 : vector<65x32xf32>
    %23 = vector.broadcast %4 : vector<1x32xf32> to vector<65x32xf32>
    %24 = arith.addf %22, %23 : vector<65x32xf32>
    %25 = arith.truncf %24 : vector<65x32xf32> to vector<65x32xbf16>
    %c0_10 = arith.constant 0 : index
    %c0_11 = arith.constant 0 : index
    %26 = vector.load %arg4[%c0_10, %c0_11] : memref<32x96xbf16, #tpu.memory_space<vmem>>, vector<32x96xbf16>
    %cst_12 = arith.constant dense<0.000000e+00> : vector<65x96xf32>
    %27 = tpu.matmul %25, %26, %cst_12 {dimension_numbers = #tpu.dot_dimension_numbers<[1], [0], [0], [1], [0, 0, 1, 1], [], []>} : vector<65x32xbf16>, vector<32x96xbf16>, vector<65x96xf32> -> vector<65x96xf32>
    %c0_13 = arith.constant 0 : index
    %c0_14 = arith.constant 0 : index
    %28 = vector.load %arg5[%c0_13, %c0_14] : memref<1x96xf32, #tpu.memory_space<vmem>>, vector<1x96xf32>
    %29 = vector.broadcast %28 : vector<1x96xf32> to vector<65x96xf32>
    %30 = arith.addf %27, %29 : vector<65x96xf32>
    %31 = vector.extract_strided_slice %30 {offsets = [0, 0], sizes = [65, 32], strides = [1, 1]} : vector<65x96xf32> to vector<65x32xf32>
    %cst_15 = arith.constant 0.353553385 : f32
    %32 = vector.broadcast %cst_15 : f32 to vector<65x32xf32>
    %33 = arith.mulf %31, %32 : vector<65x32xf32>
    %34 = arith.truncf %33 : vector<65x32xf32> to vector<65x32xbf16>
    %35 = vector.extract_strided_slice %30 {offsets = [0, 32], sizes = [65, 64], strides = [1, 1]} : vector<65x96xf32> to vector<65x64xf32>
    %36 = arith.truncf %35 : vector<65x64xf32> to vector<65x64xbf16>
    %37 = vector.extract_strided_slice %34 {offsets = [0, 0], sizes = [65, 8], strides = [1, 1]} : vector<65x32xbf16> to vector<65x8xbf16>
    %38 = vector.extract_strided_slice %36 {offsets = [0, 0], sizes = [65, 8], strides = [1, 1]} : vector<65x64xbf16> to vector<65x8xbf16>
    %39 = vector.extract_strided_slice %36 {offsets = [0, 32], sizes = [65, 8], strides = [1, 1]} : vector<65x64xbf16> to vector<65x8xbf16>
    %cst_16 = arith.constant dense<0.000000e+00> : vector<65x65xf32>
    %40 = tpu.matmul %37, %38, %cst_16 {dimension_numbers = #tpu.dot_dimension_numbers<[1], [1], [0], [0], [0, 0, 1, 0], [], []>} : vector<65x8xbf16>, vector<65x8xbf16>, vector<65x65xf32> -> vector<65x65xf32>
    %cst_17 = arith.constant dense<0xFF800000> : vector<65xf32>
    %41 = vector.multi_reduction <maximumf>, %40, %cst_17 [1] : vector<65x65xf32> to vector<65xf32>
    %42 = vector.shape_cast %41 : vector<65xf32> to vector<65x1xf32>
    %43 = vector.broadcast %42 : vector<65x1xf32> to vector<65x65xf32>
    %44 = arith.subf %40, %43 : vector<65x65xf32>
    %45 = math.exp %44 : vector<65x65xf32>
    %cst_18 = arith.constant dense<0.000000e+00> : vector<65xf32>
    %46 = vector.multi_reduction <add>, %45, %cst_18 [1] : vector<65x65xf32> to vector<65xf32>
    %47 = vector.shape_cast %46 : vector<65xf32> to vector<65x1xf32>
    %48 = tpu.reciprocal %47 {approx = true} : vector<65x1xf32> -> vector<65x1xf32>
    %49 = vector.broadcast %48 : vector<65x1xf32> to vector<65x65xf32>
    %50 = arith.mulf %45, %49 : vector<65x65xf32>
    %51 = arith.truncf %50 : vector<65x65xf32> to vector<65x65xbf16>
    %cst_19 = arith.constant dense<0.000000e+00> : vector<65x8xf32>
    %52 = tpu.matmul %51, %39, %cst_19 {dimension_numbers = #tpu.dot_dimension_numbers<[1], [0], [0], [1], [0, 0, 1, 1], [], []>} : vector<65x65xbf16>, vector<65x8xbf16>, vector<65x8xf32> -> vector<65x8xf32>
    %53 = arith.truncf %52 : vector<65x8xf32> to vector<65x8xbf16>
    %c0_20 = arith.constant 0 : index
    %c0_21 = arith.constant 0 : index
    %54 = vector.load %arg6[%c0_20, %c0_21] : memref<32x32xbf16, #tpu.memory_space<vmem>>, vector<8x32xbf16>
    %cst_22 = arith.constant dense<0.000000e+00> : vector<65x32xf32>
    %55 = tpu.matmul %53, %54, %cst_22 {dimension_numbers = #tpu.dot_dimension_numbers<[1], [0], [0], [1], [0, 0, 1, 1], [], []>} : vector<65x8xbf16>, vector<8x32xbf16>, vector<65x32xf32> -> vector<65x32xf32>
    %56 = arith.addf %2, %55 : vector<65x32xf32>
    %57 = vector.extract_strided_slice %34 {offsets = [0, 8], sizes = [65, 8], strides = [1, 1]} : vector<65x32xbf16> to vector<65x8xbf16>
    %58 = vector.extract_strided_slice %36 {offsets = [0, 8], sizes = [65, 8], strides = [1, 1]} : vector<65x64xbf16> to vector<65x8xbf16>
    %59 = vector.extract_strided_slice %36 {offsets = [0, 40], sizes = [65, 8], strides = [1, 1]} : vector<65x64xbf16> to vector<65x8xbf16>
    %cst_23 = arith.constant dense<0.000000e+00> : vector<65x65xf32>
    %60 = tpu.matmul %57, %58, %cst_23 {dimension_numbers = #tpu.dot_dimension_numbers<[1], [1], [0], [0], [0, 0, 1, 0], [], []>} : vector<65x8xbf16>, vector<65x8xbf16>, vector<65x65xf32> -> vector<65x65xf32>
    %cst_24 = arith.constant dense<0xFF800000> : vector<65xf32>
    %61 = vector.multi_reduction <maximumf>, %60, %cst_24 [1] : vector<65x65xf32> to vector<65xf32>
    %62 = vector.shape_cast %61 : vector<65xf32> to vector<65x1xf32>
    %63 = vector.broadcast %62 : vector<65x1xf32> to vector<65x65xf32>
    %64 = arith.subf %60, %63 : vector<65x65xf32>
    %65 = math.exp %64 : vector<65x65xf32>
    %cst_25 = arith.constant dense<0.000000e+00> : vector<65xf32>
    %66 = vector.multi_reduction <add>, %65, %cst_25 [1] : vector<65x65xf32> to vector<65xf32>
    %67 = vector.shape_cast %66 : vector<65xf32> to vector<65x1xf32>
    %68 = tpu.reciprocal %67 {approx = true} : vector<65x1xf32> -> vector<65x1xf32>
    %69 = vector.broadcast %68 : vector<65x1xf32> to vector<65x65xf32>
    %70 = arith.mulf %65, %69 : vector<65x65xf32>
    %71 = arith.truncf %70 : vector<65x65xf32> to vector<65x65xbf16>
    %cst_26 = arith.constant dense<0.000000e+00> : vector<65x8xf32>
    %72 = tpu.matmul %71, %59, %cst_26 {dimension_numbers = #tpu.dot_dimension_numbers<[1], [0], [0], [1], [0, 0, 1, 1], [], []>} : vector<65x65xbf16>, vector<65x8xbf16>, vector<65x8xf32> -> vector<65x8xf32>
    %73 = arith.truncf %72 : vector<65x8xf32> to vector<65x8xbf16>
    %c8 = arith.constant 8 : index
    %c0_27 = arith.constant 0 : index
    %74 = vector.load %arg6[%c8, %c0_27] : memref<32x32xbf16, #tpu.memory_space<vmem>>, vector<8x32xbf16>
    %cst_28 = arith.constant dense<0.000000e+00> : vector<65x32xf32>
    %75 = tpu.matmul %73, %74, %cst_28 {dimension_numbers = #tpu.dot_dimension_numbers<[1], [0], [0], [1], [0, 0, 1, 1], [], []>} : vector<65x8xbf16>, vector<8x32xbf16>, vector<65x32xf32> -> vector<65x32xf32>
    %76 = arith.addf %56, %75 : vector<65x32xf32>
    %77 = vector.extract_strided_slice %34 {offsets = [0, 16], sizes = [65, 8], strides = [1, 1]} : vector<65x32xbf16> to vector<65x8xbf16>
    %78 = vector.extract_strided_slice %36 {offsets = [0, 16], sizes = [65, 8], strides = [1, 1]} : vector<65x64xbf16> to vector<65x8xbf16>
    %79 = vector.extract_strided_slice %36 {offsets = [0, 48], sizes = [65, 8], strides = [1, 1]} : vector<65x64xbf16> to vector<65x8xbf16>
    %cst_29 = arith.constant dense<0.000000e+00> : vector<65x65xf32>
    %80 = tpu.matmul %77, %78, %cst_29 {dimension_numbers = #tpu.dot_dimension_numbers<[1], [1], [0], [0], [0, 0, 1, 0], [], []>} : vector<65x8xbf16>, vector<65x8xbf16>, vector<65x65xf32> -> vector<65x65xf32>
    %cst_30 = arith.constant dense<0xFF800000> : vector<65xf32>
    %81 = vector.multi_reduction <maximumf>, %80, %cst_30 [1] : vector<65x65xf32> to vector<65xf32>
    %82 = vector.shape_cast %81 : vector<65xf32> to vector<65x1xf32>
    %83 = vector.broadcast %82 : vector<65x1xf32> to vector<65x65xf32>
    %84 = arith.subf %80, %83 : vector<65x65xf32>
    %85 = math.exp %84 : vector<65x65xf32>
    %cst_31 = arith.constant dense<0.000000e+00> : vector<65xf32>
    %86 = vector.multi_reduction <add>, %85, %cst_31 [1] : vector<65x65xf32> to vector<65xf32>
    %87 = vector.shape_cast %86 : vector<65xf32> to vector<65x1xf32>
    %88 = tpu.reciprocal %87 {approx = true} : vector<65x1xf32> -> vector<65x1xf32>
    %89 = vector.broadcast %88 : vector<65x1xf32> to vector<65x65xf32>
    %90 = arith.mulf %85, %89 : vector<65x65xf32>
    %91 = arith.truncf %90 : vector<65x65xf32> to vector<65x65xbf16>
    %cst_32 = arith.constant dense<0.000000e+00> : vector<65x8xf32>
    %92 = tpu.matmul %91, %79, %cst_32 {dimension_numbers = #tpu.dot_dimension_numbers<[1], [0], [0], [1], [0, 0, 1, 1], [], []>} : vector<65x65xbf16>, vector<65x8xbf16>, vector<65x8xf32> -> vector<65x8xf32>
    %93 = arith.truncf %92 : vector<65x8xf32> to vector<65x8xbf16>
    %c16 = arith.constant 16 : index
    %c0_33 = arith.constant 0 : index
    %94 = vector.load %arg6[%c16, %c0_33] : memref<32x32xbf16, #tpu.memory_space<vmem>>, vector<8x32xbf16>
    %cst_34 = arith.constant dense<0.000000e+00> : vector<65x32xf32>
    %95 = tpu.matmul %93, %94, %cst_34 {dimension_numbers = #tpu.dot_dimension_numbers<[1], [0], [0], [1], [0, 0, 1, 1], [], []>} : vector<65x8xbf16>, vector<8x32xbf16>, vector<65x32xf32> -> vector<65x32xf32>
    %96 = arith.addf %76, %95 : vector<65x32xf32>
    %97 = vector.extract_strided_slice %34 {offsets = [0, 24], sizes = [65, 8], strides = [1, 1]} : vector<65x32xbf16> to vector<65x8xbf16>
    %98 = vector.extract_strided_slice %36 {offsets = [0, 24], sizes = [65, 8], strides = [1, 1]} : vector<65x64xbf16> to vector<65x8xbf16>
    %99 = vector.extract_strided_slice %36 {offsets = [0, 56], sizes = [65, 8], strides = [1, 1]} : vector<65x64xbf16> to vector<65x8xbf16>
    %cst_35 = arith.constant dense<0.000000e+00> : vector<65x65xf32>
    %100 = tpu.matmul %97, %98, %cst_35 {dimension_numbers = #tpu.dot_dimension_numbers<[1], [1], [0], [0], [0, 0, 1, 0], [], []>} : vector<65x8xbf16>, vector<65x8xbf16>, vector<65x65xf32> -> vector<65x65xf32>
    %cst_36 = arith.constant dense<0xFF800000> : vector<65xf32>
    %101 = vector.multi_reduction <maximumf>, %100, %cst_36 [1] : vector<65x65xf32> to vector<65xf32>
    %102 = vector.shape_cast %101 : vector<65xf32> to vector<65x1xf32>
    %103 = vector.broadcast %102 : vector<65x1xf32> to vector<65x65xf32>
    %104 = arith.subf %100, %103 : vector<65x65xf32>
    %105 = math.exp %104 : vector<65x65xf32>
    %cst_37 = arith.constant dense<0.000000e+00> : vector<65xf32>
    %106 = vector.multi_reduction <add>, %105, %cst_37 [1] : vector<65x65xf32> to vector<65xf32>
    %107 = vector.shape_cast %106 : vector<65xf32> to vector<65x1xf32>
    %108 = tpu.reciprocal %107 {approx = true} : vector<65x1xf32> -> vector<65x1xf32>
    %109 = vector.broadcast %108 : vector<65x1xf32> to vector<65x65xf32>
    %110 = arith.mulf %105, %109 : vector<65x65xf32>
    %111 = arith.truncf %110 : vector<65x65xf32> to vector<65x65xbf16>
    %cst_38 = arith.constant dense<0.000000e+00> : vector<65x8xf32>
    %112 = tpu.matmul %111, %99, %cst_38 {dimension_numbers = #tpu.dot_dimension_numbers<[1], [0], [0], [1], [0, 0, 1, 1], [], []>} : vector<65x65xbf16>, vector<65x8xbf16>, vector<65x8xf32> -> vector<65x8xf32>
    %113 = arith.truncf %112 : vector<65x8xf32> to vector<65x8xbf16>
    %c24 = arith.constant 24 : index
    %c0_39 = arith.constant 0 : index
    %114 = vector.load %arg6[%c24, %c0_39] : memref<32x32xbf16, #tpu.memory_space<vmem>>, vector<8x32xbf16>
    %cst_40 = arith.constant dense<0.000000e+00> : vector<65x32xf32>
    %115 = tpu.matmul %113, %114, %cst_40 {dimension_numbers = #tpu.dot_dimension_numbers<[1], [0], [0], [1], [0, 0, 1, 1], [], []>} : vector<65x8xbf16>, vector<8x32xbf16>, vector<65x32xf32> -> vector<65x32xf32>
    %116 = arith.addf %96, %115 : vector<65x32xf32>
    %c0_41 = arith.constant 0 : index
    %c0_42 = arith.constant 0 : index
    %117 = vector.load %arg7[%c0_41, %c0_42] : memref<1x32xf32, #tpu.memory_space<vmem>>, vector<1x32xf32>
    %118 = vector.broadcast %117 : vector<1x32xf32> to vector<65x32xf32>
    %119 = arith.addf %116, %118 : vector<65x32xf32>
    %c0_43 = arith.constant 0 : index
    %c0_44 = arith.constant 0 : index
    %120 = vector.load %arg8[%c0_43, %c0_44] : memref<1x32xf32, #tpu.memory_space<vmem>>, vector<1x32xf32>
    %c0_45 = arith.constant 0 : index
    %c0_46 = arith.constant 0 : index
    %121 = vector.load %arg9[%c0_45, %c0_46] : memref<1x32xf32, #tpu.memory_space<vmem>>, vector<1x32xf32>
    %cst_47 = arith.constant dense<0.000000e+00> : vector<65xf32>
    %122 = vector.multi_reduction <add>, %119, %cst_47 [1] : vector<65x32xf32> to vector<65xf32>
    %123 = vector.shape_cast %122 : vector<65xf32> to vector<65x1xf32>
    %cst_48 = arith.constant 3.200000e+01 : f32
    %124 = vector.broadcast %cst_48 : f32 to vector<65x1xf32>
    %125 = arith.divf %123, %124 : vector<65x1xf32>
    %126 = vector.broadcast %125 : vector<65x1xf32> to vector<65x32xf32>
    %127 = arith.subf %119, %126 : vector<65x32xf32>
    %128 = arith.mulf %127, %127 : vector<65x32xf32>
    %cst_49 = arith.constant dense<0.000000e+00> : vector<65xf32>
    %129 = vector.multi_reduction <add>, %128, %cst_49 [1] : vector<65x32xf32> to vector<65xf32>
    %130 = vector.shape_cast %129 : vector<65xf32> to vector<65x1xf32>
    %cst_50 = arith.constant 3.200000e+01 : f32
    %131 = vector.broadcast %cst_50 : f32 to vector<65x1xf32>
    %132 = arith.divf %130, %131 : vector<65x1xf32>
    %cst_51 = arith.constant 9.99999974E-6 : f32
    %133 = vector.broadcast %cst_51 : f32 to vector<65x1xf32>
    %134 = arith.addf %132, %133 : vector<65x1xf32>
    %135 = math.rsqrt %134 : vector<65x1xf32>
    %136 = vector.broadcast %135 : vector<65x1xf32> to vector<65x32xf32>
    %137 = arith.mulf %127, %136 : vector<65x32xf32>
    %138 = vector.broadcast %120 : vector<1x32xf32> to vector<65x32xf32>
    %139 = arith.mulf %137, %138 : vector<65x32xf32>
    %140 = vector.broadcast %121 : vector<1x32xf32> to vector<65x32xf32>
    %141 = arith.addf %139, %140 : vector<65x32xf32>
    %142 = arith.truncf %141 : vector<65x32xf32> to vector<65x32xbf16>
    %c0_52 = arith.constant 0 : index
    %c0_53 = arith.constant 0 : index
    %143 = vector.load %arg10[%c0_52, %c0_53] : memref<32x64xbf16, #tpu.memory_space<vmem>>, vector<32x64xbf16>
    %cst_54 = arith.constant dense<0.000000e+00> : vector<65x64xf32>
    %144 = tpu.matmul %142, %143, %cst_54 {dimension_numbers = #tpu.dot_dimension_numbers<[1], [0], [0], [1], [0, 0, 1, 1], [], []>} : vector<65x32xbf16>, vector<32x64xbf16>, vector<65x64xf32> -> vector<65x64xf32>
    %c0_55 = arith.constant 0 : index
    %c0_56 = arith.constant 0 : index
    %145 = vector.load %arg11[%c0_55, %c0_56] : memref<1x64xf32, #tpu.memory_space<vmem>>, vector<1x64xf32>
    %146 = vector.broadcast %145 : vector<1x64xf32> to vector<65x64xf32>
    %147 = arith.addf %144, %146 : vector<65x64xf32>
    %cst_57 = arith.constant 5.000000e-01 : f32
    %148 = vector.broadcast %cst_57 : f32 to vector<65x64xf32>
    %149 = arith.mulf %148, %147 : vector<65x64xf32>
    %cst_58 = arith.constant 4.471500e-02 : f32
    %150 = vector.broadcast %cst_58 : f32 to vector<65x64xf32>
    %151 = arith.mulf %150, %147 : vector<65x64xf32>
    %152 = arith.mulf %151, %147 : vector<65x64xf32>
    %153 = arith.mulf %152, %147 : vector<65x64xf32>
    %154 = arith.addf %147, %153 : vector<65x64xf32>
    %cst_59 = arith.constant 0.797884583 : f32
    %155 = vector.broadcast %cst_59 : f32 to vector<65x64xf32>
    %156 = arith.mulf %155, %154 : vector<65x64xf32>
    %157 = math.tanh %156 : vector<65x64xf32>
    %cst_60 = arith.constant 1.000000e+00 : f32
    %158 = vector.broadcast %cst_60 : f32 to vector<65x64xf32>
    %159 = arith.addf %158, %157 : vector<65x64xf32>
    %160 = arith.mulf %149, %159 : vector<65x64xf32>
    %161 = arith.truncf %160 : vector<65x64xf32> to vector<65x64xbf16>
    %c0_61 = arith.constant 0 : index
    %c0_62 = arith.constant 0 : index
    %162 = vector.load %arg12[%c0_61, %c0_62] : memref<64x32xbf16, #tpu.memory_space<vmem>>, vector<64x32xbf16>
    %cst_63 = arith.constant dense<0.000000e+00> : vector<65x32xf32>
    %163 = tpu.matmul %161, %162, %cst_63 {dimension_numbers = #tpu.dot_dimension_numbers<[1], [0], [0], [1], [0, 0, 1, 1], [], []>} : vector<65x64xbf16>, vector<64x32xbf16>, vector<65x32xf32> -> vector<65x32xf32>
    %164 = arith.addf %119, %163 : vector<65x32xf32>
    %c0_64 = arith.constant 0 : index
    %c0_65 = arith.constant 0 : index
    %165 = vector.load %arg13[%c0_64, %c0_65] : memref<1x32xf32, #tpu.memory_space<vmem>>, vector<1x32xf32>
    %166 = vector.broadcast %165 : vector<1x32xf32> to vector<65x32xf32>
    %167 = arith.addf %164, %166 : vector<65x32xf32>
    %168 = arith.truncf %167 : vector<65x32xf32> to vector<65x32xbf16>
    %c0_66 = arith.constant 0 : index
    %c0_67 = arith.constant 0 : index
    %c0_68 = arith.constant 0 : index
    %169 = vector.load %arg14[%c0_66, %c0_67, %c0_68] : memref<1x65x32xbf16, #tpu.memory_space<vmem>>, vector<1x65x32xbf16>
    %170 = vector.shape_cast %169 : vector<1x65x32xbf16> to vector<65x32xbf16>
    %171 = vector.shape_cast %168 : vector<65x32xbf16> to vector<1x65x32xbf16>
    tpu.vector_store %arg14[%c0_66, %c0_67, %c0_68], %171 {strides = array<i32>} : memref<1x65x32xbf16, #tpu.memory_space<vmem>>, vector<1x65x32xbf16>,
    return
  }
  func.func @transform_0(%arg0: i32) -> (i32, i32, i32) {
    %c0_i32 = arith.constant 0 : i32
    %c0_i32_0 = arith.constant 0 : i32
    %c0_i32_1 = arith.constant 0 : i32
    return %arg0, %c0_i32, %c0_i32_0 : i32, i32, i32
  }
  func.func @transform_1(%arg0: i32) -> (i32, i32) {
    %c0_i32 = arith.constant 0 : i32
    %c0_i32_0 = arith.constant 0 : i32
    %c0_i32_1 = arith.constant 0 : i32
    return %c0_i32, %c0_i32_0 : i32, i32
  }
  func.func @transform_2(%arg0: i32) -> (i32, i32) {
    %c0_i32 = arith.constant 0 : i32
    %c0_i32_0 = arith.constant 0 : i32
    %c0_i32_1 = arith.constant 0 : i32
    return %c0_i32, %c0_i32_0 : i32, i32
  }
  func.func @transform_3(%arg0: i32) -> (i32, i32) {
    %c0_i32 = arith.constant 0 : i32
    %c0_i32_0 = arith.constant 0 : i32
    %c0_i32_1 = arith.constant 0 : i32
    return %c0_i32, %c0_i32_0 : i32, i32
  }
  func.func @transform_4(%arg0: i32) -> (i32, i32) {
    %c0_i32 = arith.constant 0 : i32
    %c0_i32_0 = arith.constant 0 : i32
    %c0_i32_1 = arith.constant 0 : i32
    return %c0_i32, %c0_i32_0 : i32, i32
  }
  func.func @transform_5(%arg0: i32) -> (i32, i32) {
    %c0_i32 = arith.constant 0 : i32
    %c0_i32_0 = arith.constant 0 : i32
    %c0_i32_1 = arith.constant 0 : i32
    return %c0_i32, %c0_i32_0 : i32, i32
  }
  func.func @transform_6(%arg0: i32) -> (i32, i32) {
    %c0_i32 = arith.constant 0 : i32
    %c0_i32_0 = arith.constant 0 : i32
    %c0_i32_1 = arith.constant 0 : i32
    return %c0_i32, %c0_i32_0 : i32, i32
  }
  func.func @transform_7(%arg0: i32) -> (i32, i32) {
    %c0_i32 = arith.constant 0 : i32
    %c0_i32_0 = arith.constant 0 : i32
    %c0_i32_1 = arith.constant 0 : i32
    return %c0_i32, %c0_i32_0 : i32, i32
  }
  func.func @transform_8(%arg0: i32) -> (i32, i32) {
    %c0_i32 = arith.constant 0 : i32
    %c0_i32_0 = arith.constant 0 : i32
    %c0_i32_1 = arith.constant 0 : i32
    return %c0_i32, %c0_i32_0 : i32, i32
  }
  func.func @transform_9(%arg0: i32) -> (i32, i32) {
    %c0_i32 = arith.constant 0 : i32
    %c0_i32_0 = arith.constant 0 : i32
    %c0_i32_1 = arith.constant 0 : i32
    return %c0_i32, %c0_i32_0 : i32, i32
  }
  func.func @transform_10(%arg0: i32) -> (i32, i32) {
    %c0_i32 = arith.constant 0 : i32
    %c0_i32_0 = arith.constant 0 : i32
    %c0_i32_1 = arith.constant 0 : i32
    return %c0_i32, %c0_i32_0 : i32, i32
  }
  func.func @transform_11(%arg0: i32) -> (i32, i32) {
    %c0_i32 = arith.constant 0 : i32
    %c0_i32_0 = arith.constant 0 : i32
    %c0_i32_1 = arith.constant 0 : i32
    return %c0_i32, %c0_i32_0 : i32, i32
  }
  func.func @transform_12(%arg0: i32) -> (i32, i32) {
    %c0_i32 = arith.constant 0 : i32
    %c0_i32_0 = arith.constant 0 : i32
    %c0_i32_1 = arith.constant 0 : i32
    return %c0_i32, %c0_i32_0 : i32, i32
  }
  func.func @transform_13(%arg0: i32) -> (i32, i32, i32) {
    %c0_i32 = arith.constant 0 : i32
    %c0_i32_0 = arith.constant 0 : i32
    %c0_i32_1 = arith.constant 0 : i32
    return %arg0, %c0_i32, %c0_i32_0 : i32, i32, i32
  }
}

module attributes {stable_mosaic.version = 11 : i64} {
  func.func @_embed_kernel(%arg0: i32, %arg1: memref<1x64x16xf32, #tpu.memory_space<vmem>>, %arg2: memref<16x32xbf16, #tpu.memory_space<vmem>>, %arg3: memref<1x32xf32, #tpu.memory_space<vmem>>, %arg4: memref<1x32xf32, #tpu.memory_space<vmem>>, %arg5: memref<65x32xf32, #tpu.memory_space<vmem>>, %arg6: memref<1x65x32xbf16, #tpu.memory_space<vmem>>) attributes {dimension_semantics = [#tpu.dimension_semantics<parallel>], iteration_bounds = array<i64: 2>, scalar_prefetch = 0 : i64, scratch_operands = 0 : i64, tpu.core_type = #tpu.core_type<tc>, window_params = [{transform_indices = @transform_0, window_bounds = array<i64: 1, 64, 16>}, {pipeline_mode = #tpu.pipeline_mode<synchronous>, transform_indices = @transform_1, window_bounds = array<i64: 16, 32>}, {pipeline_mode = #tpu.pipeline_mode<synchronous>, transform_indices = @transform_2, window_bounds = array<i64: 1, 32>}, {pipeline_mode = #tpu.pipeline_mode<synchronous>, transform_indices = @transform_3, window_bounds = array<i64: 1, 32>}, {pipeline_mode = #tpu.pipeline_mode<synchronous>, transform_indices = @transform_4, window_bounds = array<i64: 65, 32>}, {transform_indices = @transform_5, window_bounds = array<i64: 1, 65, 32>}]} {
    %c0 = arith.constant 0 : index
    %c0_0 = arith.constant 0 : index
    %c0_1 = arith.constant 0 : index
    %0 = vector.load %arg1[%c0, %c0_0, %c0_1] : memref<1x64x16xf32, #tpu.memory_space<vmem>>, vector<1x64x16xf32>
    %1 = vector.shape_cast %0 : vector<1x64x16xf32> to vector<64x16xf32>
    %2 = arith.truncf %1 : vector<64x16xf32> to vector<64x16xbf16>
    %c0_2 = arith.constant 0 : index
    %c0_3 = arith.constant 0 : index
    %3 = vector.load %arg2[%c0_2, %c0_3] : memref<16x32xbf16, #tpu.memory_space<vmem>>, vector<16x32xbf16>
    %cst = arith.constant dense<0.000000e+00> : vector<64x32xf32>
    %4 = tpu.matmul %2, %3, %cst {dimension_numbers = #tpu.dot_dimension_numbers<[1], [0], [0], [1], [0, 0, 1, 1], [], []>} : vector<64x16xbf16>, vector<16x32xbf16>, vector<64x32xf32> -> vector<64x32xf32>
    %c0_4 = arith.constant 0 : index
    %c0_5 = arith.constant 0 : index
    %5 = vector.load %arg3[%c0_4, %c0_5] : memref<1x32xf32, #tpu.memory_space<vmem>>, vector<1x32xf32>
    %6 = vector.broadcast %5 : vector<1x32xf32> to vector<64x32xf32>
    %7 = arith.addf %4, %6 : vector<64x32xf32>
    %c0_6 = arith.constant 0 : index
    %c0_7 = arith.constant 0 : index
    %8 = vector.load %arg4[%c0_6, %c0_7] : memref<1x32xf32, #tpu.memory_space<vmem>>, vector<1x32xf32>
    %9 = tpu.concatenate %8, %7 in 0 : vector<1x32xf32>, vector<64x32xf32> -> vector<65x32xf32>
    %c0_8 = arith.constant 0 : index
    %c0_9 = arith.constant 0 : index
    %10 = vector.load %arg5[%c0_8, %c0_9] : memref<65x32xf32, #tpu.memory_space<vmem>>, vector<65x32xf32>
    %11 = arith.addf %9, %10 : vector<65x32xf32>
    %12 = arith.truncf %11 : vector<65x32xf32> to vector<65x32xbf16>
    %c0_10 = arith.constant 0 : index
    %c0_11 = arith.constant 0 : index
    %c0_12 = arith.constant 0 : index
    %13 = vector.load %arg6[%c0_10, %c0_11, %c0_12] : memref<1x65x32xbf16, #tpu.memory_space<vmem>>, vector<1x65x32xbf16>
    %14 = vector.shape_cast %13 : vector<1x65x32xbf16> to vector<65x32xbf16>
    %15 = vector.shape_cast %12 : vector<65x32xbf16> to vector<1x65x32xbf16>
    tpu.vector_store %arg6[%c0_10, %c0_11, %c0_12], %15 {strides = array<i32>} : memref<1x65x32xbf16, #tpu.memory_space<vmem>>, vector<1x65x32xbf16>,
    return
  }
  func.func @transform_0(%arg0: i32) -> (i32, i32, i32) {
    %c0_i32 = arith.constant 0 : i32
    %c0_i32_0 = arith.constant 0 : i32
    %c0_i32_1 = arith.constant 0 : i32
    return %arg0, %c0_i32, %c0_i32_0 : i32, i32, i32
  }
  func.func @transform_1(%arg0: i32) -> (i32, i32) {
    %c0_i32 = arith.constant 0 : i32
    %c0_i32_0 = arith.constant 0 : i32
    %c0_i32_1 = arith.constant 0 : i32
    return %c0_i32, %c0_i32_0 : i32, i32
  }
  func.func @transform_2(%arg0: i32) -> (i32, i32) {
    %c0_i32 = arith.constant 0 : i32
    %c0_i32_0 = arith.constant 0 : i32
    %c0_i32_1 = arith.constant 0 : i32
    return %c0_i32, %c0_i32_0 : i32, i32
  }
  func.func @transform_3(%arg0: i32) -> (i32, i32) {
    %c0_i32 = arith.constant 0 : i32
    %c0_i32_0 = arith.constant 0 : i32
    %c0_i32_1 = arith.constant 0 : i32
    return %c0_i32, %c0_i32_0 : i32, i32
  }
  func.func @transform_4(%arg0: i32) -> (i32, i32) {
    %c0_i32 = arith.constant 0 : i32
    %c0_i32_0 = arith.constant 0 : i32
    %c0_i32_1 = arith.constant 0 : i32
    return %c0_i32, %c0_i32_0 : i32, i32
  }
  func.func @transform_5(%arg0: i32) -> (i32, i32, i32) {
    %c0_i32 = arith.constant 0 : i32
    %c0_i32_0 = arith.constant 0 : i32
    %c0_i32_1 = arith.constant 0 : i32
    return %arg0, %c0_i32, %c0_i32_0 : i32, i32, i32
  }
}

module attributes {stable_mosaic.version = 11 : i64} {
  func.func @_final_norm_kernel(%arg0: i32, %arg1: memref<1x65x32xbf16, #tpu.memory_space<vmem>>, %arg2: memref<1x32xf32, #tpu.memory_space<vmem>>, %arg3: memref<1x32xf32, #tpu.memory_space<vmem>>, %arg4: memref<1x64x32xf32, #tpu.memory_space<vmem>>) attributes {dimension_semantics = [#tpu.dimension_semantics<parallel>], iteration_bounds = array<i64: 2>, scalar_prefetch = 0 : i64, scratch_operands = 0 : i64, tpu.core_type = #tpu.core_type<tc>, window_params = [{transform_indices = @transform_0, window_bounds = array<i64: 1, 65, 32>}, {pipeline_mode = #tpu.pipeline_mode<synchronous>, transform_indices = @transform_1, window_bounds = array<i64: 1, 32>}, {pipeline_mode = #tpu.pipeline_mode<synchronous>, transform_indices = @transform_2, window_bounds = array<i64: 1, 32>}, {transform_indices = @transform_3, window_bounds = array<i64: 1, 64, 32>}]} {
    %c0 = arith.constant 0 : index
    %c0_0 = arith.constant 0 : index
    %c0_1 = arith.constant 0 : index
    %0 = vector.load %arg1[%c0, %c0_0, %c0_1] : memref<1x65x32xbf16, #tpu.memory_space<vmem>>, vector<1x65x32xbf16>
    %1 = vector.shape_cast %0 : vector<1x65x32xbf16> to vector<65x32xbf16>
    %2 = arith.extf %1 : vector<65x32xbf16> to vector<65x32xf32>
    %3 = vector.extract_strided_slice %2 {offsets = [1, 0], sizes = [64, 32], strides = [1, 1]} : vector<65x32xf32> to vector<64x32xf32>
    %c0_2 = arith.constant 0 : index
    %c0_3 = arith.constant 0 : index
    %4 = vector.load %arg2[%c0_2, %c0_3] : memref<1x32xf32, #tpu.memory_space<vmem>>, vector<1x32xf32>
    %c0_4 = arith.constant 0 : index
    %c0_5 = arith.constant 0 : index
    %5 = vector.load %arg3[%c0_4, %c0_5] : memref<1x32xf32, #tpu.memory_space<vmem>>, vector<1x32xf32>
    %cst = arith.constant dense<0.000000e+00> : vector<64xf32>
    %6 = vector.multi_reduction <add>, %3, %cst [1] : vector<64x32xf32> to vector<64xf32>
    %7 = vector.shape_cast %6 : vector<64xf32> to vector<64x1xf32>
    %cst_6 = arith.constant 3.200000e+01 : f32
    %8 = vector.broadcast %cst_6 : f32 to vector<64x1xf32>
    %9 = arith.divf %7, %8 : vector<64x1xf32>
    %10 = vector.broadcast %9 : vector<64x1xf32> to vector<64x32xf32>
    %11 = arith.subf %3, %10 : vector<64x32xf32>
    %12 = arith.mulf %11, %11 : vector<64x32xf32>
    %cst_7 = arith.constant dense<0.000000e+00> : vector<64xf32>
    %13 = vector.multi_reduction <add>, %12, %cst_7 [1] : vector<64x32xf32> to vector<64xf32>
    %14 = vector.shape_cast %13 : vector<64xf32> to vector<64x1xf32>
    %cst_8 = arith.constant 3.200000e+01 : f32
    %15 = vector.broadcast %cst_8 : f32 to vector<64x1xf32>
    %16 = arith.divf %14, %15 : vector<64x1xf32>
    %cst_9 = arith.constant 9.99999974E-6 : f32
    %17 = vector.broadcast %cst_9 : f32 to vector<64x1xf32>
    %18 = arith.addf %16, %17 : vector<64x1xf32>
    %19 = math.rsqrt %18 : vector<64x1xf32>
    %20 = vector.broadcast %19 : vector<64x1xf32> to vector<64x32xf32>
    %21 = arith.mulf %11, %20 : vector<64x32xf32>
    %22 = vector.broadcast %4 : vector<1x32xf32> to vector<64x32xf32>
    %23 = arith.mulf %21, %22 : vector<64x32xf32>
    %24 = vector.broadcast %5 : vector<1x32xf32> to vector<64x32xf32>
    %25 = arith.addf %23, %24 : vector<64x32xf32>
    %c0_10 = arith.constant 0 : index
    %c0_11 = arith.constant 0 : index
    %c0_12 = arith.constant 0 : index
    %26 = vector.load %arg4[%c0_10, %c0_11, %c0_12] : memref<1x64x32xf32, #tpu.memory_space<vmem>>, vector<1x64x32xf32>
    %27 = vector.shape_cast %26 : vector<1x64x32xf32> to vector<64x32xf32>
    %28 = vector.shape_cast %25 : vector<64x32xf32> to vector<1x64x32xf32>
    tpu.vector_store %arg4[%c0_10, %c0_11, %c0_12], %28 {strides = array<i32>} : memref<1x64x32xf32, #tpu.memory_space<vmem>>, vector<1x64x32xf32>,
    return
  }
  func.func @transform_0(%arg0: i32) -> (i32, i32, i32) {
    %c0_i32 = arith.constant 0 : i32
    %c0_i32_0 = arith.constant 0 : i32
    %c0_i32_1 = arith.constant 0 : i32
    return %arg0, %c0_i32, %c0_i32_0 : i32, i32, i32
  }
  func.func @transform_1(%arg0: i32) -> (i32, i32) {
    %c0_i32 = arith.constant 0 : i32
    %c0_i32_0 = arith.constant 0 : i32
    %c0_i32_1 = arith.constant 0 : i32
    return %c0_i32, %c0_i32_0 : i32, i32
  }
  func.func @transform_2(%arg0: i32) -> (i32, i32) {
    %c0_i32 = arith.constant 0 : i32
    %c0_i32_0 = arith.constant 0 : i32
    %c0_i32_1 = arith.constant 0 : i32
    return %c0_i32, %c0_i32_0 : i32, i32
  }
  func.func @transform_3(%arg0: i32) -> (i32, i32, i32) {
    %c0_i32 = arith.constant 0 : i32
    %c0_i32_0 = arith.constant 0 : i32
    %c0_i32_1 = arith.constant 0 : i32
    return %arg0, %c0_i32, %c0_i32_0 : i32, i32, i32
  }
}

module attributes {stable_mosaic.version = 11 : i64} {
  func.func @_dec_block_kernel(%arg0: i32, %arg1: memref<1x4x32xbf16, #tpu.memory_space<vmem>>, %arg2: memref<1x64x32xf32, #tpu.memory_space<vmem>>, %arg3: memref<1x32xf32, #tpu.memory_space<vmem>>, %arg4: memref<1x32xf32, #tpu.memory_space<vmem>>, %arg5: memref<1x32xf32, #tpu.memory_space<vmem>>, %arg6: memref<1x32xf32, #tpu.memory_space<vmem>>, %arg7: memref<32x32xbf16, #tpu.memory_space<vmem>>, %arg8: memref<1x32xf32, #tpu.memory_space<vmem>>, %arg9: memref<32x64xbf16, #tpu.memory_space<vmem>>, %arg10: memref<1x64xf32, #tpu.memory_space<vmem>>, %arg11: memref<32x32xbf16, #tpu.memory_space<vmem>>, %arg12: memref<1x32xf32, #tpu.memory_space<vmem>>, %arg13: memref<1x32xf32, #tpu.memory_space<vmem>>, %arg14: memref<1x32xf32, #tpu.memory_space<vmem>>, %arg15: memref<32x64xbf16, #tpu.memory_space<vmem>>, %arg16: memref<1x64xf32, #tpu.memory_space<vmem>>, %arg17: memref<64x32xbf16, #tpu.memory_space<vmem>>, %arg18: memref<1x32xf32, #tpu.memory_space<vmem>>, %arg19: memref<1x64xf32, #tpu.memory_space<vmem>>, %arg20: memref<1x64xf32, #tpu.memory_space<vmem>>, %arg21: memref<64x192xbf16, #tpu.memory_space<vmem>>, %arg22: memref<1x192xf32, #tpu.memory_space<vmem>>, %arg23: memref<192x64xbf16, #tpu.memory_space<vmem>>, %arg24: memref<1x64xf32, #tpu.memory_space<vmem>>, %arg25: memref<1x4x256xf32, #tpu.memory_space<vmem>>, %arg26: memref<1x4x32xbf16, #tpu.memory_space<vmem>>) attributes {dimension_semantics = [#tpu.dimension_semantics<parallel>], iteration_bounds = array<i64: 2>, scalar_prefetch = 0 : i64, scratch_operands = 0 : i64, tpu.core_type = #tpu.core_type<tc>, window_params = [{transform_indices = @transform_0, window_bounds = array<i64: 1, 4, 32>}, {transform_indices = @transform_1, window_bounds = array<i64: 1, 64, 32>}, {pipeline_mode = #tpu.pipeline_mode<synchronous>, transform_indices = @transform_2, window_bounds = array<i64: 1, 32>}, {pipeline_mode = #tpu.pipeline_mode<synchronous>, transform_indices = @transform_3, window_bounds = array<i64: 1, 32>}, {pipeline_mode = #tpu.pipeline_mode<synchronous>, transform_indices = @transform_4, window_bounds = array<i64: 1, 32>}, {pipeline_mode = #tpu.pipeline_mode<synchronous>, transform_indices = @transform_5, window_bounds = array<i64: 1, 32>}, {pipeline_mode = #tpu.pipeline_mode<synchronous>, transform_indices = @transform_6, window_bounds = array<i64: 32, 32>}, {pipeline_mode = #tpu.pipeline_mode<synchronous>, transform_indices = @transform_7, window_bounds = array<i64: 1, 32>}, {pipeline_mode = #tpu.pipeline_mode<synchronous>, transform_indices = @transform_8, window_bounds = array<i64: 32, 64>}, {pipeline_mode = #tpu.pipeline_mode<synchronous>, transform_indices = @transform_9, window_bounds = array<i64: 1, 64>}, {pipeline_mode = #tpu.pipeline_mode<synchronous>, transform_indices = @transform_10, window_bounds = array<i64: 32, 32>}, {pipeline_mode = #tpu.pipeline_mode<synchronous>, transform_indices = @transform_11, window_bounds = array<i64: 1, 32>}, {pipeline_mode = #tpu.pipeline_mode<synchronous>, transform_indices = @transform_12, window_bounds = array<i64: 1, 32>}, {pipeline_mode = #tpu.pipeline_mode<synchronous>, transform_indices = @transform_13, window_bounds = array<i64: 1, 32>}, {pipeline_mode = #tpu.pipeline_mode<synchronous>, transform_indices = @transform_14, window_bounds = array<i64: 32, 64>}, {pipeline_mode = #tpu.pipeline_mode<synchronous>, transform_indices = @transform_15, window_bounds = array<i64: 1, 64>}, {pipeline_mode = #tpu.pipeline_mode<synchronous>, transform_indices = @transform_16, window_bounds = array<i64: 64, 32>}, {pipeline_mode = #tpu.pipeline_mode<synchronous>, transform_indices = @transform_17, window_bounds = array<i64: 1, 32>}, {pipeline_mode = #tpu.pipeline_mode<synchronous>, transform_indices = @transform_18, window_bounds = array<i64: 1, 64>}, {pipeline_mode = #tpu.pipeline_mode<synchronous>, transform_indices = @transform_19, window_bounds = array<i64: 1, 64>}, {pipeline_mode = #tpu.pipeline_mode<synchronous>, transform_indices = @transform_20, window_bounds = array<i64: 64, 192>}, {pipeline_mode = #tpu.pipeline_mode<synchronous>, transform_indices = @transform_21, window_bounds = array<i64: 1, 192>}, {pipeline_mode = #tpu.pipeline_mode<synchronous>, transform_indices = @transform_22, window_bounds = array<i64: 192, 64>}, {pipeline_mode = #tpu.pipeline_mode<synchronous>, transform_indices = @transform_23, window_bounds = array<i64: 1, 64>}, {transform_indices = @transform_24, window_bounds = array<i64: 1, 4, 256>}, {transform_indices = @transform_25, window_bounds = array<i64: 1, 4, 32>}]} {
    %c0 = arith.constant 0 : index
    %c0_0 = arith.constant 0 : index
    %c0_1 = arith.constant 0 : index
    %0 = vector.load %arg1[%c0, %c0_0, %c0_1] : memref<1x4x32xbf16, #tpu.memory_space<vmem>>, vector<1x4x32xbf16>
    %1 = vector.shape_cast %0 : vector<1x4x32xbf16> to vector<4x32xbf16>
    %2 = arith.extf %1 : vector<4x32xbf16> to vector<4x32xf32>
    %c0_2 = arith.constant 0 : index
    %c0_3 = arith.constant 0 : index
    %c0_4 = arith.constant 0 : index
    %3 = vector.load %arg2[%c0_2, %c0_3, %c0_4] : memref<1x64x32xf32, #tpu.memory_space<vmem>>, vector<1x64x32xf32>
    %4 = vector.shape_cast %3 : vector<1x64x32xf32> to vector<64x32xf32>
    %c0_5 = arith.constant 0 : index
    %c0_6 = arith.constant 0 : index
    %5 = vector.load %arg3[%c0_5, %c0_6] : memref<1x32xf32, #tpu.memory_space<vmem>>, vector<1x32xf32>
    %c0_7 = arith.constant 0 : index
    %c0_8 = arith.constant 0 : index
    %6 = vector.load %arg4[%c0_7, %c0_8] : memref<1x32xf32, #tpu.memory_space<vmem>>, vector<1x32xf32>
    %cst = arith.constant dense<0.000000e+00> : vector<4xf32>
    %7 = vector.multi_reduction <add>, %2, %cst [1] : vector<4x32xf32> to vector<4xf32>
    %8 = vector.shape_cast %7 : vector<4xf32> to vector<4x1xf32>
    %cst_9 = arith.constant 3.200000e+01 : f32
    %9 = vector.broadcast %cst_9 : f32 to vector<4x1xf32>
    %10 = arith.divf %8, %9 : vector<4x1xf32>
    %11 = vector.broadcast %10 : vector<4x1xf32> to vector<4x32xf32>
    %12 = arith.subf %2, %11 : vector<4x32xf32>
    %13 = arith.mulf %12, %12 : vector<4x32xf32>
    %cst_10 = arith.constant dense<0.000000e+00> : vector<4xf32>
    %14 = vector.multi_reduction <add>, %13, %cst_10 [1] : vector<4x32xf32> to vector<4xf32>
    %15 = vector.shape_cast %14 : vector<4xf32> to vector<4x1xf32>
    %cst_11 = arith.constant 3.200000e+01 : f32
    %16 = vector.broadcast %cst_11 : f32 to vector<4x1xf32>
    %17 = arith.divf %15, %16 : vector<4x1xf32>
    %cst_12 = arith.constant 9.99999974E-6 : f32
    %18 = vector.broadcast %cst_12 : f32 to vector<4x1xf32>
    %19 = arith.addf %17, %18 : vector<4x1xf32>
    %20 = math.rsqrt %19 : vector<4x1xf32>
    %21 = vector.broadcast %20 : vector<4x1xf32> to vector<4x32xf32>
    %22 = arith.mulf %12, %21 : vector<4x32xf32>
    %23 = vector.broadcast %5 : vector<1x32xf32> to vector<4x32xf32>
    %24 = arith.mulf %22, %23 : vector<4x32xf32>
    %25 = vector.broadcast %6 : vector<1x32xf32> to vector<4x32xf32>
    %26 = arith.addf %24, %25 : vector<4x32xf32>
    %c0_13 = arith.constant 0 : index
    %c0_14 = arith.constant 0 : index
    %27 = vector.load %arg5[%c0_13, %c0_14] : memref<1x32xf32, #tpu.memory_space<vmem>>, vector<1x32xf32>
    %c0_15 = arith.constant 0 : index
    %c0_16 = arith.constant 0 : index
    %28 = vector.load %arg6[%c0_15, %c0_16] : memref<1x32xf32, #tpu.memory_space<vmem>>, vector<1x32xf32>
    %cst_17 = arith.constant dense<0.000000e+00> : vector<64xf32>
    %29 = vector.multi_reduction <add>, %4, %cst_17 [1] : vector<64x32xf32> to vector<64xf32>
    %30 = vector.shape_cast %29 : vector<64xf32> to vector<64x1xf32>
    %cst_18 = arith.constant 3.200000e+01 : f32
    %31 = vector.broadcast %cst_18 : f32 to vector<64x1xf32>
    %32 = arith.divf %30, %31 : vector<64x1xf32>
    %33 = vector.broadcast %32 : vector<64x1xf32> to vector<64x32xf32>
    %34 = arith.subf %4, %33 : vector<64x32xf32>
    %35 = arith.mulf %34, %34 : vector<64x32xf32>
    %cst_19 = arith.constant dense<0.000000e+00> : vector<64xf32>
    %36 = vector.multi_reduction <add>, %35, %cst_19 [1] : vector<64x32xf32> to vector<64xf32>
    %37 = vector.shape_cast %36 : vector<64xf32> to vector<64x1xf32>
    %cst_20 = arith.constant 3.200000e+01 : f32
    %38 = vector.broadcast %cst_20 : f32 to vector<64x1xf32>
    %39 = arith.divf %37, %38 : vector<64x1xf32>
    %cst_21 = arith.constant 9.99999974E-6 : f32
    %40 = vector.broadcast %cst_21 : f32 to vector<64x1xf32>
    %41 = arith.addf %39, %40 : vector<64x1xf32>
    %42 = math.rsqrt %41 : vector<64x1xf32>
    %43 = vector.broadcast %42 : vector<64x1xf32> to vector<64x32xf32>
    %44 = arith.mulf %34, %43 : vector<64x32xf32>
    %45 = vector.broadcast %27 : vector<1x32xf32> to vector<64x32xf32>
    %46 = arith.mulf %44, %45 : vector<64x32xf32>
    %47 = vector.broadcast %28 : vector<1x32xf32> to vector<64x32xf32>
    %48 = arith.addf %46, %47 : vector<64x32xf32>
    %49 = arith.truncf %26 : vector<4x32xf32> to vector<4x32xbf16>
    %c0_22 = arith.constant 0 : index
    %c0_23 = arith.constant 0 : index
    %50 = vector.load %arg7[%c0_22, %c0_23] : memref<32x32xbf16, #tpu.memory_space<vmem>>, vector<32x32xbf16>
    %cst_24 = arith.constant dense<0.000000e+00> : vector<4x32xf32>
    %51 = tpu.matmul %49, %50, %cst_24 {dimension_numbers = #tpu.dot_dimension_numbers<[1], [0], [0], [1], [0, 0, 1, 1], [], []>} : vector<4x32xbf16>, vector<32x32xbf16>, vector<4x32xf32> -> vector<4x32xf32>
    %c0_25 = arith.constant 0 : index
    %c0_26 = arith.constant 0 : index
    %52 = vector.load %arg8[%c0_25, %c0_26] : memref<1x32xf32, #tpu.memory_space<vmem>>, vector<1x32xf32>
    %53 = vector.broadcast %52 : vector<1x32xf32> to vector<4x32xf32>
    %54 = arith.addf %51, %53 : vector<4x32xf32>
    %55 = arith.truncf %48 : vector<64x32xf32> to vector<64x32xbf16>
    %c0_27 = arith.constant 0 : index
    %c0_28 = arith.constant 0 : index
    %56 = vector.load %arg9[%c0_27, %c0_28] : memref<32x64xbf16, #tpu.memory_space<vmem>>, vector<32x64xbf16>
    %cst_29 = arith.constant dense<0.000000e+00> : vector<64x64xf32>
    %57 = tpu.matmul %55, %56, %cst_29 {dimension_numbers = #tpu.dot_dimension_numbers<[1], [0], [0], [1], [0, 0, 1, 1], [], []>} : vector<64x32xbf16>, vector<32x64xbf16>, vector<64x64xf32> -> vector<64x64xf32>
    %c0_30 = arith.constant 0 : index
    %c0_31 = arith.constant 0 : index
    %58 = vector.load %arg10[%c0_30, %c0_31] : memref<1x64xf32, #tpu.memory_space<vmem>>, vector<1x64xf32>
    %59 = vector.broadcast %58 : vector<1x64xf32> to vector<64x64xf32>
    %60 = arith.addf %57, %59 : vector<64x64xf32>
    %cst_32 = arith.constant 0.353553385 : f32
    %61 = vector.broadcast %cst_32 : f32 to vector<4x32xf32>
    %62 = arith.mulf %54, %61 : vector<4x32xf32>
    %63 = arith.truncf %62 : vector<4x32xf32> to vector<4x32xbf16>
    %64 = arith.truncf %60 : vector<64x64xf32> to vector<64x64xbf16>
    %c0_33 = arith.constant 0 : index
    %c0_34 = arith.constant 0 : index
    %65 = vector.load %arg19[%c0_33, %c0_34] : memref<1x64xf32, #tpu.memory_space<vmem>>, vector<1x64xf32>
    %c0_35 = arith.constant 0 : index
    %c0_36 = arith.constant 0 : index
    %66 = vector.load %arg20[%c0_35, %c0_36] : memref<1x64xf32, #tpu.memory_space<vmem>>, vector<1x64xf32>
    %c0_37 = arith.constant 0 : index
    %c0_38 = arith.constant 0 : index
    %67 = vector.load %arg22[%c0_37, %c0_38] : memref<1x192xf32, #tpu.memory_space<vmem>>, vector<1x192xf32>
    %c0_39 = arith.constant 0 : index
    %c0_40 = arith.constant 0 : index
    %68 = vector.load %arg24[%c0_39, %c0_40] : memref<1x64xf32, #tpu.memory_space<vmem>>, vector<1x64xf32>
    %69 = vector.extract_strided_slice %63 {offsets = [0, 0], sizes = [4, 8], strides = [1, 1]} : vector<4x32xbf16> to vector<4x8xbf16>
    %70 = vector.extract_strided_slice %64 {offsets = [0, 0], sizes = [64, 8], strides = [1, 1]} : vector<64x64xbf16> to vector<64x8xbf16>
    %71 = vector.extract_strided_slice %64 {offsets = [0, 32], sizes = [64, 8], strides = [1, 1]} : vector<64x64xbf16> to vector<64x8xbf16>
    %cst_41 = arith.constant dense<0.000000e+00> : vector<4x64xf32>
    %72 = tpu.matmul %69, %70, %cst_41 {dimension_numbers = #tpu.dot_dimension_numbers<[1], [1], [0], [0], [0, 0, 1, 0], [], []>} : vector<4x8xbf16>, vector<64x8xbf16>, vector<4x64xf32> -> vector<4x64xf32>
    %cst_42 = arith.constant dense<0xFF800000> : vector<4xf32>
    %73 = vector.multi_reduction <maximumf>, %72, %cst_42 [1] : vector<4x64xf32> to vector<4xf32>
    %74 = vector.shape_cast %73 : vector<4xf32> to vector<4x1xf32>
    %75 = vector.broadcast %74 : vector<4x1xf32> to vector<4x64xf32>
    %76 = arith.subf %72, %75 : vector<4x64xf32>
    %77 = math.exp %76 : vector<4x64xf32>
    %cst_43 = arith.constant dense<0.000000e+00> : vector<4xf32>
    %78 = vector.multi_reduction <add>, %77, %cst_43 [1] : vector<4x64xf32> to vector<4xf32>
    %79 = vector.shape_cast %78 : vector<4xf32> to vector<4x1xf32>
    %80 = tpu.reciprocal %79 {approx = true} : vector<4x1xf32> -> vector<4x1xf32>
    %81 = vector.broadcast %80 : vector<4x1xf32> to vector<4x64xf32>
    %82 = arith.mulf %77, %81 : vector<4x64xf32>
    %cst_44 = arith.constant dense<0.000000e+00> : vector<4xf32>
    %83 = vector.multi_reduction <add>, %82, %cst_44 [1] : vector<4x64xf32> to vector<4xf32>
    %84 = vector.shape_cast %83 : vector<4xf32> to vector<4x1xf32>
    %cst_45 = arith.constant 6.400000e+01 : f32
    %85 = vector.broadcast %cst_45 : f32 to vector<4x1xf32>
    %86 = arith.divf %84, %85 : vector<4x1xf32>
    %87 = vector.broadcast %86 : vector<4x1xf32> to vector<4x64xf32>
    %88 = arith.subf %82, %87 : vector<4x64xf32>
    %89 = arith.mulf %88, %88 : vector<4x64xf32>
    %cst_46 = arith.constant dense<0.000000e+00> : vector<4xf32>
    %90 = vector.multi_reduction <add>, %89, %cst_46 [1] : vector<4x64xf32> to vector<4xf32>
    %91 = vector.shape_cast %90 : vector<4xf32> to vector<4x1xf32>
    %cst_47 = arith.constant 6.400000e+01 : f32
    %92 = vector.broadcast %cst_47 : f32 to vector<4x1xf32>
    %93 = arith.divf %91, %92 : vector<4x1xf32>
    %cst_48 = arith.constant 9.99999974E-6 : f32
    %94 = vector.broadcast %cst_48 : f32 to vector<4x1xf32>
    %95 = arith.addf %93, %94 : vector<4x1xf32>
    %96 = math.rsqrt %95 : vector<4x1xf32>
    %97 = vector.broadcast %96 : vector<4x1xf32> to vector<4x64xf32>
    %98 = arith.mulf %88, %97 : vector<4x64xf32>
    %99 = vector.broadcast %65 : vector<1x64xf32> to vector<4x64xf32>
    %100 = arith.mulf %98, %99 : vector<4x64xf32>
    %101 = vector.broadcast %66 : vector<1x64xf32> to vector<4x64xf32>
    %102 = arith.addf %100, %101 : vector<4x64xf32>
    %103 = arith.truncf %102 : vector<4x64xf32> to vector<4x64xbf16>
    %c0_49 = arith.constant 0 : index
    %c0_50 = arith.constant 0 : index
    %104 = vector.load %arg21[%c0_49, %c0_50] : memref<64x192xbf16, #tpu.memory_space<vmem>>, vector<64x192xbf16>
    %cst_51 = arith.constant dense<0.000000e+00> : vector<4x192xf32>
    %105 = tpu.matmul %103, %104, %cst_51 {dimension_numbers = #tpu.dot_dimension_numbers<[1], [0], [0], [1], [0, 0, 1, 1], [], []>} : vector<4x64xbf16>, vector<64x192xbf16>, vector<4x192xf32> -> vector<4x192xf32>
    %106 = vector.broadcast %67 : vector<1x192xf32> to vector<4x192xf32>
    %107 = arith.addf %105, %106 : vector<4x192xf32>
    %cst_52 = arith.constant 5.000000e-01 : f32
    %108 = vector.broadcast %cst_52 : f32 to vector<4x192xf32>
    %109 = arith.mulf %108, %107 : vector<4x192xf32>
    %cst_53 = arith.constant 4.471500e-02 : f32
    %110 = vector.broadcast %cst_53 : f32 to vector<4x192xf32>
    %111 = arith.mulf %110, %107 : vector<4x192xf32>
    %112 = arith.mulf %111, %107 : vector<4x192xf32>
    %113 = arith.mulf %112, %107 : vector<4x192xf32>
    %114 = arith.addf %107, %113 : vector<4x192xf32>
    %cst_54 = arith.constant 0.797884583 : f32
    %115 = vector.broadcast %cst_54 : f32 to vector<4x192xf32>
    %116 = arith.mulf %115, %114 : vector<4x192xf32>
    %117 = math.tanh %116 : vector<4x192xf32>
    %cst_55 = arith.constant 1.000000e+00 : f32
    %118 = vector.broadcast %cst_55 : f32 to vector<4x192xf32>
    %119 = arith.addf %118, %117 : vector<4x192xf32>
    %120 = arith.mulf %109, %119 : vector<4x192xf32>
    %121 = arith.truncf %120 : vector<4x192xf32> to vector<4x192xbf16>
    %c0_56 = arith.constant 0 : index
    %c0_57 = arith.constant 0 : index
    %122 = vector.load %arg23[%c0_56, %c0_57] : memref<192x64xbf16, #tpu.memory_space<vmem>>, vector<192x64xbf16>
    %cst_58 = arith.constant dense<0.000000e+00> : vector<4x64xf32>
    %123 = tpu.matmul %121, %122, %cst_58 {dimension_numbers = #tpu.dot_dimension_numbers<[1], [0], [0], [1], [0, 0, 1, 1], [], []>} : vector<4x192xbf16>, vector<192x64xbf16>, vector<4x64xf32> -> vector<4x64xf32>
    %124 = arith.addf %82, %123 : vector<4x64xf32>
    %125 = vector.broadcast %68 : vector<1x64xf32> to vector<4x64xf32>
    %126 = arith.addf %124, %125 : vector<4x64xf32>
    %c0_59 = arith.constant 0 : index
    %c0_60 = arith.constant 0 : index
    %c0_61 = arith.constant 0 : index
    %127 = vector.load %arg25[%c0_59, %c0_60, %c0_61] : memref<1x4x256xf32, #tpu.memory_space<vmem>>, vector<1x4x64xf32>
    %128 = vector.shape_cast %127 : vector<1x4x64xf32> to vector<4x64xf32>
    %129 = vector.shape_cast %126 : vector<4x64xf32> to vector<1x4x64xf32>
    tpu.vector_store %arg25[%c0_59, %c0_60, %c0_61], %129 {strides = array<i32>} : memref<1x4x256xf32, #tpu.memory_space<vmem>>, vector<1x4x64xf32>,
    %130 = arith.truncf %82 : vector<4x64xf32> to vector<4x64xbf16>
    %cst_62 = arith.constant dense<0.000000e+00> : vector<4x8xf32>
    %131 = tpu.matmul %130, %71, %cst_62 {dimension_numbers = #tpu.dot_dimension_numbers<[1], [0], [0], [1], [0, 0, 1, 1], [], []>} : vector<4x64xbf16>, vector<64x8xbf16>, vector<4x8xf32> -> vector<4x8xf32>
    %132 = arith.truncf %131 : vector<4x8xf32> to vector<4x8xbf16>
    %c0_63 = arith.constant 0 : index
    %c0_64 = arith.constant 0 : index
    %133 = vector.load %arg11[%c0_63, %c0_64] : memref<32x32xbf16, #tpu.memory_space<vmem>>, vector<8x32xbf16>
    %cst_65 = arith.constant dense<0.000000e+00> : vector<4x32xf32>
    %134 = tpu.matmul %132, %133, %cst_65 {dimension_numbers = #tpu.dot_dimension_numbers<[1], [0], [0], [1], [0, 0, 1, 1], [], []>} : vector<4x8xbf16>, vector<8x32xbf16>, vector<4x32xf32> -> vector<4x32xf32>
    %135 = arith.addf %2, %134 : vector<4x32xf32>
    %136 = vector.extract_strided_slice %63 {offsets = [0, 8], sizes = [4, 8], strides = [1, 1]} : vector<4x32xbf16> to vector<4x8xbf16>
    %137 = vector.extract_strided_slice %64 {offsets = [0, 8], sizes = [64, 8], strides = [1, 1]} : vector<64x64xbf16> to vector<64x8xbf16>
    %138 = vector.extract_strided_slice %64 {offsets = [0, 40], sizes = [64, 8], strides = [1, 1]} : vector<64x64xbf16> to vector<64x8xbf16>
    %cst_66 = arith.constant dense<0.000000e+00> : vector<4x64xf32>
    %139 = tpu.matmul %136, %137, %cst_66 {dimension_numbers = #tpu.dot_dimension_numbers<[1], [1], [0], [0], [0, 0, 1, 0], [], []>} : vector<4x8xbf16>, vector<64x8xbf16>, vector<4x64xf32> -> vector<4x64xf32>
    %cst_67 = arith.constant dense<0xFF800000> : vector<4xf32>
    %140 = vector.multi_reduction <maximumf>, %139, %cst_67 [1] : vector<4x64xf32> to vector<4xf32>
    %141 = vector.shape_cast %140 : vector<4xf32> to vector<4x1xf32>
    %142 = vector.broadcast %141 : vector<4x1xf32> to vector<4x64xf32>
    %143 = arith.subf %139, %142 : vector<4x64xf32>
    %144 = math.exp %143 : vector<4x64xf32>
    %cst_68 = arith.constant dense<0.000000e+00> : vector<4xf32>
    %145 = vector.multi_reduction <add>, %144, %cst_68 [1] : vector<4x64xf32> to vector<4xf32>
    %146 = vector.shape_cast %145 : vector<4xf32> to vector<4x1xf32>
    %147 = tpu.reciprocal %146 {approx = true} : vector<4x1xf32> -> vector<4x1xf32>
    %148 = vector.broadcast %147 : vector<4x1xf32> to vector<4x64xf32>
    %149 = arith.mulf %144, %148 : vector<4x64xf32>
    %cst_69 = arith.constant dense<0.000000e+00> : vector<4xf32>
    %150 = vector.multi_reduction <add>, %149, %cst_69 [1] : vector<4x64xf32> to vector<4xf32>
    %151 = vector.shape_cast %150 : vector<4xf32> to vector<4x1xf32>
    %cst_70 = arith.constant 6.400000e+01 : f32
    %152 = vector.broadcast %cst_70 : f32 to vector<4x1xf32>
    %153 = arith.divf %151, %152 : vector<4x1xf32>
    %154 = vector.broadcast %153 : vector<4x1xf32> to vector<4x64xf32>
    %155 = arith.subf %149, %154 : vector<4x64xf32>
    %156 = arith.mulf %155, %155 : vector<4x64xf32>
    %cst_71 = arith.constant dense<0.000000e+00> : vector<4xf32>
    %157 = vector.multi_reduction <add>, %156, %cst_71 [1] : vector<4x64xf32> to vector<4xf32>
    %158 = vector.shape_cast %157 : vector<4xf32> to vector<4x1xf32>
    %cst_72 = arith.constant 6.400000e+01 : f32
    %159 = vector.broadcast %cst_72 : f32 to vector<4x1xf32>
    %160 = arith.divf %158, %159 : vector<4x1xf32>
    %cst_73 = arith.constant 9.99999974E-6 : f32
    %161 = vector.broadcast %cst_73 : f32 to vector<4x1xf32>
    %162 = arith.addf %160, %161 : vector<4x1xf32>
    %163 = math.rsqrt %162 : vector<4x1xf32>
    %164 = vector.broadcast %163 : vector<4x1xf32> to vector<4x64xf32>
    %165 = arith.mulf %155, %164 : vector<4x64xf32>
    %166 = vector.broadcast %65 : vector<1x64xf32> to vector<4x64xf32>
    %167 = arith.mulf %165, %166 : vector<4x64xf32>
    %168 = vector.broadcast %66 : vector<1x64xf32> to vector<4x64xf32>
    %169 = arith.addf %167, %168 : vector<4x64xf32>
    %170 = arith.truncf %169 : vector<4x64xf32> to vector<4x64xbf16>
    %c0_74 = arith.constant 0 : index
    %c0_75 = arith.constant 0 : index
    %171 = vector.load %arg21[%c0_74, %c0_75] : memref<64x192xbf16, #tpu.memory_space<vmem>>, vector<64x192xbf16>
    %cst_76 = arith.constant dense<0.000000e+00> : vector<4x192xf32>
    %172 = tpu.matmul %170, %171, %cst_76 {dimension_numbers = #tpu.dot_dimension_numbers<[1], [0], [0], [1], [0, 0, 1, 1], [], []>} : vector<4x64xbf16>, vector<64x192xbf16>, vector<4x192xf32> -> vector<4x192xf32>
    %173 = vector.broadcast %67 : vector<1x192xf32> to vector<4x192xf32>
    %174 = arith.addf %172, %173 : vector<4x192xf32>
    %cst_77 = arith.constant 5.000000e-01 : f32
    %175 = vector.broadcast %cst_77 : f32 to vector<4x192xf32>
    %176 = arith.mulf %175, %174 : vector<4x192xf32>
    %cst_78 = arith.constant 4.471500e-02 : f32
    %177 = vector.broadcast %cst_78 : f32 to vector<4x192xf32>
    %178 = arith.mulf %177, %174 : vector<4x192xf32>
    %179 = arith.mulf %178, %174 : vector<4x192xf32>
    %180 = arith.mulf %179, %174 : vector<4x192xf32>
    %181 = arith.addf %174, %180 : vector<4x192xf32>
    %cst_79 = arith.constant 0.797884583 : f32
    %182 = vector.broadcast %cst_79 : f32 to vector<4x192xf32>
    %183 = arith.mulf %182, %181 : vector<4x192xf32>
    %184 = math.tanh %183 : vector<4x192xf32>
    %cst_80 = arith.constant 1.000000e+00 : f32
    %185 = vector.broadcast %cst_80 : f32 to vector<4x192xf32>
    %186 = arith.addf %185, %184 : vector<4x192xf32>
    %187 = arith.mulf %176, %186 : vector<4x192xf32>
    %188 = arith.truncf %187 : vector<4x192xf32> to vector<4x192xbf16>
    %c0_81 = arith.constant 0 : index
    %c0_82 = arith.constant 0 : index
    %189 = vector.load %arg23[%c0_81, %c0_82] : memref<192x64xbf16, #tpu.memory_space<vmem>>, vector<192x64xbf16>
    %cst_83 = arith.constant dense<0.000000e+00> : vector<4x64xf32>
    %190 = tpu.matmul %188, %189, %cst_83 {dimension_numbers = #tpu.dot_dimension_numbers<[1], [0], [0], [1], [0, 0, 1, 1], [], []>} : vector<4x192xbf16>, vector<192x64xbf16>, vector<4x64xf32> -> vector<4x64xf32>
    %191 = arith.addf %149, %190 : vector<4x64xf32>
    %192 = vector.broadcast %68 : vector<1x64xf32> to vector<4x64xf32>
    %193 = arith.addf %191, %192 : vector<4x64xf32>
    %c0_84 = arith.constant 0 : index
    %c0_85 = arith.constant 0 : index
    %c64 = arith.constant 64 : index
    %194 = vector.load %arg25[%c0_84, %c0_85, %c64] : memref<1x4x256xf32, #tpu.memory_space<vmem>>, vector<1x4x64xf32>
    %195 = vector.shape_cast %194 : vector<1x4x64xf32> to vector<4x64xf32>
    %196 = vector.shape_cast %193 : vector<4x64xf32> to vector<1x4x64xf32>
    tpu.vector_store %arg25[%c0_84, %c0_85, %c64], %196 {strides = array<i32>} : memref<1x4x256xf32, #tpu.memory_space<vmem>>, vector<1x4x64xf32>,
    %197 = arith.truncf %149 : vector<4x64xf32> to vector<4x64xbf16>
    %cst_86 = arith.constant dense<0.000000e+00> : vector<4x8xf32>
    %198 = tpu.matmul %197, %138, %cst_86 {dimension_numbers = #tpu.dot_dimension_numbers<[1], [0], [0], [1], [0, 0, 1, 1], [], []>} : vector<4x64xbf16>, vector<64x8xbf16>, vector<4x8xf32> -> vector<4x8xf32>
    %199 = arith.truncf %198 : vector<4x8xf32> to vector<4x8xbf16>
    %c8 = arith.constant 8 : index
    %c0_87 = arith.constant 0 : index
    %200 = vector.load %arg11[%c8, %c0_87] : memref<32x32xbf16, #tpu.memory_space<vmem>>, vector<8x32xbf16>
    %cst_88 = arith.constant dense<0.000000e+00> : vector<4x32xf32>
    %201 = tpu.matmul %199, %200, %cst_88 {dimension_numbers = #tpu.dot_dimension_numbers<[1], [0], [0], [1], [0, 0, 1, 1], [], []>} : vector<4x8xbf16>, vector<8x32xbf16>, vector<4x32xf32> -> vector<4x32xf32>
    %202 = arith.addf %135, %201 : vector<4x32xf32>
    %203 = vector.extract_strided_slice %63 {offsets = [0, 16], sizes = [4, 8], strides = [1, 1]} : vector<4x32xbf16> to vector<4x8xbf16>
    %204 = vector.extract_strided_slice %64 {offsets = [0, 16], sizes = [64, 8], strides = [1, 1]} : vector<64x64xbf16> to vector<64x8xbf16>
    %205 = vector.extract_strided_slice %64 {offsets = [0, 48], sizes = [64, 8], strides = [1, 1]} : vector<64x64xbf16> to vector<64x8xbf16>
    %cst_89 = arith.constant dense<0.000000e+00> : vector<4x64xf32>
    %206 = tpu.matmul %203, %204, %cst_89 {dimension_numbers = #tpu.dot_dimension_numbers<[1], [1], [0], [0], [0, 0, 1, 0], [], []>} : vector<4x8xbf16>, vector<64x8xbf16>, vector<4x64xf32> -> vector<4x64xf32>
    %cst_90 = arith.constant dense<0xFF800000> : vector<4xf32>
    %207 = vector.multi_reduction <maximumf>, %206, %cst_90 [1] : vector<4x64xf32> to vector<4xf32>
    %208 = vector.shape_cast %207 : vector<4xf32> to vector<4x1xf32>
    %209 = vector.broadcast %208 : vector<4x1xf32> to vector<4x64xf32>
    %210 = arith.subf %206, %209 : vector<4x64xf32>
    %211 = math.exp %210 : vector<4x64xf32>
    %cst_91 = arith.constant dense<0.000000e+00> : vector<4xf32>
    %212 = vector.multi_reduction <add>, %211, %cst_91 [1] : vector<4x64xf32> to vector<4xf32>
    %213 = vector.shape_cast %212 : vector<4xf32> to vector<4x1xf32>
    %214 = tpu.reciprocal %213 {approx = true} : vector<4x1xf32> -> vector<4x1xf32>
    %215 = vector.broadcast %214 : vector<4x1xf32> to vector<4x64xf32>
    %216 = arith.mulf %211, %215 : vector<4x64xf32>
    %cst_92 = arith.constant dense<0.000000e+00> : vector<4xf32>
    %217 = vector.multi_reduction <add>, %216, %cst_92 [1] : vector<4x64xf32> to vector<4xf32>
    %218 = vector.shape_cast %217 : vector<4xf32> to vector<4x1xf32>
    %cst_93 = arith.constant 6.400000e+01 : f32
    %219 = vector.broadcast %cst_93 : f32 to vector<4x1xf32>
    %220 = arith.divf %218, %219 : vector<4x1xf32>
    %221 = vector.broadcast %220 : vector<4x1xf32> to vector<4x64xf32>
    %222 = arith.subf %216, %221 : vector<4x64xf32>
    %223 = arith.mulf %222, %222 : vector<4x64xf32>
    %cst_94 = arith.constant dense<0.000000e+00> : vector<4xf32>
    %224 = vector.multi_reduction <add>, %223, %cst_94 [1] : vector<4x64xf32> to vector<4xf32>
    %225 = vector.shape_cast %224 : vector<4xf32> to vector<4x1xf32>
    %cst_95 = arith.constant 6.400000e+01 : f32
    %226 = vector.broadcast %cst_95 : f32 to vector<4x1xf32>
    %227 = arith.divf %225, %226 : vector<4x1xf32>
    %cst_96 = arith.constant 9.99999974E-6 : f32
    %228 = vector.broadcast %cst_96 : f32 to vector<4x1xf32>
    %229 = arith.addf %227, %228 : vector<4x1xf32>
    %230 = math.rsqrt %229 : vector<4x1xf32>
    %231 = vector.broadcast %230 : vector<4x1xf32> to vector<4x64xf32>
    %232 = arith.mulf %222, %231 : vector<4x64xf32>
    %233 = vector.broadcast %65 : vector<1x64xf32> to vector<4x64xf32>
    %234 = arith.mulf %232, %233 : vector<4x64xf32>
    %235 = vector.broadcast %66 : vector<1x64xf32> to vector<4x64xf32>
    %236 = arith.addf %234, %235 : vector<4x64xf32>
    %237 = arith.truncf %236 : vector<4x64xf32> to vector<4x64xbf16>
    %c0_97 = arith.constant 0 : index
    %c0_98 = arith.constant 0 : index
    %238 = vector.load %arg21[%c0_97, %c0_98] : memref<64x192xbf16, #tpu.memory_space<vmem>>, vector<64x192xbf16>
    %cst_99 = arith.constant dense<0.000000e+00> : vector<4x192xf32>
    %239 = tpu.matmul %237, %238, %cst_99 {dimension_numbers = #tpu.dot_dimension_numbers<[1], [0], [0], [1], [0, 0, 1, 1], [], []>} : vector<4x64xbf16>, vector<64x192xbf16>, vector<4x192xf32> -> vector<4x192xf32>
    %240 = vector.broadcast %67 : vector<1x192xf32> to vector<4x192xf32>
    %241 = arith.addf %239, %240 : vector<4x192xf32>
    %cst_100 = arith.constant 5.000000e-01 : f32
    %242 = vector.broadcast %cst_100 : f32 to vector<4x192xf32>
    %243 = arith.mulf %242, %241 : vector<4x192xf32>
    %cst_101 = arith.constant 4.471500e-02 : f32
    %244 = vector.broadcast %cst_101 : f32 to vector<4x192xf32>
    %245 = arith.mulf %244, %241 : vector<4x192xf32>
    %246 = arith.mulf %245, %241 : vector<4x192xf32>
    %247 = arith.mulf %246, %241 : vector<4x192xf32>
    %248 = arith.addf %241, %247 : vector<4x192xf32>
    %cst_102 = arith.constant 0.797884583 : f32
    %249 = vector.broadcast %cst_102 : f32 to vector<4x192xf32>
    %250 = arith.mulf %249, %248 : vector<4x192xf32>
    %251 = math.tanh %250 : vector<4x192xf32>
    %cst_103 = arith.constant 1.000000e+00 : f32
    %252 = vector.broadcast %cst_103 : f32 to vector<4x192xf32>
    %253 = arith.addf %252, %251 : vector<4x192xf32>
    %254 = arith.mulf %243, %253 : vector<4x192xf32>
    %255 = arith.truncf %254 : vector<4x192xf32> to vector<4x192xbf16>
    %c0_104 = arith.constant 0 : index
    %c0_105 = arith.constant 0 : index
    %256 = vector.load %arg23[%c0_104, %c0_105] : memref<192x64xbf16, #tpu.memory_space<vmem>>, vector<192x64xbf16>
    %cst_106 = arith.constant dense<0.000000e+00> : vector<4x64xf32>
    %257 = tpu.matmul %255, %256, %cst_106 {dimension_numbers = #tpu.dot_dimension_numbers<[1], [0], [0], [1], [0, 0, 1, 1], [], []>} : vector<4x192xbf16>, vector<192x64xbf16>, vector<4x64xf32> -> vector<4x64xf32>
    %258 = arith.addf %216, %257 : vector<4x64xf32>
    %259 = vector.broadcast %68 : vector<1x64xf32> to vector<4x64xf32>
    %260 = arith.addf %258, %259 : vector<4x64xf32>
    %c0_107 = arith.constant 0 : index
    %c0_108 = arith.constant 0 : index
    %c128 = arith.constant 128 : index
    %261 = vector.load %arg25[%c0_107, %c0_108, %c128] : memref<1x4x256xf32, #tpu.memory_space<vmem>>, vector<1x4x64xf32>
    %262 = vector.shape_cast %261 : vector<1x4x64xf32> to vector<4x64xf32>
    %263 = vector.shape_cast %260 : vector<4x64xf32> to vector<1x4x64xf32>
    tpu.vector_store %arg25[%c0_107, %c0_108, %c128], %263 {strides = array<i32>} : memref<1x4x256xf32, #tpu.memory_space<vmem>>, vector<1x4x64xf32>,
    %264 = arith.truncf %216 : vector<4x64xf32> to vector<4x64xbf16>
    %cst_109 = arith.constant dense<0.000000e+00> : vector<4x8xf32>
    %265 = tpu.matmul %264, %205, %cst_109 {dimension_numbers = #tpu.dot_dimension_numbers<[1], [0], [0], [1], [0, 0, 1, 1], [], []>} : vector<4x64xbf16>, vector<64x8xbf16>, vector<4x8xf32> -> vector<4x8xf32>
    %266 = arith.truncf %265 : vector<4x8xf32> to vector<4x8xbf16>
    %c16 = arith.constant 16 : index
    %c0_110 = arith.constant 0 : index
    %267 = vector.load %arg11[%c16, %c0_110] : memref<32x32xbf16, #tpu.memory_space<vmem>>, vector<8x32xbf16>
    %cst_111 = arith.constant dense<0.000000e+00> : vector<4x32xf32>
    %268 = tpu.matmul %266, %267, %cst_111 {dimension_numbers = #tpu.dot_dimension_numbers<[1], [0], [0], [1], [0, 0, 1, 1], [], []>} : vector<4x8xbf16>, vector<8x32xbf16>, vector<4x32xf32> -> vector<4x32xf32>
    %269 = arith.addf %202, %268 : vector<4x32xf32>
    %270 = vector.extract_strided_slice %63 {offsets = [0, 24], sizes = [4, 8], strides = [1, 1]} : vector<4x32xbf16> to vector<4x8xbf16>
    %271 = vector.extract_strided_slice %64 {offsets = [0, 24], sizes = [64, 8], strides = [1, 1]} : vector<64x64xbf16> to vector<64x8xbf16>
    %272 = vector.extract_strided_slice %64 {offsets = [0, 56], sizes = [64, 8], strides = [1, 1]} : vector<64x64xbf16> to vector<64x8xbf16>
    %cst_112 = arith.constant dense<0.000000e+00> : vector<4x64xf32>
    %273 = tpu.matmul %270, %271, %cst_112 {dimension_numbers = #tpu.dot_dimension_numbers<[1], [1], [0], [0], [0, 0, 1, 0], [], []>} : vector<4x8xbf16>, vector<64x8xbf16>, vector<4x64xf32> -> vector<4x64xf32>
    %cst_113 = arith.constant dense<0xFF800000> : vector<4xf32>
    %274 = vector.multi_reduction <maximumf>, %273, %cst_113 [1] : vector<4x64xf32> to vector<4xf32>
    %275 = vector.shape_cast %274 : vector<4xf32> to vector<4x1xf32>
    %276 = vector.broadcast %275 : vector<4x1xf32> to vector<4x64xf32>
    %277 = arith.subf %273, %276 : vector<4x64xf32>
    %278 = math.exp %277 : vector<4x64xf32>
    %cst_114 = arith.constant dense<0.000000e+00> : vector<4xf32>
    %279 = vector.multi_reduction <add>, %278, %cst_114 [1] : vector<4x64xf32> to vector<4xf32>
    %280 = vector.shape_cast %279 : vector<4xf32> to vector<4x1xf32>
    %281 = tpu.reciprocal %280 {approx = true} : vector<4x1xf32> -> vector<4x1xf32>
    %282 = vector.broadcast %281 : vector<4x1xf32> to vector<4x64xf32>
    %283 = arith.mulf %278, %282 : vector<4x64xf32>
    %cst_115 = arith.constant dense<0.000000e+00> : vector<4xf32>
    %284 = vector.multi_reduction <add>, %283, %cst_115 [1] : vector<4x64xf32> to vector<4xf32>
    %285 = vector.shape_cast %284 : vector<4xf32> to vector<4x1xf32>
    %cst_116 = arith.constant 6.400000e+01 : f32
    %286 = vector.broadcast %cst_116 : f32 to vector<4x1xf32>
    %287 = arith.divf %285, %286 : vector<4x1xf32>
    %288 = vector.broadcast %287 : vector<4x1xf32> to vector<4x64xf32>
    %289 = arith.subf %283, %288 : vector<4x64xf32>
    %290 = arith.mulf %289, %289 : vector<4x64xf32>
    %cst_117 = arith.constant dense<0.000000e+00> : vector<4xf32>
    %291 = vector.multi_reduction <add>, %290, %cst_117 [1] : vector<4x64xf32> to vector<4xf32>
    %292 = vector.shape_cast %291 : vector<4xf32> to vector<4x1xf32>
    %cst_118 = arith.constant 6.400000e+01 : f32
    %293 = vector.broadcast %cst_118 : f32 to vector<4x1xf32>
    %294 = arith.divf %292, %293 : vector<4x1xf32>
    %cst_119 = arith.constant 9.99999974E-6 : f32
    %295 = vector.broadcast %cst_119 : f32 to vector<4x1xf32>
    %296 = arith.addf %294, %295 : vector<4x1xf32>
    %297 = math.rsqrt %296 : vector<4x1xf32>
    %298 = vector.broadcast %297 : vector<4x1xf32> to vector<4x64xf32>
    %299 = arith.mulf %289, %298 : vector<4x64xf32>
    %300 = vector.broadcast %65 : vector<1x64xf32> to vector<4x64xf32>
    %301 = arith.mulf %299, %300 : vector<4x64xf32>
    %302 = vector.broadcast %66 : vector<1x64xf32> to vector<4x64xf32>
    %303 = arith.addf %301, %302 : vector<4x64xf32>
    %304 = arith.truncf %303 : vector<4x64xf32> to vector<4x64xbf16>
    %c0_120 = arith.constant 0 : index
    %c0_121 = arith.constant 0 : index
    %305 = vector.load %arg21[%c0_120, %c0_121] : memref<64x192xbf16, #tpu.memory_space<vmem>>, vector<64x192xbf16>
    %cst_122 = arith.constant dense<0.000000e+00> : vector<4x192xf32>
    %306 = tpu.matmul %304, %305, %cst_122 {dimension_numbers = #tpu.dot_dimension_numbers<[1], [0], [0], [1], [0, 0, 1, 1], [], []>} : vector<4x64xbf16>, vector<64x192xbf16>, vector<4x192xf32> -> vector<4x192xf32>
    %307 = vector.broadcast %67 : vector<1x192xf32> to vector<4x192xf32>
    %308 = arith.addf %306, %307 : vector<4x192xf32>
    %cst_123 = arith.constant 5.000000e-01 : f32
    %309 = vector.broadcast %cst_123 : f32 to vector<4x192xf32>
    %310 = arith.mulf %309, %308 : vector<4x192xf32>
    %cst_124 = arith.constant 4.471500e-02 : f32
    %311 = vector.broadcast %cst_124 : f32 to vector<4x192xf32>
    %312 = arith.mulf %311, %308 : vector<4x192xf32>
    %313 = arith.mulf %312, %308 : vector<4x192xf32>
    %314 = arith.mulf %313, %308 : vector<4x192xf32>
    %315 = arith.addf %308, %314 : vector<4x192xf32>
    %cst_125 = arith.constant 0.797884583 : f32
    %316 = vector.broadcast %cst_125 : f32 to vector<4x192xf32>
    %317 = arith.mulf %316, %315 : vector<4x192xf32>
    %318 = math.tanh %317 : vector<4x192xf32>
    %cst_126 = arith.constant 1.000000e+00 : f32
    %319 = vector.broadcast %cst_126 : f32 to vector<4x192xf32>
    %320 = arith.addf %319, %318 : vector<4x192xf32>
    %321 = arith.mulf %310, %320 : vector<4x192xf32>
    %322 = arith.truncf %321 : vector<4x192xf32> to vector<4x192xbf16>
    %c0_127 = arith.constant 0 : index
    %c0_128 = arith.constant 0 : index
    %323 = vector.load %arg23[%c0_127, %c0_128] : memref<192x64xbf16, #tpu.memory_space<vmem>>, vector<192x64xbf16>
    %cst_129 = arith.constant dense<0.000000e+00> : vector<4x64xf32>
    %324 = tpu.matmul %322, %323, %cst_129 {dimension_numbers = #tpu.dot_dimension_numbers<[1], [0], [0], [1], [0, 0, 1, 1], [], []>} : vector<4x192xbf16>, vector<192x64xbf16>, vector<4x64xf32> -> vector<4x64xf32>
    %325 = arith.addf %283, %324 : vector<4x64xf32>
    %326 = vector.broadcast %68 : vector<1x64xf32> to vector<4x64xf32>
    %327 = arith.addf %325, %326 : vector<4x64xf32>
    %c0_130 = arith.constant 0 : index
    %c0_131 = arith.constant 0 : index
    %c192 = arith.constant 192 : index
    %328 = vector.load %arg25[%c0_130, %c0_131, %c192] : memref<1x4x256xf32, #tpu.memory_space<vmem>>, vector<1x4x64xf32>
    %329 = vector.shape_cast %328 : vector<1x4x64xf32> to vector<4x64xf32>
    %330 = vector.shape_cast %327 : vector<4x64xf32> to vector<1x4x64xf32>
    tpu.vector_store %arg25[%c0_130, %c0_131, %c192], %330 {strides = array<i32>} : memref<1x4x256xf32, #tpu.memory_space<vmem>>, vector<1x4x64xf32>,
    %331 = arith.truncf %283 : vector<4x64xf32> to vector<4x64xbf16>
    %cst_132 = arith.constant dense<0.000000e+00> : vector<4x8xf32>
    %332 = tpu.matmul %331, %272, %cst_132 {dimension_numbers = #tpu.dot_dimension_numbers<[1], [0], [0], [1], [0, 0, 1, 1], [], []>} : vector<4x64xbf16>, vector<64x8xbf16>, vector<4x8xf32> -> vector<4x8xf32>
    %333 = arith.truncf %332 : vector<4x8xf32> to vector<4x8xbf16>
    %c24 = arith.constant 24 : index
    %c0_133 = arith.constant 0 : index
    %334 = vector.load %arg11[%c24, %c0_133] : memref<32x32xbf16, #tpu.memory_space<vmem>>, vector<8x32xbf16>
    %cst_134 = arith.constant dense<0.000000e+00> : vector<4x32xf32>
    %335 = tpu.matmul %333, %334, %cst_134 {dimension_numbers = #tpu.dot_dimension_numbers<[1], [0], [0], [1], [0, 0, 1, 1], [], []>} : vector<4x8xbf16>, vector<8x32xbf16>, vector<4x32xf32> -> vector<4x32xf32>
    %336 = arith.addf %269, %335 : vector<4x32xf32>
    %c0_135 = arith.constant 0 : index
    %c0_136 = arith.constant 0 : index
    %337 = vector.load %arg12[%c0_135, %c0_136] : memref<1x32xf32, #tpu.memory_space<vmem>>, vector<1x32xf32>
    %338 = vector.broadcast %337 : vector<1x32xf32> to vector<4x32xf32>
    %339 = arith.addf %336, %338 : vector<4x32xf32>
    %c0_137 = arith.constant 0 : index
    %c0_138 = arith.constant 0 : index
    %340 = vector.load %arg13[%c0_137, %c0_138] : memref<1x32xf32, #tpu.memory_space<vmem>>, vector<1x32xf32>
    %c0_139 = arith.constant 0 : index
    %c0_140 = arith.constant 0 : index
    %341 = vector.load %arg14[%c0_139, %c0_140] : memref<1x32xf32, #tpu.memory_space<vmem>>, vector<1x32xf32>
    %cst_141 = arith.constant dense<0.000000e+00> : vector<4xf32>
    %342 = vector.multi_reduction <add>, %339, %cst_141 [1] : vector<4x32xf32> to vector<4xf32>
    %343 = vector.shape_cast %342 : vector<4xf32> to vector<4x1xf32>
    %cst_142 = arith.constant 3.200000e+01 : f32
    %344 = vector.broadcast %cst_142 : f32 to vector<4x1xf32>
    %345 = arith.divf %343, %344 : vector<4x1xf32>
    %346 = vector.broadcast %345 : vector<4x1xf32> to vector<4x32xf32>
    %347 = arith.subf %339, %346 : vector<4x32xf32>
    %348 = arith.mulf %347, %347 : vector<4x32xf32>
    %cst_143 = arith.constant dense<0.000000e+00> : vector<4xf32>
    %349 = vector.multi_reduction <add>, %348, %cst_143 [1] : vector<4x32xf32> to vector<4xf32>
    %350 = vector.shape_cast %349 : vector<4xf32> to vector<4x1xf32>
    %cst_144 = arith.constant 3.200000e+01 : f32
    %351 = vector.broadcast %cst_144 : f32 to vector<4x1xf32>
    %352 = arith.divf %350, %351 : vector<4x1xf32>
    %cst_145 = arith.constant 9.99999974E-6 : f32
    %353 = vector.broadcast %cst_145 : f32 to vector<4x1xf32>
    %354 = arith.addf %352, %353 : vector<4x1xf32>
    %355 = math.rsqrt %354 : vector<4x1xf32>
    %356 = vector.broadcast %355 : vector<4x1xf32> to vector<4x32xf32>
    %357 = arith.mulf %347, %356 : vector<4x32xf32>
    %358 = vector.broadcast %340 : vector<1x32xf32> to vector<4x32xf32>
    %359 = arith.mulf %357, %358 : vector<4x32xf32>
    %360 = vector.broadcast %341 : vector<1x32xf32> to vector<4x32xf32>
    %361 = arith.addf %359, %360 : vector<4x32xf32>
    %362 = arith.truncf %361 : vector<4x32xf32> to vector<4x32xbf16>
    %c0_146 = arith.constant 0 : index
    %c0_147 = arith.constant 0 : index
    %363 = vector.load %arg15[%c0_146, %c0_147] : memref<32x64xbf16, #tpu.memory_space<vmem>>, vector<32x64xbf16>
    %cst_148 = arith.constant dense<0.000000e+00> : vector<4x64xf32>
    %364 = tpu.matmul %362, %363, %cst_148 {dimension_numbers = #tpu.dot_dimension_numbers<[1], [0], [0], [1], [0, 0, 1, 1], [], []>} : vector<4x32xbf16>, vector<32x64xbf16>, vector<4x64xf32> -> vector<4x64xf32>
    %c0_149 = arith.constant 0 : index
    %c0_150 = arith.constant 0 : index
    %365 = vector.load %arg16[%c0_149, %c0_150] : memref<1x64xf32, #tpu.memory_space<vmem>>, vector<1x64xf32>
    %366 = vector.broadcast %365 : vector<1x64xf32> to vector<4x64xf32>
    %367 = arith.addf %364, %366 : vector<4x64xf32>
    %cst_151 = arith.constant 5.000000e-01 : f32
    %368 = vector.broadcast %cst_151 : f32 to vector<4x64xf32>
    %369 = arith.mulf %368, %367 : vector<4x64xf32>
    %cst_152 = arith.constant 4.471500e-02 : f32
    %370 = vector.broadcast %cst_152 : f32 to vector<4x64xf32>
    %371 = arith.mulf %370, %367 : vector<4x64xf32>
    %372 = arith.mulf %371, %367 : vector<4x64xf32>
    %373 = arith.mulf %372, %367 : vector<4x64xf32>
    %374 = arith.addf %367, %373 : vector<4x64xf32>
    %cst_153 = arith.constant 0.797884583 : f32
    %375 = vector.broadcast %cst_153 : f32 to vector<4x64xf32>
    %376 = arith.mulf %375, %374 : vector<4x64xf32>
    %377 = math.tanh %376 : vector<4x64xf32>
    %cst_154 = arith.constant 1.000000e+00 : f32
    %378 = vector.broadcast %cst_154 : f32 to vector<4x64xf32>
    %379 = arith.addf %378, %377 : vector<4x64xf32>
    %380 = arith.mulf %369, %379 : vector<4x64xf32>
    %381 = arith.truncf %380 : vector<4x64xf32> to vector<4x64xbf16>
    %c0_155 = arith.constant 0 : index
    %c0_156 = arith.constant 0 : index
    %382 = vector.load %arg17[%c0_155, %c0_156] : memref<64x32xbf16, #tpu.memory_space<vmem>>, vector<64x32xbf16>
    %cst_157 = arith.constant dense<0.000000e+00> : vector<4x32xf32>
    %383 = tpu.matmul %381, %382, %cst_157 {dimension_numbers = #tpu.dot_dimension_numbers<[1], [0], [0], [1], [0, 0, 1, 1], [], []>} : vector<4x64xbf16>, vector<64x32xbf16>, vector<4x32xf32> -> vector<4x32xf32>
    %384 = arith.addf %339, %383 : vector<4x32xf32>
    %c0_158 = arith.constant 0 : index
    %c0_159 = arith.constant 0 : index
    %385 = vector.load %arg18[%c0_158, %c0_159] : memref<1x32xf32, #tpu.memory_space<vmem>>, vector<1x32xf32>
    %386 = vector.broadcast %385 : vector<1x32xf32> to vector<4x32xf32>
    %387 = arith.addf %384, %386 : vector<4x32xf32>
    %388 = arith.truncf %387 : vector<4x32xf32> to vector<4x32xbf16>
    %c0_160 = arith.constant 0 : index
    %c0_161 = arith.constant 0 : index
    %c0_162 = arith.constant 0 : index
    %389 = vector.load %arg26[%c0_160, %c0_161, %c0_162] : memref<1x4x32xbf16, #tpu.memory_space<vmem>>, vector<1x4x32xbf16>
    %390 = vector.shape_cast %389 : vector<1x4x32xbf16> to vector<4x32xbf16>
    %391 = vector.shape_cast %388 : vector<4x32xbf16> to vector<1x4x32xbf16>
    tpu.vector_store %arg26[%c0_160, %c0_161, %c0_162], %391 {strides = array<i32>} : memref<1x4x32xbf16, #tpu.memory_space<vmem>>, vector<1x4x32xbf16>,
    return
  }
  func.func @transform_0(%arg0: i32) -> (i32, i32, i32) {
    %c0_i32 = arith.constant 0 : i32
    %c0_i32_0 = arith.constant 0 : i32
    %c0_i32_1 = arith.constant 0 : i32
    return %arg0, %c0_i32, %c0_i32_0 : i32, i32, i32
  }
  func.func @transform_1(%arg0: i32) -> (i32, i32, i32) {
    %c0_i32 = arith.constant 0 : i32
    %c0_i32_0 = arith.constant 0 : i32
    %c0_i32_1 = arith.constant 0 : i32
    return %arg0, %c0_i32, %c0_i32_0 : i32, i32, i32
  }
  func.func @transform_2(%arg0: i32) -> (i32, i32) {
    %c0_i32 = arith.constant 0 : i32
    %c0_i32_0 = arith.constant 0 : i32
    %c0_i32_1 = arith.constant 0 : i32
    return %c0_i32, %c0_i32_0 : i32, i32
  }
  func.func @transform_3(%arg0: i32) -> (i32, i32) {
    %c0_i32 = arith.constant 0 : i32
    %c0_i32_0 = arith.constant 0 : i32
    %c0_i32_1 = arith.constant 0 : i32
    return %c0_i32, %c0_i32_0 : i32, i32
  }
  func.func @transform_4(%arg0: i32) -> (i32, i32) {
    %c0_i32 = arith.constant 0 : i32
    %c0_i32_0 = arith.constant 0 : i32
    %c0_i32_1 = arith.constant 0 : i32
    return %c0_i32, %c0_i32_0 : i32, i32
  }
  func.func @transform_5(%arg0: i32) -> (i32, i32) {
    %c0_i32 = arith.constant 0 : i32
    %c0_i32_0 = arith.constant 0 : i32
    %c0_i32_1 = arith.constant 0 : i32
    return %c0_i32, %c0_i32_0 : i32, i32
  }
  func.func @transform_6(%arg0: i32) -> (i32, i32) {
    %c0_i32 = arith.constant 0 : i32
    %c0_i32_0 = arith.constant 0 : i32
    %c0_i32_1 = arith.constant 0 : i32
    return %c0_i32, %c0_i32_0 : i32, i32
  }
  func.func @transform_7(%arg0: i32) -> (i32, i32) {
    %c0_i32 = arith.constant 0 : i32
    %c0_i32_0 = arith.constant 0 : i32
    %c0_i32_1 = arith.constant 0 : i32
    return %c0_i32, %c0_i32_0 : i32, i32
  }
  func.func @transform_8(%arg0: i32) -> (i32, i32) {
    %c0_i32 = arith.constant 0 : i32
    %c0_i32_0 = arith.constant 0 : i32
    %c0_i32_1 = arith.constant 0 : i32
    return %c0_i32, %c0_i32_0 : i32, i32
  }
  func.func @transform_9(%arg0: i32) -> (i32, i32) {
    %c0_i32 = arith.constant 0 : i32
    %c0_i32_0 = arith.constant 0 : i32
    %c0_i32_1 = arith.constant 0 : i32
    return %c0_i32, %c0_i32_0 : i32, i32
  }
  func.func @transform_10(%arg0: i32) -> (i32, i32) {
    %c0_i32 = arith.constant 0 : i32
    %c0_i32_0 = arith.constant 0 : i32
    %c0_i32_1 = arith.constant 0 : i32
    return %c0_i32, %c0_i32_0 : i32, i32
  }
  func.func @transform_11(%arg0: i32) -> (i32, i32) {
    %c0_i32 = arith.constant 0 : i32
    %c0_i32_0 = arith.constant 0 : i32
    %c0_i32_1 = arith.constant 0 : i32
    return %c0_i32, %c0_i32_0 : i32, i32
  }
  func.func @transform_12(%arg0: i32) -> (i32, i32) {
    %c0_i32 = arith.constant 0 : i32
    %c0_i32_0 = arith.constant 0 : i32
    %c0_i32_1 = arith.constant 0 : i32
    return %c0_i32, %c0_i32_0 : i32, i32
  }
  func.func @transform_13(%arg0: i32) -> (i32, i32) {
    %c0_i32 = arith.constant 0 : i32
    %c0_i32_0 = arith.constant 0 : i32
    %c0_i32_1 = arith.constant 0 : i32
    return %c0_i32, %c0_i32_0 : i32, i32
  }
  func.func @transform_14(%arg0: i32) -> (i32, i32) {
    %c0_i32 = arith.constant 0 : i32
    %c0_i32_0 = arith.constant 0 : i32
    %c0_i32_1 = arith.constant 0 : i32
    return %c0_i32, %c0_i32_0 : i32, i32
  }
  func.func @transform_15(%arg0: i32) -> (i32, i32) {
    %c0_i32 = arith.constant 0 : i32
    %c0_i32_0 = arith.constant 0 : i32
    %c0_i32_1 = arith.constant 0 : i32
    return %c0_i32, %c0_i32_0 : i32, i32
  }
  func.func @transform_16(%arg0: i32) -> (i32, i32) {
    %c0_i32 = arith.constant 0 : i32
    %c0_i32_0 = arith.constant 0 : i32
    %c0_i32_1 = arith.constant 0 : i32
    return %c0_i32, %c0_i32_0 : i32, i32
  }
  func.func @transform_17(%arg0: i32) -> (i32, i32) {
    %c0_i32 = arith.constant 0 : i32
    %c0_i32_0 = arith.constant 0 : i32
    %c0_i32_1 = arith.constant 0 : i32
    return %c0_i32, %c0_i32_0 : i32, i32
  }
  func.func @transform_18(%arg0: i32) -> (i32, i32) {
    %c0_i32 = arith.constant 0 : i32
    %c0_i32_0 = arith.constant 0 : i32
    %c0_i32_1 = arith.constant 0 : i32
    return %c0_i32, %c0_i32_0 : i32, i32
  }
  func.func @transform_19(%arg0: i32) -> (i32, i32) {
    %c0_i32 = arith.constant 0 : i32
    %c0_i32_0 = arith.constant 0 : i32
    %c0_i32_1 = arith.constant 0 : i32
    return %c0_i32, %c0_i32_0 : i32, i32
  }
  func.func @transform_20(%arg0: i32) -> (i32, i32) {
    %c0_i32 = arith.constant 0 : i32
    %c0_i32_0 = arith.constant 0 : i32
    %c0_i32_1 = arith.constant 0 : i32
    return %c0_i32, %c0_i32_0 : i32, i32
  }
  func.func @transform_21(%arg0: i32) -> (i32, i32) {
    %c0_i32 = arith.constant 0 : i32
    %c0_i32_0 = arith.constant 0 : i32
    %c0_i32_1 = arith.constant 0 : i32
    return %c0_i32, %c0_i32_0 : i32, i32
  }
  func.func @transform_22(%arg0: i32) -> (i32, i32) {
    %c0_i32 = arith.constant 0 : i32
    %c0_i32_0 = arith.constant 0 : i32
    %c0_i32_1 = arith.constant 0 : i32
    return %c0_i32, %c0_i32_0 : i32, i32
  }
  func.func @transform_23(%arg0: i32) -> (i32, i32) {
    %c0_i32 = arith.constant 0 : i32
    %c0_i32_0 = arith.constant 0 : i32
    %c0_i32_1 = arith.constant 0 : i32
    return %c0_i32, %c0_i32_0 : i32, i32
  }
  func.func @transform_24(%arg0: i32) -> (i32, i32, i32) {
    %c0_i32 = arith.constant 0 : i32
    %c0_i32_0 = arith.constant 0 : i32
    %c0_i32_1 = arith.constant 0 : i32
    return %arg0, %c0_i32, %c0_i32_0 : i32, i32, i32
  }
  func.func @transform_25(%arg0: i32) -> (i32, i32, i32) {
    %c0_i32 = arith.constant 0 : i32
    %c0_i32_0 = arith.constant 0 : i32
    %c0_i32_1 = arith.constant 0 : i32
    return %arg0, %c0_i32, %c0_i32_0 : i32, i32, i32
  }
}

module attributes {stable_mosaic.version = 11 : i64} {
  func.func @_dec_block_kernel(%arg0: i32, %arg1: memref<1x4x32xbf16, #tpu.memory_space<vmem>>, %arg2: memref<1x64x32xf32, #tpu.memory_space<vmem>>, %arg3: memref<1x32xf32, #tpu.memory_space<vmem>>, %arg4: memref<1x32xf32, #tpu.memory_space<vmem>>, %arg5: memref<1x32xf32, #tpu.memory_space<vmem>>, %arg6: memref<1x32xf32, #tpu.memory_space<vmem>>, %arg7: memref<32x32xbf16, #tpu.memory_space<vmem>>, %arg8: memref<1x32xf32, #tpu.memory_space<vmem>>, %arg9: memref<32x64xbf16, #tpu.memory_space<vmem>>, %arg10: memref<1x64xf32, #tpu.memory_space<vmem>>, %arg11: memref<32x32xbf16, #tpu.memory_space<vmem>>, %arg12: memref<1x32xf32, #tpu.memory_space<vmem>>, %arg13: memref<1x32xf32, #tpu.memory_space<vmem>>, %arg14: memref<1x32xf32, #tpu.memory_space<vmem>>, %arg15: memref<32x64xbf16, #tpu.memory_space<vmem>>, %arg16: memref<1x64xf32, #tpu.memory_space<vmem>>, %arg17: memref<64x32xbf16, #tpu.memory_space<vmem>>, %arg18: memref<1x32xf32, #tpu.memory_space<vmem>>, %arg19: memref<1x64xf32, #tpu.memory_space<vmem>>, %arg20: memref<1x64xf32, #tpu.memory_space<vmem>>, %arg21: memref<64x192xbf16, #tpu.memory_space<vmem>>, %arg22: memref<1x192xf32, #tpu.memory_space<vmem>>, %arg23: memref<192x64xbf16, #tpu.memory_space<vmem>>, %arg24: memref<1x64xf32, #tpu.memory_space<vmem>>, %arg25: memref<1x4x256xf32, #tpu.memory_space<vmem>>, %arg26: memref<1x4x32xbf16, #tpu.memory_space<vmem>>) attributes {dimension_semantics = [#tpu.dimension_semantics<parallel>], iteration_bounds = array<i64: 2>, scalar_prefetch = 0 : i64, scratch_operands = 0 : i64, tpu.core_type = #tpu.core_type<tc>, window_params = [{transform_indices = @transform_0, window_bounds = array<i64: 1, 4, 32>}, {transform_indices = @transform_1, window_bounds = array<i64: 1, 64, 32>}, {pipeline_mode = #tpu.pipeline_mode<synchronous>, transform_indices = @transform_2, window_bounds = array<i64: 1, 32>}, {pipeline_mode = #tpu.pipeline_mode<synchronous>, transform_indices = @transform_3, window_bounds = array<i64: 1, 32>}, {pipeline_mode = #tpu.pipeline_mode<synchronous>, transform_indices = @transform_4, window_bounds = array<i64: 1, 32>}, {pipeline_mode = #tpu.pipeline_mode<synchronous>, transform_indices = @transform_5, window_bounds = array<i64: 1, 32>}, {pipeline_mode = #tpu.pipeline_mode<synchronous>, transform_indices = @transform_6, window_bounds = array<i64: 32, 32>}, {pipeline_mode = #tpu.pipeline_mode<synchronous>, transform_indices = @transform_7, window_bounds = array<i64: 1, 32>}, {pipeline_mode = #tpu.pipeline_mode<synchronous>, transform_indices = @transform_8, window_bounds = array<i64: 32, 64>}, {pipeline_mode = #tpu.pipeline_mode<synchronous>, transform_indices = @transform_9, window_bounds = array<i64: 1, 64>}, {pipeline_mode = #tpu.pipeline_mode<synchronous>, transform_indices = @transform_10, window_bounds = array<i64: 32, 32>}, {pipeline_mode = #tpu.pipeline_mode<synchronous>, transform_indices = @transform_11, window_bounds = array<i64: 1, 32>}, {pipeline_mode = #tpu.pipeline_mode<synchronous>, transform_indices = @transform_12, window_bounds = array<i64: 1, 32>}, {pipeline_mode = #tpu.pipeline_mode<synchronous>, transform_indices = @transform_13, window_bounds = array<i64: 1, 32>}, {pipeline_mode = #tpu.pipeline_mode<synchronous>, transform_indices = @transform_14, window_bounds = array<i64: 32, 64>}, {pipeline_mode = #tpu.pipeline_mode<synchronous>, transform_indices = @transform_15, window_bounds = array<i64: 1, 64>}, {pipeline_mode = #tpu.pipeline_mode<synchronous>, transform_indices = @transform_16, window_bounds = array<i64: 64, 32>}, {pipeline_mode = #tpu.pipeline_mode<synchronous>, transform_indices = @transform_17, window_bounds = array<i64: 1, 32>}, {pipeline_mode = #tpu.pipeline_mode<synchronous>, transform_indices = @transform_18, window_bounds = array<i64: 1, 64>}, {pipeline_mode = #tpu.pipeline_mode<synchronous>, transform_indices = @transform_19, window_bounds = array<i64: 1, 64>}, {pipeline_mode = #tpu.pipeline_mode<synchronous>, transform_indices = @transform_20, window_bounds = array<i64: 64, 192>}, {pipeline_mode = #tpu.pipeline_mode<synchronous>, transform_indices = @transform_21, window_bounds = array<i64: 1, 192>}, {pipeline_mode = #tpu.pipeline_mode<synchronous>, transform_indices = @transform_22, window_bounds = array<i64: 192, 64>}, {pipeline_mode = #tpu.pipeline_mode<synchronous>, transform_indices = @transform_23, window_bounds = array<i64: 1, 64>}, {transform_indices = @transform_24, window_bounds = array<i64: 1, 4, 256>}, {transform_indices = @transform_25, window_bounds = array<i64: 1, 4, 32>}]} {
    %c0 = arith.constant 0 : index
    %c0_0 = arith.constant 0 : index
    %c0_1 = arith.constant 0 : index
    %0 = vector.load %arg1[%c0, %c0_0, %c0_1] : memref<1x4x32xbf16, #tpu.memory_space<vmem>>, vector<1x4x32xbf16>
    %1 = vector.shape_cast %0 : vector<1x4x32xbf16> to vector<4x32xbf16>
    %2 = arith.extf %1 : vector<4x32xbf16> to vector<4x32xf32>
    %c0_2 = arith.constant 0 : index
    %c0_3 = arith.constant 0 : index
    %c0_4 = arith.constant 0 : index
    %3 = vector.load %arg2[%c0_2, %c0_3, %c0_4] : memref<1x64x32xf32, #tpu.memory_space<vmem>>, vector<1x64x32xf32>
    %4 = vector.shape_cast %3 : vector<1x64x32xf32> to vector<64x32xf32>
    %c0_5 = arith.constant 0 : index
    %c0_6 = arith.constant 0 : index
    %5 = vector.load %arg3[%c0_5, %c0_6] : memref<1x32xf32, #tpu.memory_space<vmem>>, vector<1x32xf32>
    %c0_7 = arith.constant 0 : index
    %c0_8 = arith.constant 0 : index
    %6 = vector.load %arg4[%c0_7, %c0_8] : memref<1x32xf32, #tpu.memory_space<vmem>>, vector<1x32xf32>
    %cst = arith.constant dense<0.000000e+00> : vector<4xf32>
    %7 = vector.multi_reduction <add>, %2, %cst [1] : vector<4x32xf32> to vector<4xf32>
    %8 = vector.shape_cast %7 : vector<4xf32> to vector<4x1xf32>
    %cst_9 = arith.constant 3.200000e+01 : f32
    %9 = vector.broadcast %cst_9 : f32 to vector<4x1xf32>
    %10 = arith.divf %8, %9 : vector<4x1xf32>
    %11 = vector.broadcast %10 : vector<4x1xf32> to vector<4x32xf32>
    %12 = arith.subf %2, %11 : vector<4x32xf32>
    %13 = arith.mulf %12, %12 : vector<4x32xf32>
    %cst_10 = arith.constant dense<0.000000e+00> : vector<4xf32>
    %14 = vector.multi_reduction <add>, %13, %cst_10 [1] : vector<4x32xf32> to vector<4xf32>
    %15 = vector.shape_cast %14 : vector<4xf32> to vector<4x1xf32>
    %cst_11 = arith.constant 3.200000e+01 : f32
    %16 = vector.broadcast %cst_11 : f32 to vector<4x1xf32>
    %17 = arith.divf %15, %16 : vector<4x1xf32>
    %cst_12 = arith.constant 9.99999974E-6 : f32
    %18 = vector.broadcast %cst_12 : f32 to vector<4x1xf32>
    %19 = arith.addf %17, %18 : vector<4x1xf32>
    %20 = math.rsqrt %19 : vector<4x1xf32>
    %21 = vector.broadcast %20 : vector<4x1xf32> to vector<4x32xf32>
    %22 = arith.mulf %12, %21 : vector<4x32xf32>
    %23 = vector.broadcast %5 : vector<1x32xf32> to vector<4x32xf32>
    %24 = arith.mulf %22, %23 : vector<4x32xf32>
    %25 = vector.broadcast %6 : vector<1x32xf32> to vector<4x32xf32>
    %26 = arith.addf %24, %25 : vector<4x32xf32>
    %c0_13 = arith.constant 0 : index
    %c0_14 = arith.constant 0 : index
    %27 = vector.load %arg5[%c0_13, %c0_14] : memref<1x32xf32, #tpu.memory_space<vmem>>, vector<1x32xf32>
    %c0_15 = arith.constant 0 : index
    %c0_16 = arith.constant 0 : index
    %28 = vector.load %arg6[%c0_15, %c0_16] : memref<1x32xf32, #tpu.memory_space<vmem>>, vector<1x32xf32>
    %cst_17 = arith.constant dense<0.000000e+00> : vector<64xf32>
    %29 = vector.multi_reduction <add>, %4, %cst_17 [1] : vector<64x32xf32> to vector<64xf32>
    %30 = vector.shape_cast %29 : vector<64xf32> to vector<64x1xf32>
    %cst_18 = arith.constant 3.200000e+01 : f32
    %31 = vector.broadcast %cst_18 : f32 to vector<64x1xf32>
    %32 = arith.divf %30, %31 : vector<64x1xf32>
    %33 = vector.broadcast %32 : vector<64x1xf32> to vector<64x32xf32>
    %34 = arith.subf %4, %33 : vector<64x32xf32>
    %35 = arith.mulf %34, %34 : vector<64x32xf32>
    %cst_19 = arith.constant dense<0.000000e+00> : vector<64xf32>
    %36 = vector.multi_reduction <add>, %35, %cst_19 [1] : vector<64x32xf32> to vector<64xf32>
    %37 = vector.shape_cast %36 : vector<64xf32> to vector<64x1xf32>
    %cst_20 = arith.constant 3.200000e+01 : f32
    %38 = vector.broadcast %cst_20 : f32 to vector<64x1xf32>
    %39 = arith.divf %37, %38 : vector<64x1xf32>
    %cst_21 = arith.constant 9.99999974E-6 : f32
    %40 = vector.broadcast %cst_21 : f32 to vector<64x1xf32>
    %41 = arith.addf %39, %40 : vector<64x1xf32>
    %42 = math.rsqrt %41 : vector<64x1xf32>
    %43 = vector.broadcast %42 : vector<64x1xf32> to vector<64x32xf32>
    %44 = arith.mulf %34, %43 : vector<64x32xf32>
    %45 = vector.broadcast %27 : vector<1x32xf32> to vector<64x32xf32>
    %46 = arith.mulf %44, %45 : vector<64x32xf32>
    %47 = vector.broadcast %28 : vector<1x32xf32> to vector<64x32xf32>
    %48 = arith.addf %46, %47 : vector<64x32xf32>
    %49 = arith.truncf %26 : vector<4x32xf32> to vector<4x32xbf16>
    %c0_22 = arith.constant 0 : index
    %c0_23 = arith.constant 0 : index
    %50 = vector.load %arg7[%c0_22, %c0_23] : memref<32x32xbf16, #tpu.memory_space<vmem>>, vector<32x32xbf16>
    %cst_24 = arith.constant dense<0.000000e+00> : vector<4x32xf32>
    %51 = tpu.matmul %49, %50, %cst_24 {dimension_numbers = #tpu.dot_dimension_numbers<[1], [0], [0], [1], [0, 0, 1, 1], [], []>} : vector<4x32xbf16>, vector<32x32xbf16>, vector<4x32xf32> -> vector<4x32xf32>
    %c0_25 = arith.constant 0 : index
    %c0_26 = arith.constant 0 : index
    %52 = vector.load %arg8[%c0_25, %c0_26] : memref<1x32xf32, #tpu.memory_space<vmem>>, vector<1x32xf32>
    %53 = vector.broadcast %52 : vector<1x32xf32> to vector<4x32xf32>
    %54 = arith.addf %51, %53 : vector<4x32xf32>
    %55 = arith.truncf %48 : vector<64x32xf32> to vector<64x32xbf16>
    %c0_27 = arith.constant 0 : index
    %c0_28 = arith.constant 0 : index
    %56 = vector.load %arg9[%c0_27, %c0_28] : memref<32x64xbf16, #tpu.memory_space<vmem>>, vector<32x64xbf16>
    %cst_29 = arith.constant dense<0.000000e+00> : vector<64x64xf32>
    %57 = tpu.matmul %55, %56, %cst_29 {dimension_numbers = #tpu.dot_dimension_numbers<[1], [0], [0], [1], [0, 0, 1, 1], [], []>} : vector<64x32xbf16>, vector<32x64xbf16>, vector<64x64xf32> -> vector<64x64xf32>
    %c0_30 = arith.constant 0 : index
    %c0_31 = arith.constant 0 : index
    %58 = vector.load %arg10[%c0_30, %c0_31] : memref<1x64xf32, #tpu.memory_space<vmem>>, vector<1x64xf32>
    %59 = vector.broadcast %58 : vector<1x64xf32> to vector<64x64xf32>
    %60 = arith.addf %57, %59 : vector<64x64xf32>
    %cst_32 = arith.constant 0.353553385 : f32
    %61 = vector.broadcast %cst_32 : f32 to vector<4x32xf32>
    %62 = arith.mulf %54, %61 : vector<4x32xf32>
    %63 = arith.truncf %62 : vector<4x32xf32> to vector<4x32xbf16>
    %64 = arith.truncf %60 : vector<64x64xf32> to vector<64x64xbf16>
    %c0_33 = arith.constant 0 : index
    %c0_34 = arith.constant 0 : index
    %65 = vector.load %arg19[%c0_33, %c0_34] : memref<1x64xf32, #tpu.memory_space<vmem>>, vector<1x64xf32>
    %c0_35 = arith.constant 0 : index
    %c0_36 = arith.constant 0 : index
    %66 = vector.load %arg20[%c0_35, %c0_36] : memref<1x64xf32, #tpu.memory_space<vmem>>, vector<1x64xf32>
    %c0_37 = arith.constant 0 : index
    %c0_38 = arith.constant 0 : index
    %67 = vector.load %arg22[%c0_37, %c0_38] : memref<1x192xf32, #tpu.memory_space<vmem>>, vector<1x192xf32>
    %c0_39 = arith.constant 0 : index
    %c0_40 = arith.constant 0 : index
    %68 = vector.load %arg24[%c0_39, %c0_40] : memref<1x64xf32, #tpu.memory_space<vmem>>, vector<1x64xf32>
    %69 = vector.extract_strided_slice %63 {offsets = [0, 0], sizes = [4, 8], strides = [1, 1]} : vector<4x32xbf16> to vector<4x8xbf16>
    %70 = vector.extract_strided_slice %64 {offsets = [0, 0], sizes = [64, 8], strides = [1, 1]} : vector<64x64xbf16> to vector<64x8xbf16>
    %71 = vector.extract_strided_slice %64 {offsets = [0, 32], sizes = [64, 8], strides = [1, 1]} : vector<64x64xbf16> to vector<64x8xbf16>
    %cst_41 = arith.constant dense<0.000000e+00> : vector<4x64xf32>
    %72 = tpu.matmul %69, %70, %cst_41 {dimension_numbers = #tpu.dot_dimension_numbers<[1], [1], [0], [0], [0, 0, 1, 0], [], []>} : vector<4x8xbf16>, vector<64x8xbf16>, vector<4x64xf32> -> vector<4x64xf32>
    %cst_42 = arith.constant dense<0xFF800000> : vector<4xf32>
    %73 = vector.multi_reduction <maximumf>, %72, %cst_42 [1] : vector<4x64xf32> to vector<4xf32>
    %74 = vector.shape_cast %73 : vector<4xf32> to vector<4x1xf32>
    %75 = vector.broadcast %74 : vector<4x1xf32> to vector<4x64xf32>
    %76 = arith.subf %72, %75 : vector<4x64xf32>
    %77 = math.exp %76 : vector<4x64xf32>
    %cst_43 = arith.constant dense<0.000000e+00> : vector<4xf32>
    %78 = vector.multi_reduction <add>, %77, %cst_43 [1] : vector<4x64xf32> to vector<4xf32>
    %79 = vector.shape_cast %78 : vector<4xf32> to vector<4x1xf32>
    %80 = tpu.reciprocal %79 {approx = true} : vector<4x1xf32> -> vector<4x1xf32>
    %81 = vector.broadcast %80 : vector<4x1xf32> to vector<4x64xf32>
    %82 = arith.mulf %77, %81 : vector<4x64xf32>
    %cst_44 = arith.constant dense<0.000000e+00> : vector<4xf32>
    %83 = vector.multi_reduction <add>, %82, %cst_44 [1] : vector<4x64xf32> to vector<4xf32>
    %84 = vector.shape_cast %83 : vector<4xf32> to vector<4x1xf32>
    %cst_45 = arith.constant 6.400000e+01 : f32
    %85 = vector.broadcast %cst_45 : f32 to vector<4x1xf32>
    %86 = arith.divf %84, %85 : vector<4x1xf32>
    %87 = vector.broadcast %86 : vector<4x1xf32> to vector<4x64xf32>
    %88 = arith.subf %82, %87 : vector<4x64xf32>
    %89 = arith.mulf %88, %88 : vector<4x64xf32>
    %cst_46 = arith.constant dense<0.000000e+00> : vector<4xf32>
    %90 = vector.multi_reduction <add>, %89, %cst_46 [1] : vector<4x64xf32> to vector<4xf32>
    %91 = vector.shape_cast %90 : vector<4xf32> to vector<4x1xf32>
    %cst_47 = arith.constant 6.400000e+01 : f32
    %92 = vector.broadcast %cst_47 : f32 to vector<4x1xf32>
    %93 = arith.divf %91, %92 : vector<4x1xf32>
    %cst_48 = arith.constant 9.99999974E-6 : f32
    %94 = vector.broadcast %cst_48 : f32 to vector<4x1xf32>
    %95 = arith.addf %93, %94 : vector<4x1xf32>
    %96 = math.rsqrt %95 : vector<4x1xf32>
    %97 = vector.broadcast %96 : vector<4x1xf32> to vector<4x64xf32>
    %98 = arith.mulf %88, %97 : vector<4x64xf32>
    %99 = vector.broadcast %65 : vector<1x64xf32> to vector<4x64xf32>
    %100 = arith.mulf %98, %99 : vector<4x64xf32>
    %101 = vector.broadcast %66 : vector<1x64xf32> to vector<4x64xf32>
    %102 = arith.addf %100, %101 : vector<4x64xf32>
    %103 = arith.truncf %102 : vector<4x64xf32> to vector<4x64xbf16>
    %c0_49 = arith.constant 0 : index
    %c0_50 = arith.constant 0 : index
    %104 = vector.load %arg21[%c0_49, %c0_50] : memref<64x192xbf16, #tpu.memory_space<vmem>>, vector<64x192xbf16>
    %cst_51 = arith.constant dense<0.000000e+00> : vector<4x192xf32>
    %105 = tpu.matmul %103, %104, %cst_51 {dimension_numbers = #tpu.dot_dimension_numbers<[1], [0], [0], [1], [0, 0, 1, 1], [], []>} : vector<4x64xbf16>, vector<64x192xbf16>, vector<4x192xf32> -> vector<4x192xf32>
    %106 = vector.broadcast %67 : vector<1x192xf32> to vector<4x192xf32>
    %107 = arith.addf %105, %106 : vector<4x192xf32>
    %cst_52 = arith.constant 5.000000e-01 : f32
    %108 = vector.broadcast %cst_52 : f32 to vector<4x192xf32>
    %109 = arith.mulf %108, %107 : vector<4x192xf32>
    %cst_53 = arith.constant 4.471500e-02 : f32
    %110 = vector.broadcast %cst_53 : f32 to vector<4x192xf32>
    %111 = arith.mulf %110, %107 : vector<4x192xf32>
    %112 = arith.mulf %111, %107 : vector<4x192xf32>
    %113 = arith.mulf %112, %107 : vector<4x192xf32>
    %114 = arith.addf %107, %113 : vector<4x192xf32>
    %cst_54 = arith.constant 0.797884583 : f32
    %115 = vector.broadcast %cst_54 : f32 to vector<4x192xf32>
    %116 = arith.mulf %115, %114 : vector<4x192xf32>
    %117 = math.tanh %116 : vector<4x192xf32>
    %cst_55 = arith.constant 1.000000e+00 : f32
    %118 = vector.broadcast %cst_55 : f32 to vector<4x192xf32>
    %119 = arith.addf %118, %117 : vector<4x192xf32>
    %120 = arith.mulf %109, %119 : vector<4x192xf32>
    %121 = arith.truncf %120 : vector<4x192xf32> to vector<4x192xbf16>
    %c0_56 = arith.constant 0 : index
    %c0_57 = arith.constant 0 : index
    %122 = vector.load %arg23[%c0_56, %c0_57] : memref<192x64xbf16, #tpu.memory_space<vmem>>, vector<192x64xbf16>
    %cst_58 = arith.constant dense<0.000000e+00> : vector<4x64xf32>
    %123 = tpu.matmul %121, %122, %cst_58 {dimension_numbers = #tpu.dot_dimension_numbers<[1], [0], [0], [1], [0, 0, 1, 1], [], []>} : vector<4x192xbf16>, vector<192x64xbf16>, vector<4x64xf32> -> vector<4x64xf32>
    %124 = arith.addf %82, %123 : vector<4x64xf32>
    %125 = vector.broadcast %68 : vector<1x64xf32> to vector<4x64xf32>
    %126 = arith.addf %124, %125 : vector<4x64xf32>
    %c0_59 = arith.constant 0 : index
    %c0_60 = arith.constant 0 : index
    %c0_61 = arith.constant 0 : index
    %127 = vector.load %arg25[%c0_59, %c0_60, %c0_61] : memref<1x4x256xf32, #tpu.memory_space<vmem>>, vector<1x4x64xf32>
    %128 = vector.shape_cast %127 : vector<1x4x64xf32> to vector<4x64xf32>
    %129 = vector.shape_cast %126 : vector<4x64xf32> to vector<1x4x64xf32>
    tpu.vector_store %arg25[%c0_59, %c0_60, %c0_61], %129 {strides = array<i32>} : memref<1x4x256xf32, #tpu.memory_space<vmem>>, vector<1x4x64xf32>,
    %130 = arith.truncf %82 : vector<4x64xf32> to vector<4x64xbf16>
    %cst_62 = arith.constant dense<0.000000e+00> : vector<4x8xf32>
    %131 = tpu.matmul %130, %71, %cst_62 {dimension_numbers = #tpu.dot_dimension_numbers<[1], [0], [0], [1], [0, 0, 1, 1], [], []>} : vector<4x64xbf16>, vector<64x8xbf16>, vector<4x8xf32> -> vector<4x8xf32>
    %132 = arith.truncf %131 : vector<4x8xf32> to vector<4x8xbf16>
    %c0_63 = arith.constant 0 : index
    %c0_64 = arith.constant 0 : index
    %133 = vector.load %arg11[%c0_63, %c0_64] : memref<32x32xbf16, #tpu.memory_space<vmem>>, vector<8x32xbf16>
    %cst_65 = arith.constant dense<0.000000e+00> : vector<4x32xf32>
    %134 = tpu.matmul %132, %133, %cst_65 {dimension_numbers = #tpu.dot_dimension_numbers<[1], [0], [0], [1], [0, 0, 1, 1], [], []>} : vector<4x8xbf16>, vector<8x32xbf16>, vector<4x32xf32> -> vector<4x32xf32>
    %135 = arith.addf %2, %134 : vector<4x32xf32>
    %136 = vector.extract_strided_slice %63 {offsets = [0, 8], sizes = [4, 8], strides = [1, 1]} : vector<4x32xbf16> to vector<4x8xbf16>
    %137 = vector.extract_strided_slice %64 {offsets = [0, 8], sizes = [64, 8], strides = [1, 1]} : vector<64x64xbf16> to vector<64x8xbf16>
    %138 = vector.extract_strided_slice %64 {offsets = [0, 40], sizes = [64, 8], strides = [1, 1]} : vector<64x64xbf16> to vector<64x8xbf16>
    %cst_66 = arith.constant dense<0.000000e+00> : vector<4x64xf32>
    %139 = tpu.matmul %136, %137, %cst_66 {dimension_numbers = #tpu.dot_dimension_numbers<[1], [1], [0], [0], [0, 0, 1, 0], [], []>} : vector<4x8xbf16>, vector<64x8xbf16>, vector<4x64xf32> -> vector<4x64xf32>
    %cst_67 = arith.constant dense<0xFF800000> : vector<4xf32>
    %140 = vector.multi_reduction <maximumf>, %139, %cst_67 [1] : vector<4x64xf32> to vector<4xf32>
    %141 = vector.shape_cast %140 : vector<4xf32> to vector<4x1xf32>
    %142 = vector.broadcast %141 : vector<4x1xf32> to vector<4x64xf32>
    %143 = arith.subf %139, %142 : vector<4x64xf32>
    %144 = math.exp %143 : vector<4x64xf32>
    %cst_68 = arith.constant dense<0.000000e+00> : vector<4xf32>
    %145 = vector.multi_reduction <add>, %144, %cst_68 [1] : vector<4x64xf32> to vector<4xf32>
    %146 = vector.shape_cast %145 : vector<4xf32> to vector<4x1xf32>
    %147 = tpu.reciprocal %146 {approx = true} : vector<4x1xf32> -> vector<4x1xf32>
    %148 = vector.broadcast %147 : vector<4x1xf32> to vector<4x64xf32>
    %149 = arith.mulf %144, %148 : vector<4x64xf32>
    %cst_69 = arith.constant dense<0.000000e+00> : vector<4xf32>
    %150 = vector.multi_reduction <add>, %149, %cst_69 [1] : vector<4x64xf32> to vector<4xf32>
    %151 = vector.shape_cast %150 : vector<4xf32> to vector<4x1xf32>
    %cst_70 = arith.constant 6.400000e+01 : f32
    %152 = vector.broadcast %cst_70 : f32 to vector<4x1xf32>
    %153 = arith.divf %151, %152 : vector<4x1xf32>
    %154 = vector.broadcast %153 : vector<4x1xf32> to vector<4x64xf32>
    %155 = arith.subf %149, %154 : vector<4x64xf32>
    %156 = arith.mulf %155, %155 : vector<4x64xf32>
    %cst_71 = arith.constant dense<0.000000e+00> : vector<4xf32>
    %157 = vector.multi_reduction <add>, %156, %cst_71 [1] : vector<4x64xf32> to vector<4xf32>
    %158 = vector.shape_cast %157 : vector<4xf32> to vector<4x1xf32>
    %cst_72 = arith.constant 6.400000e+01 : f32
    %159 = vector.broadcast %cst_72 : f32 to vector<4x1xf32>
    %160 = arith.divf %158, %159 : vector<4x1xf32>
    %cst_73 = arith.constant 9.99999974E-6 : f32
    %161 = vector.broadcast %cst_73 : f32 to vector<4x1xf32>
    %162 = arith.addf %160, %161 : vector<4x1xf32>
    %163 = math.rsqrt %162 : vector<4x1xf32>
    %164 = vector.broadcast %163 : vector<4x1xf32> to vector<4x64xf32>
    %165 = arith.mulf %155, %164 : vector<4x64xf32>
    %166 = vector.broadcast %65 : vector<1x64xf32> to vector<4x64xf32>
    %167 = arith.mulf %165, %166 : vector<4x64xf32>
    %168 = vector.broadcast %66 : vector<1x64xf32> to vector<4x64xf32>
    %169 = arith.addf %167, %168 : vector<4x64xf32>
    %170 = arith.truncf %169 : vector<4x64xf32> to vector<4x64xbf16>
    %c0_74 = arith.constant 0 : index
    %c0_75 = arith.constant 0 : index
    %171 = vector.load %arg21[%c0_74, %c0_75] : memref<64x192xbf16, #tpu.memory_space<vmem>>, vector<64x192xbf16>
    %cst_76 = arith.constant dense<0.000000e+00> : vector<4x192xf32>
    %172 = tpu.matmul %170, %171, %cst_76 {dimension_numbers = #tpu.dot_dimension_numbers<[1], [0], [0], [1], [0, 0, 1, 1], [], []>} : vector<4x64xbf16>, vector<64x192xbf16>, vector<4x192xf32> -> vector<4x192xf32>
    %173 = vector.broadcast %67 : vector<1x192xf32> to vector<4x192xf32>
    %174 = arith.addf %172, %173 : vector<4x192xf32>
    %cst_77 = arith.constant 5.000000e-01 : f32
    %175 = vector.broadcast %cst_77 : f32 to vector<4x192xf32>
    %176 = arith.mulf %175, %174 : vector<4x192xf32>
    %cst_78 = arith.constant 4.471500e-02 : f32
    %177 = vector.broadcast %cst_78 : f32 to vector<4x192xf32>
    %178 = arith.mulf %177, %174 : vector<4x192xf32>
    %179 = arith.mulf %178, %174 : vector<4x192xf32>
    %180 = arith.mulf %179, %174 : vector<4x192xf32>
    %181 = arith.addf %174, %180 : vector<4x192xf32>
    %cst_79 = arith.constant 0.797884583 : f32
    %182 = vector.broadcast %cst_79 : f32 to vector<4x192xf32>
    %183 = arith.mulf %182, %181 : vector<4x192xf32>
    %184 = math.tanh %183 : vector<4x192xf32>
    %cst_80 = arith.constant 1.000000e+00 : f32
    %185 = vector.broadcast %cst_80 : f32 to vector<4x192xf32>
    %186 = arith.addf %185, %184 : vector<4x192xf32>
    %187 = arith.mulf %176, %186 : vector<4x192xf32>
    %188 = arith.truncf %187 : vector<4x192xf32> to vector<4x192xbf16>
    %c0_81 = arith.constant 0 : index
    %c0_82 = arith.constant 0 : index
    %189 = vector.load %arg23[%c0_81, %c0_82] : memref<192x64xbf16, #tpu.memory_space<vmem>>, vector<192x64xbf16>
    %cst_83 = arith.constant dense<0.000000e+00> : vector<4x64xf32>
    %190 = tpu.matmul %188, %189, %cst_83 {dimension_numbers = #tpu.dot_dimension_numbers<[1], [0], [0], [1], [0, 0, 1, 1], [], []>} : vector<4x192xbf16>, vector<192x64xbf16>, vector<4x64xf32> -> vector<4x64xf32>
    %191 = arith.addf %149, %190 : vector<4x64xf32>
    %192 = vector.broadcast %68 : vector<1x64xf32> to vector<4x64xf32>
    %193 = arith.addf %191, %192 : vector<4x64xf32>
    %c0_84 = arith.constant 0 : index
    %c0_85 = arith.constant 0 : index
    %c64 = arith.constant 64 : index
    %194 = vector.load %arg25[%c0_84, %c0_85, %c64] : memref<1x4x256xf32, #tpu.memory_space<vmem>>, vector<1x4x64xf32>
    %195 = vector.shape_cast %194 : vector<1x4x64xf32> to vector<4x64xf32>
    %196 = vector.shape_cast %193 : vector<4x64xf32> to vector<1x4x64xf32>
    tpu.vector_store %arg25[%c0_84, %c0_85, %c64], %196 {strides = array<i32>} : memref<1x4x256xf32, #tpu.memory_space<vmem>>, vector<1x4x64xf32>,
    %197 = arith.truncf %149 : vector<4x64xf32> to vector<4x64xbf16>
    %cst_86 = arith.constant dense<0.000000e+00> : vector<4x8xf32>
    %198 = tpu.matmul %197, %138, %cst_86 {dimension_numbers = #tpu.dot_dimension_numbers<[1], [0], [0], [1], [0, 0, 1, 1], [], []>} : vector<4x64xbf16>, vector<64x8xbf16>, vector<4x8xf32> -> vector<4x8xf32>
    %199 = arith.truncf %198 : vector<4x8xf32> to vector<4x8xbf16>
    %c8 = arith.constant 8 : index
    %c0_87 = arith.constant 0 : index
    %200 = vector.load %arg11[%c8, %c0_87] : memref<32x32xbf16, #tpu.memory_space<vmem>>, vector<8x32xbf16>
    %cst_88 = arith.constant dense<0.000000e+00> : vector<4x32xf32>
    %201 = tpu.matmul %199, %200, %cst_88 {dimension_numbers = #tpu.dot_dimension_numbers<[1], [0], [0], [1], [0, 0, 1, 1], [], []>} : vector<4x8xbf16>, vector<8x32xbf16>, vector<4x32xf32> -> vector<4x32xf32>
    %202 = arith.addf %135, %201 : vector<4x32xf32>
    %203 = vector.extract_strided_slice %63 {offsets = [0, 16], sizes = [4, 8], strides = [1, 1]} : vector<4x32xbf16> to vector<4x8xbf16>
    %204 = vector.extract_strided_slice %64 {offsets = [0, 16], sizes = [64, 8], strides = [1, 1]} : vector<64x64xbf16> to vector<64x8xbf16>
    %205 = vector.extract_strided_slice %64 {offsets = [0, 48], sizes = [64, 8], strides = [1, 1]} : vector<64x64xbf16> to vector<64x8xbf16>
    %cst_89 = arith.constant dense<0.000000e+00> : vector<4x64xf32>
    %206 = tpu.matmul %203, %204, %cst_89 {dimension_numbers = #tpu.dot_dimension_numbers<[1], [1], [0], [0], [0, 0, 1, 0], [], []>} : vector<4x8xbf16>, vector<64x8xbf16>, vector<4x64xf32> -> vector<4x64xf32>
    %cst_90 = arith.constant dense<0xFF800000> : vector<4xf32>
    %207 = vector.multi_reduction <maximumf>, %206, %cst_90 [1] : vector<4x64xf32> to vector<4xf32>
    %208 = vector.shape_cast %207 : vector<4xf32> to vector<4x1xf32>
    %209 = vector.broadcast %208 : vector<4x1xf32> to vector<4x64xf32>
    %210 = arith.subf %206, %209 : vector<4x64xf32>
    %211 = math.exp %210 : vector<4x64xf32>
    %cst_91 = arith.constant dense<0.000000e+00> : vector<4xf32>
    %212 = vector.multi_reduction <add>, %211, %cst_91 [1] : vector<4x64xf32> to vector<4xf32>
    %213 = vector.shape_cast %212 : vector<4xf32> to vector<4x1xf32>
    %214 = tpu.reciprocal %213 {approx = true} : vector<4x1xf32> -> vector<4x1xf32>
    %215 = vector.broadcast %214 : vector<4x1xf32> to vector<4x64xf32>
    %216 = arith.mulf %211, %215 : vector<4x64xf32>
    %cst_92 = arith.constant dense<0.000000e+00> : vector<4xf32>
    %217 = vector.multi_reduction <add>, %216, %cst_92 [1] : vector<4x64xf32> to vector<4xf32>
    %218 = vector.shape_cast %217 : vector<4xf32> to vector<4x1xf32>
    %cst_93 = arith.constant 6.400000e+01 : f32
    %219 = vector.broadcast %cst_93 : f32 to vector<4x1xf32>
    %220 = arith.divf %218, %219 : vector<4x1xf32>
    %221 = vector.broadcast %220 : vector<4x1xf32> to vector<4x64xf32>
    %222 = arith.subf %216, %221 : vector<4x64xf32>
    %223 = arith.mulf %222, %222 : vector<4x64xf32>
    %cst_94 = arith.constant dense<0.000000e+00> : vector<4xf32>
    %224 = vector.multi_reduction <add>, %223, %cst_94 [1] : vector<4x64xf32> to vector<4xf32>
    %225 = vector.shape_cast %224 : vector<4xf32> to vector<4x1xf32>
    %cst_95 = arith.constant 6.400000e+01 : f32
    %226 = vector.broadcast %cst_95 : f32 to vector<4x1xf32>
    %227 = arith.divf %225, %226 : vector<4x1xf32>
    %cst_96 = arith.constant 9.99999974E-6 : f32
    %228 = vector.broadcast %cst_96 : f32 to vector<4x1xf32>
    %229 = arith.addf %227, %228 : vector<4x1xf32>
    %230 = math.rsqrt %229 : vector<4x1xf32>
    %231 = vector.broadcast %230 : vector<4x1xf32> to vector<4x64xf32>
    %232 = arith.mulf %222, %231 : vector<4x64xf32>
    %233 = vector.broadcast %65 : vector<1x64xf32> to vector<4x64xf32>
    %234 = arith.mulf %232, %233 : vector<4x64xf32>
    %235 = vector.broadcast %66 : vector<1x64xf32> to vector<4x64xf32>
    %236 = arith.addf %234, %235 : vector<4x64xf32>
    %237 = arith.truncf %236 : vector<4x64xf32> to vector<4x64xbf16>
    %c0_97 = arith.constant 0 : index
    %c0_98 = arith.constant 0 : index
    %238 = vector.load %arg21[%c0_97, %c0_98] : memref<64x192xbf16, #tpu.memory_space<vmem>>, vector<64x192xbf16>
    %cst_99 = arith.constant dense<0.000000e+00> : vector<4x192xf32>
    %239 = tpu.matmul %237, %238, %cst_99 {dimension_numbers = #tpu.dot_dimension_numbers<[1], [0], [0], [1], [0, 0, 1, 1], [], []>} : vector<4x64xbf16>, vector<64x192xbf16>, vector<4x192xf32> -> vector<4x192xf32>
    %240 = vector.broadcast %67 : vector<1x192xf32> to vector<4x192xf32>
    %241 = arith.addf %239, %240 : vector<4x192xf32>
    %cst_100 = arith.constant 5.000000e-01 : f32
    %242 = vector.broadcast %cst_100 : f32 to vector<4x192xf32>
    %243 = arith.mulf %242, %241 : vector<4x192xf32>
    %cst_101 = arith.constant 4.471500e-02 : f32
    %244 = vector.broadcast %cst_101 : f32 to vector<4x192xf32>
    %245 = arith.mulf %244, %241 : vector<4x192xf32>
    %246 = arith.mulf %245, %241 : vector<4x192xf32>
    %247 = arith.mulf %246, %241 : vector<4x192xf32>
    %248 = arith.addf %241, %247 : vector<4x192xf32>
    %cst_102 = arith.constant 0.797884583 : f32
    %249 = vector.broadcast %cst_102 : f32 to vector<4x192xf32>
    %250 = arith.mulf %249, %248 : vector<4x192xf32>
    %251 = math.tanh %250 : vector<4x192xf32>
    %cst_103 = arith.constant 1.000000e+00 : f32
    %252 = vector.broadcast %cst_103 : f32 to vector<4x192xf32>
    %253 = arith.addf %252, %251 : vector<4x192xf32>
    %254 = arith.mulf %243, %253 : vector<4x192xf32>
    %255 = arith.truncf %254 : vector<4x192xf32> to vector<4x192xbf16>
    %c0_104 = arith.constant 0 : index
    %c0_105 = arith.constant 0 : index
    %256 = vector.load %arg23[%c0_104, %c0_105] : memref<192x64xbf16, #tpu.memory_space<vmem>>, vector<192x64xbf16>
    %cst_106 = arith.constant dense<0.000000e+00> : vector<4x64xf32>
    %257 = tpu.matmul %255, %256, %cst_106 {dimension_numbers = #tpu.dot_dimension_numbers<[1], [0], [0], [1], [0, 0, 1, 1], [], []>} : vector<4x192xbf16>, vector<192x64xbf16>, vector<4x64xf32> -> vector<4x64xf32>
    %258 = arith.addf %216, %257 : vector<4x64xf32>
    %259 = vector.broadcast %68 : vector<1x64xf32> to vector<4x64xf32>
    %260 = arith.addf %258, %259 : vector<4x64xf32>
    %c0_107 = arith.constant 0 : index
    %c0_108 = arith.constant 0 : index
    %c128 = arith.constant 128 : index
    %261 = vector.load %arg25[%c0_107, %c0_108, %c128] : memref<1x4x256xf32, #tpu.memory_space<vmem>>, vector<1x4x64xf32>
    %262 = vector.shape_cast %261 : vector<1x4x64xf32> to vector<4x64xf32>
    %263 = vector.shape_cast %260 : vector<4x64xf32> to vector<1x4x64xf32>
    tpu.vector_store %arg25[%c0_107, %c0_108, %c128], %263 {strides = array<i32>} : memref<1x4x256xf32, #tpu.memory_space<vmem>>, vector<1x4x64xf32>,
    %264 = arith.truncf %216 : vector<4x64xf32> to vector<4x64xbf16>
    %cst_109 = arith.constant dense<0.000000e+00> : vector<4x8xf32>
    %265 = tpu.matmul %264, %205, %cst_109 {dimension_numbers = #tpu.dot_dimension_numbers<[1], [0], [0], [1], [0, 0, 1, 1], [], []>} : vector<4x64xbf16>, vector<64x8xbf16>, vector<4x8xf32> -> vector<4x8xf32>
    %266 = arith.truncf %265 : vector<4x8xf32> to vector<4x8xbf16>
    %c16 = arith.constant 16 : index
    %c0_110 = arith.constant 0 : index
    %267 = vector.load %arg11[%c16, %c0_110] : memref<32x32xbf16, #tpu.memory_space<vmem>>, vector<8x32xbf16>
    %cst_111 = arith.constant dense<0.000000e+00> : vector<4x32xf32>
    %268 = tpu.matmul %266, %267, %cst_111 {dimension_numbers = #tpu.dot_dimension_numbers<[1], [0], [0], [1], [0, 0, 1, 1], [], []>} : vector<4x8xbf16>, vector<8x32xbf16>, vector<4x32xf32> -> vector<4x32xf32>
    %269 = arith.addf %202, %268 : vector<4x32xf32>
    %270 = vector.extract_strided_slice %63 {offsets = [0, 24], sizes = [4, 8], strides = [1, 1]} : vector<4x32xbf16> to vector<4x8xbf16>
    %271 = vector.extract_strided_slice %64 {offsets = [0, 24], sizes = [64, 8], strides = [1, 1]} : vector<64x64xbf16> to vector<64x8xbf16>
    %272 = vector.extract_strided_slice %64 {offsets = [0, 56], sizes = [64, 8], strides = [1, 1]} : vector<64x64xbf16> to vector<64x8xbf16>
    %cst_112 = arith.constant dense<0.000000e+00> : vector<4x64xf32>
    %273 = tpu.matmul %270, %271, %cst_112 {dimension_numbers = #tpu.dot_dimension_numbers<[1], [1], [0], [0], [0, 0, 1, 0], [], []>} : vector<4x8xbf16>, vector<64x8xbf16>, vector<4x64xf32> -> vector<4x64xf32>
    %cst_113 = arith.constant dense<0xFF800000> : vector<4xf32>
    %274 = vector.multi_reduction <maximumf>, %273, %cst_113 [1] : vector<4x64xf32> to vector<4xf32>
    %275 = vector.shape_cast %274 : vector<4xf32> to vector<4x1xf32>
    %276 = vector.broadcast %275 : vector<4x1xf32> to vector<4x64xf32>
    %277 = arith.subf %273, %276 : vector<4x64xf32>
    %278 = math.exp %277 : vector<4x64xf32>
    %cst_114 = arith.constant dense<0.000000e+00> : vector<4xf32>
    %279 = vector.multi_reduction <add>, %278, %cst_114 [1] : vector<4x64xf32> to vector<4xf32>
    %280 = vector.shape_cast %279 : vector<4xf32> to vector<4x1xf32>
    %281 = tpu.reciprocal %280 {approx = true} : vector<4x1xf32> -> vector<4x1xf32>
    %282 = vector.broadcast %281 : vector<4x1xf32> to vector<4x64xf32>
    %283 = arith.mulf %278, %282 : vector<4x64xf32>
    %cst_115 = arith.constant dense<0.000000e+00> : vector<4xf32>
    %284 = vector.multi_reduction <add>, %283, %cst_115 [1] : vector<4x64xf32> to vector<4xf32>
    %285 = vector.shape_cast %284 : vector<4xf32> to vector<4x1xf32>
    %cst_116 = arith.constant 6.400000e+01 : f32
    %286 = vector.broadcast %cst_116 : f32 to vector<4x1xf32>
    %287 = arith.divf %285, %286 : vector<4x1xf32>
    %288 = vector.broadcast %287 : vector<4x1xf32> to vector<4x64xf32>
    %289 = arith.subf %283, %288 : vector<4x64xf32>
    %290 = arith.mulf %289, %289 : vector<4x64xf32>
    %cst_117 = arith.constant dense<0.000000e+00> : vector<4xf32>
    %291 = vector.multi_reduction <add>, %290, %cst_117 [1] : vector<4x64xf32> to vector<4xf32>
    %292 = vector.shape_cast %291 : vector<4xf32> to vector<4x1xf32>
    %cst_118 = arith.constant 6.400000e+01 : f32
    %293 = vector.broadcast %cst_118 : f32 to vector<4x1xf32>
    %294 = arith.divf %292, %293 : vector<4x1xf32>
    %cst_119 = arith.constant 9.99999974E-6 : f32
    %295 = vector.broadcast %cst_119 : f32 to vector<4x1xf32>
    %296 = arith.addf %294, %295 : vector<4x1xf32>
    %297 = math.rsqrt %296 : vector<4x1xf32>
    %298 = vector.broadcast %297 : vector<4x1xf32> to vector<4x64xf32>
    %299 = arith.mulf %289, %298 : vector<4x64xf32>
    %300 = vector.broadcast %65 : vector<1x64xf32> to vector<4x64xf32>
    %301 = arith.mulf %299, %300 : vector<4x64xf32>
    %302 = vector.broadcast %66 : vector<1x64xf32> to vector<4x64xf32>
    %303 = arith.addf %301, %302 : vector<4x64xf32>
    %304 = arith.truncf %303 : vector<4x64xf32> to vector<4x64xbf16>
    %c0_120 = arith.constant 0 : index
    %c0_121 = arith.constant 0 : index
    %305 = vector.load %arg21[%c0_120, %c0_121] : memref<64x192xbf16, #tpu.memory_space<vmem>>, vector<64x192xbf16>
    %cst_122 = arith.constant dense<0.000000e+00> : vector<4x192xf32>
    %306 = tpu.matmul %304, %305, %cst_122 {dimension_numbers = #tpu.dot_dimension_numbers<[1], [0], [0], [1], [0, 0, 1, 1], [], []>} : vector<4x64xbf16>, vector<64x192xbf16>, vector<4x192xf32> -> vector<4x192xf32>
    %307 = vector.broadcast %67 : vector<1x192xf32> to vector<4x192xf32>
    %308 = arith.addf %306, %307 : vector<4x192xf32>
    %cst_123 = arith.constant 5.000000e-01 : f32
    %309 = vector.broadcast %cst_123 : f32 to vector<4x192xf32>
    %310 = arith.mulf %309, %308 : vector<4x192xf32>
    %cst_124 = arith.constant 4.471500e-02 : f32
    %311 = vector.broadcast %cst_124 : f32 to vector<4x192xf32>
    %312 = arith.mulf %311, %308 : vector<4x192xf32>
    %313 = arith.mulf %312, %308 : vector<4x192xf32>
    %314 = arith.mulf %313, %308 : vector<4x192xf32>
    %315 = arith.addf %308, %314 : vector<4x192xf32>
    %cst_125 = arith.constant 0.797884583 : f32
    %316 = vector.broadcast %cst_125 : f32 to vector<4x192xf32>
    %317 = arith.mulf %316, %315 : vector<4x192xf32>
    %318 = math.tanh %317 : vector<4x192xf32>
    %cst_126 = arith.constant 1.000000e+00 : f32
    %319 = vector.broadcast %cst_126 : f32 to vector<4x192xf32>
    %320 = arith.addf %319, %318 : vector<4x192xf32>
    %321 = arith.mulf %310, %320 : vector<4x192xf32>
    %322 = arith.truncf %321 : vector<4x192xf32> to vector<4x192xbf16>
    %c0_127 = arith.constant 0 : index
    %c0_128 = arith.constant 0 : index
    %323 = vector.load %arg23[%c0_127, %c0_128] : memref<192x64xbf16, #tpu.memory_space<vmem>>, vector<192x64xbf16>
    %cst_129 = arith.constant dense<0.000000e+00> : vector<4x64xf32>
    %324 = tpu.matmul %322, %323, %cst_129 {dimension_numbers = #tpu.dot_dimension_numbers<[1], [0], [0], [1], [0, 0, 1, 1], [], []>} : vector<4x192xbf16>, vector<192x64xbf16>, vector<4x64xf32> -> vector<4x64xf32>
    %325 = arith.addf %283, %324 : vector<4x64xf32>
    %326 = vector.broadcast %68 : vector<1x64xf32> to vector<4x64xf32>
    %327 = arith.addf %325, %326 : vector<4x64xf32>
    %c0_130 = arith.constant 0 : index
    %c0_131 = arith.constant 0 : index
    %c192 = arith.constant 192 : index
    %328 = vector.load %arg25[%c0_130, %c0_131, %c192] : memref<1x4x256xf32, #tpu.memory_space<vmem>>, vector<1x4x64xf32>
    %329 = vector.shape_cast %328 : vector<1x4x64xf32> to vector<4x64xf32>
    %330 = vector.shape_cast %327 : vector<4x64xf32> to vector<1x4x64xf32>
    tpu.vector_store %arg25[%c0_130, %c0_131, %c192], %330 {strides = array<i32>} : memref<1x4x256xf32, #tpu.memory_space<vmem>>, vector<1x4x64xf32>,
    %331 = arith.truncf %283 : vector<4x64xf32> to vector<4x64xbf16>
    %cst_132 = arith.constant dense<0.000000e+00> : vector<4x8xf32>
    %332 = tpu.matmul %331, %272, %cst_132 {dimension_numbers = #tpu.dot_dimension_numbers<[1], [0], [0], [1], [0, 0, 1, 1], [], []>} : vector<4x64xbf16>, vector<64x8xbf16>, vector<4x8xf32> -> vector<4x8xf32>
    %333 = arith.truncf %332 : vector<4x8xf32> to vector<4x8xbf16>
    %c24 = arith.constant 24 : index
    %c0_133 = arith.constant 0 : index
    %334 = vector.load %arg11[%c24, %c0_133] : memref<32x32xbf16, #tpu.memory_space<vmem>>, vector<8x32xbf16>
    %cst_134 = arith.constant dense<0.000000e+00> : vector<4x32xf32>
    %335 = tpu.matmul %333, %334, %cst_134 {dimension_numbers = #tpu.dot_dimension_numbers<[1], [0], [0], [1], [0, 0, 1, 1], [], []>} : vector<4x8xbf16>, vector<8x32xbf16>, vector<4x32xf32> -> vector<4x32xf32>
    %336 = arith.addf %269, %335 : vector<4x32xf32>
    %c0_135 = arith.constant 0 : index
    %c0_136 = arith.constant 0 : index
    %337 = vector.load %arg12[%c0_135, %c0_136] : memref<1x32xf32, #tpu.memory_space<vmem>>, vector<1x32xf32>
    %338 = vector.broadcast %337 : vector<1x32xf32> to vector<4x32xf32>
    %339 = arith.addf %336, %338 : vector<4x32xf32>
    %c0_137 = arith.constant 0 : index
    %c0_138 = arith.constant 0 : index
    %340 = vector.load %arg13[%c0_137, %c0_138] : memref<1x32xf32, #tpu.memory_space<vmem>>, vector<1x32xf32>
    %c0_139 = arith.constant 0 : index
    %c0_140 = arith.constant 0 : index
    %341 = vector.load %arg14[%c0_139, %c0_140] : memref<1x32xf32, #tpu.memory_space<vmem>>, vector<1x32xf32>
    %cst_141 = arith.constant dense<0.000000e+00> : vector<4xf32>
    %342 = vector.multi_reduction <add>, %339, %cst_141 [1] : vector<4x32xf32> to vector<4xf32>
    %343 = vector.shape_cast %342 : vector<4xf32> to vector<4x1xf32>
    %cst_142 = arith.constant 3.200000e+01 : f32
    %344 = vector.broadcast %cst_142 : f32 to vector<4x1xf32>
    %345 = arith.divf %343, %344 : vector<4x1xf32>
    %346 = vector.broadcast %345 : vector<4x1xf32> to vector<4x32xf32>
    %347 = arith.subf %339, %346 : vector<4x32xf32>
    %348 = arith.mulf %347, %347 : vector<4x32xf32>
    %cst_143 = arith.constant dense<0.000000e+00> : vector<4xf32>
    %349 = vector.multi_reduction <add>, %348, %cst_143 [1] : vector<4x32xf32> to vector<4xf32>
    %350 = vector.shape_cast %349 : vector<4xf32> to vector<4x1xf32>
    %cst_144 = arith.constant 3.200000e+01 : f32
    %351 = vector.broadcast %cst_144 : f32 to vector<4x1xf32>
    %352 = arith.divf %350, %351 : vector<4x1xf32>
    %cst_145 = arith.constant 9.99999974E-6 : f32
    %353 = vector.broadcast %cst_145 : f32 to vector<4x1xf32>
    %354 = arith.addf %352, %353 : vector<4x1xf32>
    %355 = math.rsqrt %354 : vector<4x1xf32>
    %356 = vector.broadcast %355 : vector<4x1xf32> to vector<4x32xf32>
    %357 = arith.mulf %347, %356 : vector<4x32xf32>
    %358 = vector.broadcast %340 : vector<1x32xf32> to vector<4x32xf32>
    %359 = arith.mulf %357, %358 : vector<4x32xf32>
    %360 = vector.broadcast %341 : vector<1x32xf32> to vector<4x32xf32>
    %361 = arith.addf %359, %360 : vector<4x32xf32>
    %362 = arith.truncf %361 : vector<4x32xf32> to vector<4x32xbf16>
    %c0_146 = arith.constant 0 : index
    %c0_147 = arith.constant 0 : index
    %363 = vector.load %arg15[%c0_146, %c0_147] : memref<32x64xbf16, #tpu.memory_space<vmem>>, vector<32x64xbf16>
    %cst_148 = arith.constant dense<0.000000e+00> : vector<4x64xf32>
    %364 = tpu.matmul %362, %363, %cst_148 {dimension_numbers = #tpu.dot_dimension_numbers<[1], [0], [0], [1], [0, 0, 1, 1], [], []>} : vector<4x32xbf16>, vector<32x64xbf16>, vector<4x64xf32> -> vector<4x64xf32>
    %c0_149 = arith.constant 0 : index
    %c0_150 = arith.constant 0 : index
    %365 = vector.load %arg16[%c0_149, %c0_150] : memref<1x64xf32, #tpu.memory_space<vmem>>, vector<1x64xf32>
    %366 = vector.broadcast %365 : vector<1x64xf32> to vector<4x64xf32>
    %367 = arith.addf %364, %366 : vector<4x64xf32>
    %cst_151 = arith.constant 5.000000e-01 : f32
    %368 = vector.broadcast %cst_151 : f32 to vector<4x64xf32>
    %369 = arith.mulf %368, %367 : vector<4x64xf32>
    %cst_152 = arith.constant 4.471500e-02 : f32
    %370 = vector.broadcast %cst_152 : f32 to vector<4x64xf32>
    %371 = arith.mulf %370, %367 : vector<4x64xf32>
    %372 = arith.mulf %371, %367 : vector<4x64xf32>
    %373 = arith.mulf %372, %367 : vector<4x64xf32>
    %374 = arith.addf %367, %373 : vector<4x64xf32>
    %cst_153 = arith.constant 0.797884583 : f32
    %375 = vector.broadcast %cst_153 : f32 to vector<4x64xf32>
    %376 = arith.mulf %375, %374 : vector<4x64xf32>
    %377 = math.tanh %376 : vector<4x64xf32>
    %cst_154 = arith.constant 1.000000e+00 : f32
    %378 = vector.broadcast %cst_154 : f32 to vector<4x64xf32>
    %379 = arith.addf %378, %377 : vector<4x64xf32>
    %380 = arith.mulf %369, %379 : vector<4x64xf32>
    %381 = arith.truncf %380 : vector<4x64xf32> to vector<4x64xbf16>
    %c0_155 = arith.constant 0 : index
    %c0_156 = arith.constant 0 : index
    %382 = vector.load %arg17[%c0_155, %c0_156] : memref<64x32xbf16, #tpu.memory_space<vmem>>, vector<64x32xbf16>
    %cst_157 = arith.constant dense<0.000000e+00> : vector<4x32xf32>
    %383 = tpu.matmul %381, %382, %cst_157 {dimension_numbers = #tpu.dot_dimension_numbers<[1], [0], [0], [1], [0, 0, 1, 1], [], []>} : vector<4x64xbf16>, vector<64x32xbf16>, vector<4x32xf32> -> vector<4x32xf32>
    %384 = arith.addf %339, %383 : vector<4x32xf32>
    %c0_158 = arith.constant 0 : index
    %c0_159 = arith.constant 0 : index
    %385 = vector.load %arg18[%c0_158, %c0_159] : memref<1x32xf32, #tpu.memory_space<vmem>>, vector<1x32xf32>
    %386 = vector.broadcast %385 : vector<1x32xf32> to vector<4x32xf32>
    %387 = arith.addf %384, %386 : vector<4x32xf32>
    %388 = arith.truncf %387 : vector<4x32xf32> to vector<4x32xbf16>
    %c0_160 = arith.constant 0 : index
    %c0_161 = arith.constant 0 : index
    %c0_162 = arith.constant 0 : index
    %389 = vector.load %arg26[%c0_160, %c0_161, %c0_162] : memref<1x4x32xbf16, #tpu.memory_space<vmem>>, vector<1x4x32xbf16>
    %390 = vector.shape_cast %389 : vector<1x4x32xbf16> to vector<4x32xbf16>
    %391 = vector.shape_cast %388 : vector<4x32xbf16> to vector<1x4x32xbf16>
    tpu.vector_store %arg26[%c0_160, %c0_161, %c0_162], %391 {strides = array<i32>} : memref<1x4x32xbf16, #tpu.memory_space<vmem>>, vector<1x4x32xbf16>,
    return
  }
  func.func @transform_0(%arg0: i32) -> (i32, i32, i32) {
    %c0_i32 = arith.constant 0 : i32
    %c0_i32_0 = arith.constant 0 : i32
    %c0_i32_1 = arith.constant 0 : i32
    return %arg0, %c0_i32, %c0_i32_0 : i32, i32, i32
  }
  func.func @transform_1(%arg0: i32) -> (i32, i32, i32) {
    %c0_i32 = arith.constant 0 : i32
    %c0_i32_0 = arith.constant 0 : i32
    %c0_i32_1 = arith.constant 0 : i32
    return %arg0, %c0_i32, %c0_i32_0 : i32, i32, i32
  }
  func.func @transform_2(%arg0: i32) -> (i32, i32) {
    %c0_i32 = arith.constant 0 : i32
    %c0_i32_0 = arith.constant 0 : i32
    %c0_i32_1 = arith.constant 0 : i32
    return %c0_i32, %c0_i32_0 : i32, i32
  }
  func.func @transform_3(%arg0: i32) -> (i32, i32) {
    %c0_i32 = arith.constant 0 : i32
    %c0_i32_0 = arith.constant 0 : i32
    %c0_i32_1 = arith.constant 0 : i32
    return %c0_i32, %c0_i32_0 : i32, i32
  }
  func.func @transform_4(%arg0: i32) -> (i32, i32) {
    %c0_i32 = arith.constant 0 : i32
    %c0_i32_0 = arith.constant 0 : i32
    %c0_i32_1 = arith.constant 0 : i32
    return %c0_i32, %c0_i32_0 : i32, i32
  }
  func.func @transform_5(%arg0: i32) -> (i32, i32) {
    %c0_i32 = arith.constant 0 : i32
    %c0_i32_0 = arith.constant 0 : i32
    %c0_i32_1 = arith.constant 0 : i32
    return %c0_i32, %c0_i32_0 : i32, i32
  }
  func.func @transform_6(%arg0: i32) -> (i32, i32) {
    %c0_i32 = arith.constant 0 : i32
    %c0_i32_0 = arith.constant 0 : i32
    %c0_i32_1 = arith.constant 0 : i32
    return %c0_i32, %c0_i32_0 : i32, i32
  }
  func.func @transform_7(%arg0: i32) -> (i32, i32) {
    %c0_i32 = arith.constant 0 : i32
    %c0_i32_0 = arith.constant 0 : i32
    %c0_i32_1 = arith.constant 0 : i32
    return %c0_i32, %c0_i32_0 : i32, i32
  }
  func.func @transform_8(%arg0: i32) -> (i32, i32) {
    %c0_i32 = arith.constant 0 : i32
    %c0_i32_0 = arith.constant 0 : i32
    %c0_i32_1 = arith.constant 0 : i32
    return %c0_i32, %c0_i32_0 : i32, i32
  }
  func.func @transform_9(%arg0: i32) -> (i32, i32) {
    %c0_i32 = arith.constant 0 : i32
    %c0_i32_0 = arith.constant 0 : i32
    %c0_i32_1 = arith.constant 0 : i32
    return %c0_i32, %c0_i32_0 : i32, i32
  }
  func.func @transform_10(%arg0: i32) -> (i32, i32) {
    %c0_i32 = arith.constant 0 : i32
    %c0_i32_0 = arith.constant 0 : i32
    %c0_i32_1 = arith.constant 0 : i32
    return %c0_i32, %c0_i32_0 : i32, i32
  }
  func.func @transform_11(%arg0: i32) -> (i32, i32) {
    %c0_i32 = arith.constant 0 : i32
    %c0_i32_0 = arith.constant 0 : i32
    %c0_i32_1 = arith.constant 0 : i32
    return %c0_i32, %c0_i32_0 : i32, i32
  }
  func.func @transform_12(%arg0: i32) -> (i32, i32) {
    %c0_i32 = arith.constant 0 : i32
    %c0_i32_0 = arith.constant 0 : i32
    %c0_i32_1 = arith.constant 0 : i32
    return %c0_i32, %c0_i32_0 : i32, i32
  }
  func.func @transform_13(%arg0: i32) -> (i32, i32) {
    %c0_i32 = arith.constant 0 : i32
    %c0_i32_0 = arith.constant 0 : i32
    %c0_i32_1 = arith.constant 0 : i32
    return %c0_i32, %c0_i32_0 : i32, i32
  }
  func.func @transform_14(%arg0: i32) -> (i32, i32) {
    %c0_i32 = arith.constant 0 : i32
    %c0_i32_0 = arith.constant 0 : i32
    %c0_i32_1 = arith.constant 0 : i32
    return %c0_i32, %c0_i32_0 : i32, i32
  }
  func.func @transform_15(%arg0: i32) -> (i32, i32) {
    %c0_i32 = arith.constant 0 : i32
    %c0_i32_0 = arith.constant 0 : i32
    %c0_i32_1 = arith.constant 0 : i32
    return %c0_i32, %c0_i32_0 : i32, i32
  }
  func.func @transform_16(%arg0: i32) -> (i32, i32) {
    %c0_i32 = arith.constant 0 : i32
    %c0_i32_0 = arith.constant 0 : i32
    %c0_i32_1 = arith.constant 0 : i32
    return %c0_i32, %c0_i32_0 : i32, i32
  }
  func.func @transform_17(%arg0: i32) -> (i32, i32) {
    %c0_i32 = arith.constant 0 : i32
    %c0_i32_0 = arith.constant 0 : i32
    %c0_i32_1 = arith.constant 0 : i32
    return %c0_i32, %c0_i32_0 : i32, i32
  }
  func.func @transform_18(%arg0: i32) -> (i32, i32) {
    %c0_i32 = arith.constant 0 : i32
    %c0_i32_0 = arith.constant 0 : i32
    %c0_i32_1 = arith.constant 0 : i32
    return %c0_i32, %c0_i32_0 : i32, i32
  }
  func.func @transform_19(%arg0: i32) -> (i32, i32) {
    %c0_i32 = arith.constant 0 : i32
    %c0_i32_0 = arith.constant 0 : i32
    %c0_i32_1 = arith.constant 0 : i32
    return %c0_i32, %c0_i32_0 : i32, i32
  }
  func.func @transform_20(%arg0: i32) -> (i32, i32) {
    %c0_i32 = arith.constant 0 : i32
    %c0_i32_0 = arith.constant 0 : i32
    %c0_i32_1 = arith.constant 0 : i32
    return %c0_i32, %c0_i32_0 : i32, i32
  }
  func.func @transform_21(%arg0: i32) -> (i32, i32) {
    %c0_i32 = arith.constant 0 : i32
    %c0_i32_0 = arith.constant 0 : i32
    %c0_i32_1 = arith.constant 0 : i32
    return %c0_i32, %c0_i32_0 : i32, i32
  }
  func.func @transform_22(%arg0: i32) -> (i32, i32) {
    %c0_i32 = arith.constant 0 : i32
    %c0_i32_0 = arith.constant 0 : i32
    %c0_i32_1 = arith.constant 0 : i32
    return %c0_i32, %c0_i32_0 : i32, i32
  }
  func.func @transform_23(%arg0: i32) -> (i32, i32) {
    %c0_i32 = arith.constant 0 : i32
    %c0_i32_0 = arith.constant 0 : i32
    %c0_i32_1 = arith.constant 0 : i32
    return %c0_i32, %c0_i32_0 : i32, i32
  }
  func.func @transform_24(%arg0: i32) -> (i32, i32, i32) {
    %c0_i32 = arith.constant 0 : i32
    %c0_i32_0 = arith.constant 0 : i32
    %c0_i32_1 = arith.constant 0 : i32
    return %arg0, %c0_i32, %c0_i32_0 : i32, i32, i32
  }
  func.func @transform_25(%arg0: i32) -> (i32, i32, i32) {
    %c0_i32 = arith.constant 0 : i32
    %c0_i32_0 = arith.constant 0 : i32
    %c0_i32_1 = arith.constant 0 : i32
    return %arg0, %c0_i32, %c0_i32_0 : i32, i32, i32
  }
}

</mosaic_0001>

<bundles_post_ra>
// kernel: _lambda_.9
= control target key start
LH: loop header
LB: loop body
LE: loop exit
PB: predicated region body
PF: predicated region fallthrough
CT: control target
= control target key end

     0   :  { %s493_s12 = smov 0   ;;  %s603_s0 = inlined_call_operand.vmem [shape: bf16[2,65,32], index: 0, kind: input, shape index: {}]   ;;  %s604_s1 = inlined_call_operand.vmem [shape: f32[1,32], index: 1, kind: input, shape index: {}]   ;;  %s605_s2 = inlined_call_operand.vmem [shape: f32[1,32], index: 2, kind: input, shape index: {}]   ;;  %s606_s3 = inlined_call_operand.vmem [shape: f32[2,64,32], index: 3, kind: output, shape index: {}]  }
   0x1 LB: > { %s406_s13 = sadd.s32 4294967295, %s471_s12   ;;  %p410_p0 = scmp.ge.s32.totalorder %s471_s12, 1  ;;  %s471_s12 = sphi %s493_s12, %s13_s12  }
   0x2   : > { %p137_p1 = scmp.lt.s32.totalorder %s471_s12, 3 }
   0x4   : > { %p138_p2 = pnand %p410_p0, %p137_p1 }
   0x5   : > { %p161_p3 = scmp.lt.s32.totalorder (!%p138_p2), %s406_s13, 1  ;;  %vm191_vm0 = vcmask (!%p138_p2), 261121   ;;  %vm195_vm1 = vcmask (!%p138_p2), 261120   ;;  %vm217_vm2 = vcmask (!%p138_p2), 253952  }
   0x6   : > { %141 = sbr.rel (%p138_p2) target bundleno = 351 (0x15f), region = 32 }
   0xd   : > { %s608_s13 = smov (!%p161_p3, %s406_s13), 1 }
   0xe   : > { %s438_s14 = smul.u32 36, %s608_s13  ;;  %s418_s20 = sshll.u32 %s608_s13, 6 }
   0xf   : > { %s572_s25 = scalar_lea.vmem %s606_s3, %s418_s20 }
  0x10   : > { %s165_s17 = scalar_lea.vmem %s603_s0, %s438_s14 }
  0x11   : > { %v420_v0 = vld [vmem:[%s165_s17] sm:$0xff]   ;;  %v435_v1 = vld [vmem:[%s165_s17 + $0x8] sm:$0xff]   ;;  %v436_v6 = vld [vmem:[%s165_s17 + $0x10] sm:$0xff]  }
  0x12   : > { %v421_v2 = vunpack.c.l.bf16 %v420_v0  ;;  %v425_v3 = vunpack.c.l.bf16 %v435_v1  ;;  %v422_v4 = vunpack.c.h.bf16 %v420_v0  ;;  %v426_v5 = vunpack.c.h.bf16 %v435_v1  ;;  %v437_v13 = vld [vmem:[%s165_s17 + $0x18] sm:$0xff]   ;;  %v179_v18 = vld [vmem:[%s165_s17 + $0x20] sm:$0x1] }
  0x13   : > { %v429_v11 = vunpack.c.l.bf16 %v436_v6  ;;  %v430_v12 = vunpack.c.h.bf16 %v436_v6  ;;  %v433_v16 = vunpack.c.l.bf16 %v437_v13  ;;  %v434_v17 = vunpack.c.h.bf16 %v437_v13 }
  0x14   : > { %v192_v7 = vsel %vm191_vm0, %v421_v2, 0.0  ;;  %v199_v8 = vsel %vm195_vm1, %v425_v3, 0.0  ;;  %v196_v9 = vsel %vm195_vm1, %v422_v4, 0.0  ;;  %v202_v10 = vsel %vm195_vm1, %v426_v5, 0.0 }
  0x15   : > { %193 = vadd.xlane.f32.xlu0 %v192_v7  ;;  %200 = vadd.xlane.f32.xlu1 %v199_v8  ;;  %v205_v14 = vsel %vm195_vm1, %v429_v11, 0.0  ;;  %v208_v15 = vsel %vm195_vm1, %v430_v12, 0.0  ;;  %v211_v19 = vsel %vm195_vm1, %v433_v16, 0.0  ;;  %v214_v20 = vsel %vm195_vm1, %v434_v17, 0.0 }
  0x16   : > { %v188_v21 = vunpack.c.l.bf16 %v179_v18 }
  0x18   : > { %v218_v22 = vsel %vm217_vm2, %v188_v21, 0.0 }
  0x19   : > { %197 = vadd.xlane.f32.xlu0 %v196_v9  ;;  %203 = vadd.xlane.f32.xlu1 %v202_v10 }
  0x1d   : > { %206 = vadd.xlane.f32.xlu0 %v205_v14  ;;  %209 = vadd.xlane.f32.xlu1 %v208_v15 }
  0x21   : > { %212 = vadd.xlane.f32.xlu0 %v211_v19  ;;  %215 = vadd.xlane.f32.xlu1 %v214_v20 }
  0x25   : > { %219 = vadd.xlane.f32.xlu0 %v218_v22 }
  0xa2   : > { %v194_v23 = vpop.xlane.xlu0 %193  ;;  %v201_v24 = vpop.xlane.xlu1 %200 }
  0xa3   : > { %v222_v25 = vmul.f32 0.03125, %v194_v23  ;;  %v224_v26 = vmul.f32 0.03125, %v201_v24  ;;  %v414_v24 = vld [vmem:[%s604_s1] ss:$0 sm:$0xff] }
  0xa5   : > { %v516_v27 = vsub.f32 %v421_v2, %v222_v25  ;;  %v518_v28 = vsub.f32 %v425_v3, %v224_v26 }
  0xa6   : > { %v198_v29 = vpop.xlane.xlu0 %197  ;;  %v204_v30 = vpop.xlane.xlu1 %203 }
  0xa7   : > { %v223_v31 = vmul.f32 0.03125, %v198_v29  ;;  %v225_v32 = vmul.f32 0.03125, %v204_v30  ;;  %v240_v33 = vmul.f32 %v516_v27, %v516_v27  ;;  %v242_v34 = vmul.f32 %v518_v28, %v518_v28 }
  0xa9   : > { %v524_v35 = vsub.f32 %v422_v4, %v223_v31  ;;  %v526_v36 = vsub.f32 %v426_v5, %v225_v32  ;;  %v249_v37 = vsel %vm191_vm0, %v240_v33, 0.0  ;;  %v255_v40 = vsel %vm195_vm1, %v242_v34, 0.0  ;;  %v415_v32 = vld [vmem:[%s605_s2] ss:$0 sm:$0xff] }
  0xaa   : > { %250 = vadd.xlane.f32.xlu1 %v249_v37  ;;  %v207_v38 = vpop.xlane.xlu0 %206  ;;  %v210_v39 = vpop.xlane.xlu1 %209 }
  0xab   : > { %v226_v41 = vmul.f32 0.03125, %v207_v38  ;;  %v227_v42 = vmul.f32 0.03125, %v210_v39  ;;  %v241_v43 = vmul.f32 %v524_v35, %v524_v35  ;;  %v243_v44 = vmul.f32 %v526_v36, %v526_v36 }
  0xad   : > { %v534_v45 = vsub.f32 %v429_v11, %v226_v41  ;;  %v536_v46 = vsub.f32 %v430_v12, %v227_v42  ;;  %v252_v47 = vsel %vm195_vm1, %v241_v43, 0.0  ;;  %v258_v50 = vsel %vm195_vm1, %v243_v44, 0.0 }
  0xae   : > { %256 = vadd.xlane.f32.xlu1 %v255_v40  ;;  %253 = vadd.xlane.f32.xlu0 %v252_v47  ;;  %v213_v48 = vpop.xlane.xlu0 %212  ;;  %v216_v49 = vpop.xlane.xlu1 %215 }
  0xaf   : > { %v228_v51 = vmul.f32 0.03125, %v213_v48  ;;  %v229_v52 = vmul.f32 0.03125, %v216_v49  ;;  %v244_v53 = vmul.f32 %v534_v45, %v534_v45  ;;  %v245_v54 = vmul.f32 %v536_v46, %v536_v46 }
  0xb1   : > { %v544_v55 = vsub.f32 %v433_v16, %v228_v51  ;;  %v546_v56 = vsub.f32 %v434_v17, %v229_v52  ;;  %v261_v57 = vsel %vm195_vm1, %v244_v53, 0.0  ;;  %v264_v60 = vsel %vm195_vm1, %v245_v54, 0.0 }
  0xb2   : > { %259 = vadd.xlane.f32.xlu0 %v258_v50  ;;  %262 = vadd.xlane.f32.xlu1 %v261_v57  ;;  %v220_v58 = vpop.xlane.xlu0 %219 }
  0xb3   : > { %v230_v59 = vmul.f32 0.03125, %v220_v58  ;;  %v246_v61 = vmul.f32 %v544_v55, %v544_v55  ;;  %v247_v62 = vmul.f32 %v546_v56, %v546_v56 }
  0xb5   : > { %v554_v63 = vsub.f32 %v188_v21, %v230_v59  ;;  %v267_v0 = vsel %vm195_vm1, %v246_v61, 0.0  ;;  %v270_v1 = vsel %vm195_vm1, %v247_v62, 0.0 }
  0xb6   : > { %265 = vadd.xlane.f32.xlu0 %v264_v60  ;;  %268 = vadd.xlane.f32.xlu1 %v267_v0 }
  0xb7   : > { %v248_v2 = vmul.f32 %v554_v63, %v554_v63 }
  0xb9   : > { %v273_v3 = vsel %vm217_vm2, %v248_v2, 0.0 }
  0xba   : > { %271 = vadd.xlane.f32.xlu0 %v270_v1  ;;  %274 = vadd.xlane.f32.xlu1 %v273_v3 }
 0x137   : > { %v251_v4 = vpop.xlane.xlu1 %250 }
 0x138   : > { %v276_v5 = vmul.f32 0.03125, %v251_v4 }
 0x13a   : > { %v285_v6 = vadd.f32 1e-05, %v276_v5 }
 0x13b   : > { %v257_v7 = vpop.xlane.xlu1 %256  ;;  %v254_v8 = vpop.xlane.xlu0 %253 }
 0x13c   : > { %447 = vrsqrt.f32 %v285_v6  ;;  %v278_v9 = vmul.f32 0.03125, %v257_v7  ;;  %v277_v10 = vmul.f32 0.03125, %v254_v8 }
 0x13e   : > { %v287_v11 = vadd.f32 1e-05, %v278_v9  ;;  %v286_v12 = vadd.f32 1e-05, %v277_v10 }
 0x13f   : > { %v263_v13 = vpop.xlane.xlu1 %262  ;;  %v260_v14 = vpop.xlane.xlu0 %259 }
 0x140   : > { %449 = vrsqrt.f32 %v287_v11  ;;  %v280_v15 = vmul.f32 0.03125, %v263_v13  ;;  %v279_v16 = vmul.f32 0.03125, %v260_v14 }
 0x141   : > { %451 = vrsqrt.f32 %v286_v12 }
 0x142   : > { %v289_v17 = vadd.f32 1e-05, %v280_v15  ;;  %v288_v18 = vadd.f32 1e-05, %v279_v16 }
 0x143   : > { %v269_v19 = vpop.xlane.xlu1 %268  ;;  %v266_v20 = vpop.xlane.xlu0 %265 }
 0x144   : > { %453 = vrsqrt.f32 %v289_v17  ;;  %v282_v21 = vmul.f32 0.03125, %v269_v19  ;;  %v281_v22 = vmul.f32 0.03125, %v266_v20 }
 0x145   : > { %455 = vrsqrt.f32 %v288_v18 }
 0x146   : > { %v448_v23 = vpop.eup %447  ;;  %v291_v25 = vadd.f32 1e-05, %v282_v21  ;;  %v290_v26 = vadd.f32 1e-05, %v281_v22 }
 0x147   : > { %v303_v29 = vmul.f32 %v448_v23, %v516_v27  ;;  %v275_v30 = vpop.xlane.xlu1 %274  ;;  %v272_v31 = vpop.xlane.xlu0 %271 }
 0x148   : > { %457 = vrsqrt.f32 %v291_v25  ;;  %v284_v33 = vmul.f32 0.03125, %v275_v30  ;;  %v283_v34 = vmul.f32 0.03125, %v272_v31 }
 0x149   : > { %v318_v37 = vmul.f32 %v414_v24, %v303_v29  ;;  %459 = vrsqrt.f32 %v290_v26 }
 0x14a   : > { %v450_v38 = vpop.eup %449  ;;  %v293_v39 = vadd.f32 1e-05, %v284_v33  ;;  %v292_v27 = vadd.f32 1e-05, %v283_v34 }
 0x14b   : > { %v452_v40 = vpop.eup %451  ;;  %v333_v41 = vadd.f32 %v415_v32, %v318_v37  ;;  %v305_v42 = vmul.f32 %v450_v38, %v518_v28 }
 0x14c   : > { %v304_v43 = vmul.f32 %v452_v40, %v524_v35  ;;  %461 = vrsqrt.f32 %v293_v39 }
 0x14d   : > { %342 = vst.msk [vmem:[%s572_s25 - $0x1] sm:$0xfe] %vm191_vm0, %v333_v41  ;;  %v320_v44 = vmul.f32 %v414_v24, %v305_v42  ;;  %463 = vrsqrt.f32 %v292_v27 }
 0x14e   : > { %v454_v47 = vpop.eup %453  ;;  %v319_v48 = vmul.f32 %v414_v24, %v304_v43 }
 0x14f   : > { %v456_v49 = vpop.eup %455  ;;  %v335_v50 = vadd.f32 %v415_v32, %v320_v44  ;;  %v307_v51 = vmul.f32 %v454_v47, %v534_v45 }
 0x150   : > { %v334_v52 = vadd.f32 %v415_v32, %v319_v48  ;;  %v306_v53 = vmul.f32 %v456_v49, %v526_v36 }
 0x151   : > { %344 = vst.msk [vmem:[%s572_s25 + $0xf] sm:$0xff] %vm195_vm1, %v335_v50  ;;  %v322_v28 = vmul.f32 %v414_v24, %v307_v51 }
 0x152   : > { %v458_v35 = vpop.eup %457  ;;  %343 = vst.msk [vmem:[%s572_s25 + $0x7] sm:$0xff] %vm195_vm1, %v334_v52  ;;  %v321_v54 = vmul.f32 %v414_v24, %v306_v53 }
 0x153   : > { %v460_v57 = vpop.eup %459  ;;  %v337_v58 = vadd.f32 %v415_v32, %v322_v28  ;;  %v309_v59 = vmul.f32 %v458_v35, %v544_v55 }
 0x154   : > { %v336_v60 = vadd.f32 %v415_v32, %v321_v54  ;;  %v308_v45 = vmul.f32 %v460_v57, %v536_v46 }
 0x155   : > { %346 = vst.msk [vmem:[%s572_s25 + $0x1f] sm:$0xff] %vm195_vm1, %v337_v58  ;;  %v324_v36 = vmul.f32 %v414_v24, %v309_v59 }
 0x156   : > { %v462_v61 = vpop.eup %461  ;;  %345 = vst.msk [vmem:[%s572_s25 + $0x17] sm:$0xff] %vm195_vm1, %v336_v60  ;;  %v323_v62 = vmul.f32 %v414_v24, %v308_v45 }
 0x157   : > { %v464_v0 = vpop.eup %463  ;;  %v339_v1 = vadd.f32 %v415_v32, %v324_v36  ;;  %v311_v2 = vmul.f32 %v462_v61, %v554_v63 }
 0x158   : > { %v338_v3 = vadd.f32 %v415_v32, %v323_v62  ;;  %v310_v4 = vmul.f32 %v464_v0, %v546_v56 }
 0x159   : > { %348 = vst.msk [vmem:[%s572_s25 + $0x2f] sm:$0xff] %vm195_vm1, %v339_v1  ;;  %v326_v55 = vmul.f32 %v414_v24, %v311_v2 }
 0x15a   : > { %347 = vst.msk [vmem:[%s572_s25 + $0x27] sm:$0xff] %vm195_vm1, %v338_v3  ;;  %v325_v46 = vmul.f32 %v414_v24, %v310_v4 }
 0x15b   : > { %v341_v5 = vadd.f32 %v415_v32, %v326_v55 }
 0x15c   : > { %v340_v6 = vadd.f32 %v415_v32, %v325_v46 }
 0x15d   : > { %350 = vst.msk [vmem:[%s572_s25 + $0x3f] sm:$0x1] %vm217_vm2, %v341_v5 }
 0x15e   : > { %349 = vst.msk [vmem:[%s572_s25 + $0x37] sm:$0xff] %vm195_vm1, %v340_v6 }
 0x15f PF: > { %s13_s12 = sadd.s32 1, %s471_s12  }
 0x160   : > { %p10_p4 = scmp.ge.s32.totalorder %s13_s12, 4  }
 0x162   :  { %12 = sbr.rel (!%p10_p4) target bundleno = 1 (0x1), region = 62 }

// kernel: _lambda_.6
= control target key start
LH: loop header
LB: loop body
LE: loop exit
PB: predicated region body
PF: predicated region fallthrough
CT: control target
= control target key end

     0   :  { %s591_s18 = smov 0   ;;  %s684_s0 = inlined_call_operand.vmem [shape: f32[2,64,16], index: 0, kind: input, shape index: {}]   ;;  %s685_s1 = inlined_call_operand.vmem [shape: bf16[16,32], index: 1, kind: input, shape index: {}]   ;;  %s686_s2 = inlined_call_operand.vmem [shape: f32[1,32], index: 2, kind: input, shape index: {}]   ;;  %s687_s3 = inlined_call_operand.vmem [shape: f32[1,32], index: 3, kind: input, shape index: {}]   ;;  %s688_s4 = inlined_call_operand.vmem [shape: f32[65,32], index: 4, kind: input, shape index: {}]   ;;  %s689_s5 = inlined_call_operand.vmem [shape: bf16[2,65,32], index: 5, kind: output, shape index: {}]  }
   0x1 LB: > { %s491_s19 = sadd.s32 4294967295, %s559_s18   ;;  %p495_p0 = scmp.ge.s32.totalorder %s559_s18, 1  ;;  %s559_s18 = sphi %s591_s18, %s15_s18  }
   0x2   : > { %p187_p1 = scmp.lt.s32.totalorder %s559_s18, 3 }
   0x4   : > { %p188_p2 = pnand %p495_p0, %p187_p1 }
   0x5   : > { %v552_v0 = vld [vmem:[%s685_s1] sm:$0xff] (!%p188_p2)   ;;  %p215_p3 = scmp.lt.s32.totalorder (!%p188_p2), %s491_s19, 1  ;;  %vm253_vm0 = vcmask (!%p188_p2), 130048   ;;  %vm340_vm1 = vcmask (!%p188_p2), 1040384   ;;  %vm421_vm2 = vcmask (!%p188_p2), 257024   ;;  %vm430_vm3 = vcmask (!%p188_p2), 253952  }
   0x6   : > { %191 = sbr.rel (%p188_p2) target bundleno = 249 (0xf9), region = 40  ;;  %531 = vmatprep.subr.bf16.mxu0 (!%p188_p2), %v552_v0  ;;  %541 = vmatprep.subr.bf16.mxu1 (!%p188_p2), %v552_v0  ;;  %v499_v13 = vld [vmem:[%s686_s2] ss:$0 sm:$0xff] (!%p188_p2)  ;;  %vm431_vm4 = vsmask.f32 (!%p188_p2), 256  ;;  %v369_v36 = vld [vmem:[%s688_s4 + $0x18] sm:$0xff] (!%p188_p2) }
   0x7   : > { %532 = vmatpush3.bf16.msra.mxu0 (!%p188_p2), %v552_v0  ;;  %542 = vmatpush3.bf16.msra.mxu1 (!%p188_p2), %v552_v0  ;;  %v331_v20 = vld [vmem:[%s687_s3] sm:$0x1] (!%p188_p2)  ;;  %v373_v42 = vld [vmem:[%s688_s4 + $0x38] sm:$0xff] (!%p188_p2)  ;;  %v367_v47 = vld [vmem:[%s688_s4 + $0x8] sm:$0xff] (!%p188_p2) }
   0x8   : > { %v366_v23 = vld [vmem:[%s688_s4] sm:$0xff] (!%p188_p2)  ;;  %vm644_vm5 = vmand (!%p188_p2), %vm430_vm3, %vm431_vm4  ;;  %v368_v54 = vld [vmem:[%s688_s4 + $0x10] sm:$0xff] (!%p188_p2) }
   0x9   : > { %v374_v30 = vld [vmem:[%s688_s4 + $0x40] sm:$0x1] (!%p188_p2)  ;;  %v371_v60 = vld [vmem:[%s688_s4 + $0x28] sm:$0xff] (!%p188_p2)  ;;  %v372_v61 = vld [vmem:[%s688_s4 + $0x30] sm:$0xff] (!%p188_p2) }
   0xa   : > { %v370_v37 = vld [vmem:[%s688_s4 + $0x20] sm:$0xff] (!%p188_p2) }
   0xd   : > { %s693_s19 = smov (!%p215_p3, %s491_s19), 1 }
   0xe   : > { %s516_s22 = sshll.u32 %s693_s19, 6  ;;  %s543_s28 = smul.u32 36, %s693_s19 }
   0xf   : > { %s219_s25 = scalar_lea.vmem %s684_s0, %s516_s22 }
  0x10   : > { %v226_v1 = vld [vmem:[%s219_s25] sm:$0xff]  ;;  %v227_v2 = vld [vmem:[%s219_s25 + $0x8] sm:$0xff]  ;;  %v228_v6 = vld [vmem:[%s219_s25 + $0x10] sm:$0xff]  ;;  %s630_s16 = scalar_lea.vmem %s689_s5, %s543_s28 }
  0x11   : > { %v230_v3 = vld [vmem:[%s219_s25 + $0x20] sm:$0xff]  ;;  %v234_v4 = vpack.c.bf16 %v227_v2, %v226_v1  ;;  %v231_v5 = vld [vmem:[%s219_s25 + $0x28] sm:$0xff]  ;;  %v229_v7 = vld [vmem:[%s219_s25 + $0x18] sm:$0xff] }
  0x12   : > { %v236_v8 = vpack.c.bf16 %v231_v5, %v230_v3  ;;  %v235_v9 = vpack.c.bf16 %v229_v7, %v228_v6  ;;  %v232_v10 = vld [vmem:[%s219_s25 + $0x30] sm:$0xff]  ;;  %v233_v11 = vld [vmem:[%s219_s25 + $0x38] sm:$0xff]  ;;  %v433_v57 = vld [vmem:[%s630_s16 + $0x20] sm:$0x1] }
  0x13   : > { %533 = vmatprep.mubr.msk.bf16.mxu0 %vm253_vm0, %v234_v4  ;;  %v237_v12 = vpack.c.bf16 %v233_v11, %v232_v10 }
  0x14   : > { %537 = vmatprep.mubr.msk.bf16.mxu1 %vm253_vm0, %v236_v8  ;;  %534 = vmatmul.mubr.msk.bf16.vlgmr.msra.gmra.mrb[0].mxu0 %vm253_vm0, %v235_v9 }
  0x15   : > { %538 = vmatmul.mubr.msk.bf16.vlgmr.msra.gmra.mrb[0].mxu1 %vm253_vm0, %v237_v12 }
  0xe7   : > { %v535_v14 = vpop.f32.mrb[0].mxu0 }
  0xe8   : > { %v309_v15 = vadd.f32 %v535_v14, %v499_v13  ;;  %v539_v16 = vpop.f32.mrb[0].mxu1  ;;  %v300_v17 = vpop.f32.mrb[1].mxu0 }
  0xe9   : > { %v325_v18 = vadd.f32 %v539_v16, %v499_v13  ;;  %v301_v19 = vadd.f32 %v499_v13, %v300_v17  ;;  %v316_v21 = vpop.f32.mrb[1].mxu1  ;;  %v536_v22 = vpop.f32.mrb[2].mxu0 }
  0xea   : > { %v317_v24 = vadd.f32 %v499_v13, %v316_v21  ;;  %v312_v25 = vadd.f32 %v536_v22, %v499_v13  ;;  %v540_v26 = vpop.f32.mrb[2].mxu1  ;;  %v303_v27 = vpop.f32.mrb[3].mxu0  ;;  %v344_v33 = vrot.slane %v309_v15, 7 }
  0xeb   : > { %v341_v28 = vrot.slane %v301_v19, 7  ;;  %v328_v29 = vadd.f32 %v540_v26, %v499_v13  ;;  %v304_v31 = vadd.f32 %v499_v13, %v303_v27  ;;  %v319_v32 = vpop.f32.mrb[3].mxu1  ;;  %v352_v39 = vrot.slane %v325_v18, 7 }
  0xec   : > { %v348_v34 = vrot.slane %v317_v24, 7  ;;  %v346_v35 = vrot.slane %v312_v25, 7  ;;  %v320_v38 = vadd.f32 %v499_v13, %v319_v32 }
  0xed   : > { %v365_v40 = vsel %vm340_vm1, %v331_v20, %v341_v28  ;;  %v354_v41 = vrot.slane %v328_v29, 7  ;;  %v342_v43 = vrot.slane %v304_v31, 7 }
  0xee   : > { %v375_v44 = vadd.f32 %v366_v23, %v365_v40  ;;  %v347_v45 = vsel %vm340_vm1, %v344_v33, %v346_v35  ;;  %v349_v46 = vsel %vm340_vm1, %v346_v35, %v348_v34  ;;  %v350_v48 = vrot.slane %v320_v38, 7 }
  0xef   : > { %v378_v49 = vadd.f32 %v369_v36, %v347_v45  ;;  %v379_v50 = vadd.f32 %v370_v37, %v349_v46  ;;  %v355_v51 = vsel %vm340_vm1, %v352_v39, %v354_v41  ;;  %v383_v52 = vadd.f32 %v374_v30, %v354_v41 }
  0xf0   : > { %v517_v55 = vpack.c.bf16 %v375_v44, %v375_v44  ;;  %v382_v56 = vadd.f32 %v373_v42, %v355_v51  ;;  %v343_v58 = vsel %vm340_vm1, %v341_v28, %v342_v43  ;;  %v345_v59 = vsel %vm340_vm1, %v342_v43, %v344_v33 }
  0xf1   : > { %v520_v62 = vpack.c.bf16 %v378_v49, %v378_v49  ;;  %v521_v63 = vpack.c.bf16 %v379_v50, %v379_v50  ;;  %v525_v0 = vpack.c.bf16 %v383_v52, %v383_v52  ;;  %v376_v1 = vadd.f32 %v367_v47, %v343_v58 }
  0xf2   : > { %422 = vst.msk [vmem:[%s630_s16] sm:$0xf] %vm421_vm2, %v517_v55  ;;  %v524_v2 = vpack.c.bf16 %v382_v56, %v382_v56  ;;  %v377_v3 = vadd.f32 %v368_v54, %v345_v59  ;;  %v351_v4 = vsel %vm340_vm1, %v348_v34, %v350_v48  ;;  %v353_v5 = vsel %vm340_vm1, %v350_v48, %v352_v39 }
  0xf3   : > { %425 = vst.msk [vmem:[%s630_s16 + $0xc] sm:$0xf] %vm421_vm2, %v520_v62  ;;  %426 = vst.msk [vmem:[%s630_s16 + $0x10] sm:$0xf] %vm421_vm2, %v521_v63  ;;  %v434_v6 = vsel %vm644_vm5, %v525_v0, %v433_v57  ;;  %v518_v7 = vpack.c.bf16 %v376_v1, %v376_v1  ;;  %v380_v8 = vadd.f32 %v371_v60, %v351_v4 }
  0xf4   : > { %v381_v9 = vadd.f32 %v372_v61, %v353_v5  ;;  %429 = vst.msk [vmem:[%s630_s16 + $0x1c] sm:$0xf] %vm421_vm2, %v524_v2  ;;  %435 = vst [vmem:[%s630_s16 + $0x20] sm:$0x1] %v434_v6  ;;  %v519_v10 = vpack.c.bf16 %v377_v3, %v377_v3 }
  0xf5   : > { %423 = vst.msk [vmem:[%s630_s16 + $0x4] sm:$0xf] %vm421_vm2, %v518_v7  ;;  %v522_v11 = vpack.c.bf16 %v380_v8, %v380_v8 }
  0xf6   : > { %v523_v12 = vpack.c.bf16 %v381_v9, %v381_v9  ;;  %424 = vst.msk [vmem:[%s630_s16 + $0x8] sm:$0xf] %vm421_vm2, %v519_v10 }
  0xf7   : > { %427 = vst.msk [vmem:[%s630_s16 + $0x14] sm:$0xf] %vm421_vm2, %v522_v11 }
  0xf8   : > { %428 = vst.msk [vmem:[%s630_s16 + $0x18] sm:$0xf] %vm421_vm2, %v523_v12 }
  0xf9 PF: > { %s15_s18 = sadd.s32 1, %s559_s18  }
  0xfa   : > { %p12_p4 = scmp.ge.s32.totalorder %s15_s18, 4  }
  0xfc   :  { %14 = sbr.rel (!%p12_p4) target bundleno = 1 (0x1), region = 70 }

// kernel: _lambda_.7
= control target key start
LH: loop header
LB: loop body
LE: loop exit
PB: predicated region body
PF: predicated region fallthrough
CT: control target
= control target key end

     0   :  { %s4100_s25 = smov 0   ;;  %s5227_s0 = inlined_call_operand.vmem [shape: bf16[2,65,32], index: 0, kind: input, shape index: {}]   ;;  %s5228_s1 = inlined_call_operand.vmem [shape: f32[1,32], index: 1, kind: input, shape index: {}]   ;;  %s5229_s2 = inlined_call_operand.vmem [shape: f32[1,32], index: 2, kind: input, shape index: {}]   ;;  %s5230_s3 = inlined_call_operand.vmem [shape: bf16[32,96], index: 3, kind: input, shape index: {}]   ;;  %s5231_s4 = inlined_call_operand.vmem [shape: f32[1,96], index: 4, kind: input, shape index: {}]   ;;  %s5232_s5 = inlined_call_operand.vmem [shape: bf16[32,32], index: 5, kind: input, shape index: {}]   ;;  %s5233_s6 = inlined_call_operand.vmem [shape: f32[1,32], index: 6, kind: input, shape index: {}]   ;;  %s5234_s7 = inlined_call_operand.vmem [shape: f32[1,32], index: 7, kind: input, shape index: {}]   ;;  %s5235_s8 = inlined_call_operand.vmem [shape: f32[1,32], index: 8, kind: input, shape index: {}]   ;;  %s5236_s9 = inlined_call_operand.vmem [shape: bf16[32,64], index: 9, kind: input, shape index: {}]   ;;  %s5237_s10 = inlined_call_operand.vmem [shape: f32[1,64], index: 10, kind: input, shape index: {}]   ;;  %s5238_s11 = inlined_call_operand.vmem [shape: bf16[64,32], index: 11, kind: input, shape index: {}]   ;;  %s5239_s12 = inlined_call_operand.vmem [shape: f32[1,32], index: 12, kind: input, shape index: {}]   ;;  %s5240_s13 = inlined_call_operand.vmem [shape: bf16[2,65,32], index: 13, kind: output, shape index: {}]  }
   0x1 LB: > { %s3111_s26 = sadd.s32 4294967295, %s4014_s25   ;;  %p3115_p0 = scmp.ge.s32.totalorder %s4014_s25, 1  ;;  %s4014_s25 = sphi %s4100_s25, %s23_s25  }
   0x2   : > { %p387_p1 = scmp.lt.s32.totalorder %s4014_s25, 3 }
   0x4   : > { %p388_p2 = pnand %p3115_p0, %p387_p1 }
   0x5   : > { %p431_p3 = scmp.lt.s32.totalorder (!%p388_p2), %s3111_s26, 1  ;;  %vm462_vm0 = vcmask (!%p388_p2), 261120   ;;  %vm487_vm1 = vcmask (!%p388_p2), 253952   ;;  %vm4017_vm2 = vmmov (!%p388_p2), 0   ;;  %s4018_s24 = smov (!%p388_p2), 96   ;;  %vm761_vm3 = vcmask (!%p388_p2), 64512  }
   0x6   : > { %391 = sbr.rel (%p388_p2) target bundleno = 4418 (0x1142), region = 72  ;;  %s4019_s28 = smov (!%p388_p2), 64   ;;  %vm864_vm4 = vcmask (!%p388_p2), 531456   ;;  %vm889_vm5 = vcmask (!%p388_p2), 524288   ;;  %vm999_vm6 = vcmask (!%p388_p2), 1040384   ;;  %vm1098_vm7 = vcmask (!%p388_p2), 1043456  }
   0x7   : > { %s4020_s29 = smov (!%p388_p2), 88   ;;  %s4023_s14 = smov (!%p388_p2), 56   ;;  %vm2891_vm8 = vcmask (!%p388_p2), 523264   ;;  %vm3041_vm9 = vcmask (!%p388_p2), 257024   ;;  %vm3051_vm10 = vsmask.f32 (!%p388_p2), 256 }
   0x8   : > { %s4024_s17 = smov (!%p388_p2), 80   ;;  %s4025_s18 = smov (!%p388_p2), 112   ;;  %vm3052_vm11 = vmand (!%p388_p2), %vm487_vm1, %vm3051_vm10 }
   0x9   : > { %s4026_s19 = smov (!%p388_p2), 48   ;;  %s4027_s22 = smov (!%p388_p2), 72  }
   0xa   : > { %s4028_s23 = smov (!%p388_p2), 104  }
   0xd   : > { %s5242_s26 = smov (!%p431_p3, %s3111_s26), 1 }
   0xe   : > { %s3779_s27 = smul.u32 36, %s5242_s26 }
  0x10   : > { %s435_s30 = scalar_lea.vmem %s5227_s0, %s3779_s27 }
  0x11   : > { %v3230_v0 = vld [vmem:[%s435_s30] sm:$0xff]   ;;  %v3245_v1 = vld [vmem:[%s435_s30 + $0x8] sm:$0xff]   ;;  %v3246_v6 = vld [vmem:[%s435_s30 + $0x10] sm:$0xff]  }
  0x12   : > { %v4116_v2 = vunpack.c.l.bf16 %v3230_v0  ;;  %v4118_v3 = vunpack.c.l.bf16 %v3245_v1  ;;  %v4120_v4 = vunpack.c.h.bf16 %v3230_v0  ;;  %v4122_v5 = vunpack.c.h.bf16 %v3245_v1  ;;  %v3247_v13 = vld [vmem:[%s435_s30 + $0x18] sm:$0xff]   ;;  %v450_v18 = vld [vmem:[%s435_s30 + $0x20] sm:$0x1]  ;;  %s4022_s30 = smov 120  }
  0x13   : > { %v4132_v11 = vunpack.c.l.bf16 %v3246_v6  ;;  %v4134_v12 = vunpack.c.h.bf16 %v3246_v6  ;;  %v4140_v16 = vunpack.c.l.bf16 %v3247_v13  ;;  %v4142_v17 = vunpack.c.h.bf16 %v3247_v13 }
  0x14   : > { %v463_v7 = vsel %vm462_vm0, %v4116_v2, 0.0  ;;  %v469_v8 = vsel %vm462_vm0, %v4118_v3, 0.0  ;;  %v466_v9 = vsel %vm462_vm0, %v4120_v4, 0.0  ;;  %v472_v10 = vsel %vm462_vm0, %v4122_v5, 0.0 }
  0x15   : > { %464 = vadd.xlane.f32.xlu0 %v463_v7  ;;  %470 = vadd.xlane.f32.xlu1 %v469_v8  ;;  %v475_v14 = vsel %vm462_vm0, %v4132_v11, 0.0  ;;  %v478_v15 = vsel %vm462_vm0, %v4134_v12, 0.0  ;;  %v481_v19 = vsel %vm462_vm0, %v4140_v16, 0.0  ;;  %v484_v20 = vsel %vm462_vm0, %v4142_v17, 0.0  ;;  %v3802_v8 = vld [vmem:[%s5230_s3] sm:$0xff]  }
  0x16   : > { %v4148_v21 = vunpack.c.l.bf16 %v450_v18 }
  0x18   : > { %v488_v22 = vsel %vm487_vm1, %v4148_v21, 0.0 }
  0x19   : > { %467 = vadd.xlane.f32.xlu0 %v466_v9  ;;  %473 = vadd.xlane.f32.xlu1 %v472_v10  ;;  %v4016_v9 = vmov 0.0   ;;  %v3803_v10 = vld [vmem:[%s5230_s3 + $0x8] sm:$0xff]  }
  0x1a   : > { %3375 = vmatprep.subr.bf16.mxu0 %v4016_v9  ;;  %3399 = vmatprep.subr.bf16.mxu1 %v4016_v9 }
  0x1b   : > { %3376 = vmatpush3.bf16.msra.mxu0 %v3802_v8  ;;  %3379 = vmatprep.mubr.msk.bf16.mxu0 %vm4017_vm2, %v4016_v9 }
  0x1c   : > { %3377 = vmatprep.subr.bf16.mxu0 %v4016_v9  ;;  %3409 = vmatprep.mubr.msk.bf16.mxu1 %vm4017_vm2, %v4016_v9 }
  0x1d   : > { %476 = vadd.xlane.f32.xlu0 %v475_v14  ;;  %479 = vadd.xlane.f32.xlu1 %v478_v15 }
  0x1f   : > { %3378 = vmatpush3.bf16.msra.mxu0 %v3803_v10 }
  0x20   : > { %3429 = vmatprep.subr.bf16.mxu0 %v4016_v9 }
  0x21   : > { %482 = vadd.xlane.f32.xlu0 %v481_v19  ;;  %485 = vadd.xlane.f32.xlu1 %v484_v20 }
  0x25   : > { %489 = vadd.xlane.f32.xlu0 %v488_v22 }
  0xa2   : > { %v465_v23 = vpop.xlane.xlu0 %464  ;;  %v471_v24 = vpop.xlane.xlu1 %470 }
  0xa3   : > { %v492_v25 = vmul.f32 0.03125, %v465_v23  ;;  %v494_v26 = vmul.f32 0.03125, %v471_v24 }
  0xa5   : > { %v4153_v27 = vsub.f32 %v4116_v2, %v492_v25  ;;  %v4156_v28 = vsub.f32 %v4118_v3, %v494_v26 }
  0xa6   : > { %v468_v29 = vpop.xlane.xlu0 %467  ;;  %v474_v30 = vpop.xlane.xlu1 %473 }
  0xa7   : > { %v493_v31 = vmul.f32 0.03125, %v468_v29  ;;  %v495_v32 = vmul.f32 0.03125, %v474_v30  ;;  %v510_v33 = vmul.f32 %v4153_v27, %v4153_v27  ;;  %v512_v34 = vmul.f32 %v4156_v28, %v4156_v28 }
  0xa9   : > { %v4163_v35 = vsub.f32 %v4120_v4, %v493_v31  ;;  %v4166_v36 = vsub.f32 %v4122_v5, %v495_v32  ;;  %v519_v37 = vsel %vm462_vm0, %v510_v33, 0.0  ;;  %v525_v40 = vsel %vm462_vm0, %v512_v34, 0.0 }
  0xaa   : > { %520 = vadd.xlane.f32.xlu1 %v519_v37  ;;  %v477_v38 = vpop.xlane.xlu0 %476  ;;  %v480_v39 = vpop.xlane.xlu1 %479 }
  0xab   : > { %v496_v41 = vmul.f32 0.03125, %v477_v38  ;;  %v497_v42 = vmul.f32 0.03125, %v480_v39  ;;  %v511_v43 = vmul.f32 %v4163_v35, %v4163_v35  ;;  %v513_v44 = vmul.f32 %v4166_v36, %v4166_v36 }
  0xad   : > { %v4175_v45 = vsub.f32 %v4132_v11, %v496_v41  ;;  %v4178_v46 = vsub.f32 %v4134_v12, %v497_v42  ;;  %v522_v47 = vsel %vm462_vm0, %v511_v43, 0.0  ;;  %v528_v50 = vsel %vm462_vm0, %v513_v44, 0.0  ;;  %v3118_v43 = vld [vmem:[%s5228_s1] ss:$0 sm:$0xff] }
  0xae   : > { %526 = vadd.xlane.f32.xlu1 %v525_v40  ;;  %523 = vadd.xlane.f32.xlu0 %v522_v47  ;;  %v483_v48 = vpop.xlane.xlu0 %482  ;;  %v486_v49 = vpop.xlane.xlu1 %485 }
  0xaf   : > { %v498_v51 = vmul.f32 0.03125, %v483_v48  ;;  %v499_v52 = vmul.f32 0.03125, %v486_v49  ;;  %v514_v53 = vmul.f32 %v4175_v45, %v4175_v45  ;;  %v515_v54 = vmul.f32 %v4178_v46, %v4178_v46 }
  0xb1   : > { %v4187_v55 = vsub.f32 %v4140_v16, %v498_v51  ;;  %v4190_v56 = vsub.f32 %v4142_v17, %v499_v52  ;;  %v531_v57 = vsel %vm462_vm0, %v514_v53, 0.0  ;;  %v534_v60 = vsel %vm462_vm0, %v515_v54, 0.0  ;;  %v3119_v52 = vld [vmem:[%s5229_s2] ss:$0 sm:$0xff] }
  0xb2   : > { %529 = vadd.xlane.f32.xlu0 %v528_v50  ;;  %532 = vadd.xlane.f32.xlu1 %v531_v57  ;;  %v490_v58 = vpop.xlane.xlu0 %489 }
  0xb3   : > { %v500_v59 = vmul.f32 0.03125, %v490_v58  ;;  %v516_v61 = vmul.f32 %v4187_v55, %v4187_v55  ;;  %v517_v62 = vmul.f32 %v4190_v56, %v4190_v56 }
  0xb5   : > { %v4199_v63 = vsub.f32 %v4148_v21, %v500_v59  ;;  %v537_v0 = vsel %vm462_vm0, %v516_v61, 0.0  ;;  %v540_v1 = vsel %vm462_vm0, %v517_v62, 0.0 }
  0xb6   : > { %535 = vadd.xlane.f32.xlu0 %v534_v60  ;;  %538 = vadd.xlane.f32.xlu1 %v537_v0 }
  0xb7   : > { %v518_v6 = vmul.f32 %v4199_v63, %v4199_v63 }
  0xb9   : > { %v543_v7 = vsel %vm487_vm1, %v518_v6, 0.0 }
  0xba   : > { %541 = vadd.xlane.f32.xlu0 %v540_v1  ;;  %544 = vadd.xlane.f32.xlu1 %v543_v7 }
 0x137   : > { %v521_v13 = vpop.xlane.xlu1 %520 }
 0x138   : > { %v546_v14 = vmul.f32 0.03125, %v521_v13 }
 0x13a   : > { %v555_v15 = vadd.f32 1e-05, %v546_v14 }
 0x13b   : > { %v527_v18 = vpop.xlane.xlu1 %526  ;;  %v524_v19 = vpop.xlane.xlu0 %523 }
 0x13c   : > { %3810 = vrsqrt.f32 %v555_v15  ;;  %v548_v20 = vmul.f32 0.03125, %v527_v18  ;;  %v547_v22 = vmul.f32 0.03125, %v524_v19 }
 0x13e   : > { %v556_v23 = vadd.f32 1e-05, %v547_v22  ;;  %v557_v24 = vadd.f32 1e-05, %v548_v20 }
 0x13f   : > { %v530_v25 = vpop.xlane.xlu0 %529  ;;  %v533_v26 = vpop.xlane.xlu1 %532 }
 0x140   : > { %v549_v29 = vmul.f32 0.03125, %v530_v25  ;;  %3812 = vrsqrt.f32 %v556_v23  ;;  %v550_v31 = vmul.f32 0.03125, %v533_v26 }
 0x141   : > { %3814 = vrsqrt.f32 %v557_v24 }
 0x142   : > { %v558_v30 = vadd.f32 1e-05, %v549_v29  ;;  %v559_v38 = vadd.f32 1e-05, %v550_v31 }
 0x143   : > { %v536_v32 = vpop.xlane.xlu0 %535  ;;  %v539_v40 = vpop.xlane.xlu1 %538 }
 0x144   : > { %v551_v33 = vmul.f32 0.03125, %v536_v32  ;;  %3816 = vrsqrt.f32 %v558_v30  ;;  %v552_v47 = vmul.f32 0.03125, %v539_v40 }
 0x146   : > { %v3811_v34 = vpop.eup %3810  ;;  %v560_v37 = vadd.f32 1e-05, %v551_v33  ;;  %v561_v57 = vadd.f32 1e-05, %v552_v47 }
 0x147   : > { %v542_v39 = vpop.xlane.xlu0 %541  ;;  %v573_v41 = vmul.f32 %v3811_v34, %v4153_v27  ;;  %v545_v53 = vpop.xlane.xlu1 %544 }
 0x148   : > { %3818 = vrsqrt.f32 %v560_v37  ;;  %v553_v42 = vmul.f32 0.03125, %v542_v39  ;;  %v554_v62 = vmul.f32 0.03125, %v545_v53  ;;  %v3120_v37 = vld [vmem:[%s5231_s4] ss:$0 sm:$0xff] }
 0x149   : > { %3820 = vrsqrt.f32 %v559_v38  ;;  %v588_v49 = vmul.f32 %v3118_v43, %v573_v41 }
 0x14a   : > { %v3813_v44 = vpop.eup %3812  ;;  %v562_v51 = vadd.f32 1e-05, %v553_v42  ;;  %v563_v8 = vadd.f32 1e-05, %v554_v62 }
 0x14b   : > { %v574_v48 = vmul.f32 %v3813_v44, %v4163_v35  ;;  %v3815_v50 = vpop.eup %3814  ;;  %v603_v58 = vadd.f32 %v3119_v52, %v588_v49 }
 0x14c   : > { %v575_v60 = vmul.f32 %v3815_v50, %v4156_v28  ;;  %3822 = vrsqrt.f32 %v562_v51 }
 0x14d   : > { %v589_v27 = vmul.f32 %v3118_v43, %v574_v48  ;;  %3824 = vrsqrt.f32 %v561_v57 }
 0x14e   : > { %v3817_v54 = vpop.eup %3816  ;;  %v590_v6 = vmul.f32 %v3118_v43, %v575_v60  ;;  %3826 = vrsqrt.f32 %v563_v8 }
 0x14f   : > { %v604_v59 = vadd.f32 %v3119_v52, %v589_v27  ;;  %v576_v61 = vmul.f32 %v3817_v54, %v4166_v36 }
 0x150   : > { %v605_v28 = vadd.f32 %v3119_v52, %v590_v6 }
 0x151   : > { %v612_v35 = vpack.c.bf16 %v604_v59, %v603_v58  ;;  %v591_v0 = vmul.f32 %v3118_v43, %v576_v61 }
 0x152   : > { %v3819_v1 = vpop.eup %3818 }
 0x153   : > { %3380 = vmatmul.mubr.msk.bf16.vlgmr.msra.gmra.mrb[0].mxu0 %vm462_vm0, %v612_v35  ;;  %v3821_v7 = vpop.eup %3820  ;;  %v606_v10 = vadd.f32 %v3119_v52, %v591_v0  ;;  %v578_v13 = vmul.f32 %v3819_v1, %v4178_v46 }
 0x154   : > { %3383 = vmatprep.mubr.msk.bf16.mxu0 %vm4017_vm2, %v4016_v9  ;;  %v577_v36 = vmul.f32 %v3821_v7, %v4175_v45 }
 0x155   : > { %v613_v14 = vpack.c.bf16 %v606_v10, %v605_v28  ;;  %v593_v15 = vmul.f32 %v3118_v43, %v578_v13 }
 0x156   : > { %v3823_v18 = vpop.eup %3822  ;;  %v592_v19 = vmul.f32 %v3118_v43, %v577_v36 }
 0x157   : > { %v3825_v20 = vpop.eup %3824  ;;  %v608_v22 = vadd.f32 %v3119_v52, %v593_v15  ;;  %v580_v23 = vmul.f32 %v3823_v18, %v4190_v56 }
 0x158   : > { %v607_v24 = vadd.f32 %v3119_v52, %v592_v19  ;;  %v579_v46 = vmul.f32 %v3825_v20, %v4187_v55  ;;  %v3827_v45 = vpop.eup %3826 }
 0x159   : > { %v595_v26 = vmul.f32 %v3118_v43, %v580_v23  ;;  %v581_v31 = vmul.f32 %v3827_v45, %v4199_v63 }
 0x15a   : > { %v614_v25 = vpack.c.bf16 %v608_v22, %v607_v24  ;;  %v594_v29 = vmul.f32 %v3118_v43, %v579_v46 }
 0x15b   : > { %3384 = vmatmul.mubr.msk.bf16.gmra.mrb[4].mxu0 %vm462_vm0, %v613_v14  ;;  %v610_v30 = vadd.f32 %v3119_v52, %v595_v26  ;;  %v596_v34 = vmul.f32 %v3118_v43, %v581_v31 }
 0x15c   : > { %3387 = vmatprep.mubr.msk.bf16.mxu0 %vm4017_vm2, %v4016_v9  ;;  %v609_v32 = vadd.f32 %v3119_v52, %v594_v29 }
 0x15d   : > { %v611_v55 = vadd.f32 %v3119_v52, %v596_v34 }
 0x15e   : > { %v615_v33 = vpack.c.bf16 %v610_v30, %v609_v32 }
 0x15f   : > { %v616_v56 = vpack.c.bf16 %v611_v55, %v611_v55 }
 0x163   : > { %3388 = vmatmul.mubr.msk.bf16.gmra.mrb[8].mxu0 %vm462_vm0, %v614_v25 }
 0x164   : > { %3391 = vmatprep.mubr.msk.bf16.mxu0 %vm4017_vm2, %v4016_v9 }
 0x16b   : > { %3392 = vmatmul.mubr.msk.bf16.gmra.mrb[12].mxu0 %vm462_vm0, %v615_v33 }
 0x16c   : > { %3395 = vmatprep.mubr.msk.bf16.mxu0 %vm4017_vm2, %v4016_v9 }
 0x173   : > { %3396 = vmatmul.mubr.msk.bf16.gmra.mrb[16].mxu0 %vm462_vm0, %v616_v56 }
 0x174   : > { %3439 = vmatprep.mubr.msk.bf16.mxu0 %vm4017_vm2, %v4016_v9 }
 0x226   : > { %v689_v63 = vpop.f32.mrb[0].mxu0 }
 0x227   : > { %v690_v38 = vadd.f32 %v3120_v37, %v689_v63  ;;  %v3381_v39 = vpop.f32.mrb[1].mxu0 }
 0x228   : > { %v692_v40 = vpop.f32.mrb[2].mxu0 }
 0x229   : > { %v693_v41 = vadd.f32 %v3120_v37, %v692_v40  ;;  %v3382_v42 = vpop.f32.mrb[3].mxu0  ;;  %v727_v43 = vmul.f32 0.35355338, %v690_v38 }
 0x22b   : > { %v728_v44 = vmul.f32 0.35355338, %v693_v41  ;;  %v4253_v47 = vpack.c.bf16 %v693_v41, %v690_v38 }
 0x22d   : > { %v4255_v48 = vpack.c.bf16 %v728_v44, %v727_v43  ;;  %751 = vrot.lane.b32.xlu0 %v4253_v47, %s4018_s24 }
 0x22e   : > { %v697_v49 = vpop.f32.mrb[4].mxu0 }
 0x22f   : > { %v698_v50 = vadd.f32 %v3120_v37, %v697_v49  ;;  %v3385_v51 = vpop.f32.mrb[5].mxu0 }
 0x230   : > { %v700_v52 = vpop.f32.mrb[6].mxu0 }
 0x231   : > { %v701_v53 = vadd.f32 %v3120_v37, %v700_v52  ;;  %v3386_v27 = vpop.f32.mrb[7].mxu0  ;;  %v729_v54 = vmul.f32 0.35355338, %v698_v50 }
 0x233   : > { %v730_v57 = vmul.f32 0.35355338, %v701_v53  ;;  %v4259_v58 = vpack.c.bf16 %v701_v53, %v698_v50 }
 0x235   : > { %v4261_v59 = vpack.c.bf16 %v730_v57, %v729_v54  ;;  %753 = vrot.lane.b32.xlu1 %v4259_v58, %s4018_s24 }
 0x236   : > { %v705_v60 = vpop.f32.mrb[8].mxu0 }
 0x237   : > { %v706_v61 = vadd.f32 %v3120_v37, %v705_v60  ;;  %v3389_v62 = vpop.f32.mrb[9].mxu0 }
 0x238   : > { %v708_v35 = vpop.f32.mrb[10].mxu0 }
 0x239   : > { %v709_v0 = vadd.f32 %v3120_v37, %v708_v35  ;;  %v3390_v1 = vpop.f32.mrb[11].mxu0  ;;  %v731_v6 = vmul.f32 0.35355338, %v706_v61 }
 0x23b   : > { %v732_v7 = vmul.f32 0.35355338, %v709_v0  ;;  %v4265_v8 = vpack.c.bf16 %v709_v0, %v706_v61 }
 0x23d   : > { %v4267_v10 = vpack.c.bf16 %v732_v7, %v731_v6  ;;  %755 = vrot.lane.b32.xlu1 %v4265_v8, %s4018_s24 }
 0x23e   : > { %v713_v13 = vpop.f32.mrb[12].mxu0 }
 0x23f   : > { %v714_v28 = vadd.f32 %v3120_v37, %v713_v13  ;;  %v3393_v36 = vpop.f32.mrb[13].mxu0 }
 0x240   : > { %v716_v14 = vpop.f32.mrb[14].mxu0 }
 0x241   : > { %v717_v15 = vadd.f32 %v3120_v37, %v716_v14  ;;  %v3394_v18 = vpop.f32.mrb[15].mxu0  ;;  %v733_v19 = vmul.f32 0.35355338, %v714_v28 }
 0x243   : > { %v734_v20 = vmul.f32 0.35355338, %v717_v15  ;;  %v4271_v22 = vpack.c.bf16 %v717_v15, %v714_v28 }
 0x245   : > { %v4273_v23 = vpack.c.bf16 %v734_v20, %v733_v19  ;;  %757 = vrot.lane.b32.xlu1 %v4271_v22, %s4018_s24 }
 0x246   : > { %v721_v24 = vpop.f32.mrb[16].mxu0 }
 0x247   : > { %v722_v46 = vadd.f32 %v3120_v37, %v721_v24  ;;  %v3397_v25 = vpop.f32.mrb[17].mxu0 }
 0x248   : > { %v724_v26 = vpop.f32.mrb[18].mxu0 }
 0x249   : > { %v4277_v45 = vpack.c.bf16 %v722_v46, %v722_v46  ;;  %972 = vrot.lane.b32.xlu1 %v4259_v58, %s4019_s28  ;;  %v3398_v29 = vpop.f32.mrb[19].mxu0  ;;  %v735_v42 = vmul.f32 0.35355338, %v722_v46 }
 0x24b   : > { %759 = vrot.lane.b32.xlu0 %v4277_v45, %s4018_s24  ;;  %v4316_v43 = vpack.c.bf16 %v735_v42, %v735_v42 }
 0x24f   : > { %970 = vrot.lane.b32.xlu0 %v4253_v47, %s4019_s28 }
 0x253   : > { %974 = vrot.lane.b32.xlu0 %v4265_v8, %s4019_s28 }
 0x29f   : > { %v752_v30 = vpop.permute.xlu0 %751 }
 0x2a0   : > { %v778_v31 = vsel %vm761_vm3, %v752_v30, 0 }
 0x2a1   : > { %3400 = vmatpush3.bf16.xpose.msra.mxu1 %v778_v31 }
 0x2a2   : > { %3401 = vmatprep.subr.bf16.mxu1 %v4016_v9 }
 0x2a7   : > { %v754_v32 = vpop.permute.xlu1 %753 }
 0x2a8   : > { %v781_v33 = vsel %vm761_vm3, %v754_v32, 0 }
 0x2a9   : > { %3402 = vmatpush3.bf16.xpose.msra.mxu1 %v781_v33 }
 0x2aa   : > { %3403 = vmatprep.subr.bf16.mxu1 %v4016_v9 }
 0x2af   : > { %v756_v34 = vpop.permute.xlu1 %755 }
 0x2b0   : > { %v784_v55 = vsel %vm761_vm3, %v756_v34, 0 }
 0x2b1   : > { %3404 = vmatpush3.bf16.xpose.msra.mxu1 %v784_v55 }
 0x2b2   : > { %3405 = vmatprep.subr.bf16.mxu1 %v4016_v9 }
 0x2b7   : > { %v758_v56 = vpop.permute.xlu1 %757 }
 0x2b8   : > { %v787_v37 = vsel %vm761_vm3, %v758_v56, 0 }
 0x2b9   : > { %3406 = vmatpush3.bf16.xpose.msra.mxu1 %v787_v37 }
 0x2ba   : > { %3407 = vmatprep.subr.bf16.mxu1 %v4016_v9 }
 0x2bb   : > { %v973_v40 = vpop.permute.xlu1 %972 }
 0x2bd   : > { %v760_v63 = vpop.permute.xlu0 %759 }
 0x2be   : > { %v790_v38 = vsel %vm761_vm3, %v760_v63, 0 }
 0x2c1   : > { %3408 = vmatpush3.bf16.xpose.msra.mxu1 %v790_v38  ;;  %v971_v39 = vpop.permute.xlu0 %970 }
 0x2c2   : > { %3430 = vmatpush3.bf16.msra.mxu0 %v971_v39  ;;  %3459 = vmatprep.subr.bf16.mxu1 %v4016_v9 }
 0x2c3   : > { %3431 = vmatprep.subr.bf16.mxu0 %v4016_v9 }
 0x2c5   : > { %v975_v41 = vpop.permute.xlu0 %974 }
 0x2c6   : > { %3432 = vmatpush3.bf16.msra.mxu0 %v973_v40 }
 0x2c7   : > { %3433 = vmatprep.subr.bf16.mxu0 %v4016_v9 }
 0x2c8   : > { %3410 = vmatmul.mubr.msk.bf16.vlgmr.msra.gmra.mrb[0].mxu1 %vm761_vm3, %v4255_v48 }
 0x2c9   : > { %3413 = vmatprep.mubr.msk.bf16.mxu1 %vm4017_vm2, %v4016_v9 }
 0x2ca   : > { %3434 = vmatpush3.bf16.msra.mxu0 %v975_v41 }
 0x2cb   : > { %3435 = vmatprep.subr.bf16.mxu0 %v4016_v9 }
 0x2d0   : > { %3414 = vmatmul.mubr.msk.bf16.gmra.mrb[4].mxu1 %vm761_vm3, %v4261_v59 }
 0x2d1   : > { %3417 = vmatprep.mubr.msk.bf16.mxu1 %vm4017_vm2, %v4016_v9 }
 0x2d8   : > { %3418 = vmatmul.mubr.msk.bf16.gmra.mrb[8].mxu1 %vm761_vm3, %v4267_v10 }
 0x2d9   : > { %3421 = vmatprep.mubr.msk.bf16.mxu1 %vm4017_vm2, %v4016_v9 }
 0x2e0   : > { %3422 = vmatmul.mubr.msk.bf16.gmra.mrb[12].mxu1 %vm761_vm3, %v4273_v23 }
 0x2e1   : > { %3425 = vmatprep.mubr.msk.bf16.mxu1 %vm4017_vm2, %v4016_v9 }
 0x2e8   : > { %3426 = vmatmul.mubr.msk.bf16.gmra.mrb[16].mxu1 %vm761_vm3, %v4316_v43 }
 0x2e9   : > { %3461 = vmatprep.mubr.msk.bf16.mxu1 %vm4017_vm2, %v4016_v9 }
 0x39b   : > { %v826_v44 = vpop.f32.mrb[0].mxu1 }
 0x39c   : > { %v3411_v49 = vpop.f32.mrb[1].mxu1  ;;  %v865_v50 = vsel %vm864_vm4, %v826_v44, -inf }
 0x39d   : > { %866 = vmax.xlane.f32.xlu1 %v865_v50  ;;  %v829_v51 = vpop.f32.mrb[2].mxu1 }
 0x39e   : > { %v3412_v52 = vpop.f32.mrb[3].mxu1  ;;  %v868_v53 = vsel %vm864_vm4, %v829_v51, -inf }
 0x39f   : > { %869 = vmax.xlane.f32.xlu0 %v868_v53 }
 0x3a3   : > { %v834_v27 = vpop.f32.mrb[4].mxu1 }
 0x3a4   : > { %v3415_v54 = vpop.f32.mrb[5].mxu1  ;;  %v871_v57 = vsel %vm864_vm4, %v834_v27, -inf }
 0x3a5   : > { %872 = vmax.xlane.f32.xlu0 %v871_v57  ;;  %v837_v60 = vpop.f32.mrb[6].mxu1 }
 0x3a6   : > { %v3416_v61 = vpop.f32.mrb[7].mxu1  ;;  %v874_v62 = vsel %vm864_vm4, %v837_v60, -inf }
 0x3a9   : > { %875 = vmax.xlane.f32.xlu0 %v874_v62 }
 0x3ab   : > { %v842_v35 = vpop.f32.mrb[8].mxu1 }
 0x3ac   : > { %v3419_v0 = vpop.f32.mrb[9].mxu1  ;;  %v877_v1 = vsel %vm864_vm4, %v842_v35, -inf }
 0x3ad   : > { %878 = vmax.xlane.f32.xlu1 %v877_v1  ;;  %v4327_v6 = vpop.f32.mrb[10].mxu1  ;;  %v4021_v0 = vmov 0  }
 0x3ae   : > { %v3420_v7 = vpop.f32.mrb[11].mxu1  ;;  %v880_v13 = vsel %vm864_vm4, %v4327_v6, -inf  ;;  %v4362_v1 = vsel %vm999_vm6, 65535, %v4021_v0 }
 0x3af   : > { %881 = vmax.xlane.f32.xlu0 %v880_v13 }
 0x3b3   : > { %v850_v28 = vpop.f32.mrb[12].mxu1 }
 0x3b4   : > { %v3423_v36 = vpop.f32.mrb[13].mxu1  ;;  %v883_v14 = vsel %vm864_vm4, %v850_v28, -inf }
 0x3b5   : > { %884 = vmax.xlane.f32.xlu1 %v883_v14  ;;  %v4332_v15 = vpop.f32.mrb[14].mxu1 }
 0x3b6   : > { %v3424_v18 = vpop.f32.mrb[15].mxu1  ;;  %v886_v19 = vsel %vm864_vm4, %v4332_v15, -inf }
 0x3b7   : > { %887 = vmax.xlane.f32.xlu0 %v886_v19 }
 0x3bb   : > { %v4336_v20 = vpop.f32.mrb[16].mxu1 }
 0x3bc   : > { %v3427_v24 = vpop.f32.mrb[17].mxu1  ;;  %v890_v26 = vsel %vm889_vm5, %v4336_v20, -inf }
 0x3bd   : > { %v861_v46 = vpop.f32.mrb[18].mxu1 }
 0x3be   : > { %v3428_v25 = vpop.f32.mrb[19].mxu1 }
 0x3c6   : > { %978 = vrot.lane.b32.xlu1 %v4277_v45, %s4019_s28 }
 0x3cd   : > { %976 = vrot.lane.b32.xlu0 %v4271_v22, %s4019_s28  ;;  %s5196_s28 = scalar_lea.vmem %s5240_s13, %s3779_s27 }
 0x3ea   : > { %891 = vmax.xlane.f32.xlu1 %v890_v26 }
 0x3fb   : > { %1200 = vrot.lane.b32.xlu1 %v4259_v58, %s4020_s29 }
 0x42a   : > { %v867_v29 = vpop.xlane.xlu1 %866 }
 0x42b   : > { %v893_v30 = vsub.f32 %v826_v44, %v867_v29 }
 0x42c   : > { %v870_v31 = vpop.xlane.xlu0 %869 }
 0x42d   : > { %v902_v32 = vmul.f32 1.442695, %v893_v30  ;;  %v894_v33 = vsub.f32 %v829_v51, %v870_v31 }
 0x42f   : > { %3828 = vpow2.f32 %v902_v32  ;;  %v904_v34 = vmul.f32 1.442695, %v894_v33 }
 0x431   : > { %3830 = vpow2.f32 %v904_v34 }
 0x432   : > { %v873_v55 = vpop.xlane.xlu0 %872 }
 0x433   : > { %v895_v56 = vsub.f32 %v834_v27, %v873_v55 }
 0x435   : > { %v906_v37 = vmul.f32 1.442695, %v895_v56 }
 0x436   : > { %v876_v63 = vpop.xlane.xlu0 %875 }
 0x437   : > { %3832 = vpow2.f32 %v906_v37  ;;  %v896_v38 = vsub.f32 %v837_v60, %v876_v63 }
 0x439   : > { %v4346_v39 = vpop.eup %3828  ;;  %v908_v40 = vmul.f32 1.442695, %v896_v38 }
 0x43a   : > { %v879_v41 = vpop.xlane.xlu1 %878  ;;  %v920_v42 = vsel %vm864_vm4, %v4346_v39, 0.0 }
 0x43b   : > { %v4350_v44 = vpop.eup %3830  ;;  %3834 = vpow2.f32 %v908_v40  ;;  %v897_v49 = vsub.f32 %v842_v35, %v879_v41  ;;  %921 = vadd.xlane.f32.xlu0 %v920_v42 }
 0x43c   : > { %v923_v50 = vsel %vm864_vm4, %v4350_v44, 0.0  ;;  %v882_v52 = vpop.xlane.xlu0 %881 }
 0x43d   : > { %v910_v51 = vmul.f32 1.442695, %v897_v49  ;;  %924 = vadd.xlane.f32.xlu1 %v923_v50  ;;  %v898_v24 = vsub.f32 %v4327_v6, %v882_v52 }
 0x43f   : > { %3836 = vpow2.f32 %v910_v51  ;;  %v912_v46 = vmul.f32 1.442695, %v898_v24 }
 0x441   : > { %v4354_v53 = vpop.eup %3832 }
 0x442   : > { %v885_v27 = vpop.xlane.xlu1 %884  ;;  %v926_v54 = vsel %vm864_vm4, %v4354_v53, 0.0 }
 0x443   : > { %v899_v57 = vsub.f32 %v850_v28, %v885_v27  ;;  %927 = vadd.xlane.f32.xlu1 %v926_v54 }
 0x444   : > { %v888_v60 = vpop.xlane.xlu0 %887 }
 0x445   : > { %v4358_v61 = vpop.eup %3834  ;;  %v914_v62 = vmul.f32 1.442695, %v899_v57  ;;  %v900_v25 = vsub.f32 %v4332_v15, %v888_v60 }
 0x446   : > { %v929_v35 = vsel %vm864_vm4, %v4358_v61, 0.0  ;;  %v979_v7 = vpop.permute.xlu1 %978 }
 0x447   : > { %3838 = vpow2.f32 %v914_v62  ;;  %930 = vadd.xlane.f32.xlu1 %v929_v35  ;;  %v1003_v14 = vand.u32 %v4362_v1, %v979_v7  ;;  %v916_v26 = vmul.f32 1.442695, %v900_v25 }
 0x448   : > { %v977_v13 = vpop.permute.xlu0 %976  ;;  %3840 = vpow2.f32 %v912_v46 }
 0x449   : > { %v4364_v36 = vpop.eup %3836  ;;  %3436 = vmatpush3.bf16.msra.mxu0 %v977_v13  ;;  %3842 = vpow2.f32 %v916_v26 }
 0x44a   : > { %v932_v28 = vsel %vm864_vm4, %v4364_v36, 0.0  ;;  %3437 = vmatprep.subr.bf16.mxu0 %v4016_v9 }
 0x44b   : > { %933 = vadd.xlane.f32.xlu1 %v932_v28 }
 0x44d   : > { %3438 = vmatpush3.bf16.msra.mxu0 %v1003_v14 }
 0x44e   : > { %3481 = vmatprep.subr.bf16.mxu0 %v4016_v9 }
 0x451   : > { %v4371_v18 = vpop.eup %3838  ;;  %1198 = vrot.lane.b32.xlu0 %v4253_v47, %s4020_s29 }
 0x452   : > { %v938_v19 = vsel %vm864_vm4, %v4371_v18, 0.0  ;;  %v4379_v29 = vpop.eup %3840 }
 0x453   : > { %939 = vadd.xlane.f32.xlu1 %v938_v19  ;;  %v935_v30 = vsel %vm864_vm4, %v4379_v29, 0.0  ;;  %v4383_v31 = vpop.eup %3842 }
 0x454   : > { %v941_v32 = vsel %vm864_vm4, %v4383_v31, 0.0 }
 0x470   : > { %936 = vadd.xlane.f32.xlu0 %v935_v30 }
 0x474   : > { %942 = vadd.xlane.f32.xlu0 %v941_v32 }
 0x477   : > { %v892_v33 = vpop.xlane.xlu1 %891 }
 0x478   : > { %v901_v6 = vsub.f32 %v4336_v20, %v892_v33 }
 0x47a   : > { %v918_v34 = vmul.f32 1.442695, %v901_v6 }
 0x47b   : > { %v1201_v20 = vpop.permute.xlu1 %1200 }
 0x47c   : > { %3844 = vpow2.f32 %v918_v34 }
 0x486   : > { %v4388_v15 = vpop.eup %3844 }
 0x487   : > { %v944_v55 = vsel %vm889_vm5, %v4388_v15, 0.0 }
 0x488   : > { %945 = vadd.xlane.f32.xlu1 %v944_v55 }
 0x48a   : > { %1202 = vrot.lane.b32.xlu0 %v4265_v8, %s4020_s29 }
 0x48e   : > { %1206 = vrot.lane.b32.xlu0 %v4277_v45, %s4020_s29 }
 0x492   : > { %1190 = vrot.lane.b32.xlu0 %v4261_v59, %s4022_s30 }
 0x496   : > { %1194 = vrot.lane.b32.xlu0 %v4273_v23, %s4022_s30 }
 0x499   : > { %1204 = vrot.lane.b32.xlu1 %v4271_v22, %s4020_s29  ;;  %s4029_s29 = smov 40  }
 0x49d   : > { %1188 = vrot.lane.b32.xlu1 %v4255_v48, %s4022_s30 }
 0x4a1   : > { %1192 = vrot.lane.b32.xlu1 %v4267_v10, %s4022_s30 }
 0x4a5   : > { %1196 = vrot.lane.b32.xlu1 %v4316_v43, %s4022_s30 }
 0x4a9   : > { %1414 = vrot.lane.b32.xlu1 %v4253_v47, %s4023_s14 }
 0x4c8   : > { %v922_v56 = vpop.xlane.xlu0 %921 }
 0x4c9   : > { %3846 = vrcp.f32 %v922_v56  ;;  %v1082_v56 = vld [vmem:[%s5232_s5] sm:$0xf] }
 0x4ca   : > { %v925_v37 = vpop.xlane.xlu1 %924 }
 0x4cb   : > { %3848 = vrcp.f32 %v925_v37 }
 0x4cc   : > { %v1199_v50 = vpop.permute.xlu0 %1198 }
 0x4cd   : > { %v1224_v52 = vsel %vm761_vm3, %v1199_v50, 0 }
 0x4d0   : > { %v928_v63 = vpop.xlane.xlu1 %927 }
 0x4d1   : > { %3850 = vrcp.f32 %v928_v63 }
 0x4d3   : > { %v3847_v38 = vpop.eup %3846 }
 0x4d4   : > { %v931_v40 = vpop.xlane.xlu1 %930  ;;  %v956_v42 = vmul.f32 %v3847_v38, %v4346_v39 }
 0x4d5   : > { %v3849_v41 = vpop.eup %3848  ;;  %3852 = vrcp.f32 %v931_v40 }
 0x4d6   : > { %v957_v49 = vmul.f32 %v3849_v41, %v4350_v44  ;;  %v1227_v44 = vsel %vm761_vm3, %v1201_v20, 0 }
 0x4d8   : > { %v965_v51 = vpack.c.bf16 %v957_v49, %v956_v42  ;;  %v934_v62 = vpop.xlane.xlu1 %933 }
 0x4d9   : > { %3854 = vrcp.f32 %v934_v62 }
 0x4da   : > { %3440 = vmatmul.mubr.msk.bf16.vlgmr.msra.gmra.mrb[20].mxu0 %vm864_vm4, %v965_v51 }
 0x4db   : > { %3482 = vmatpush3.bf16.xpose.msra.mxu0 %v1224_v52  ;;  %3443 = vmatprep.mubr.msk.bf16.mxu0 %vm4017_vm2, %v4016_v9  ;;  %v3851_v27 = vpop.eup %3850 }
 0x4dc   : > { %3483 = vmatprep.subr.bf16.mxu0 %v4016_v9  ;;  %v958_v57 = vmul.f32 %v3851_v27, %v4354_v53 }
 0x4df   : > { %v3853_v54 = vpop.eup %3852 }
 0x4e0   : > { %v959_v39 = vmul.f32 %v3853_v54, %v4358_v61  ;;  %v940_v0 = vpop.xlane.xlu1 %939 }
 0x4e2   : > { %v966_v60 = vpack.c.bf16 %v959_v39, %v958_v57 }
 0x4e3   : > { %3484 = vmatpush3.bf16.xpose.msra.mxu0 %v1227_v44  ;;  %v3855_v61 = vpop.eup %3854 }
 0x4e4   : > { %3444 = vmatmul.mubr.msk.bf16.gmra.mrb[24].mxu0 %vm864_vm4, %v966_v60  ;;  %3485 = vmatprep.subr.bf16.mxu0 %v4016_v9  ;;  %v960_v14 = vmul.f32 %v3855_v61, %v4364_v36 }
 0x4e5   : > { %3447 = vmatprep.mubr.msk.bf16.mxu0 %vm4017_vm2, %v4016_v9 }
 0x4fd   : > { %v937_v35 = vpop.xlane.xlu0 %936 }
 0x4fe   : > { %3856 = vrcp.f32 %v937_v35 }
 0x501   : > { %v943_v7 = vpop.xlane.xlu0 %942 }
 0x502   : > { %3858 = vrcp.f32 %v943_v7 }
 0x503   : > { %3860 = vrcp.f32 %v940_v0 }
 0x505   : > { %v1203_v53 = vpop.permute.xlu0 %1202 }
 0x506   : > { %v1230_v13 = vsel %vm761_vm3, %v1203_v53, 0 }
 0x507   : > { %3486 = vmatpush3.bf16.xpose.msra.mxu0 %v1230_v13 }
 0x508   : > { %v3857_v28 = vpop.eup %3856  ;;  %3487 = vmatprep.subr.bf16.mxu0 %v4016_v9 }
 0x509   : > { %v961_v19 = vmul.f32 %v3857_v28, %v4379_v29  ;;  %v1207_v6 = vpop.permute.xlu0 %1206 }
 0x50b   : > { %v967_v24 = vpack.c.bf16 %v961_v19, %v960_v14 }
 0x50c   : > { %v3859_v46 = vpop.eup %3858 }
 0x50d   : > { %3448 = vmatmul.mubr.msk.bf16.gmra.mrb[28].mxu0 %vm864_vm4, %v967_v24  ;;  %v3861_v25 = vpop.eup %3860  ;;  %v963_v26 = vmul.f32 %v3859_v46, %v4383_v31  ;;  %v1191_v37 = vpop.permute.xlu0 %1190 }
 0x50e   : > { %3451 = vmatprep.mubr.msk.bf16.mxu0 %vm4017_vm2, %v4016_v9  ;;  %v962_v30 = vmul.f32 %v3861_v25, %v4371_v18  ;;  %v1236_v18 = vsel %vm761_vm3, %v1207_v6, 0 }
 0x510   : > { %v968_v32 = vpack.c.bf16 %v963_v26, %v962_v30 }
 0x511   : > { %v1195_v38 = vpop.permute.xlu0 %1194 }
 0x515   : > { %v946_v33 = vpop.xlane.xlu1 %945  ;;  %3452 = vmatmul.mubr.msk.bf16.gmra.mrb[32].mxu0 %vm864_vm4, %v968_v32 }
 0x516   : > { %3862 = vrcp.f32 %v946_v33  ;;  %3455 = vmatprep.mubr.msk.bf16.mxu0 %vm4017_vm2, %v4016_v9 }
 0x519   : > { %v1205_v36 = vpop.permute.xlu1 %1204 }
 0x51a   : > { %v1233_v29 = vsel %vm761_vm3, %v1205_v36, 0 }
 0x51b   : > { %3488 = vmatpush3.bf16.xpose.msra.mxu0 %v1233_v29 }
 0x51c   : > { %3489 = vmatprep.subr.bf16.mxu0 %v4016_v9 }
 0x51d   : > { %v1189_v20 = vpop.permute.xlu1 %1188 }
 0x520   : > { %v3863_v34 = vpop.eup %3862 }
 0x521   : > { %v964_v31 = vmul.f32 %v3863_v34, %v4388_v15  ;;  %v1100_v15 = vsel %vm1098_vm7, %v1082_v56, 0  ;;  %v1193_v63 = vpop.permute.xlu1 %1192 }
 0x522   : > { %3460 = vmatpush3.bf16.msra.mxu1 %v1100_v15 }
 0x523   : > { %3490 = vmatpush3.bf16.xpose.msra.mxu0 %v1236_v18  ;;  %v969_v55 = vpack.c.bf16 %v964_v31, %v964_v31  ;;  %3511 = vmatprep.subr.bf16.mxu1 %v4016_v9 }
 0x524   : > { %3541 = vmatprep.subr.bf16.mxu0 %v4016_v9 }
 0x525   : > { %3456 = vmatmul.mubr.msk.bf16.gmra.mrb[36].mxu0 %vm864_vm4, %v969_v55  ;;  %v1197_v40 = vpop.permute.xlu1 %1196 }
 0x526   : > { %3491 = vmatprep.mubr.msk.bf16.mxu0 %vm4017_vm2, %v4016_v9 }
 0x529   : > { %v1415_v52 = vpop.permute.xlu1 %1414 }
 0x52d   : > { %3492 = vmatmul.mubr.msk.bf16.vlgmr.msra.gmra.mrb[40].mxu0 %vm761_vm3, %v1189_v20 }
 0x52e   : > { %3495 = vmatprep.mubr.msk.bf16.mxu0 %vm4017_vm2, %v4016_v9 }
 0x535   : > { %3496 = vmatmul.mubr.msk.bf16.gmra.mrb[44].mxu0 %vm761_vm3, %v1191_v37 }
 0x536   : > { %3499 = vmatprep.mubr.msk.bf16.mxu0 %vm4017_vm2, %v4016_v9 }
 0x53d   : > { %3500 = vmatmul.mubr.msk.bf16.gmra.mrb[48].mxu0 %vm761_vm3, %v1193_v63 }
 0x53e   : > { %3503 = vmatprep.mubr.msk.bf16.mxu0 %vm4017_vm2, %v4016_v9 }
 0x545   : > { %3504 = vmatmul.mubr.msk.bf16.gmra.mrb[52].mxu0 %vm761_vm3, %v1195_v38 }
 0x546   : > { %3507 = vmatprep.mubr.msk.bf16.mxu0 %vm4017_vm2, %v4016_v9 }
 0x54d   : > { %3508 = vmatmul.mubr.msk.bf16.gmra.mrb[56].mxu0 %vm761_vm3, %v1197_v40 }
 0x54e   : > { %3543 = vmatprep.mubr.msk.bf16.mxu0 %vm4017_vm2, %v4016_v9 }
 0x5ad   : > { %v1039_v41 = vpop.f32.mrb[20].mxu0 }
 0x5ae   : > { %v3441_v42 = vpop.f32.mrb[21].mxu0 }
 0x5af   : > { %v1042_v49 = vpop.f32.mrb[22].mxu0 }
 0x5b0   : > { %v1077_v50 = vpack.c.bf16 %v1042_v49, %v1039_v41  ;;  %v3442_v51 = vpop.f32.mrb[23].mxu0 }
 0x5b2   : > { %3462 = vmatmul.mubr.msk.bf16.vlgmr.msra.gmra.mrb[20].mxu1 %vm761_vm3, %v1077_v50 }
 0x5b3   : > { %3512 = vmatpush3.bf16.msra.mxu1 %v1415_v52  ;;  %3465 = vmatprep.mubr.msk.bf16.mxu1 %vm4017_vm2, %v4016_v9 }
 0x5b4   : > { %3513 = vmatprep.subr.bf16.mxu1 %v4016_v9 }
 0x5b7   : > { %v1047_v27 = vpop.f32.mrb[24].mxu0 }
 0x5b8   : > { %v3445_v54 = vpop.f32.mrb[25].mxu0 }
 0x5b9   : > { %v1050_v57 = vpop.f32.mrb[26].mxu0 }
 0x5ba   : > { %v1078_v39 = vpack.c.bf16 %v1050_v57, %v1047_v27  ;;  %v3446_v44 = vpop.f32.mrb[27].mxu0 }
 0x5bc   : > { %3466 = vmatmul.mubr.msk.bf16.gmra.mrb[24].mxu1 %vm761_vm3, %v1078_v39 }
 0x5bd   : > { %3469 = vmatprep.mubr.msk.bf16.mxu1 %vm4017_vm2, %v4016_v9 }
 0x5e0   : > { %v1055_v60 = vpop.f32.mrb[28].mxu0 }
 0x5e1   : > { %v3449_v62 = vpop.f32.mrb[29].mxu0 }
 0x5e2   : > { %v1058_v35 = vpop.f32.mrb[30].mxu0 }
 0x5e3   : > { %v1079_v0 = vpack.c.bf16 %v1058_v35, %v1055_v60  ;;  %v3450_v7 = vpop.f32.mrb[31].mxu0 }
 0x5e5   : > { %3470 = vmatmul.mubr.msk.bf16.gmra.mrb[28].mxu1 %vm761_vm3, %v1079_v0 }
 0x5e6   : > { %3473 = vmatprep.mubr.msk.bf16.mxu1 %vm4017_vm2, %v4016_v9 }
 0x5e8   : > { %v1063_v53 = vpop.f32.mrb[32].mxu0 }
 0x5e9   : > { %v3453_v61 = vpop.f32.mrb[33].mxu0 }
 0x5ea   : > { %v1066_v13 = vpop.f32.mrb[34].mxu0 }
 0x5eb   : > { %v1080_v28 = vpack.c.bf16 %v1066_v13, %v1063_v53  ;;  %v3454_v14 = vpop.f32.mrb[35].mxu0 }
 0x5ed   : > { %3474 = vmatmul.mubr.msk.bf16.gmra.mrb[32].mxu1 %vm761_vm3, %v1080_v28 }
 0x5ee   : > { %3477 = vmatprep.mubr.msk.bf16.mxu1 %vm4017_vm2, %v4016_v9 }
 0x5f8   : > { %v1071_v19 = vpop.f32.mrb[36].mxu0 }
 0x5f9   : > { %v1081_v24 = vpack.c.bf16 %v1071_v19, %v1071_v19  ;;  %v3457_v46 = vpop.f32.mrb[37].mxu0 }
 0x5fa   : > { %v1074_v25 = vpop.f32.mrb[38].mxu0 }
 0x5fb   : > { %v3458_v26 = vpop.f32.mrb[39].mxu0  ;;  %3478 = vmatmul.mubr.msk.bf16.gmra.mrb[36].mxu1 %vm761_vm3, %v1081_v24 }
 0x5fc   : > { %3521 = vmatprep.mubr.msk.bf16.mxu1 %vm4017_vm2, %v4016_v9 }
 0x600   : > { %v1272_v30 = vpop.f32.mrb[40].mxu0 }
 0x601   : > { %v3493_v32 = vpop.f32.mrb[41].mxu0  ;;  %v1310_v33 = vsel %vm864_vm4, %v1272_v30, -inf }
 0x602   : > { %1311 = vmax.xlane.f32.xlu0 %v1310_v33  ;;  %v1275_v36 = vpop.f32.mrb[42].mxu0 }
 0x603   : > { %v3494_v29 = vpop.f32.mrb[43].mxu0  ;;  %v1313_v6 = vsel %vm864_vm4, %v1275_v36, -inf }
 0x604   : > { %1314 = vmax.xlane.f32.xlu1 %v1313_v6 }
 0x608   : > { %v1280_v34 = vpop.f32.mrb[44].mxu0 }
 0x609   : > { %v3497_v31 = vpop.f32.mrb[45].mxu0  ;;  %v1316_v18 = vsel %vm864_vm4, %v1280_v34, -inf }
 0x60a   : > { %1317 = vmax.xlane.f32.xlu0 %v1316_v18  ;;  %v1283_v55 = vpop.f32.mrb[46].mxu0 }
 0x60b   : > { %v3498_v20 = vpop.f32.mrb[47].mxu0  ;;  %v1319_v56 = vsel %vm864_vm4, %v1283_v55, -inf }
 0x60e   : > { %1320 = vmax.xlane.f32.xlu0 %v1319_v56 }
 0x610   : > { %v4479_v15 = vpop.f32.mrb[48].mxu0 }
 0x611   : > { %v3501_v37 = vpop.f32.mrb[49].mxu0  ;;  %v1322_v39 = vsel %vm864_vm4, %v4479_v15, -inf }
 0x612   : > { %v4481_v63 = vpop.f32.mrb[50].mxu0 }
 0x613   : > { %v3502_v38 = vpop.f32.mrb[51].mxu0  ;;  %v1325_v54 = vsel %vm864_vm4, %v4481_v63, -inf }
 0x615   : > { %1418 = vrot.lane.b32.xlu1 %v4265_v8, %s4023_s14 }
 0x618   : > { %v4485_v40 = vpop.f32.mrb[52].mxu0 }
 0x619   : > { %v3505_v41 = vpop.f32.mrb[53].mxu0  ;;  %v1328_v44 = vsel %vm864_vm4, %v4485_v40, -inf }
 0x61a   : > { %v4487_v42 = vpop.f32.mrb[54].mxu0 }
 0x61b   : > { %v3506_v49 = vpop.f32.mrb[55].mxu0  ;;  %v1331_v57 = vsel %vm864_vm4, %v4487_v42, -inf }
 0x620   : > { %v4489_v50 = vpop.f32.mrb[56].mxu0 }
 0x621   : > { %v3509_v51 = vpop.f32.mrb[57].mxu0  ;;  %v1334_v60 = vsel %vm889_vm5, %v4489_v50, -inf }
 0x622   : > { %v1307_v52 = vpop.f32.mrb[58].mxu0 }
 0x623   : > { %v3510_v27 = vpop.f32.mrb[59].mxu0 }
 0x624   : > { %1416 = vrot.lane.b32.xlu0 %v4259_v58, %s4023_s14 }
 0x639   : > { %1326 = vmax.xlane.f32.xlu1 %v1325_v54 }
 0x63d   : > { %1332 = vmax.xlane.f32.xlu1 %v1331_v57 }
 0x643   : > { %1323 = vmax.xlane.f32.xlu0 %v1322_v39 }
 0x647   : > { %1329 = vmax.xlane.f32.xlu0 %v1328_v44 }
 0x64b   : > { %1335 = vmax.xlane.f32.xlu0 %v1334_v60 }
 0x64e   : > { %1420 = vrot.lane.b32.xlu1 %v4271_v22, %s4023_s14 }
 0x661   : > { %1422 = vrot.lane.b32.xlu0 %v4277_v45, %s4023_s14 }
 0x685   : > { %v4507_v62 = vpop.f32.mrb[20].mxu1 }
 0x686   : > { %v3463_v35 = vpop.f32.mrb[21].mxu1 }
 0x687   : > { %v4509_v0 = vpop.f32.mrb[22].mxu1 }
 0x688   : > { %v3464_v7 = vpop.f32.mrb[23].mxu1 }
 0x68f   : > { %v4511_v53 = vpop.f32.mrb[24].mxu1  ;;  %v1312_v61 = vpop.xlane.xlu0 %1311 }
 0x690   : > { %v1337_v13 = vsub.f32 %v1272_v30, %v1312_v61  ;;  %v3467_v28 = vpop.f32.mrb[25].mxu1 }
 0x691   : > { %v4513_v14 = vpop.f32.mrb[26].mxu1  ;;  %v1315_v19 = vpop.xlane.xlu1 %1314 }
 0x692   : > { %v1346_v24 = vmul.f32 1.442695, %v1337_v13  ;;  %v1338_v46 = vsub.f32 %v1275_v36, %v1315_v19  ;;  %v3468_v25 = vpop.f32.mrb[27].mxu1 }
 0x694   : > { %3864 = vpow2.f32 %v1346_v24  ;;  %v1348_v26 = vmul.f32 1.442695, %v1338_v46 }
 0x696   : > { %3866 = vpow2.f32 %v1348_v26 }
 0x697   : > { %v1318_v32 = vpop.xlane.xlu0 %1317 }
 0x698   : > { %v1339_v33 = vsub.f32 %v1280_v34, %v1318_v32  ;;  %v1419_v34 = vpop.permute.xlu1 %1418 }
 0x69a   : > { %v1350_v29 = vmul.f32 1.442695, %v1339_v33 }
 0x69b   : > { %v1321_v6 = vpop.xlane.xlu0 %1320 }
 0x69c   : > { %3868 = vpow2.f32 %v1350_v29  ;;  %v1340_v31 = vsub.f32 %v1283_v55, %v1321_v6 }
 0x69e   : > { %v4515_v18 = vpop.eup %3864  ;;  %v1352_v20 = vmul.f32 1.442695, %v1340_v31 }
 0x69f   : > { %v1417_v30 = vpop.permute.xlu0 %1416  ;;  %v1364_v56 = vsel %vm864_vm4, %v4515_v18, 0.0 }
 0x6a0   : > { %v4519_v37 = vpop.eup %3866  ;;  %3870 = vpow2.f32 %v1352_v20  ;;  %1365 = vadd.xlane.f32.xlu1 %v1364_v56  ;;  %3514 = vmatpush3.bf16.msra.mxu1 %v1417_v30 }
 0x6a1   : > { %v1367_v36 = vsel %vm864_vm4, %v4519_v37, 0.0  ;;  %3515 = vmatprep.subr.bf16.mxu1 %v4016_v9 }
 0x6a2   : > { %1368 = vadd.xlane.f32.xlu0 %v1367_v36 }
 0x6a4   : > { %3516 = vmatpush3.bf16.msra.mxu1 %v1419_v34 }
 0x6a5   : > { %3517 = vmatprep.subr.bf16.mxu1 %v4016_v9 }
 0x6a6   : > { %v4525_v55 = vpop.eup %3868 }
 0x6a7   : > { %v1370_v38 = vsel %vm864_vm4, %v4525_v55, 0.0 }
 0x6a8   : > { %1371 = vadd.xlane.f32.xlu0 %v1370_v38 }
 0x6aa   : > { %v4529_v41 = vpop.eup %3870 }
 0x6ab   : > { %v1373_v49 = vsel %vm864_vm4, %v4529_v41, 0.0 }
 0x6ac   : > { %1374 = vadd.xlane.f32.xlu0 %v1373_v49 }
 0x6b1   : > { %1633 = vrot.lane.b32.xlu1 %v4253_v47, %s4024_s17 }
 0x6b8   : > { %v4535_v51 = vpop.f32.mrb[28].mxu1 }
 0x6b9   : > { %v3471_v52 = vpop.f32.mrb[29].mxu1 }
 0x6ba   : > { %v4537_v27 = vpop.f32.mrb[30].mxu1 }
 0x6bb   : > { %v3472_v54 = vpop.f32.mrb[31].mxu1 }
 0x6c0   : > { %v4539_v57 = vpop.f32.mrb[32].mxu1 }
 0x6c1   : > { %v3475_v39 = vpop.f32.mrb[33].mxu1 }
 0x6c2   : > { %v4541_v44 = vpop.f32.mrb[34].mxu1 }
 0x6c3   : > { %v3476_v60 = vpop.f32.mrb[35].mxu1 }
 0x6c6   : > { %v1327_v35 = vpop.xlane.xlu1 %1326 }
 0x6c7   : > { %v1342_v7 = vsub.f32 %v4481_v63, %v1327_v35 }
 0x6c9   : > { %v1356_v61 = vmul.f32 1.442695, %v1342_v7 }
 0x6ca   : > { %v1333_v13 = vpop.xlane.xlu1 %1332 }
 0x6cb   : > { %3872 = vpow2.f32 %v1356_v61  ;;  %v1344_v28 = vsub.f32 %v4487_v42, %v1333_v13 }
 0x6cd   : > { %v1360_v19 = vmul.f32 1.442695, %v1344_v28 }
 0x6ce   : > { %v4545_v24 = vpop.f32.mrb[36].mxu1  ;;  %v1421_v46 = vpop.permute.xlu1 %1420 }
 0x6cf   : > { %3874 = vpow2.f32 %v1360_v19  ;;  %v3479_v25 = vpop.f32.mrb[37].mxu1  ;;  %3518 = vmatpush3.bf16.msra.mxu1 %v1421_v46 }
 0x6d0   : > { %v1171_v26 = vpop.f32.mrb[38].mxu1  ;;  %v1324_v32 = vpop.xlane.xlu0 %1323  ;;  %3519 = vmatprep.subr.bf16.mxu1 %v4016_v9 }
 0x6d1   : > { %v1341_v33 = vsub.f32 %v4479_v15, %v1324_v32  ;;  %v3480_v29 = vpop.f32.mrb[39].mxu1 }
 0x6d3   : > { %v1354_v63 = vmul.f32 1.442695, %v1341_v33 }
 0x6d4   : > { %v1330_v6 = vpop.xlane.xlu0 %1329 }
 0x6d5   : > { %v4549_v31 = vpop.eup %3872  ;;  %3876 = vpow2.f32 %v1354_v63  ;;  %v1343_v42 = vsub.f32 %v4485_v40, %v1330_v6 }
 0x6d6   : > { %v1379_v20 = vsel %vm864_vm4, %v4549_v31, 0.0 }
 0x6d7   : > { %v1358_v30 = vmul.f32 1.442695, %v1343_v42  ;;  %1380 = vadd.xlane.f32.xlu0 %v1379_v20 }
 0x6d8   : > { %v1336_v56 = vpop.xlane.xlu0 %1335 }
 0x6d9   : > { %v4554_v36 = vpop.eup %3874  ;;  %3878 = vpow2.f32 %v1358_v30  ;;  %v1345_v34 = vsub.f32 %v4489_v50, %v1336_v56 }
 0x6da   : > { %v1385_v15 = vsel %vm864_vm4, %v4554_v36, 0.0 }
 0x6db   : > { %v1362_v38 = vmul.f32 1.442695, %v1345_v34  ;;  %1386 = vadd.xlane.f32.xlu0 %v1385_v15 }
 0x6dc   : > { %v1423_v49 = vpop.permute.xlu0 %1422 }
 0x6dd   : > { %3880 = vpow2.f32 %v1362_v38  ;;  %v1444_v40 = vand.u32 %v1423_v49, %v4362_v1 }
 0x6df   : > { %v4560_v52 = vpop.eup %3876  ;;  %3520 = vmatpush3.bf16.msra.mxu1 %v1444_v40 }
 0x6e0   : > { %v1376_v54 = vsel %vm864_vm4, %v4560_v52, 0.0  ;;  %3563 = vmatprep.subr.bf16.mxu1 %v4016_v9 }
 0x6e1   : > { %1377 = vadd.xlane.f32.xlu1 %v1376_v54 }
 0x6e3   : > { %v4565_v39 = vpop.eup %3878 }
 0x6e4   : > { %v1382_v50 = vsel %vm864_vm4, %v4565_v39, 0.0 }
 0x6e5   : > { %1383 = vadd.xlane.f32.xlu1 %v1382_v50 }
 0x6e7   : > { %v4569_v60 = vpop.eup %3880 }
 0x6e8   : > { %v1388_v35 = vsel %vm889_vm5, %v4569_v60, 0.0 }
 0x6e9   : > { %1389 = vadd.xlane.f32.xlu0 %v1388_v35 }
 0x6f6   : > { %1637 = vrot.lane.b32.xlu1 %v4265_v8, %s4024_s17 }
 0x6fa   : > { %1639 = vrot.lane.b32.xlu1 %v4271_v22, %s4024_s17 }
 0x6fe   : > { %1641 = vrot.lane.b32.xlu1 %v4277_v45, %s4024_s17 }
 0x6ff   : > { %1635 = vrot.lane.b32.xlu0 %v4259_v58, %s4024_s17 }
 0x702   : > { %1623 = vrot.lane.b32.xlu1 %v4255_v48, %s4025_s18 }
 0x703   : > { %1627 = vrot.lane.b32.xlu0 %v4267_v10, %s4025_s18 }
 0x706   : > { %1625 = vrot.lane.b32.xlu1 %v4261_v59, %s4025_s18 }
 0x707   : > { %1631 = vrot.lane.b32.xlu0 %v4316_v43, %s4025_s18 }
 0x70a   : > { %1629 = vrot.lane.b32.xlu1 %v4273_v23, %s4025_s18 }
 0x70b   : > { %1849 = vrot.lane.b32.xlu0 %v4253_v47, %s4026_s19 }
 0x70e   : > { %1851 = vrot.lane.b32.xlu1 %v4259_v58, %s4026_s19 }
 0x70f   : > { %1853 = vrot.lane.b32.xlu0 %v4265_v8, %s4026_s19 }
 0x72d   : > { %v1366_v7 = vpop.xlane.xlu1 %1365 }
 0x72e   : > { %3882 = vrcp.f32 %v1366_v7 }
 0x72f   : > { %v1369_v61 = vpop.xlane.xlu0 %1368 }
 0x730   : > { %3884 = vrcp.f32 %v1369_v61 }
 0x731   : > { %v1634_v32 = vpop.permute.xlu1 %1633 }
 0x732   : > { %v1659_v29 = vsel %vm761_vm3, %v1634_v32, 0  ;;  %v1523_v32 = vld [vmem:[%s5232_s5 + $0x4] sm:$0xf] }
 0x735   : > { %v1372_v13 = vpop.xlane.xlu0 %1371 }
 0x736   : > { %3886 = vrcp.f32 %v1372_v13 }
 0x738   : > { %v3883_v28 = vpop.eup %3882 }
 0x739   : > { %v1375_v19 = vpop.xlane.xlu0 %1374  ;;  %v1400_v25 = vmul.f32 %v3883_v28, %v4515_v18 }
 0x73a   : > { %v3885_v46 = vpop.eup %3884  ;;  %3888 = vrcp.f32 %v1375_v19 }
 0x73b   : > { %v1401_v26 = vmul.f32 %v3885_v46, %v4519_v37 }
 0x73d   : > { %v1409_v33 = vpack.c.bf16 %v1401_v26, %v1400_v25 }
 0x73f   : > { %3522 = vmatmul.mubr.msk.bf16.vlgmr.msra.gmra.mrb[40].mxu1 %vm864_vm4, %v1409_v33 }
 0x740   : > { %3564 = vmatpush3.bf16.xpose.msra.mxu1 %v1659_v29  ;;  %3525 = vmatprep.mubr.msk.bf16.mxu1 %vm4017_vm2, %v4016_v9  ;;  %v3887_v63 = vpop.eup %3886 }
 0x741   : > { %3565 = vmatprep.subr.bf16.mxu1 %v4016_v9  ;;  %v1402_v42 = vmul.f32 %v3887_v63, %v4525_v55 }
 0x744   : > { %v3889_v6 = vpop.eup %3888 }
 0x745   : > { %v1403_v18 = vmul.f32 %v3889_v6, %v4529_v41 }
 0x747   : > { %v1410_v20 = vpack.c.bf16 %v1403_v18, %v1402_v42 }
 0x749   : > { %3526 = vmatmul.mubr.msk.bf16.gmra.mrb[44].mxu1 %vm864_vm4, %v1410_v20 }
 0x74a   : > { %3529 = vmatprep.mubr.msk.bf16.mxu1 %vm4017_vm2, %v4016_v9 }
 0x764   : > { %v1381_v37 = vpop.xlane.xlu0 %1380 }
 0x765   : > { %3890 = vrcp.f32 %v1381_v37 }
 0x768   : > { %v1387_v56 = vpop.xlane.xlu0 %1386 }
 0x76e   : > { %v1378_v30 = vpop.xlane.xlu1 %1377 }
 0x76f   : > { %3892 = vrcp.f32 %v1378_v30  ;;  %v3891_v38 = vpop.eup %3890 }
 0x770   : > { %v1405_v40 = vmul.f32 %v3891_v38, %v4549_v31 }
 0x772   : > { %v1384_v34 = vpop.xlane.xlu1 %1383 }
 0x773   : > { %3894 = vrcp.f32 %v1384_v34 }
 0x774   : > { %3896 = vrcp.f32 %v1387_v56 }
 0x776   : > { %v1390_v15 = vpop.xlane.xlu0 %1389  ;;  %v1638_v61 = vpop.permute.xlu1 %1637 }
 0x777   : > { %3898 = vrcp.f32 %v1390_v15  ;;  %v1665_v31 = vsel %vm761_vm3, %v1638_v61, 0 }
 0x779   : > { %v3893_v49 = vpop.eup %3892 }
 0x77a   : > { %v1636_v55 = vpop.permute.xlu0 %1635  ;;  %v1404_v41 = vmul.f32 %v3893_v49, %v4560_v52  ;;  %v1640_v46 = vpop.permute.xlu1 %1639 }
 0x77b   : > { %v1662_v54 = vsel %vm761_vm3, %v1636_v55, 0  ;;  %v1668_v26 = vsel %vm761_vm3, %v1640_v46, 0 }
 0x77c   : > { %3566 = vmatpush3.bf16.xpose.msra.mxu1 %v1662_v54  ;;  %v1411_v50 = vpack.c.bf16 %v1405_v40, %v1404_v41 }
 0x77d   : > { %v3895_v35 = vpop.eup %3894  ;;  %3567 = vmatprep.subr.bf16.mxu1 %v4016_v9 }
 0x77e   : > { %3530 = vmatmul.mubr.msk.bf16.gmra.mrb[48].mxu1 %vm864_vm4, %v1411_v50  ;;  %v3897_v7 = vpop.eup %3896  ;;  %v1406_v13 = vmul.f32 %v3895_v35, %v4565_v39  ;;  %v1628_v6 = vpop.permute.xlu0 %1627 }
 0x77f   : > { %3533 = vmatprep.mubr.msk.bf16.mxu1 %vm4017_vm2, %v4016_v9  ;;  %v1407_v52 = vmul.f32 %v3897_v7, %v4554_v36  ;;  %v1642_v36 = vpop.permute.xlu1 %1641 }
 0x780   : > { %v1671_v33 = vsel %vm761_vm3, %v1642_v36, 0 }
 0x781   : > { %v1412_v28 = vpack.c.bf16 %v1407_v52, %v1406_v13  ;;  %v3899_v19 = vpop.eup %3898 }
 0x782   : > { %v1408_v25 = vmul.f32 %v3899_v19, %v4569_v60  ;;  %v1540_v60 = vsel %vm1098_vm7, %v1523_v32, 0  ;;  %v1632_v18 = vpop.permute.xlu0 %1631 }
 0x783   : > { %3542 = vmatpush3.bf16.msra.mxu0 %v1540_v60  ;;  %v1624_v29 = vpop.permute.xlu1 %1623 }
 0x784   : > { %3568 = vmatpush3.bf16.xpose.msra.mxu1 %v1665_v31  ;;  %v1413_v39 = vpack.c.bf16 %v1408_v25, %v1408_v25  ;;  %3593 = vmatprep.subr.bf16.mxu0 %v4016_v9 }
 0x785   : > { %3569 = vmatprep.subr.bf16.mxu1 %v4016_v9 }
 0x786   : > { %3534 = vmatmul.mubr.msk.bf16.gmra.mrb[52].mxu1 %vm864_vm4, %v1412_v28  ;;  %v1850_v15 = vpop.permute.xlu0 %1849 }
 0x787   : > { %3537 = vmatprep.mubr.msk.bf16.mxu1 %vm4017_vm2, %v4016_v9  ;;  %v1626_v63 = vpop.permute.xlu1 %1625 }
 0x78a   : > { %v1854_v40 = vpop.permute.xlu0 %1853 }
 0x78b   : > { %v1630_v42 = vpop.permute.xlu1 %1629 }
 0x78c   : > { %3570 = vmatpush3.bf16.xpose.msra.mxu1 %v1668_v26 }
 0x78d   : > { %3571 = vmatprep.subr.bf16.mxu1 %v4016_v9 }
 0x78e   : > { %3538 = vmatmul.mubr.msk.bf16.gmra.mrb[56].mxu1 %vm864_vm4, %v1413_v39 }
 0x78f   : > { %3573 = vmatprep.mubr.msk.bf16.mxu1 %vm4017_vm2, %v4016_v9  ;;  %v1852_v38 = vpop.permute.xlu1 %1851 }
 0x794   : > { %3572 = vmatpush3.bf16.xpose.msra.mxu1 %v1671_v33 }
 0x795   : > { %3623 = vmatprep.subr.bf16.mxu1 %v4016_v9 }
 0x79b   : > { %3574 = vmatmul.mubr.msk.bf16.vlgmr.msra.gmra.mrb[60].mxu1 %vm761_vm3, %v1624_v29 }
 0x79c   : > { %3577 = vmatprep.mubr.msk.bf16.mxu1 %vm4017_vm2, %v4016_v9 }
 0x7a3   : > { %3578 = vmatmul.mubr.msk.bf16.gmra.mrb[64].mxu1 %vm761_vm3, %v1626_v63 }
 0x7a4   : > { %3581 = vmatprep.mubr.msk.bf16.mxu1 %vm4017_vm2, %v4016_v9 }
 0x7ab   : > { %3582 = vmatmul.mubr.msk.bf16.gmra.mrb[68].mxu1 %vm761_vm3, %v1628_v6 }
 0x7ac   : > { %3585 = vmatprep.mubr.msk.bf16.mxu1 %vm4017_vm2, %v4016_v9 }
 0x7b3   : > { %3586 = vmatmul.mubr.msk.bf16.gmra.mrb[72].mxu1 %vm761_vm3, %v1630_v42 }
 0x7b4   : > { %3589 = vmatprep.mubr.msk.bf16.mxu1 %vm4017_vm2, %v4016_v9 }
 0x7bb   : > { %3590 = vmatmul.mubr.msk.bf16.gmra.mrb[76].mxu1 %vm761_vm3, %v1632_v18 }
 0x7bc   : > { %3625 = vmatprep.mubr.msk.bf16.mxu1 %vm4017_vm2, %v4016_v9 }
 0x812   : > { %v1480_v20 = vpop.f32.mrb[40].mxu1 }
 0x813   : > { %v3523_v37 = vpop.f32.mrb[41].mxu1 }
 0x814   : > { %v1483_v30 = vpop.f32.mrb[42].mxu1 }
 0x815   : > { %v1518_v56 = vpack.c.bf16 %v1483_v30, %v1480_v20  ;;  %v3524_v34 = vpop.f32.mrb[43].mxu1 }
 0x817   : > { %3544 = vmatmul.mubr.msk.bf16.vlgmr.msra.gmra.mrb[60].mxu0 %vm761_vm3, %v1518_v56 }
 0x818   : > { %3594 = vmatpush3.bf16.msra.mxu0 %v1850_v15  ;;  %3547 = vmatprep.mubr.msk.bf16.mxu0 %vm4017_vm2, %v4016_v9 }
 0x819   : > { %3595 = vmatprep.subr.bf16.mxu0 %v4016_v9 }
 0x81c   : > { %3596 = vmatpush3.bf16.msra.mxu0 %v1852_v38  ;;  %v1488_v49 = vpop.f32.mrb[44].mxu1 }
 0x81d   : > { %v3527_v55 = vpop.f32.mrb[45].mxu1  ;;  %3597 = vmatprep.subr.bf16.mxu0 %v4016_v9 }
 0x81e   : > { %v1491_v41 = vpop.f32.mrb[46].mxu1 }
 0x81f   : > { %v1519_v54 = vpack.c.bf16 %v1491_v41, %v1488_v49  ;;  %v3528_v50 = vpop.f32.mrb[47].mxu1 }
 0x820   : > { %3598 = vmatpush3.bf16.msra.mxu0 %v1854_v40 }
 0x821   : > { %3548 = vmatmul.mubr.msk.bf16.gmra.mrb[64].mxu0 %vm761_vm3, %v1519_v54  ;;  %3599 = vmatprep.subr.bf16.mxu0 %v4016_v9 }
 0x822   : > { %3551 = vmatprep.mubr.msk.bf16.mxu0 %vm4017_vm2, %v4016_v9 }
 0x851   : > { %v1496_v35 = vpop.f32.mrb[48].mxu1 }
 0x852   : > { %v3531_v7 = vpop.f32.mrb[49].mxu1 }
 0x853   : > { %v1499_v61 = vpop.f32.mrb[50].mxu1 }
 0x854   : > { %v1520_v13 = vpack.c.bf16 %v1499_v61, %v1496_v35  ;;  %v3532_v52 = vpop.f32.mrb[51].mxu1 }
 0x856   : > { %3552 = vmatmul.mubr.msk.bf16.gmra.mrb[68].mxu0 %vm761_vm3, %v1520_v13 }
 0x857   : > { %3555 = vmatprep.mubr.msk.bf16.mxu0 %vm4017_vm2, %v4016_v9 }
 0x859   : > { %v1504_v31 = vpop.f32.mrb[52].mxu1 }
 0x85a   : > { %v3535_v28 = vpop.f32.mrb[53].mxu1 }
 0x85b   : > { %v1507_v19 = vpop.f32.mrb[54].mxu1 }
 0x85c   : > { %v1521_v46 = vpack.c.bf16 %v1507_v19, %v1504_v31  ;;  %v3536_v25 = vpop.f32.mrb[55].mxu1 }
 0x85e   : > { %3556 = vmatmul.mubr.msk.bf16.gmra.mrb[72].mxu0 %vm761_vm3, %v1521_v46 }
 0x85f   : > { %3559 = vmatprep.mubr.msk.bf16.mxu0 %vm4017_vm2, %v4016_v9 }
 0x861   : > { %v1512_v26 = vpop.f32.mrb[56].mxu1 }
 0x862   : > { %v3539_v39 = vpop.f32.mrb[57].mxu1  ;;  %v1522_v32 = vpack.c.bf16 %v1512_v26, %v1512_v26  ;;  %v1174_v26 = vadd.f32 %v4116_v2, %v4507_v62 }
 0x863   : > { %v1515_v36 = vpop.f32.mrb[58].mxu1 }
 0x864   : > { %v3540_v33 = vpop.f32.mrb[59].mxu1  ;;  %v1175_v36 = vadd.f32 %v4120_v4, %v4509_v0 }
 0x866   : > { %3560 = vmatmul.mubr.msk.bf16.gmra.mrb[76].mxu0 %vm761_vm3, %v1522_v32 }
 0x867   : > { %3603 = vmatprep.mubr.msk.bf16.mxu0 %vm4017_vm2, %v4016_v9 }
 0x86e   : > { %v1707_v60 = vpop.f32.mrb[60].mxu1 }
 0x86f   : > { %v3575_v29 = vpop.f32.mrb[61].mxu1  ;;  %v1745_v63 = vsel %vm864_vm4, %v1707_v60, -inf }
 0x870   : > { %1746 = vmax.xlane.f32.xlu1 %v1745_v63  ;;  %v1710_v6 = vpop.f32.mrb[62].mxu1 }
 0x871   : > { %v3576_v42 = vpop.f32.mrb[63].mxu1  ;;  %v1748_v18 = vsel %vm864_vm4, %v1710_v6, -inf }
 0x872   : > { %1749 = vmax.xlane.f32.xlu0 %v1748_v18  ;;  %v1176_v18 = vadd.f32 %v4118_v3, %v4511_v53 }
 0x876   : > { %v1715_v20 = vpop.f32.mrb[64].mxu1 }
 0x877   : > { %v3579_v37 = vpop.f32.mrb[65].mxu1  ;;  %v1751_v30 = vsel %vm864_vm4, %v1715_v20, -inf }
 0x878   : > { %1752 = vmax.xlane.f32.xlu0 %v1751_v30  ;;  %v1718_v56 = vpop.f32.mrb[66].mxu1  ;;  %v1177_v30 = vadd.f32 %v4122_v5, %v4513_v14 }
 0x879   : > { %v3580_v34 = vpop.f32.mrb[67].mxu1  ;;  %v1754_v15 = vsel %vm864_vm4, %v1718_v56, -inf }
 0x87c   : > { %1755 = vmax.xlane.f32.xlu0 %v1754_v15 }
 0x87e   : > { %v4668_v38 = vpop.f32.mrb[68].mxu1 }
 0x87f   : > { %v3583_v49 = vpop.f32.mrb[69].mxu1  ;;  %v1757_v55 = vsel %vm864_vm4, %v4668_v38, -inf }
 0x880   : > { %1758 = vmax.xlane.f32.xlu1 %v1757_v55  ;;  %v4672_v41 = vpop.f32.mrb[70].mxu1 }
 0x881   : > { %v3584_v40 = vpop.f32.mrb[71].mxu1  ;;  %v1760_v54 = vsel %vm864_vm4, %v4672_v41, -inf }
 0x882   : > { %1761 = vmax.xlane.f32.xlu0 %v1760_v54 }
 0x886   : > { %v4676_v50 = vpop.f32.mrb[72].mxu1 }
 0x887   : > { %v3587_v35 = vpop.f32.mrb[73].mxu1  ;;  %v1763_v7 = vsel %vm864_vm4, %v4676_v50, -inf }
 0x888   : > { %1764 = vmax.xlane.f32.xlu1 %v1763_v7  ;;  %v4680_v61 = vpop.f32.mrb[74].mxu1 }
 0x889   : > { %v3588_v13 = vpop.f32.mrb[75].mxu1  ;;  %v1766_v52 = vsel %vm864_vm4, %v4680_v61, -inf }
 0x88a   : > { %1767 = vmax.xlane.f32.xlu0 %v1766_v52 }
 0x88e   : > { %v4684_v31 = vpop.f32.mrb[76].mxu1 }
 0x88f   : > { %v3591_v28 = vpop.f32.mrb[77].mxu1  ;;  %v1769_v25 = vsel %vm889_vm5, %v4684_v31, -inf }
 0x890   : > { %v1742_v19 = vpop.f32.mrb[78].mxu1 }
 0x891   : > { %v3592_v46 = vpop.f32.mrb[79].mxu1 }
 0x899   : > { %1857 = vrot.lane.b32.xlu1 %v4277_v45, %s4026_s19 }
 0x8a0   : > { %1855 = vrot.lane.b32.xlu0 %v4271_v22, %s4026_s19 }
 0x8bd   : > { %1770 = vmax.xlane.f32.xlu1 %v1769_v25 }
 0x8ce   : > { %2070 = vrot.lane.b32.xlu1 %v4259_v58, %s4027_s22 }
 0x8ea   : > { %v1576_v39 = vpop.f32.mrb[60].mxu0 }
 0x8eb   : > { %v4698_v32 = vadd.f32 %v1576_v39, %v1174_v26  ;;  %v3545_v33 = vpop.f32.mrb[61].mxu0 }
 0x8ec   : > { %v1579_v29 = vpop.f32.mrb[62].mxu0 }
 0x8ed   : > { %v4700_v63 = vadd.f32 %v1579_v29, %v1175_v36  ;;  %v3546_v42 = vpop.f32.mrb[63].mxu0 }
 0x8f4   : > { %v1584_v37 = vpop.f32.mrb[64].mxu0 }
 0x8f5   : > { %v4706_v34 = vadd.f32 %v1584_v37, %v1176_v18  ;;  %v3549_v2 = vpop.f32.mrb[65].mxu0 }
 0x8f6   : > { %v1587_v62 = vpop.f32.mrb[66].mxu0 }
 0x8f7   : > { %v4708_v15 = vadd.f32 %v1587_v62, %v1177_v30  ;;  %v3550_v4 = vpop.f32.mrb[67].mxu0 }
 0x8fd   : > { %v1747_v0 = vpop.xlane.xlu1 %1746 }
 0x8fe   : > { %v1772_v49 = vsub.f32 %v1707_v60, %v1747_v0  ;;  %v1178_v0 = vadd.f32 %v4132_v11, %v4535_v51  ;;  %v1181_v51 = vadd.f32 %v4142_v17, %v4541_v44 }
 0x8ff   : > { %v1750_v55 = vpop.xlane.xlu0 %1749 }
 0x900   : > { %v1781_v40 = vmul.f32 1.442695, %v1772_v49  ;;  %v1773_v54 = vsub.f32 %v1710_v6, %v1750_v55  ;;  %v1179_v55 = vadd.f32 %v4134_v12, %v4537_v27 }
 0x902   : > { %3900 = vpow2.f32 %v1781_v40  ;;  %v1783_v35 = vmul.f32 1.442695, %v1773_v54 }
 0x904   : > { %3902 = vpow2.f32 %v1783_v35 }
 0x905   : > { %v1753_v3 = vpop.xlane.xlu0 %1752 }
 0x906   : > { %v1774_v53 = vsub.f32 %v1715_v20, %v1753_v3 }
 0x908   : > { %v1785_v7 = vmul.f32 1.442695, %v1774_v53 }
 0x909   : > { %v1756_v13 = vpop.xlane.xlu0 %1755 }
 0x90a   : > { %3904 = vpow2.f32 %v1785_v7  ;;  %v1775_v5 = vsub.f32 %v1718_v56, %v1756_v13  ;;  %v1180_v13 = vadd.f32 %v4140_v16, %v4539_v57 }
 0x90c   : > { %v4710_v14 = vpop.eup %3900  ;;  %v1787_v52 = vmul.f32 1.442695, %v1775_v5 }
 0x90d   : > { %v1759_v28 = vpop.xlane.xlu1 %1758  ;;  %v1799_v19 = vsel %vm864_vm4, %v4710_v14, 0.0 }
 0x90e   : > { %v4714_v60 = vpop.eup %3902  ;;  %3906 = vpow2.f32 %v1787_v52  ;;  %v1776_v6 = vsub.f32 %v4668_v38, %v1759_v28  ;;  %1800 = vadd.xlane.f32.xlu0 %v1799_v19 }
 0x90f   : > { %v1802_v20 = vsel %vm864_vm4, %v4714_v60, 0.0  ;;  %v1762_v56 = vpop.xlane.xlu0 %1761 }
 0x910   : > { %v1789_v46 = vmul.f32 1.442695, %v1776_v6  ;;  %1803 = vadd.xlane.f32.xlu1 %v1802_v20  ;;  %v1777_v7 = vsub.f32 %v4672_v41, %v1762_v56  ;;  %v1182_v41 = vadd.f32 %v4545_v24, %v4148_v21 }
 0x912   : > { %3908 = vpow2.f32 %v1789_v46  ;;  %v1791_v5 = vmul.f32 1.442695, %v1777_v7 }
 0x914   : > { %v4719_v25 = vpop.eup %3904 }
 0x915   : > { %v1765_v26 = vpop.xlane.xlu1 %1764  ;;  %v1805_v39 = vsel %vm864_vm4, %v4719_v25, 0.0 }
 0x916   : > { %v1778_v36 = vsub.f32 %v4676_v50, %v1765_v26  ;;  %1806 = vadd.xlane.f32.xlu1 %v1805_v39 }
 0x917   : > { %v1768_v33 = vpop.xlane.xlu0 %1767 }
 0x918   : > { %v4724_v29 = vpop.eup %3906  ;;  %v1793_v38 = vmul.f32 1.442695, %v1778_v36  ;;  %v1779_v52 = vsub.f32 %v4680_v61, %v1768_v33 }
 0x919   : > { %v1808_v42 = vsel %vm864_vm4, %v4724_v29, 0.0  ;;  %v1858_v18 = vpop.permute.xlu1 %1857 }
 0x91a   : > { %3910 = vpow2.f32 %v1793_v38  ;;  %1809 = vadd.xlane.f32.xlu1 %v1808_v42  ;;  %v1879_v50 = vand.u32 %v1858_v18, %v4362_v1  ;;  %v1795_v20 = vmul.f32 1.442695, %v1779_v52 }
 0x91b   : > { %v1856_v37 = vpop.permute.xlu0 %1855  ;;  %3912 = vpow2.f32 %v1791_v5 }
 0x91c   : > { %v4728_v30 = vpop.eup %3908  ;;  %3600 = vmatpush3.bf16.msra.mxu0 %v1856_v37  ;;  %3914 = vpow2.f32 %v1795_v20 }
 0x91d   : > { %v1811_v2 = vsel %vm864_vm4, %v4728_v30, 0.0  ;;  %3601 = vmatprep.subr.bf16.mxu0 %v4016_v9 }
 0x91e   : > { %1812 = vadd.xlane.f32.xlu1 %v1811_v2 }
 0x920   : > { %3602 = vmatpush3.bf16.msra.mxu0 %v1879_v50 }
 0x921   : > { %3645 = vmatprep.subr.bf16.mxu0 %v4016_v9 }
 0x924   : > { %v4735_v62 = vpop.eup %3910  ;;  %2068 = vrot.lane.b32.xlu0 %v4253_v47, %s4027_s22 }
 0x925   : > { %v1817_v4 = vsel %vm864_vm4, %v4735_v62, 0.0  ;;  %v4763_v17 = vpop.eup %3912 }
 0x926   : > { %1818 = vadd.xlane.f32.xlu1 %v1817_v4  ;;  %v1814_v44 = vsel %vm864_vm4, %v4763_v17, 0.0  ;;  %v4767_v26 = vpop.eup %3914 }
 0x927   : > { %v1820_v39 = vsel %vm864_vm4, %v4767_v26, 0.0 }
 0x929   : > { %v1592_v49 = vpop.f32.mrb[68].mxu0 }
 0x92a   : > { %v4745_v40 = vadd.f32 %v1592_v49, %v1178_v0  ;;  %v3553_v54 = vpop.f32.mrb[69].mxu0 }
 0x92b   : > { %v1595_v35 = vpop.f32.mrb[70].mxu0 }
 0x92c   : > { %v4747_v3 = vadd.f32 %v1595_v35, %v1179_v55  ;;  %v3554_v53 = vpop.f32.mrb[71].mxu0 }
 0x931   : > { %v1600_v11 = vpop.f32.mrb[72].mxu0 }
 0x932   : > { %v4755_v12 = vadd.f32 %v1600_v11, %v1180_v13  ;;  %v3557_v27 = vpop.f32.mrb[73].mxu0 }
 0x933   : > { %v1603_v28 = vpop.f32.mrb[74].mxu0 }
 0x934   : > { %v4757_v19 = vadd.f32 %v1603_v28, %v1181_v51  ;;  %v3558_v6 = vpop.f32.mrb[75].mxu0 }
 0x939   : > { %v1608_v16 = vpop.f32.mrb[76].mxu0 }
 0x93a   : > { %v4761_v57 = vadd.f32 %v1608_v16, %v1182_v41  ;;  %v3561_v61 = vpop.f32.mrb[77].mxu0 }
 0x93b   : > { %v1611_v46 = vpop.f32.mrb[78].mxu0 }
 0x93c   : > { %v3562_v56 = vpop.f32.mrb[79].mxu0 }
 0x943   : > { %1815 = vadd.xlane.f32.xlu0 %v1814_v44 }
 0x947   : > { %1821 = vadd.xlane.f32.xlu0 %v1820_v39 }
 0x94a   : > { %v1771_v21 = vpop.xlane.xlu1 %1770 }
 0x94b   : > { %v1780_v24 = vsub.f32 %v4684_v31, %v1771_v21  ;;  %v1958_v21 = vld [vmem:[%s5232_s5 + $0x8] sm:$0xf] }
 0x94d   : > { %v1797_v36 = vmul.f32 1.442695, %v1780_v24  ;;  %v1975_v24 = vsel %vm1098_vm7, %v1958_v21, 0 }
 0x94e   : > { %v2071_v31 = vpop.permute.xlu1 %2070  ;;  %3624 = vmatpush3.bf16.msra.mxu1 %v1975_v24 }
 0x94f   : > { %3916 = vpow2.f32 %v1797_v36  ;;  %3675 = vmatprep.subr.bf16.mxu1 %v4016_v9 }
 0x959   : > { %v4772_v33 = vpop.eup %3916 }
 0x95a   : > { %v1823_v38 = vsel %vm889_vm5, %v4772_v33, 0.0 }
 0x95b   : > { %1824 = vadd.xlane.f32.xlu1 %v1823_v38 }
 0x95d   : > { %2072 = vrot.lane.b32.xlu0 %v4265_v8, %s4027_s22 }
 0x961   : > { %2076 = vrot.lane.b32.xlu0 %v4277_v45, %s4027_s22 }
 0x965   : > { %2060 = vrot.lane.b32.xlu0 %v4261_v59, %s4028_s23 }
 0x969   : > { %2064 = vrot.lane.b32.xlu0 %v4273_v23, %s4028_s23 }
 0x96c   : > { %2074 = vrot.lane.b32.xlu1 %v4271_v22, %s4027_s22 }
 0x970   : > { %2058 = vrot.lane.b32.xlu1 %v4255_v48, %s4028_s23 }
 0x974   : > { %2062 = vrot.lane.b32.xlu1 %v4267_v10, %s4028_s23 }
 0x978   : > { %2066 = vrot.lane.b32.xlu1 %v4316_v43, %s4028_s23 }
 0x99b   : > { %v1801_v42 = vpop.xlane.xlu0 %1800 }
 0x99c   : > { %3918 = vrcp.f32 %v1801_v42 }
 0x99d   : > { %v1804_v18 = vpop.xlane.xlu1 %1803 }
 0x99e   : > { %3920 = vrcp.f32 %v1804_v18 }
 0x99f   : > { %v2069_v48 = vpop.permute.xlu0 %2068 }
 0x9a0   : > { %v2094_v10 = vsel %vm761_vm3, %v2069_v48, 0 }
 0x9a3   : > { %v1807_v37 = vpop.xlane.xlu1 %1806 }
 0x9a4   : > { %3922 = vrcp.f32 %v1807_v37 }
 0x9a6   : > { %v3919_v2 = vpop.eup %3918 }
 0x9a7   : > { %v1810_v59 = vpop.xlane.xlu1 %1809  ;;  %v1835_v23 = vmul.f32 %v3919_v2, %v4710_v14 }
 0x9a8   : > { %v3921_v50 = vpop.eup %3920  ;;  %3924 = vrcp.f32 %v1810_v59 }
 0x9a9   : > { %v1836_v4 = vmul.f32 %v3921_v50, %v4714_v60  ;;  %v2097_v60 = vsel %vm761_vm3, %v2071_v31, 0 }
 0x9ab   : > { %v1844_v0 = vpack.c.bf16 %v1836_v4, %v1835_v23  ;;  %v1813_v35 = vpop.xlane.xlu1 %1812 }
 0x9ac   : > { %3926 = vrcp.f32 %v1813_v35 }
 0x9ad   : > { %3604 = vmatmul.mubr.msk.bf16.vlgmr.msra.gmra.mrb[80].mxu0 %vm864_vm4, %v1844_v0 }
 0x9ae   : > { %3646 = vmatpush3.bf16.xpose.msra.mxu0 %v2094_v10  ;;  %3607 = vmatprep.mubr.msk.bf16.mxu0 %vm4017_vm2, %v4016_v9  ;;  %v3923_v43 = vpop.eup %3922 }
 0x9af   : > { %3647 = vmatprep.subr.bf16.mxu0 %v4016_v9  ;;  %v1837_v55 = vmul.f32 %v3923_v43, %v4719_v25 }
 0x9b2   : > { %v3925_v49 = vpop.eup %3924 }
 0x9b3   : > { %v1838_v14 = vmul.f32 %v3925_v49, %v4724_v29  ;;  %v1819_v7 = vpop.xlane.xlu1 %1818 }
 0x9b5   : > { %v1845_v54 = vpack.c.bf16 %v1838_v14, %v1837_v55 }
 0x9b6   : > { %3648 = vmatpush3.bf16.xpose.msra.mxu0 %v2097_v60  ;;  %v3927_v29 = vpop.eup %3926 }
 0x9b7   : > { %3608 = vmatmul.mubr.msk.bf16.gmra.mrb[84].mxu0 %vm864_vm4, %v1845_v54  ;;  %3649 = vmatprep.subr.bf16.mxu0 %v4016_v9  ;;  %v1839_v11 = vmul.f32 %v3927_v29, %v4728_v30 }
 0x9b8   : > { %3611 = vmatprep.mubr.msk.bf16.mxu0 %vm4017_vm2, %v4016_v9 }
 0x9d0   : > { %v1816_v53 = vpop.xlane.xlu0 %1815 }
 0x9d1   : > { %3928 = vrcp.f32 %v1816_v53 }
 0x9d4   : > { %v1822_v13 = vpop.xlane.xlu0 %1821 }
 0x9d5   : > { %3930 = vrcp.f32 %v1822_v13 }
 0x9d6   : > { %3932 = vrcp.f32 %v1819_v7 }
 0x9d8   : > { %v2073_v25 = vpop.permute.xlu0 %2072 }
 0x9d9   : > { %v2100_v5 = vsel %vm761_vm3, %v2073_v25, 0 }
 0x9da   : > { %3650 = vmatpush3.bf16.xpose.msra.mxu0 %v2100_v5 }
 0x9db   : > { %v3929_v52 = vpop.eup %3928  ;;  %3651 = vmatprep.subr.bf16.mxu0 %v4016_v9 }
 0x9dc   : > { %v1840_v51 = vmul.f32 %v3929_v52, %v4763_v17  ;;  %v2077_v56 = vpop.permute.xlu0 %2076 }
 0x9de   : > { %v1846_v27 = vpack.c.bf16 %v1840_v51, %v1839_v11 }
 0x9df   : > { %v3931_v28 = vpop.eup %3930 }
 0x9e0   : > { %3612 = vmatmul.mubr.msk.bf16.gmra.mrb[88].mxu0 %vm864_vm4, %v1846_v27  ;;  %v3933_v6 = vpop.eup %3932  ;;  %v1842_v20 = vmul.f32 %v3931_v28, %v4767_v26  ;;  %v2061_v36 = vpop.permute.xlu0 %2060 }
 0x9e1   : > { %3615 = vmatprep.mubr.msk.bf16.mxu0 %vm4017_vm2, %v4016_v9  ;;  %v1841_v41 = vmul.f32 %v3933_v6, %v4735_v62  ;;  %v2106_v62 = vsel %vm761_vm3, %v2077_v56, 0 }
 0x9e3   : > { %v1847_v16 = vpack.c.bf16 %v1842_v20, %v1841_v41 }
 0x9e4   : > { %v2065_v38 = vpop.permute.xlu0 %2064 }
 0x9e8   : > { %v1825_v61 = vpop.xlane.xlu1 %1824  ;;  %3616 = vmatmul.mubr.msk.bf16.gmra.mrb[92].mxu0 %vm864_vm4, %v1847_v16 }
 0x9e9   : > { %3934 = vrcp.f32 %v1825_v61  ;;  %3619 = vmatprep.mubr.msk.bf16.mxu0 %vm4017_vm2, %v4016_v9 }
 0x9ec   : > { %v2075_v30 = vpop.permute.xlu1 %2074 }
 0x9ed   : > { %v2103_v46 = vsel %vm761_vm3, %v2075_v30, 0 }
 0x9ee   : > { %3652 = vmatpush3.bf16.xpose.msra.mxu0 %v2103_v46 }
 0x9ef   : > { %3653 = vmatprep.subr.bf16.mxu0 %v4016_v9 }
 0x9f0   : > { %v2059_v39 = vpop.permute.xlu1 %2058 }
 0x9f3   : > { %v3935_v17 = vpop.eup %3934 }
 0x9f4   : > { %v1843_v44 = vmul.f32 %v3935_v17, %v4772_v33  ;;  %v2063_v33 = vpop.permute.xlu1 %2062 }
 0x9f6   : > { %3654 = vmatpush3.bf16.xpose.msra.mxu0 %v2106_v62  ;;  %v1848_v26 = vpack.c.bf16 %v1843_v44, %v1843_v44 }
 0x9f7   : > { %3705 = vmatprep.subr.bf16.mxu0 %v4016_v9 }
 0x9f8   : > { %3620 = vmatmul.mubr.msk.bf16.gmra.mrb[96].mxu0 %vm864_vm4, %v1848_v26  ;;  %v2067_v31 = vpop.permute.xlu1 %2066 }
 0x9f9   : > { %3655 = vmatprep.mubr.msk.bf16.mxu0 %vm4017_vm2, %v4016_v9 }
 0xa00   : > { %3656 = vmatmul.mubr.msk.bf16.vlgmr.msra.gmra.mrb[100].mxu0 %vm761_vm3, %v2059_v39 }
 0xa01   : > { %3659 = vmatprep.mubr.msk.bf16.mxu0 %vm4017_vm2, %v4016_v9 }
 0xa08   : > { %3660 = vmatmul.mubr.msk.bf16.gmra.mrb[104].mxu0 %vm761_vm3, %v2061_v36 }
 0xa09   : > { %3663 = vmatprep.mubr.msk.bf16.mxu0 %vm4017_vm2, %v4016_v9 }
 0xa10   : > { %3664 = vmatmul.mubr.msk.bf16.gmra.mrb[108].mxu0 %vm761_vm3, %v2063_v33 }
 0xa11   : > { %3667 = vmatprep.mubr.msk.bf16.mxu0 %vm4017_vm2, %v4016_v9 }
 0xa18   : > { %3668 = vmatmul.mubr.msk.bf16.gmra.mrb[112].mxu0 %vm761_vm3, %v2065_v38 }
 0xa19   : > { %3671 = vmatprep.mubr.msk.bf16.mxu0 %vm4017_vm2, %v4016_v9 }
 0xa20   : > { %3672 = vmatmul.mubr.msk.bf16.gmra.mrb[116].mxu0 %vm761_vm3, %v2067_v31 }
 0xa21   : > { %3707 = vmatprep.mubr.msk.bf16.mxu0 %vm4017_vm2, %v4016_v9 }
 0xa80   : > { %v1915_v42 = vpop.f32.mrb[80].mxu0 }
 0xa81   : > { %v3605_v18 = vpop.f32.mrb[81].mxu0 }
 0xa82   : > { %v1918_v37 = vpop.f32.mrb[82].mxu0 }
 0xa83   : > { %v1953_v2 = vpack.c.bf16 %v1918_v37, %v1915_v42  ;;  %v3606_v59 = vpop.f32.mrb[83].mxu0 }
 0xa85   : > { %3626 = vmatmul.mubr.msk.bf16.vlgmr.msra.gmra.mrb[80].mxu1 %vm761_vm3, %v1953_v2 }
 0xa86   : > { %3629 = vmatprep.mubr.msk.bf16.mxu1 %vm4017_vm2, %v4016_v9 }
 0xa8a   : > { %v1923_v50 = vpop.f32.mrb[84].mxu0 }
 0xa8b   : > { %v3609_v23 = vpop.f32.mrb[85].mxu0 }
 0xa8c   : > { %v1926_v4 = vpop.f32.mrb[86].mxu0 }
 0xa8d   : > { %v1954_v48 = vpack.c.bf16 %v1926_v4, %v1923_v50  ;;  %v3610_v0 = vpop.f32.mrb[87].mxu0 }
 0xa8f   : > { %3630 = vmatmul.mubr.msk.bf16.gmra.mrb[84].mxu1 %vm761_vm3, %v1954_v48 }
 0xa90   : > { %3633 = vmatprep.mubr.msk.bf16.mxu1 %vm4017_vm2, %v4016_v9 }
 0xab3   : > { %v1931_v10 = vpop.f32.mrb[88].mxu0 }
 0xab4   : > { %v3613_v43 = vpop.f32.mrb[89].mxu0 }
 0xab5   : > { %v1934_v49 = vpop.f32.mrb[90].mxu0 }
 0xab6   : > { %v1955_v55 = vpack.c.bf16 %v1934_v49, %v1931_v10  ;;  %v3614_v14 = vpop.f32.mrb[91].mxu0 }
 0xab8   : > { %3634 = vmatmul.mubr.msk.bf16.gmra.mrb[88].mxu1 %vm761_vm3, %v1955_v55 }
 0xab9   : > { %3637 = vmatprep.mubr.msk.bf16.mxu1 %vm4017_vm2, %v4016_v9 }
 0xabb   : > { %v1939_v60 = vpop.f32.mrb[92].mxu0 }
 0xabc   : > { %v3617_v54 = vpop.f32.mrb[93].mxu0 }
 0xabd   : > { %v1942_v35 = vpop.f32.mrb[94].mxu0 }
 0xabe   : > { %v1956_v53 = vpack.c.bf16 %v1942_v35, %v1939_v60  ;;  %v3618_v7 = vpop.f32.mrb[95].mxu0 }
 0xac0   : > { %3638 = vmatmul.mubr.msk.bf16.gmra.mrb[92].mxu1 %vm761_vm3, %v1956_v53 }
 0xac1   : > { %3641 = vmatprep.mubr.msk.bf16.mxu1 %vm4017_vm2, %v4016_v9 }
 0xacb   : > { %v1947_v13 = vpop.f32.mrb[96].mxu0 }
 0xacc   : > { %v1957_v25 = vpack.c.bf16 %v1947_v13, %v1947_v13  ;;  %v3621_v29 = vpop.f32.mrb[97].mxu0 }
 0xacd   : > { %v1950_v5 = vpop.f32.mrb[98].mxu0 }
 0xace   : > { %v3622_v52 = vpop.f32.mrb[99].mxu0  ;;  %3642 = vmatmul.mubr.msk.bf16.gmra.mrb[96].mxu1 %vm761_vm3, %v1957_v25 }
 0xacf   : > { %3685 = vmatprep.mubr.msk.bf16.mxu1 %vm4017_vm2, %v4016_v9 }
 0xad3   : > { %v2142_v11 = vpop.f32.mrb[100].mxu0 }
 0xad4   : > { %v3657_v51 = vpop.f32.mrb[101].mxu0  ;;  %v2180_v27 = vsel %vm864_vm4, %v2142_v11, -inf }
 0xad5   : > { %2181 = vmax.xlane.f32.xlu0 %v2180_v27  ;;  %v2145_v28 = vpop.f32.mrb[102].mxu0 }
 0xad6   : > { %v3658_v6 = vpop.f32.mrb[103].mxu0  ;;  %v2183_v20 = vsel %vm864_vm4, %v2145_v28, -inf }
 0xad7   : > { %2184 = vmax.xlane.f32.xlu1 %v2183_v20 }
 0xadb   : > { %v2150_v41 = vpop.f32.mrb[104].mxu0 }
 0xadc   : > { %v3661_v16 = vpop.f32.mrb[105].mxu0  ;;  %v2186_v61 = vsel %vm864_vm4, %v2150_v41, -inf }
 0xadd   : > { %2187 = vmax.xlane.f32.xlu0 %v2186_v61  ;;  %v2153_v30 = vpop.f32.mrb[106].mxu0 }
 0xade   : > { %v3662_v46 = vpop.f32.mrb[107].mxu0  ;;  %v2189_v56 = vsel %vm864_vm4, %v2153_v30, -inf }
 0xae1   : > { %2190 = vmax.xlane.f32.xlu0 %v2189_v56 }
 0xae3   : > { %v4860_v17 = vpop.f32.mrb[108].mxu0 }
 0xae4   : > { %v3665_v44 = vpop.f32.mrb[109].mxu0  ;;  %v2192_v62 = vsel %vm864_vm4, %v4860_v17, -inf }
 0xae5   : > { %2193 = vmax.xlane.f32.xlu0 %v2192_v62  ;;  %v4864_v26 = vpop.f32.mrb[110].mxu0 }
 0xae6   : > { %v3666_v39 = vpop.f32.mrb[111].mxu0 }
 0xae8   : > { %2284 = vrot.lane.b32.xlu1 %v4253_v47, %s4029_s29  ;;  %v2195_v47 = vsel %vm864_vm4, %v4864_v26, -inf }
 0xaeb   : > { %v4868_v21 = vpop.f32.mrb[112].mxu0 }
 0xaec   : > { %v3669_v24 = vpop.f32.mrb[113].mxu0  ;;  %v2198_v36 = vsel %vm864_vm4, %v4868_v21, -inf }
 0xaed   : > { %2199 = vmax.xlane.f32.xlu0 %v2198_v36  ;;  %v4872_v33 = vpop.f32.mrb[114].mxu0 }
 0xaee   : > { %v3670_v38 = vpop.f32.mrb[115].mxu0  ;;  %v2201_v59 = vsel %vm864_vm4, %v4872_v33, -inf }
 0xaf3   : > { %v4874_v31 = vpop.f32.mrb[116].mxu0 }
 0xaf4   : > { %v3673_v42 = vpop.f32.mrb[117].mxu0  ;;  %v2204_v18 = vsel %vm889_vm5, %v4874_v31, -inf }
 0xaf5   : > { %2205 = vmax.xlane.f32.xlu0 %v2204_v18  ;;  %v2177_v37 = vpop.f32.mrb[118].mxu0 }
 0xaf6   : > { %v3674_v2 = vpop.f32.mrb[119].mxu0 }
 0xb0b   : > { %2286 = vrot.lane.b32.xlu0 %v4259_v58, %s4029_s29 }
 0xb0c   : > { %2196 = vmax.xlane.f32.xlu1 %v2195_v47 }
 0xb10   : > { %2202 = vmax.xlane.f32.xlu1 %v2201_v59 }
 0xb21   : > { %2288 = vrot.lane.b32.xlu1 %v4265_v8, %s4029_s29 }
 0xb58   : > { %v2011_v50 = vpop.f32.mrb[80].mxu1 }
 0xb59   : > { %v4887_v23 = vadd.f32 %v2011_v50, %v4698_v32  ;;  %v3627_v4 = vpop.f32.mrb[81].mxu1 }
 0xb5a   : > { %v2014_v48 = vpop.f32.mrb[82].mxu1 }
 0xb5b   : > { %v4890_v0 = vadd.f32 %v2014_v48, %v4700_v63  ;;  %v3628_v58 = vpop.f32.mrb[83].mxu1 }
 0xb62   : > { %v2019_v10 = vpop.f32.mrb[84].mxu1  ;;  %v2182_v43 = vpop.xlane.xlu0 %2181 }
 0xb63   : > { %v4893_v49 = vadd.f32 %v2019_v10, %v4706_v34  ;;  %v2207_v55 = vsub.f32 %v2142_v11, %v2182_v43  ;;  %v3631_v14 = vpop.f32.mrb[85].mxu1 }
 0xb64   : > { %v2022_v60 = vpop.f32.mrb[86].mxu1  ;;  %v2185_v54 = vpop.xlane.xlu1 %2184 }
 0xb65   : > { %v2216_v8 = vmul.f32 1.442695, %v2207_v55  ;;  %v4896_v35 = vadd.f32 %v2022_v60, %v4708_v15  ;;  %v2208_v32 = vsub.f32 %v2145_v28, %v2185_v54  ;;  %v3632_v53 = vpop.f32.mrb[87].mxu1 }
 0xb67   : > { %3936 = vpow2.f32 %v2216_v8  ;;  %v2218_v7 = vmul.f32 1.442695, %v2208_v32 }
 0xb68   : > { %v2285_v63 = vpop.permute.xlu1 %2284 }
 0xb69   : > { %3938 = vpow2.f32 %v2218_v7  ;;  %3676 = vmatpush3.bf16.msra.mxu1 %v2285_v63 }
 0xb6a   : > { %v2188_v13 = vpop.xlane.xlu0 %2187  ;;  %3677 = vmatprep.subr.bf16.mxu1 %v4016_v9 }
 0xb6b   : > { %v2209_v34 = vsub.f32 %v2150_v41, %v2188_v13 }
 0xb6d   : > { %v2220_v25 = vmul.f32 1.442695, %v2209_v34 }
 0xb6e   : > { %v2191_v29 = vpop.xlane.xlu0 %2190 }
 0xb6f   : > { %3940 = vpow2.f32 %v2220_v25  ;;  %v2210_v5 = vsub.f32 %v2153_v30, %v2191_v29  ;;  %v2393_v25 = vld [vmem:[%s5232_s5 + $0xc] sm:$0xf] }
 0xb71   : > { %v4899_v52 = vpop.eup %3936  ;;  %v2222_v11 = vmul.f32 1.442695, %v2210_v5 }
 0xb72   : > { %v2194_v15 = vpop.xlane.xlu0 %2193  ;;  %v2234_v51 = vsel %vm864_vm4, %v4899_v52, 0.0 }
 0xb73   : > { %v4903_v27 = vpop.eup %3938  ;;  %3942 = vpow2.f32 %v2222_v11  ;;  %v2211_v28 = vsub.f32 %v4860_v17, %v2194_v15  ;;  %2235 = vadd.xlane.f32.xlu1 %v2234_v51 }
 0xb74   : > { %v2237_v6 = vsel %vm864_vm4, %v4903_v27, 0.0 }
 0xb75   : > { %v2224_v20 = vmul.f32 1.442695, %v2211_v28  ;;  %2238 = vadd.xlane.f32.xlu0 %v2237_v6 }
 0xb77   : > { %3944 = vpow2.f32 %v2224_v20 }
 0xb79   : > { %v4908_v41 = vpop.eup %3940 }
 0xb7a   : > { %v2200_v16 = vpop.xlane.xlu0 %2199  ;;  %v2240_v61 = vsel %vm864_vm4, %v4908_v41, 0.0 }
 0xb7b   : > { %v2213_v30 = vsub.f32 %v4868_v21, %v2200_v16  ;;  %2241 = vadd.xlane.f32.xlu1 %v2240_v61 }
 0xb7d   : > { %v4913_v46 = vpop.eup %3942  ;;  %v2228_v56 = vmul.f32 1.442695, %v2213_v30 }
 0xb7e   : > { %v2243_v17 = vsel %vm864_vm4, %v4913_v46, 0.0 }
 0xb7f   : > { %3946 = vpow2.f32 %v2228_v56  ;;  %2244 = vadd.xlane.f32.xlu0 %v2243_v17 }
 0xb81   : > { %v4917_v44 = vpop.eup %3944 }
 0xb82   : > { %v2206_v62 = vpop.xlane.xlu0 %2205  ;;  %v2246_v39 = vsel %vm864_vm4, %v4917_v44, 0.0 }
 0xb83   : > { %v2215_v24 = vsub.f32 %v4874_v31, %v2206_v62  ;;  %2247 = vadd.xlane.f32.xlu1 %v2246_v39 }
 0xb85   : > { %v2232_v7 = vmul.f32 1.442695, %v2215_v24 }
 0xb86   : > { %v2287_v36 = vpop.permute.xlu0 %2286 }
 0xb87   : > { %3678 = vmatpush3.bf16.msra.mxu1 %v2287_v36 }
 0xb88   : > { %3679 = vmatprep.subr.bf16.mxu1 %v4016_v9 }
 0xb89   : > { %v4923_v21 = vpop.eup %3946 }
 0xb8a   : > { %v2252_v38 = vsel %vm864_vm4, %v4923_v21, 0.0 }
 0xb8b   : > { %v2027_v42 = vpop.f32.mrb[88].mxu1  ;;  %2253 = vadd.xlane.f32.xlu1 %v2252_v38 }
 0xb8c   : > { %v4928_v18 = vadd.f32 %v2027_v42, %v4745_v40  ;;  %v3635_v37 = vpop.f32.mrb[89].mxu1 }
 0xb8d   : > { %v2030_v2 = vpop.f32.mrb[90].mxu1 }
 0xb8e   : > { %v4931_v47 = vadd.f32 %v2030_v2, %v4747_v3  ;;  %v3636_v31 = vpop.f32.mrb[91].mxu1 }
 0xb93   : > { %v2035_v59 = vpop.f32.mrb[92].mxu1 }
 0xb94   : > { %v4934_v50 = vadd.f32 %v2035_v59, %v4755_v12  ;;  %v3639_v4 = vpop.f32.mrb[93].mxu1 }
 0xb95   : > { %v2038_v48 = vpop.f32.mrb[94].mxu1 }
 0xb96   : > { %v4937_v58 = vadd.f32 %v2038_v48, %v4757_v19  ;;  %v3640_v10 = vpop.f32.mrb[95].mxu1 }
 0xb99   : > { %v2197_v43 = vpop.xlane.xlu1 %2196 }
 0xb9a   : > { %v2212_v40 = vsub.f32 %v4864_v26, %v2197_v43 }
 0xb9c   : > { %v2226_v55 = vmul.f32 1.442695, %v2212_v40  ;;  %2292 = vrot.lane.b32.xlu1 %v4277_v45, %s4029_s29 }
 0xb9d   : > { %v2203_v3 = vpop.xlane.xlu1 %2202 }
 0xb9e   : > { %3948 = vpow2.f32 %v2226_v55  ;;  %v2214_v45 = vsub.f32 %v4872_v33, %v2203_v3 }
 0xba0   : > { %v2230_v53 = vmul.f32 1.442695, %v2214_v45 }
 0xba1   : > { %v2043_v14 = vpop.f32.mrb[96].mxu1  ;;  %v2289_v60 = vpop.permute.xlu1 %2288 }
 0xba2   : > { %v4943_v12 = vadd.f32 %v2043_v14, %v4761_v57  ;;  %v3643_v54 = vpop.f32.mrb[97].mxu1  ;;  %3680 = vmatpush3.bf16.msra.mxu1 %v2289_v60  ;;  %3950 = vpow2.f32 %v2230_v53 }
 0xba3   : > { %v2046_v8 = vpop.f32.mrb[98].mxu1  ;;  %3681 = vmatprep.subr.bf16.mxu1 %v4016_v9  ;;  %3952 = vpow2.f32 %v2232_v7 }
 0xba4   : > { %v3644_v19 = vpop.f32.mrb[99].mxu1 }
 0xba8   : > { %v3949_v32 = vpop.eup %3948 }
 0xba9   : > { %v2249_v26 = vsel %vm864_vm4, %v3949_v32, 0.0 }
 0xbaa   : > { %2250 = vadd.xlane.f32.xlu0 %v2249_v26 }
 0xbac   : > { %v3951_v57 = vpop.eup %3950 }
 0xbad   : > { %v2255_v63 = vsel %vm864_vm4, %v3951_v57, 0.0  ;;  %v3953_v13 = vpop.eup %3952 }
 0xbae   : > { %v2258_v34 = vsel %vm889_vm5, %v3953_v13, 0.0 }
 0xbc0   : > { %2290 = vrot.lane.b32.xlu0 %v4271_v22, %s4029_s29  ;;  %v2410_v22 = vsel %vm1098_vm7, %v2393_v25, 0 }
 0xbc1   : > { %3706 = vmatpush3.bf16.msra.mxu0 %v2410_v22 }
 0xbc2   : > { %3751 = vmatprep.subr.bf16.mxu0 %v4016_v9 }
 0xbdf   : > { %2256 = vadd.xlane.f32.xlu0 %v2255_v63 }
 0xbe3   : > { %2259 = vadd.xlane.f32.xlu0 %v2258_v34 }
 0xc00   : > { %v2236_v33 = vpop.xlane.xlu1 %2235 }
 0xc02   : > { %v2239_v29 = vpop.xlane.xlu0 %2238 }
 0xc03   : > { %3954 = vrcp.f32 %v2239_v29 }
 0xc04   : > { %3956 = vrcp.f32 %v2236_v33 }
 0xc08   : > { %v2242_v5 = vpop.xlane.xlu1 %2241 }
 0xc0c   : > { %v2245_v15 = vpop.xlane.xlu0 %2244 }
 0xc0d   : > { %3958 = vrcp.f32 %v2245_v15  ;;  %v3955_v6 = vpop.eup %3954 }
 0xc0e   : > { %3960 = vrcp.f32 %v2242_v5  ;;  %v3957_v61 = vpop.eup %3956  ;;  %v2271_v30 = vmul.f32 %v3955_v6, %v4903_v27  ;;  %v3188_v6 = vld [vmem:[%s5233_s6] ss:$0 sm:$0xff] }
 0xc0f   : > { %v2270_v17 = vmul.f32 %v3957_v61, %v4899_v52 }
 0xc10   : > { %v2248_v11 = vpop.xlane.xlu1 %2247 }
 0xc11   : > { %v2279_v62 = vpack.c.bf16 %v2271_v30, %v2270_v17 }
 0xc17   : > { %v3959_v39 = vpop.eup %3958 }
 0xc18   : > { %v2254_v51 = vpop.xlane.xlu1 %2253  ;;  %v3961_v24 = vpop.eup %3960  ;;  %v2273_v27 = vmul.f32 %v3959_v39, %v4913_v46 }
 0xc19   : > { %v2272_v36 = vmul.f32 %v3961_v24, %v4908_v41 }
 0xc1c   : > { %v2293_v20 = vpop.permute.xlu1 %2292 }
 0xc1d   : > { %v2314_v56 = vand.u32 %v2293_v20, %v4362_v1  ;;  %v2280_v1 = vpack.c.bf16 %v2273_v27, %v2272_v36 }
 0xc37   : > { %v2251_v28 = vpop.xlane.xlu0 %2250 }
 0xc38   : > { %3962 = vrcp.f32 %v2251_v28 }
 0xc39   : > { %3964 = vrcp.f32 %v2248_v11 }
 0xc3a   : > { %3966 = vrcp.f32 %v2254_v51 }
 0xc3b   : > { %v2291_v16 = vpop.permute.xlu0 %2290 }
 0xc3c   : > { %3682 = vmatpush3.bf16.msra.mxu1 %v2291_v16 }
 0xc3d   : > { %3683 = vmatprep.subr.bf16.mxu1 %v4016_v9 }
 0xc40   : > { %3684 = vmatpush3.bf16.msra.mxu1 %v2314_v56 }
 0xc41   : > { %3727 = vmatprep.subr.bf16.mxu1 %v4016_v9 }
 0xc42   : > { %v3963_v38 = vpop.eup %3962 }
 0xc43   : > { %3686 = vmatmul.mubr.msk.bf16.vlgmr.msra.gmra.mrb[100].mxu1 %vm864_vm4, %v2279_v62  ;;  %v3965_v52 = vpop.eup %3964  ;;  %v2275_v42 = vmul.f32 %v3963_v38, %v3949_v32 }
 0xc44   : > { %3689 = vmatprep.mubr.msk.bf16.mxu1 %vm4017_vm2, %v4016_v9  ;;  %v2274_v37 = vmul.f32 %v3965_v52, %v4917_v44  ;;  %v3967_v31 = vpop.eup %3966 }
 0xc45   : > { %v2276_v4 = vmul.f32 %v3967_v31, %v4923_v21 }
 0xc46   : > { %v2281_v2 = vpack.c.bf16 %v2275_v42, %v2274_v37 }
 0xc4b   : > { %3690 = vmatmul.mubr.msk.bf16.gmra.mrb[104].mxu1 %vm864_vm4, %v2280_v1 }
 0xc4c   : > { %3693 = vmatprep.mubr.msk.bf16.mxu1 %vm4017_vm2, %v4016_v9 }
 0xc53   : > { %3694 = vmatmul.mubr.msk.bf16.gmra.mrb[108].mxu1 %vm864_vm4, %v2281_v2 }
 0xc54   : > { %3697 = vmatprep.mubr.msk.bf16.mxu1 %vm4017_vm2, %v4016_v9 }
 0xc6c   : > { %v2257_v46 = vpop.xlane.xlu0 %2256 }
 0xc6d   : > { %3968 = vrcp.f32 %v2257_v46 }
 0xc70   : > { %v2260_v41 = vpop.xlane.xlu0 %2259 }
 0xc71   : > { %3970 = vrcp.f32 %v2260_v41 }
 0xc77   : > { %v3969_v59 = vpop.eup %3968 }
 0xc78   : > { %v2277_v48 = vmul.f32 %v3969_v59, %v3951_v57 }
 0xc7a   : > { %v2282_v10 = vpack.c.bf16 %v2277_v48, %v2276_v4 }
 0xc7b   : > { %v3971_v43 = vpop.eup %3970 }
 0xc7c   : > { %3698 = vmatmul.mubr.msk.bf16.gmra.mrb[112].mxu1 %vm864_vm4, %v2282_v10  ;;  %v2278_v44 = vmul.f32 %v3971_v43, %v3953_v13 }
 0xc7d   : > { %3701 = vmatprep.mubr.msk.bf16.mxu1 %vm4017_vm2, %v4016_v9 }
 0xc7e   : > { %v2283_v40 = vpack.c.bf16 %v2278_v44, %v2278_v44 }
 0xc84   : > { %3702 = vmatmul.mubr.msk.bf16.gmra.mrb[116].mxu1 %vm864_vm4, %v2283_v40 }
 0xc85   : > { %3731 = vmatprep.mubr.msk.bf16.mxu1 %vm4017_vm2, %v4016_v9 }
 0xd16   : > { %v2350_v55 = vpop.f32.mrb[100].mxu1 }
 0xd17   : > { %v3687_v3 = vpop.f32.mrb[101].mxu1 }
 0xd18   : > { %v2353_v14 = vpop.f32.mrb[102].mxu1 }
 0xd19   : > { %v2388_v60 = vpack.c.bf16 %v2353_v14, %v2350_v55  ;;  %v3688_v21 = vpop.f32.mrb[103].mxu1 }
 0xd1b   : > { %3708 = vmatmul.mubr.msk.bf16.vlgmr.msra.gmra.mrb[120].mxu0 %vm761_vm3, %v2388_v60 }
 0xd1c   : > { %3711 = vmatprep.mubr.msk.bf16.mxu0 %vm4017_vm2, %v4016_v9 }
 0xd1e   : > { %v2358_v54 = vpop.f32.mrb[104].mxu1 }
 0xd1f   : > { %v3691_v8 = vpop.f32.mrb[105].mxu1 }
 0xd20   : > { %v2361_v19 = vpop.f32.mrb[106].mxu1 }
 0xd21   : > { %v2389_v32 = vpack.c.bf16 %v2361_v19, %v2358_v54  ;;  %v3692_v26 = vpop.f32.mrb[107].mxu1 }
 0xd23   : > { %3712 = vmatmul.mubr.msk.bf16.gmra.mrb[124].mxu0 %vm761_vm3, %v2389_v32 }
 0xd24   : > { %3715 = vmatprep.mubr.msk.bf16.mxu0 %vm4017_vm2, %v4016_v9 }
 0xd26   : > { %v2366_v45 = vpop.f32.mrb[108].mxu1 }
 0xd27   : > { %v3695_v53 = vpop.f32.mrb[109].mxu1 }
 0xd28   : > { %v2369_v7 = vpop.f32.mrb[110].mxu1 }
 0xd29   : > { %v2390_v57 = vpack.c.bf16 %v2369_v7, %v2366_v45  ;;  %v3696_v63 = vpop.f32.mrb[111].mxu1 }
 0xd2b   : > { %3716 = vmatmul.mubr.msk.bf16.gmra.mrb[128].mxu0 %vm761_vm3, %v2390_v57 }
 0xd2c   : > { %3719 = vmatprep.mubr.msk.bf16.mxu0 %vm4017_vm2, %v4016_v9 }
 0xd4f   : > { %v2374_v13 = vpop.f32.mrb[112].mxu1 }
 0xd50   : > { %v3699_v34 = vpop.f32.mrb[113].mxu1 }
 0xd51   : > { %v2377_v25 = vpop.f32.mrb[114].mxu1 }
 0xd52   : > { %v2391_v22 = vpack.c.bf16 %v2377_v25, %v2374_v13  ;;  %v3700_v33 = vpop.f32.mrb[115].mxu1 }
 0xd54   : > { %3720 = vmatmul.mubr.msk.bf16.gmra.mrb[132].mxu0 %vm761_vm3, %v2391_v22 }
 0xd55   : > { %3723 = vmatprep.mubr.msk.bf16.mxu0 %vm4017_vm2, %v4016_v9 }
 0xd57   : > { %v2382_v29 = vpop.f32.mrb[116].mxu1 }
 0xd58   : > { %v3703_v5 = vpop.f32.mrb[117].mxu1  ;;  %v2392_v15 = vpack.c.bf16 %v2382_v29, %v2382_v29 }
 0xd59   : > { %v2385_v11 = vpop.f32.mrb[118].mxu1 }
 0xd5a   : > { %v3704_v51 = vpop.f32.mrb[119].mxu1 }
 0xd5c   : > { %3724 = vmatmul.mubr.msk.bf16.gmra.mrb[136].mxu0 %vm761_vm3, %v2392_v15 }
 0xd5d   : > { %3759 = vmatprep.mubr.msk.bf16.mxu0 %vm4017_vm2, %v4016_v9 }
 0xdee   : > { %v2446_v28 = vpop.f32.mrb[120].mxu0 }
 0xdef   : > { %v2484_v20 = vadd.f32 %v2446_v28, %v4887_v23  ;;  %v3709_v16 = vpop.f32.mrb[121].mxu0 }
 0xdf0   : > { %v2449_v61 = vpop.f32.mrb[122].mxu0 }
 0xdf1   : > { %v5000_v30 = vadd.f32 %v3188_v6, %v2484_v20  ;;  %v2485_v56 = vadd.f32 %v2449_v61, %v4890_v0  ;;  %v3710_v17 = vpop.f32.mrb[123].mxu0 }
 0xdf3   : > { %v5003_v62 = vadd.f32 %v3188_v6, %v2485_v56  ;;  %v2511_v39 = vsel %vm462_vm0, %v5000_v30, 0.0 }
 0xdf4   : > { %2512 = vadd.xlane.f32.xlu0 %v2511_v39 }
 0xdf5   : > { %v2514_v23 = vsel %vm462_vm0, %v5003_v62, 0.0 }
 0xdf6   : > { %v2454_v24 = vpop.f32.mrb[124].mxu0 }
 0xdf7   : > { %v2486_v27 = vadd.f32 %v2454_v24, %v4893_v49  ;;  %v3713_v36 = vpop.f32.mrb[125].mxu0 }
 0xdf8   : > { %2515 = vadd.xlane.f32.xlu0 %v2514_v23  ;;  %v2457_v1 = vpop.f32.mrb[126].mxu0 }
 0xdf9   : > { %v5010_v38 = vadd.f32 %v3188_v6, %v2486_v27  ;;  %v2487_v0 = vadd.f32 %v2457_v1, %v4896_v35  ;;  %v3714_v52 = vpop.f32.mrb[127].mxu0 }
 0xdfb   : > { %v5013_v42 = vadd.f32 %v3188_v6, %v2487_v0  ;;  %v2517_v37 = vsel %vm462_vm0, %v5010_v38, 0.0 }
 0xdfc   : > { %2518 = vadd.xlane.f32.xlu0 %v2517_v37  ;;  %v3804_v37 = vld [vmem:[%s5236_s9] sm:$0xff]  }
 0xdfd   : > { %v2520_v49 = vsel %vm462_vm0, %v5013_v42, 0.0  ;;  %3728 = vmatpush3.bf16.msra.mxu1 %v3804_v37 }
 0xdfe   : > { %2521 = vadd.xlane.f32.xlu1 %v2520_v49  ;;  %v2462_v2 = vpop.f32.mrb[128].mxu0  ;;  %3729 = vmatprep.subr.bf16.mxu1 %v4016_v9  ;;  %v3805_v49 = vld [vmem:[%s5236_s9 + $0x8] sm:$0xff]  }
 0xdff   : > { %v2488_v46 = vadd.f32 %v2462_v2, %v4928_v18  ;;  %v3717_v41 = vpop.f32.mrb[129].mxu0 }
 0xe00   : > { %v2465_v31 = vpop.f32.mrb[130].mxu0 }
 0xe01   : > { %v5020_v59 = vadd.f32 %v3188_v6, %v2488_v46  ;;  %v2489_v35 = vadd.f32 %v2465_v31, %v4931_v47  ;;  %v3718_v4 = vpop.f32.mrb[131].mxu0  ;;  %3730 = vmatpush3.bf16.msra.mxu1 %v3805_v49 }
 0xe03   : > { %v5023_v48 = vadd.f32 %v3188_v6, %v2489_v35  ;;  %v2523_v10 = vsel %vm462_vm0, %v5020_v59, 0.0 }
 0xe04   : > { %2524 = vadd.xlane.f32.xlu0 %v2523_v10 }
 0xe05   : > { %v2526_v43 = vsel %vm462_vm0, %v5023_v48, 0.0 }
 0xe08   : > { %2527 = vadd.xlane.f32.xlu0 %v2526_v43 }
 0xe27   : > { %v2470_v44 = vpop.f32.mrb[132].mxu0 }
 0xe28   : > { %v2490_v18 = vadd.f32 %v2470_v44, %v4934_v50  ;;  %v3721_v40 = vpop.f32.mrb[133].mxu0 }
 0xe29   : > { %v2473_v55 = vpop.f32.mrb[134].mxu0 }
 0xe2a   : > { %v5030_v3 = vadd.f32 %v3188_v6, %v2490_v18  ;;  %v2491_v47 = vadd.f32 %v2473_v55, %v4937_v58  ;;  %v3722_v14 = vpop.f32.mrb[135].mxu0 }
 0xe2c   : > { %v5033_v60 = vadd.f32 %v3188_v6, %v2491_v47  ;;  %v2529_v21 = vsel %vm462_vm0, %v5030_v3, 0.0 }
 0xe2d   : > { %2530 = vadd.xlane.f32.xlu0 %v2529_v21 }
 0xe2e   : > { %v2532_v50 = vsel %vm462_vm0, %v5033_v60, 0.0 }
 0xe2f   : > { %v2478_v54 = vpop.f32.mrb[136].mxu0 }
 0xe30   : > { %v2492_v8 = vadd.f32 %v2478_v54, %v4943_v12  ;;  %v3725_v19 = vpop.f32.mrb[137].mxu0 }
 0xe31   : > { %2533 = vadd.xlane.f32.xlu0 %v2532_v50  ;;  %v2481_v32 = vpop.f32.mrb[138].mxu0 }
 0xe32   : > { %v5040_v26 = vadd.f32 %v3188_v6, %v2492_v8  ;;  %v3726_v45 = vpop.f32.mrb[139].mxu0 }
 0xe34   : > { %v2535_v58 = vsel %vm487_vm1, %v5040_v26, 0.0 }
 0xe35   : > { %2536 = vadd.xlane.f32.xlu0 %v2535_v58 }
 0xe81   : > { %v2513_v53 = vpop.xlane.xlu0 %2512 }
 0xe82   : > { %v2538_v7 = vmul.f32 0.03125, %v2513_v53 }
 0xe84   : > { %v5045_v57 = vsub.f32 %v5000_v30, %v2538_v7 }
 0xe85   : > { %v2516_v63 = vpop.xlane.xlu0 %2515 }
 0xe86   : > { %v2539_v12 = vmul.f32 0.03125, %v2516_v63  ;;  %v2556_v13 = vmul.f32 %v5045_v57, %v5045_v57 }
 0xe88   : > { %v5050_v34 = vsub.f32 %v5003_v62, %v2539_v12  ;;  %v2565_v25 = vsel %vm462_vm0, %v2556_v13, 0.0 }
 0xe89   : > { %2566 = vadd.xlane.f32.xlu0 %v2565_v25  ;;  %v2519_v22 = vpop.xlane.xlu0 %2518 }
 0xe8a   : > { %v2540_v33 = vmul.f32 0.03125, %v2519_v22  ;;  %v2557_v29 = vmul.f32 %v5050_v34, %v5050_v34 }
 0xe8b   : > { %v2522_v5 = vpop.xlane.xlu1 %2521 }
 0xe8c   : > { %v5056_v11 = vsub.f32 %v5010_v38, %v2540_v33  ;;  %v2541_v15 = vmul.f32 0.03125, %v2522_v5  ;;  %v2568_v51 = vsel %vm462_vm0, %v2557_v29, 0.0  ;;  %v5109_v29 = vld [vmem:[%s5234_s7] ss:$0 sm:$0xff] }
 0xe8d   : > { %2569 = vadd.xlane.f32.xlu0 %v2568_v51 }
 0xe8e   : > { %v5060_v28 = vsub.f32 %v5013_v42, %v2541_v15  ;;  %v2558_v6 = vmul.f32 %v5056_v11, %v5056_v11 }
 0xe90   : > { %v2571_v20 = vsel %vm462_vm0, %v2558_v6, 0.0  ;;  %v2559_v16 = vmul.f32 %v5060_v28, %v5060_v28 }
 0xe91   : > { %2572 = vadd.xlane.f32.xlu0 %v2571_v20  ;;  %v2525_v61 = vpop.xlane.xlu0 %2524 }
 0xe92   : > { %v2542_v56 = vmul.f32 0.03125, %v2525_v61  ;;  %v2574_v39 = vsel %vm462_vm0, %v2559_v16, 0.0  ;;  %v3190_v61 = vld [vmem:[%s5235_s8] ss:$0 sm:$0xff] }
 0xe94   : > { %v5068_v17 = vsub.f32 %v5020_v59, %v2542_v56 }
 0xe95   : > { %2575 = vadd.xlane.f32.xlu0 %v2574_v39  ;;  %v2528_v24 = vpop.xlane.xlu0 %2527 }
 0xe96   : > { %v2543_v27 = vmul.f32 0.03125, %v2528_v24  ;;  %v2560_v36 = vmul.f32 %v5068_v17, %v5068_v17 }
 0xe98   : > { %v5074_v23 = vsub.f32 %v5023_v48, %v2543_v27  ;;  %v2577_v1 = vsel %vm462_vm0, %v2560_v36, 0.0 }
 0xe99   : > { %2578 = vadd.xlane.f32.xlu1 %v2577_v1 }
 0xe9a   : > { %v2561_v0 = vmul.f32 %v5074_v23, %v5074_v23 }
 0xe9c   : > { %v2580_v52 = vsel %vm462_vm0, %v2561_v0, 0.0 }
 0xe9d   : > { %2581 = vadd.xlane.f32.xlu0 %v2580_v52 }
 0xeba   : > { %v2531_v2 = vpop.xlane.xlu0 %2530 }
 0xebb   : > { %v2544_v46 = vmul.f32 0.03125, %v2531_v2 }
 0xebd   : > { %v5088_v41 = vsub.f32 %v5030_v3, %v2544_v46 }
 0xebe   : > { %v2534_v31 = vpop.xlane.xlu0 %2533 }
 0xebf   : > { %v2545_v35 = vmul.f32 0.03125, %v2534_v31  ;;  %v2562_v4 = vmul.f32 %v5088_v41, %v5088_v41 }
 0xec1   : > { %v5093_v10 = vsub.f32 %v5033_v60, %v2545_v35  ;;  %v2583_v43 = vsel %vm462_vm0, %v2562_v4, 0.0 }
 0xec2   : > { %2584 = vadd.xlane.f32.xlu1 %v2583_v43  ;;  %v2537_v44 = vpop.xlane.xlu0 %2536 }
 0xec3   : > { %v2546_v18 = vmul.f32 0.03125, %v2537_v44  ;;  %v2563_v40 = vmul.f32 %v5093_v10, %v5093_v10 }
 0xec5   : > { %v5099_v55 = vsub.f32 %v5040_v26, %v2546_v18  ;;  %v2586_v47 = vsel %vm462_vm0, %v2563_v40, 0.0 }
 0xec6   : > { %2587 = vadd.xlane.f32.xlu0 %v2586_v47 }
 0xec7   : > { %v2564_v14 = vmul.f32 %v5099_v55, %v5099_v55 }
 0xec9   : > { %v2589_v21 = vsel %vm487_vm1, %v2564_v14, 0.0 }
 0xeca   : > { %2590 = vadd.xlane.f32.xlu1 %v2589_v21 }
 0xf16   : > { %v2567_v54 = vpop.xlane.xlu0 %2566 }
 0xf17   : > { %v2592_v8 = vmul.f32 0.03125, %v2567_v54 }
 0xf19   : > { %v2601_v19 = vadd.f32 1e-05, %v2592_v8 }
 0xf1a   : > { %v2570_v50 = vpop.xlane.xlu0 %2569 }
 0xf1b   : > { %3972 = vrsqrt.f32 %v2601_v19  ;;  %v2593_v32 = vmul.f32 0.03125, %v2570_v50 }
 0xf1d   : > { %v2602_v45 = vadd.f32 1e-05, %v2593_v32 }
 0xf1e   : > { %v2573_v58 = vpop.xlane.xlu0 %2572 }
 0xf1f   : > { %3974 = vrsqrt.f32 %v2602_v45  ;;  %v2594_v53 = vmul.f32 0.03125, %v2573_v58 }
 0xf21   : > { %v2603_v7 = vadd.f32 1e-05, %v2594_v53 }
 0xf22   : > { %v2576_v63 = vpop.xlane.xlu0 %2575 }
 0xf23   : > { %3976 = vrsqrt.f32 %v2603_v7  ;;  %v2595_v12 = vmul.f32 0.03125, %v2576_v63 }
 0xf25   : > { %v3973_v13 = vpop.eup %3972  ;;  %v2604_v25 = vadd.f32 1e-05, %v2595_v12 }
 0xf26   : > { %v2619_v22 = vmul.f32 %v3973_v13, %v5045_v57  ;;  %v2579_v33 = vpop.xlane.xlu1 %2578 }
 0xf27   : > { %3978 = vrsqrt.f32 %v2604_v25  ;;  %v2596_v5 = vmul.f32 0.03125, %v2579_v33 }
 0xf28   : > { %v2634_v6 = vmul.f32 %v5109_v29, %v2619_v22 }
 0xf29   : > { %v3975_v15 = vpop.eup %3974  ;;  %v2605_v51 = vadd.f32 1e-05, %v2596_v5 }
 0xf2a   : > { %v2620_v20 = vmul.f32 %v3975_v15, %v5050_v34  ;;  %v2582_v16 = vpop.xlane.xlu0 %2581  ;;  %v2649_v27 = vadd.f32 %v3190_v61, %v2634_v6  ;;  %v3809_v6 = vld [vmem:[%s5238_s11 + $0x18] sm:$0xff]  }
 0xf2b   : > { %3980 = vrsqrt.f32 %v2605_v51  ;;  %v2597_v57 = vmul.f32 0.03125, %v2582_v16 }
 0xf2c   : > { %v2635_v56 = vmul.f32 %v5109_v29, %v2620_v20  ;;  %v5162_v20 = vld [vmem:[%s5237_s10] ss:$0 sm:$0xff] }
 0xf2d   : > { %v3977_v39 = vpop.eup %3976  ;;  %v2606_v24 = vadd.f32 1e-05, %v2597_v57 }
 0xf2e   : > { %v2650_v36 = vadd.f32 %v3190_v61, %v2635_v56  ;;  %v2621_v1 = vmul.f32 %v3977_v39, %v5056_v11 }
 0xf2f   : > { %3982 = vrsqrt.f32 %v2606_v24 }
 0xf30   : > { %v2658_v0 = vpack.c.bf16 %v2650_v36, %v2649_v27  ;;  %v2636_v37 = vmul.f32 %v5109_v29, %v2621_v1 }
 0xf31   : > { %v3979_v52 = vpop.eup %3978 }
 0xf32   : > { %v2622_v34 = vmul.f32 %v3979_v52, %v5060_v28  ;;  %3732 = vmatmul.mubr.msk.bf16.vlgmr.msra.gmra.mrb[120].mxu1 %vm462_vm0, %v2658_v0  ;;  %v2651_v31 = vadd.f32 %v3190_v61, %v2636_v37 }
 0xf33   : > { %3735 = vmatprep.mubr.msk.bf16.mxu1 %vm4017_vm2, %v4016_v9 }
 0xf34   : > { %v2637_v49 = vmul.f32 %v5109_v29, %v2622_v34 }
 0xf35   : > { %v3981_v2 = vpop.eup %3980 }
 0xf36   : > { %v2623_v46 = vmul.f32 %v3981_v2, %v5068_v17  ;;  %v2652_v35 = vadd.f32 %v3190_v61, %v2637_v49 }
 0xf38   : > { %v2659_v11 = vpack.c.bf16 %v2652_v35, %v2651_v31  ;;  %v2638_v28 = vmul.f32 %v5109_v29, %v2623_v46 }
 0xf39   : > { %v3983_v4 = vpop.eup %3982 }
 0xf3a   : > { %v2624_v43 = vmul.f32 %v3983_v4, %v5074_v23  ;;  %3736 = vmatmul.mubr.msk.bf16.gmra.mrb[124].mxu1 %vm462_vm0, %v2659_v11  ;;  %v2653_v18 = vadd.f32 %v3190_v61, %v2638_v28 }
 0xf3b   : > { %3739 = vmatprep.mubr.msk.bf16.mxu1 %vm4017_vm2, %v4016_v9 }
 0xf3c   : > { %v2639_v44 = vmul.f32 %v5109_v29, %v2624_v43 }
 0xf3e   : > { %v2654_v40 = vadd.f32 %v3190_v61, %v2639_v44 }
 0xf40   : > { %v2660_v47 = vpack.c.bf16 %v2654_v40, %v2653_v18 }
 0xf42   : > { %3740 = vmatmul.mubr.msk.bf16.gmra.mrb[128].mxu1 %vm462_vm0, %v2660_v47 }
 0xf43   : > { %3743 = vmatprep.mubr.msk.bf16.mxu1 %vm4017_vm2, %v4016_v9 }
 0xf4f   : > { %v2585_v17 = vpop.xlane.xlu1 %2584 }
 0xf50   : > { %v2598_v14 = vmul.f32 0.03125, %v2585_v17 }
 0xf52   : > { %v2607_v23 = vadd.f32 1e-05, %v2598_v14 }
 0xf53   : > { %v2588_v21 = vpop.xlane.xlu0 %2587 }
 0xf54   : > { %3984 = vrsqrt.f32 %v2607_v23  ;;  %v2599_v54 = vmul.f32 0.03125, %v2588_v21 }
 0xf56   : > { %v2608_v8 = vadd.f32 1e-05, %v2599_v54 }
 0xf57   : > { %v2591_v19 = vpop.xlane.xlu1 %2590 }
 0xf58   : > { %3986 = vrsqrt.f32 %v2608_v8  ;;  %v2600_v50 = vmul.f32 0.03125, %v2591_v19 }
 0xf5a   : > { %v2609_v32 = vadd.f32 1e-05, %v2600_v50 }
 0xf5c   : > { %3988 = vrsqrt.f32 %v2609_v32 }
 0xf5e   : > { %v3985_v45 = vpop.eup %3984 }
 0xf5f   : > { %v2625_v58 = vmul.f32 %v3985_v45, %v5088_v41 }
 0xf61   : > { %v2640_v63 = vmul.f32 %v5109_v29, %v2625_v58 }
 0xf62   : > { %v3987_v53 = vpop.eup %3986 }
 0xf63   : > { %v2626_v7 = vmul.f32 %v3987_v53, %v5093_v10  ;;  %v2655_v22 = vadd.f32 %v3190_v61, %v2640_v63  ;;  %v3806_v10 = vld [vmem:[%s5238_s11] sm:$0xff]  }
 0xf64   : > { %3752 = vmatpush3.bf16.msra.mxu0 %v3806_v10 }
 0xf65   : > { %v2641_v12 = vmul.f32 %v5109_v29, %v2626_v7  ;;  %3753 = vmatprep.subr.bf16.mxu0 %v4016_v9 }
 0xf66   : > { %v3989_v13 = vpop.eup %3988 }
 0xf67   : > { %v2627_v25 = vmul.f32 %v3989_v13, %v5099_v55  ;;  %v2656_v33 = vadd.f32 %v3190_v61, %v2641_v12  ;;  %v3807_v55 = vld [vmem:[%s5238_s11 + $0x8] sm:$0xff]  }
 0xf68   : > { %3754 = vmatpush3.bf16.msra.mxu0 %v3807_v55 }
 0xf69   : > { %v2661_v5 = vpack.c.bf16 %v2656_v33, %v2655_v22  ;;  %v2642_v15 = vmul.f32 %v5109_v29, %v2627_v25  ;;  %3755 = vmatprep.subr.bf16.mxu0 %v4016_v9  ;;  %v3808_v29 = vld [vmem:[%s5238_s11 + $0x10] sm:$0xff]  }
 0xf6b   : > { %3744 = vmatmul.mubr.msk.bf16.gmra.mrb[132].mxu1 %vm462_vm0, %v2661_v5  ;;  %v2657_v41 = vadd.f32 %v3190_v61, %v2642_v15 }
 0xf6c   : > { %3747 = vmatprep.mubr.msk.bf16.mxu1 %vm4017_vm2, %v4016_v9  ;;  %3756 = vmatpush3.bf16.msra.mxu0 %v3808_v29 }
 0xf6d   : > { %v2662_v51 = vpack.c.bf16 %v2657_v41, %v2657_v41  ;;  %3757 = vmatprep.subr.bf16.mxu0 %v4016_v9 }
 0xf70   : > { %3758 = vmatpush3.bf16.msra.mxu0 %v3809_v6 }
 0xf73   : > { %3748 = vmatmul.mubr.msk.bf16.gmra.mrb[136].mxu1 %vm462_vm0, %v2662_v51 }
0x1005   : > { %v2735_v16 = vpop.f32.mrb[120].mxu1 }
0x1006   : > { %v2736_v61 = vadd.f32 %v5162_v20, %v2735_v16  ;;  %v3733_v57 = vpop.f32.mrb[121].mxu1 }
0x1007   : > { %v2738_v56 = vpop.f32.mrb[122].mxu1 }
0x1008   : > { %v2782_v39 = vmul.f32 0.044715, %v2736_v61  ;;  %v2739_v24 = vadd.f32 %v5162_v20, %v2738_v56  ;;  %v3734_v27 = vpop.f32.mrb[123].mxu1  ;;  %v2773_v51 = vmul.f32 0.5, %v2736_v61 }
0x100a   : > { %v2791_v36 = vmul.f32 %v2782_v39, %v2736_v61  ;;  %v2783_v1 = vmul.f32 0.044715, %v2739_v24  ;;  %v2774_v10 = vmul.f32 0.5, %v2739_v24 }
0x100c   : > { %v2800_v0 = vmul.f32 %v2791_v36, %v2736_v61  ;;  %v2792_v52 = vmul.f32 %v2783_v1, %v2739_v24 }
0x100d   : > { %v2743_v34 = vpop.f32.mrb[124].mxu1 }
0x100e   : > { %v2809_v37 = vadd.f32 %v2800_v0, %v2736_v61  ;;  %v2801_v49 = vmul.f32 %v2792_v52, %v2739_v24  ;;  %v2744_v2 = vadd.f32 %v5162_v20, %v2743_v34  ;;  %v3737_v46 = vpop.f32.mrb[125].mxu1 }
0x100f   : > { %v2746_v31 = vpop.f32.mrb[126].mxu1 }
0x1010   : > { %v2818_v35 = vmul.f32 0.7978846, %v2809_v37  ;;  %v2810_v11 = vadd.f32 %v2801_v49, %v2739_v24  ;;  %v2784_v4 = vmul.f32 0.044715, %v2744_v2  ;;  %v2747_v43 = vadd.f32 %v5162_v20, %v2746_v31  ;;  %v3738_v28 = vpop.f32.mrb[127].mxu1 }
0x1011   : > { %v2775_v61 = vmul.f32 0.5, %v2744_v2 }
0x1012   : > { %3990 = vtanh.f32 %v2818_v35  ;;  %v2819_v44 = vmul.f32 0.7978846, %v2810_v11  ;;  %v2793_v18 = vmul.f32 %v2784_v4, %v2744_v2  ;;  %v2785_v40 = vmul.f32 0.044715, %v2747_v43 }
0x1013   : > { %v2776_v24 = vmul.f32 0.5, %v2747_v43 }
0x1014   : > { %3992 = vtanh.f32 %v2819_v44  ;;  %v2802_v47 = vmul.f32 %v2793_v18, %v2744_v2  ;;  %v2794_v17 = vmul.f32 %v2785_v40, %v2747_v43 }
0x1015   : > { %v2751_v14 = vpop.f32.mrb[128].mxu1 }
0x1016   : > { %v2811_v23 = vadd.f32 %v2802_v47, %v2744_v2  ;;  %v2803_v21 = vmul.f32 %v2794_v17, %v2747_v43  ;;  %v2752_v54 = vadd.f32 %v5162_v20, %v2751_v14  ;;  %v3741_v8 = vpop.f32.mrb[129].mxu1 }
0x1017   : > { %v2754_v19 = vpop.f32.mrb[130].mxu1 }
0x1018   : > { %v2820_v50 = vmul.f32 0.7978846, %v2811_v23  ;;  %v2812_v32 = vadd.f32 %v2803_v21, %v2747_v43  ;;  %v2786_v45 = vmul.f32 0.044715, %v2752_v54  ;;  %v2755_v58 = vadd.f32 %v5162_v20, %v2754_v19  ;;  %v3742_v53 = vpop.f32.mrb[131].mxu1 }
0x1019   : > { %v2777_v35 = vmul.f32 0.5, %v2752_v54 }
0x101a   : > { %3994 = vtanh.f32 %v2820_v50  ;;  %v2821_v7 = vmul.f32 0.7978846, %v2812_v32  ;;  %v2795_v63 = vmul.f32 %v2786_v45, %v2752_v54  ;;  %v2787_v12 = vmul.f32 0.044715, %v2755_v58 }
0x101b   : > { %v2778_v11 = vmul.f32 0.5, %v2755_v58 }
0x101c   : > { %v3991_v13 = vpop.eup %3990  ;;  %3996 = vtanh.f32 %v2821_v7  ;;  %v2804_v25 = vmul.f32 %v2795_v63, %v2752_v54  ;;  %v2796_v22 = vmul.f32 %v2787_v12, %v2755_v58 }
0x101d   : > { %v2836_v33 = vadd.f32 1.0, %v3991_v13 }
0x101e   : > { %v3993_v5 = vpop.eup %3992  ;;  %v2813_v15 = vadd.f32 %v2804_v25, %v2752_v54  ;;  %v2805_v41 = vmul.f32 %v2796_v22, %v2755_v58 }
0x101f   : > { %v2837_v55 = vadd.f32 1.0, %v3993_v5  ;;  %v2845_v16 = vmul.f32 %v2836_v33, %v2773_v51 }
0x1020   : > { %v2822_v29 = vmul.f32 0.7978846, %v2813_v15  ;;  %v2814_v6 = vadd.f32 %v2805_v41, %v2755_v58 }
0x1021   : > { %v2846_v57 = vmul.f32 %v2837_v55, %v2774_v10 }
0x1022   : > { %3998 = vtanh.f32 %v2822_v29  ;;  %v2823_v56 = vmul.f32 0.7978846, %v2814_v6 }
0x1023   : > { %v2854_v39 = vpack.c.bf16 %v2846_v57, %v2845_v16 }
0x1024   : > { %v3995_v27 = vpop.eup %3994  ;;  %4000 = vtanh.f32 %v2823_v56 }
0x1025   : > { %3760 = vmatmul.mubr.msk.bf16.vlgmr.msra.gmra.mrb[140].mxu0 %vm2891_vm8, %v2854_v39  ;;  %v2838_v36 = vadd.f32 1.0, %v3995_v27 }
0x1026   : > { %v3997_v1 = vpop.eup %3996  ;;  %3763 = vmatprep.mubr.msk.bf16.mxu0 %vm4017_vm2, %v4016_v9 }
0x1027   : > { %v2839_v0 = vadd.f32 1.0, %v3997_v1  ;;  %v2847_v52 = vmul.f32 %v2838_v36, %v2775_v61 }
0x1029   : > { %v2848_v34 = vmul.f32 %v2839_v0, %v2776_v24  ;;  %v3208_v0 = vld [vmem:[%s5239_s12] ss:$0 sm:$0xff] }
0x102b   : > { %v2855_v37 = vpack.c.bf16 %v2848_v34, %v2847_v52 }
0x102c   : > { %v3999_v49 = vpop.eup %3998 }
0x102d   : > { %3764 = vmatmul.mubr.msk.bf16.gmra.mrb[144].mxu0 %vm2891_vm8, %v2855_v37  ;;  %v2840_v46 = vadd.f32 1.0, %v3999_v49 }
0x102e   : > { %v4001_v31 = vpop.eup %4000  ;;  %3767 = vmatprep.mubr.msk.bf16.mxu0 %vm4017_vm2, %v4016_v9 }
0x102f   : > { %v2841_v4 = vadd.f32 1.0, %v4001_v31  ;;  %v2849_v28 = vmul.f32 %v2840_v46, %v2777_v35 }
0x1031   : > { %v2850_v44 = vmul.f32 %v2841_v4, %v2778_v11 }
0x1033   : > { %v2856_v18 = vpack.c.bf16 %v2850_v44, %v2849_v28 }
0x1035   : > { %3768 = vmatmul.mubr.msk.bf16.gmra.mrb[148].mxu0 %vm2891_vm8, %v2856_v18 }
0x1036   : > { %3771 = vmatprep.mubr.msk.bf16.mxu0 %vm4017_vm2, %v4016_v9 }
0x103e   : > { %v2759_v2 = vpop.f32.mrb[132].mxu1 }
0x103f   : > { %v2760_v43 = vadd.f32 %v5162_v20, %v2759_v2  ;;  %v3745_v40 = vpop.f32.mrb[133].mxu1 }
0x1040   : > { %v2762_v47 = vpop.f32.mrb[134].mxu1 }
0x1041   : > { %v2788_v17 = vmul.f32 0.044715, %v2760_v43  ;;  %v2763_v14 = vadd.f32 %v5162_v20, %v2762_v47  ;;  %v3746_v23 = vpop.f32.mrb[135].mxu1  ;;  %v2779_v29 = vmul.f32 0.5, %v2760_v43 }
0x1043   : > { %v2797_v21 = vmul.f32 %v2788_v17, %v2760_v43  ;;  %v2789_v54 = vmul.f32 0.044715, %v2763_v14  ;;  %v2780_v6 = vmul.f32 0.5, %v2763_v14 }
0x1045   : > { %v2806_v8 = vmul.f32 %v2797_v21, %v2760_v43  ;;  %v2798_v19 = vmul.f32 %v2789_v54, %v2763_v14 }
0x1046   : > { %v2767_v50 = vpop.f32.mrb[136].mxu1 }
0x1047   : > { %v2815_v32 = vadd.f32 %v2806_v8, %v2760_v43  ;;  %v2807_v45 = vmul.f32 %v2798_v19, %v2763_v14  ;;  %v2768_v58 = vadd.f32 %v5162_v20, %v2767_v50  ;;  %v3749_v53 = vpop.f32.mrb[137].mxu1 }
0x1048   : > { %v2770_v7 = vpop.f32.mrb[138].mxu1 }
0x1049   : > { %v2824_v63 = vmul.f32 0.7978846, %v2815_v32  ;;  %v2816_v12 = vadd.f32 %v2807_v45, %v2763_v14  ;;  %v2790_v13 = vmul.f32 0.044715, %v2768_v58  ;;  %v3750_v25 = vpop.f32.mrb[139].mxu1  ;;  %v2781_v27 = vmul.f32 0.5, %v2768_v58 }
0x104b   : > { %4002 = vtanh.f32 %v2824_v63  ;;  %v2825_v22 = vmul.f32 0.7978846, %v2816_v12  ;;  %v2799_v33 = vmul.f32 %v2790_v13, %v2768_v58 }
0x104d   : > { %4004 = vtanh.f32 %v2825_v22  ;;  %v2808_v5 = vmul.f32 %v2799_v33, %v2768_v58 }
0x104f   : > { %v2817_v15 = vadd.f32 %v2808_v5, %v2768_v58 }
0x1051   : > { %v2826_v41 = vmul.f32 0.7978846, %v2817_v15 }
0x1053   : > { %4006 = vtanh.f32 %v2826_v41 }
0x1055   : > { %v4003_v51 = vpop.eup %4002 }
0x1056   : > { %v2842_v10 = vadd.f32 1.0, %v4003_v51 }
0x1057   : > { %v4005_v55 = vpop.eup %4004 }
0x1058   : > { %v2843_v20 = vadd.f32 1.0, %v4005_v55  ;;  %v2851_v16 = vmul.f32 %v2842_v10, %v2779_v29 }
0x105a   : > { %v2852_v57 = vmul.f32 %v2843_v20, %v2780_v6 }
0x105c   : > { %v2857_v56 = vpack.c.bf16 %v2852_v57, %v2851_v16 }
0x105d   : > { %v4007_v39 = vpop.eup %4006 }
0x105e   : > { %3772 = vmatmul.mubr.msk.bf16.gmra.mrb[152].mxu0 %vm2891_vm8, %v2857_v56  ;;  %v2844_v36 = vadd.f32 1.0, %v4007_v39 }
0x105f   : > { %3775 = vmatprep.mubr.msk.bf16.mxu0 %vm4017_vm2, %v4016_v9 }
0x1060   : > { %v2853_v1 = vmul.f32 %v2844_v36, %v2781_v27 }
0x1062   : > { %v2858_v61 = vpack.c.bf16 %v2853_v1, %v2853_v1 }
0x1066   : > { %3776 = vmatmul.mubr.msk.bf16.gmra.mrb[156].mxu0 %vm2891_vm8, %v2858_v61 }
0x10f8   : > { %v2941_v24 = vpop.f32.mrb[140].mxu0 }
0x10f9   : > { %v2979_v52 = vadd.f32 %v2941_v24, %v5000_v30  ;;  %v3761_v34 = vpop.f32.mrb[141].mxu0 }
0x10fa   : > { %v2944_v37 = vpop.f32.mrb[142].mxu0 }
0x10fb   : > { %v2995_v49 = vadd.f32 %v3208_v0, %v2979_v52  ;;  %v2980_v46 = vadd.f32 %v2944_v37, %v5003_v62  ;;  %v3762_v31 = vpop.f32.mrb[143].mxu0 }
0x10fd   : > { %v3220_v9 = vpack.c.bf16 %v2995_v49, %v2995_v49  ;;  %v2996_v35 = vadd.f32 %v3208_v0, %v2980_v46 }
0x10ff   : > { %3042 = vst.msk [vmem:[%s5196_s28] sm:$0xf] %vm3041_vm9, %v3220_v9  ;;  %v3221_v30 = vpack.c.bf16 %v2996_v35, %v2996_v35 }
0x1100   : > { %v2949_v11 = vpop.f32.mrb[144].mxu0 }
0x1101   : > { %3043 = vst.msk [vmem:[%s5196_s28 + $0x4] sm:$0xf] %vm3041_vm9, %v3221_v30  ;;  %v2981_v62 = vadd.f32 %v2949_v11, %v5010_v38  ;;  %v3765_v4 = vpop.f32.mrb[145].mxu0 }
0x1102   : > { %v2952_v28 = vpop.f32.mrb[146].mxu0 }
0x1103   : > { %v2997_v44 = vadd.f32 %v3208_v0, %v2981_v62  ;;  %v2982_v18 = vadd.f32 %v2952_v28, %v5013_v42  ;;  %v3766_v2 = vpop.f32.mrb[147].mxu0 }
0x1105   : > { %v3222_v43 = vpack.c.bf16 %v2997_v44, %v2997_v44  ;;  %v2998_v40 = vadd.f32 %v3208_v0, %v2982_v18 }
0x1107   : > { %3044 = vst.msk [vmem:[%s5196_s28 + $0x8] sm:$0xf] %vm3041_vm9, %v3222_v43  ;;  %v3223_v47 = vpack.c.bf16 %v2998_v40, %v2998_v40 }
0x1108   : > { %v2957_v17 = vpop.f32.mrb[148].mxu0 }
0x1109   : > { %3045 = vst.msk [vmem:[%s5196_s28 + $0xc] sm:$0xf] %vm3041_vm9, %v3223_v47  ;;  %v2983_v14 = vadd.f32 %v2957_v17, %v5020_v59  ;;  %v3769_v23 = vpop.f32.mrb[149].mxu0 }
0x110a   : > { %v2960_v38 = vpop.f32.mrb[150].mxu0 }
0x110b   : > { %v2999_v21 = vadd.f32 %v3208_v0, %v2983_v14  ;;  %v2984_v54 = vadd.f32 %v2960_v38, %v5023_v48  ;;  %v3770_v42 = vpop.f32.mrb[151].mxu0 }
0x110d   : > { %v3224_v8 = vpack.c.bf16 %v2999_v21, %v2999_v21  ;;  %v3000_v19 = vadd.f32 %v3208_v0, %v2984_v54 }
0x110f   : > { %3046 = vst.msk [vmem:[%s5196_s28 + $0x10] sm:$0xf] %vm3041_vm9, %v3224_v8  ;;  %v3225_v50 = vpack.c.bf16 %v3000_v19, %v3000_v19 }
0x1111   : > { %3047 = vst.msk [vmem:[%s5196_s28 + $0x14] sm:$0xf] %vm3041_vm9, %v3225_v50 }
0x1131   : > { %v2965_v32 = vpop.f32.mrb[152].mxu0 }
0x1132   : > { %v2985_v45 = vadd.f32 %v2965_v32, %v5030_v3  ;;  %v3773_v58 = vpop.f32.mrb[153].mxu0 }
0x1133   : > { %v2968_v59 = vpop.f32.mrb[154].mxu0 }
0x1134   : > { %v3001_v53 = vadd.f32 %v3208_v0, %v2985_v45  ;;  %v2986_v7 = vadd.f32 %v2968_v59, %v5033_v60  ;;  %v3774_v48 = vpop.f32.mrb[155].mxu0  ;;  %v3053_v60 = vld [vmem:[%s5196_s28 + $0x20] sm:$0x1] }
0x1136   : > { %v3226_v63 = vpack.c.bf16 %v3001_v53, %v3001_v53  ;;  %v3002_v12 = vadd.f32 %v3208_v0, %v2986_v7 }
0x1138   : > { %3048 = vst.msk [vmem:[%s5196_s28 + $0x18] sm:$0xf] %vm3041_vm9, %v3226_v63  ;;  %v3227_v13 = vpack.c.bf16 %v3002_v12, %v3002_v12 }
0x1139   : > { %v2973_v25 = vpop.f32.mrb[156].mxu0 }
0x113a   : > { %3049 = vst.msk [vmem:[%s5196_s28 + $0x1c] sm:$0xf] %vm3041_vm9, %v3227_v13  ;;  %v2987_v22 = vadd.f32 %v2973_v25, %v5040_v26  ;;  %v3777_v3 = vpop.f32.mrb[157].mxu0 }
0x113b   : > { %v2976_v33 = vpop.f32.mrb[158].mxu0 }
0x113c   : > { %v3003_v5 = vadd.f32 %v3208_v0, %v2987_v22  ;;  %v3778_v15 = vpop.f32.mrb[159].mxu0 }
0x113e   : > { %v3228_v41 = vpack.c.bf16 %v3003_v5, %v3003_v5 }
0x1140   : > { %v3054_v51 = vsel %vm3052_vm11, %v3228_v41, %v3053_v60 }
0x1141   : > { %3055 = vst [vmem:[%s5196_s28 + $0x20] sm:$0x1] %v3054_v51 }
0x1142 PF: > { %s23_s25 = sadd.s32 1, %s4014_s25  }
0x1143   : > { %p20_p4 = scmp.ge.s32.totalorder %s23_s25, 4  }
0x1145   :  { %22 = sbr.rel (!%p20_p4) target bundleno = 1 (0x1), region = 102 }

// kernel: _lambda_.10
= control target key start
LH: loop header
LB: loop body
LE: loop exit
PB: predicated region body
PF: predicated region fallthrough
CT: control target
= control target key end

     0   :  { %s3975_s29 = smov 0   ;;  %s4744_s0 = inlined_call_operand.vmem [shape: bf16[2,4,32], index: 0, kind: input, shape index: {}]   ;;  %s4745_s1 = inlined_call_operand.vmem [shape: f32[2,64,32], index: 1, kind: input, shape index: {}]   ;;  %s4746_s2 = inlined_call_operand.vmem [shape: f32[1,32], index: 2, kind: input, shape index: {}]   ;;  %s4747_s3 = inlined_call_operand.vmem [shape: f32[1,32], index: 3, kind: input, shape index: {}]   ;;  %s4748_s4 = inlined_call_operand.vmem [shape: f32[1,32], index: 4, kind: input, shape index: {}]   ;;  %s4749_s5 = inlined_call_operand.vmem [shape: f32[1,32], index: 5, kind: input, shape index: {}]   ;;  %s4750_s6 = inlined_call_operand.vmem [shape: bf16[32,32], index: 6, kind: input, shape index: {}]   ;;  %s4751_s7 = inlined_call_operand.vmem [shape: f32[1,32], index: 7, kind: input, shape index: {}]   ;;  %s4752_s8 = inlined_call_operand.vmem [shape: bf16[32,64], index: 8, kind: input, shape index: {}]   ;;  %s4753_s9 = inlined_call_operand.vmem [shape: f32[1,64], index: 9, kind: input, shape index: {}]   ;;  %s4754_s10 = inlined_call_operand.vmem [shape: bf16[32,32], index: 10, kind: input, shape index: {}]   ;;  %s4755_s11 = inlined_call_operand.vmem [shape: f32[1,32], index: 11, kind: input, shape index: {}]   ;;  %s4756_s12 = inlined_call_operand.vmem [shape: f32[1,32], index: 12, kind: input, shape index: {}]   ;;  %s4757_s13 = inlined_call_operand.vmem [shape: f32[1,32], index: 13, kind: input, shape index: {}]   ;;  %s4758_s14 = inlined_call_operand.vmem [shape: bf16[32,64], index: 14, kind: input, shape index: {}]   ;;  %s4759_s15 = inlined_call_operand.vmem [shape: f32[1,64], index: 15, kind: input, shape index: {}]   ;;  %s4760_s16 = inlined_call_operand.vmem [shape: bf16[64,32], index: 16, kind: input, shape index: {}]   ;;  %s4761_s17 = inlined_call_operand.vmem [shape: f32[1,32], index: 17, kind: input, shape index: {}]   ;;  %s4762_s18 = inlined_call_operand.vmem [shape: f32[1,64], index: 18, kind: input, shape index: {}]   ;;  %s4763_s19 = inlined_call_operand.vmem [shape: f32[1,64], index: 19, kind: input, shape index: {}]   ;;  %s4764_s20 = inlined_call_operand.vmem [shape: bf16[64,192], index: 20, kind: input, shape index: {}]   ;;  %s4765_s21 = inlined_call_operand.vmem [shape: f32[1,192], index: 21, kind: input, shape index: {}]   ;;  %s4766_s22 = inlined_call_operand.vmem [shape: bf16[192,64], index: 22, kind: input, shape index: {}]   ;;  %s4767_s23 = inlined_call_operand.vmem [shape: f32[1,64], index: 23, kind: input, shape index: {}]   ;;  %s4768_s24 = inlined_call_operand.vmem [shape: f32[2,4,256], index: 24, kind: output, shape index: {0}]   ;;  %s4769_s25 = inlined_call_operand.vmem [shape: bf16[2,4,32], index: 25, kind: output, shape index: {1}]  }
   0x1   :  { %4773 = sst [smem:[#allocation2_spill]] %s4744_s0 }
   0x2   :  { %4774 = sst [smem:[#allocation3_spill]] %s4745_s1 }
   0x3   :  { %4775 = sst [smem:[#allocation4_spill]] %s4746_s2 }
   0x4   :  { %4776 = sst [smem:[#allocation5_spill]] %s4747_s3 }
   0x5   :  { %4777 = sst [smem:[#allocation6_spill]] %s4748_s4 }
   0x6   :  { %4778 = sst [smem:[#allocation7_spill]] %s4749_s5 }
   0x7   :  { %4779 = sst [smem:[#allocation8_spill]] %s4750_s6 }
   0x8   :  { %4780 = sst [smem:[#allocation9_spill]] %s4751_s7 }
   0x9   :  { %4781 = sst [smem:[#allocation10_spill]] %s4752_s8 }
   0xa   :  { %4782 = sst [smem:[#allocation11_spill]] %s4753_s9 }
   0xb LB: > { %s3292_s2 = sadd.s32 4294967295, %s3832_s29   ;;  %p3296_p0 = scmp.ge.s32.totalorder %s3832_s29, 1  ;;  %s3832_s29 = sphi %s3975_s29, %s36_s29  }
   0xc   : > { %p699_p1 = scmp.lt.s32.totalorder %s3832_s29, 3 }
   0xe   : > { %p700_p2 = pnand %p3296_p0, %p699_p1 }
   0xf   : > { %p775_p3 = scmp.lt.s32.totalorder (!%p700_p2), %s3292_s2, 1  ;;  %vm837_vm0 = vcmask (!%p700_p2), 261120   ;;  %s4783_s26 = sld [smem:[#allocation3_spill]] (!%p700_p2)  ;;  %vm806_vm1 = vcmask (!%p700_p2), 257024   ;;  %vm3835_vm2 = vmmov (!%p700_p2), 0   ;;  %vm1151_vm3 = vcmask (!%p700_p2), 64512  }
  0x10   : > { %703 = sbr.rel (%p700_p2) target bundleno = 5315 (0x14c3), region = 116  ;;  %s4784_s4 = sld [smem:[#allocation2_spill]] (!%p700_p2)  ;;  %vm1207_vm4 = vcmask (!%p700_p2), 519168   ;;  %vm1585_vm5 = vcmask (!%p700_p2), 1043456   ;;  %vm1307_vm6 = vcmask (!%p700_p2), 523264   ;;  %vm1980_vm7 = vcmask (!%p700_p2), 1043968  }
  0x11   : > { %s4785_s0 = sld [smem:[#allocation10_spill]] (!%p700_p2)  ;;  %s4787_s9 = sld [smem:[#allocation6_spill]] (!%p700_p2)  ;;  %vm3192_vm8 = vcmask (!%p700_p2), 254976  }
  0x12   : > { %s4788_s7 = sld [smem:[#allocation7_spill]] (!%p700_p2)  ;;  %s4789_s8 = sld [smem:[#allocation4_spill]] (!%p700_p2) }
  0x13   : > { %s3837_s27 = smov (!%p700_p2), 120   ;;  %s3839_s5 = smov (!%p700_p2), 112  }
  0x17   : > { %s4795_s2 = smov (!%p775_p3, %s3292_s2), 1 }
  0x18   : > { %s3436_s6 = sshll.u32 %s4795_s2, 6  ;;  %s4772_s30 = sshll.u32 %s4795_s2, 1 }
  0x19   : > { %s783_s1 = scalar_lea.vmem %s4783_s26, %s3436_s6  ;;  %s778_s28 = scalar_lea.vmem %s4784_s4, %s4772_s30 }
  0x1a   : > { %v796_v0 = vld [vmem:[%s783_s1] sm:$0xff]  ;;  %v798_v1 = vld [vmem:[%s783_s1 + $0x10] sm:$0xff]  ;;  %v797_v2 = vld [vmem:[%s783_s1 + $0x8] sm:$0xff]  ;;  %s4791_s6 = sld [smem:[#allocation11_spill]]  ;;  %s3838_s4 = smov 88  }
  0x1b   : > { %v838_v3 = vsel %vm837_vm0, %v796_v0, 0.0  ;;  %v844_v4 = vsel %vm837_vm0, %v798_v1, 0.0  ;;  %v841_v5 = vsel %vm837_vm0, %v797_v2, 0.0  ;;  %v799_v6 = vld [vmem:[%s783_s1 + $0x18] sm:$0xff]  ;;  %v800_v7 = vld [vmem:[%s783_s1 + $0x20] sm:$0xff]  ;;  %v801_v8 = vld [vmem:[%s783_s1 + $0x28] sm:$0xff] }
  0x1c   : > { %839 = vadd.xlane.f32.xlu0 %v838_v3  ;;  %845 = vadd.xlane.f32.xlu1 %v844_v4  ;;  %v847_v9 = vsel %vm837_vm0, %v799_v6, 0.0  ;;  %v850_v10 = vsel %vm837_vm0, %v800_v7, 0.0  ;;  %v853_v11 = vsel %vm837_vm0, %v801_v8, 0.0  ;;  %v802_v12 = vld [vmem:[%s783_s1 + $0x30] sm:$0xff]  ;;  %v803_v13 = vld [vmem:[%s783_s1 + $0x38] sm:$0xff]  ;;  %s4786_s1 = sld [smem:[#allocation8_spill]] }
  0x1d   : > { %v856_v14 = vsel %vm837_vm0, %v802_v12, 0.0  ;;  %v859_v15 = vsel %vm837_vm0, %v803_v13, 0.0  ;;  %v794_v16 = vld [vmem:[%s778_s28] sm:$0x3]  ;;  %v3834_v3 = vmov 0.0   ;;  %s4790_s28 = sld [smem:[#allocation5_spill]] }
  0x1e   : > { %v4003_v17 = vunpack.c.l.bf16 %v794_v16  ;;  %3503 = vmatprep.subr.bf16.mxu0 %v3834_v3  ;;  %3507 = vmatprep.mubr.msk.bf16.mxu0 %vm3835_vm2, %v3834_v3  ;;  %s3437_s3 = sshll.u32 %s4795_s2, 3 }
  0x20   : > { %842 = vadd.xlane.f32.xlu0 %v841_v5  ;;  %848 = vadd.xlane.f32.xlu1 %v847_v9  ;;  %v807_v18 = vsel %vm806_vm1, %v4003_v17, 0.0 }
  0x22   : > { %v3685_v4 = vld [vmem:[%s4786_s1 + $0x8] sm:$0xff]  }
  0x24   : > { %851 = vadd.xlane.f32.xlu0 %v850_v10  ;;  %854 = vadd.xlane.f32.xlu1 %v853_v11 }
  0x28   : > { %857 = vadd.xlane.f32.xlu0 %v856_v14  ;;  %860 = vadd.xlane.f32.xlu1 %v859_v15 }
  0x2c   : > { %808 = vadd.xlane.f32.xlu0 %v807_v18 }
  0xa9   : > { %v840_v19 = vpop.xlane.xlu0 %839  ;;  %v846_v20 = vpop.xlane.xlu1 %845 }
  0xaa   : > { %v862_v21 = vmul.f32 0.03125, %v840_v19  ;;  %v864_v22 = vmul.f32 0.03125, %v846_v20 }
  0xac   : > { %v4007_v23 = vsub.f32 %v796_v0, %v862_v21  ;;  %v4009_v24 = vsub.f32 %v798_v1, %v864_v22  ;;  %v3682_v0 = vld [vmem:[%s4785_s0] sm:$0xff]   ;;  %v3683_v1 = vld [vmem:[%s4785_s0 + $0x8] sm:$0xff]  }
  0xad   : > { %v843_v25 = vpop.xlane.xlu0 %842  ;;  %v849_v26 = vpop.xlane.xlu1 %848  ;;  %3511 = vmatprep.subr.bf16.mxu1 %v3682_v0 }
  0xae   : > { %v863_v27 = vmul.f32 0.03125, %v843_v25  ;;  %v865_v28 = vmul.f32 0.03125, %v849_v26  ;;  %v878_v29 = vmul.f32 %v4007_v23, %v4007_v23  ;;  %v880_v30 = vmul.f32 %v4009_v24, %v4009_v24  ;;  %3512 = vmatpush3.bf16.msra.mxu1 %v3682_v0 }
  0xaf   : > { %3513 = vmatprep.subr.bf16.mxu1 %v3683_v1 }
  0xb0   : > { %v4015_v31 = vsub.f32 %v797_v2, %v863_v27  ;;  %v4017_v32 = vsub.f32 %v799_v6, %v865_v28  ;;  %v886_v33 = vsel %vm837_vm0, %v878_v29, 0.0  ;;  %v892_v36 = vsel %vm837_vm0, %v880_v30, 0.0  ;;  %v3684_v2 = vld [vmem:[%s4786_s1] sm:$0xff]  }
  0xb1   : > { %887 = vadd.xlane.f32.xlu1 %v886_v33  ;;  %v852_v34 = vpop.xlane.xlu0 %851  ;;  %v855_v35 = vpop.xlane.xlu1 %854  ;;  %3504 = vmatpush3.bf16.msra.mxu0 %v3684_v2 }
  0xb2   : > { %v866_v37 = vmul.f32 0.03125, %v852_v34  ;;  %v867_v38 = vmul.f32 0.03125, %v855_v35  ;;  %v879_v39 = vmul.f32 %v4015_v31, %v4015_v31  ;;  %v881_v40 = vmul.f32 %v4017_v32, %v4017_v32  ;;  %3514 = vmatpush3.bf16.msra.mxu1 %v3683_v1  ;;  %3505 = vmatprep.subr.bf16.mxu0 %v3834_v3 }
  0xb4   : > { %v4025_v41 = vsub.f32 %v800_v7, %v866_v37  ;;  %v4027_v42 = vsub.f32 %v801_v8, %v867_v38  ;;  %v889_v43 = vsel %vm837_vm0, %v879_v39, 0.0  ;;  %v895_v46 = vsel %vm837_vm0, %v881_v40, 0.0  ;;  %v3305_v37 = vld [vmem:[%s4787_s9] ss:$0 sm:$0xff]  ;;  %s3841_s9 = smov 80  }
  0xb5   : > { %893 = vadd.xlane.f32.xlu1 %v892_v36  ;;  %v858_v44 = vpop.xlane.xlu0 %857  ;;  %890 = vadd.xlane.f32.xlu0 %v889_v43  ;;  %v861_v45 = vpop.xlane.xlu1 %860 }
  0xb6   : > { %v868_v47 = vmul.f32 0.03125, %v858_v44  ;;  %v869_v48 = vmul.f32 0.03125, %v861_v45  ;;  %v882_v49 = vmul.f32 %v4025_v41, %v4025_v41  ;;  %v883_v50 = vmul.f32 %v4027_v42, %v4027_v42  ;;  %3506 = vmatpush3.bf16.msra.mxu0 %v3685_v4 }
  0xb7   : > { %3523 = vmatprep.subr.bf16.mxu0 %v3834_v3 }
  0xb8   : > { %v4035_v51 = vsub.f32 %v802_v12, %v868_v47  ;;  %v4037_v52 = vsub.f32 %v803_v13, %v869_v48  ;;  %v898_v53 = vsel %vm837_vm0, %v882_v49, 0.0  ;;  %v901_v57 = vsel %vm837_vm0, %v883_v50, 0.0 }
  0xb9   : > { %899 = vadd.xlane.f32.xlu1 %v898_v53  ;;  %896 = vadd.xlane.f32.xlu0 %v895_v46  ;;  %v809_v54 = vpop.xlane.xlu0 %808 }
  0xba   : > { %v811_v55 = vmul.f32 0.03125, %v809_v54  ;;  %v884_v56 = vmul.f32 %v4035_v51, %v4035_v51  ;;  %v885_v58 = vmul.f32 %v4037_v52, %v4037_v52 }
  0xbc   : > { %v4046_v59 = vsub.f32 %v4003_v17, %v811_v55  ;;  %v904_v60 = vsel %vm837_vm0, %v884_v56, 0.0  ;;  %v907_v61 = vsel %vm837_vm0, %v885_v58, 0.0 }
  0xbd   : > { %905 = vadd.xlane.f32.xlu1 %v904_v60  ;;  %902 = vadd.xlane.f32.xlu0 %v901_v57 }
  0xbe   : > { %v813_v62 = vmul.f32 %v4046_v59, %v4046_v59 }
  0xc0   : > { %v814_v63 = vsel %vm806_vm1, %v813_v62, 0.0 }
  0xc1   : > { %908 = vadd.xlane.f32.xlu0 %v907_v61  ;;  %815 = vadd.xlane.f32.xlu1 %v814_v63 }
 0x13e   : > { %v888_v5 = vpop.xlane.xlu1 %887 }
 0x13f   : > { %v910_v6 = vmul.f32 0.03125, %v888_v5 }
 0x141   : > { %v918_v7 = vadd.f32 1e-05, %v910_v6 }
 0x142   : > { %v894_v8 = vpop.xlane.xlu1 %893  ;;  %v891_v9 = vpop.xlane.xlu0 %890 }
 0x143   : > { %3764 = vrsqrt.f32 %v918_v7  ;;  %v912_v10 = vmul.f32 0.03125, %v894_v8  ;;  %v911_v11 = vmul.f32 0.03125, %v891_v9  ;;  %v3304_v7 = vld [vmem:[%s4790_s28] ss:$0 sm:$0xff]  ;;  %s4444_s28 = scalar_lea.vmem %s4768_s24, %s3437_s3 }
 0x145   : > { %v920_v12 = vadd.f32 1e-05, %v912_v10  ;;  %v919_v13 = vadd.f32 1e-05, %v911_v11 }
 0x146   : > { %v900_v14 = vpop.xlane.xlu1 %899  ;;  %v897_v15 = vpop.xlane.xlu0 %896 }
 0x147   : > { %3766 = vrsqrt.f32 %v920_v12  ;;  %v914_v16 = vmul.f32 0.03125, %v900_v14  ;;  %v913_v18 = vmul.f32 0.03125, %v897_v15 }
 0x148   : > { %3768 = vrsqrt.f32 %v919_v13 }
 0x149   : > { %v922_v19 = vadd.f32 1e-05, %v914_v16  ;;  %v921_v20 = vadd.f32 1e-05, %v913_v18  ;;  %v3311_v16 = vld [vmem:[%s4791_s6] ss:$0 sm:$0xff] }
 0x14a   : > { %v906_v21 = vpop.xlane.xlu1 %905  ;;  %v903_v22 = vpop.xlane.xlu0 %902 }
 0x14b   : > { %3770 = vrsqrt.f32 %v922_v19  ;;  %v916_v25 = vmul.f32 0.03125, %v906_v21  ;;  %v915_v26 = vmul.f32 0.03125, %v903_v22 }
 0x14c   : > { %3772 = vrsqrt.f32 %v921_v20 }
 0x14d   : > { %v3765_v27 = vpop.eup %3764  ;;  %v924_v28 = vadd.f32 1e-05, %v916_v25  ;;  %v923_v29 = vadd.f32 1e-05, %v915_v26 }
 0x14e   : > { %v816_v30 = vpop.xlane.xlu1 %815  ;;  %v909_v33 = vpop.xlane.xlu0 %908  ;;  %v934_v36 = vmul.f32 %v3765_v27, %v4007_v23  ;;  %v3306_v23 = vld [vmem:[%s4788_s7] ss:$0 sm:$0xff]  ;;  %s3836_s7 = smov 96  }
 0x14f   : > { %3774 = vrsqrt.f32 %v924_v28  ;;  %v817_v34 = vmul.f32 0.03125, %v816_v30  ;;  %v917_v35 = vmul.f32 0.03125, %v909_v33 }
 0x150   : > { %3776 = vrsqrt.f32 %v923_v29  ;;  %v948_v46 = vmul.f32 %v3305_v37, %v934_v36 }
 0x151   : > { %v3767_v38 = vpop.eup %3766  ;;  %v818_v39 = vadd.f32 1e-05, %v817_v34  ;;  %v925_v40 = vadd.f32 1e-05, %v917_v35 }
 0x152   : > { %v3769_v43 = vpop.eup %3768  ;;  %v936_v44 = vmul.f32 %v3767_v38, %v4009_v24  ;;  %v962_v55 = vadd.f32 %v3306_v23, %v948_v46 }
 0x153   : > { %3778 = vrsqrt.f32 %v818_v39  ;;  %v935_v45 = vmul.f32 %v3769_v43, %v4015_v31 }
 0x154   : > { %3780 = vrsqrt.f32 %v925_v40  ;;  %v950_v50 = vmul.f32 %v3305_v37, %v936_v44 }
 0x155   : > { %v3771_v47 = vpop.eup %3770  ;;  %v949_v48 = vmul.f32 %v3305_v37, %v935_v45 }
 0x156   : > { %v3773_v49 = vpop.eup %3772  ;;  %v938_v53 = vmul.f32 %v3771_v47, %v4025_v41  ;;  %v964_v60 = vadd.f32 %v3306_v23, %v950_v50 }
 0x157   : > { %v937_v54 = vmul.f32 %v3773_v49, %v4017_v32  ;;  %v963_v56 = vadd.f32 %v3306_v23, %v949_v48  ;;  %v3303_v32 = vld [vmem:[%s4789_s8] ss:$0 sm:$0xff]  ;;  %s4792_s8 = sld [smem:[#allocation9_spill]] }
 0x158   : > { %v952_v0 = vmul.f32 %v3305_v37, %v938_v53 }
 0x159   : > { %v3775_v24 = vpop.eup %3774  ;;  %v1037_v57 = vpack.c.bf16 %v963_v56, %v962_v55  ;;  %v951_v58 = vmul.f32 %v3305_v37, %v937_v54 }
 0x15a   : > { %v3777_v31 = vpop.eup %3776  ;;  %v940_v61 = vmul.f32 %v3775_v24, %v4035_v51  ;;  %v966_v51 = vadd.f32 %v3306_v23, %v952_v0 }
 0x15b   : > { %v939_v62 = vmul.f32 %v3777_v31, %v4027_v42  ;;  %3515 = vmatprep.mubr.msk.bf16.mxu1 %vm837_vm0, %v1037_v57  ;;  %v965_v63 = vadd.f32 %v3306_v23, %v951_v58 }
 0x15c   : > { %v954_v8 = vmul.f32 %v3305_v37, %v940_v61 }
 0x15d   : > { %v3779_v1 = vpop.eup %3778  ;;  %v1038_v2 = vpack.c.bf16 %v965_v63, %v964_v60  ;;  %v953_v41 = vmul.f32 %v3305_v37, %v939_v62  ;;  %v3307_v49 = vld [vmem:[%s4792_s8] ss:$0 sm:$0xff]  ;;  %s3844_s8 = smov 64  }
 0x15e   : > { %v3781_v4 = vpop.eup %3780  ;;  %v820_v5 = vmul.f32 %v3779_v1, %v4046_v59  ;;  %v968_v13 = vadd.f32 %v3306_v23, %v954_v8 }
 0x15f   : > { %v941_v6 = vmul.f32 %v3781_v4, %v4037_v52  ;;  %3516 = vmatmul.mubr.msk.bf16.vlgmr.msra.gmra.mrb[0].mxu1 %vm837_vm0, %v1038_v2  ;;  %v967_v42 = vadd.f32 %v3306_v23, %v953_v41 }
 0x160   : > { %v827_v9 = vmul.f32 %v3303_v32, %v820_v5 }
 0x161   : > { %v1039_v10 = vpack.c.bf16 %v967_v42, %v966_v51  ;;  %v955_v11 = vmul.f32 %v3305_v37, %v941_v6  ;;  %v1581_v6 = vld [vmem:[%s4754_s10] sm:$0xf] }
 0x162   : > { %v834_v12 = vadd.f32 %v3304_v7, %v827_v9  ;;  %v1587_v7 = vsel %vm1585_vm5, %v1581_v6, 0 }
 0x163   : > { %3519 = vmatprep.mubr.msk.bf16.mxu1 %vm837_vm0, %v1039_v10  ;;  %v969_v14 = vadd.f32 %v3306_v23, %v955_v11 }
 0x164   : > { %v970_v59 = vpack.c.bf16 %v834_v12, %v834_v12 }
 0x165   : > { %v1040_v15 = vpack.c.bf16 %v969_v14, %v968_v13 }
 0x166   : > { %3508 = vmatmul.mubr.msk.bf16.vlgmr.msra.gmra.mrb[0].mxu0 %vm837_vm0, %v970_v59 }
 0x167   : > { %3520 = vmatmul.mubr.msk.bf16.gmra.mrb[4].mxu1 %vm837_vm0, %v1040_v15  ;;  %3531 = vmatprep.mubr.msk.bf16.mxu0 %vm3835_vm2, %v3834_v3 }
 0x232   : > { %v3517_v52 = vpop.f32.mrb[0].mxu1 }
 0x233   : > { %v1110_v18 = vpop.f32.mrb[1].mxu1  ;;  %v1119_v20 = vadd.f32 %v3517_v52, %v3311_v16 }
 0x234   : > { %v3518_v19 = vpop.f32.mrb[2].mxu1  ;;  %v1111_v25 = vadd.f32 %v3311_v16, %v1110_v18 }
 0x235   : > { %v1122_v21 = vadd.f32 %v3518_v19, %v3311_v16  ;;  %v1113_v22 = vpop.f32.mrb[3].mxu1 }
 0x236   : > { %v1114_v26 = vadd.f32 %v3311_v16, %v1113_v22 }
 0x237   : > { %v4101_v27 = vpack.c.bf16 %v1122_v21, %v1119_v20 }
 0x238   : > { %v4103_v28 = vpack.c.bf16 %v1114_v26, %v1111_v25 }
 0x239   : > { %1527 = vrot.lane.b32.xlu1 %v4101_v27, %s3836_s7  ;;  %v1031_v29 = vpop.f32.mrb[0].mxu0  ;;  %v1159_v47 = vsel %vm1151_vm3, %v4101_v27, 0 }
 0x23a   : > { %v3521_v30 = vpop.f32.mrb[4].mxu1  ;;  %v3509_v33 = vpop.f32.mrb[1].mxu0  ;;  %v1156_v34 = vsel %vm1151_vm3, %v4103_v28, 0  ;;  %v1032_v50 = vadd.f32 %v3307_v49, %v1031_v29 }
 0x23b   : > { %v1126_v35 = vpop.f32.mrb[5].mxu1  ;;  %3524 = vmatpush3.bf16.xpose.msra.mxu0 %v1156_v34  ;;  %v1034_v36 = vpop.f32.mrb[2].mxu0  ;;  %v1135_v39 = vadd.f32 %v3521_v30, %v3311_v16 }
 0x23c   : > { %v3522_v37 = vpop.f32.mrb[6].mxu1  ;;  %v3510_v38 = vpop.f32.mrb[3].mxu0  ;;  %3525 = vmatprep.subr.bf16.mxu0 %v3834_v3  ;;  %v1127_v44 = vadd.f32 %v3311_v16, %v1126_v35  ;;  %v1141_v54 = vmul.f32 0.35355338, %v1032_v50 }
 0x23d   : > { %v1138_v40 = vadd.f32 %v3522_v37, %v3311_v16  ;;  %v1129_v43 = vpop.f32.mrb[7].mxu1 }
 0x23e   : > { %v1130_v45 = vadd.f32 %v3311_v16, %v1129_v43  ;;  %v4128_v55 = vpack.c.bf16 %v1141_v54, %v1141_v54 }
 0x23f   : > { %v4110_v46 = vpack.c.bf16 %v1138_v40, %v1135_v39 }
 0x240   : > { %v4112_v23 = vpack.c.bf16 %v1130_v45, %v1127_v44 }
 0x241   : > { %v1165_v53 = vsel %vm1151_vm3, %v4110_v46, 0 }
 0x242   : > { %1529 = vrot.lane.b32.xlu1 %v4112_v23, %s3836_s7  ;;  %v1162_v48 = vsel %vm1151_vm3, %v4112_v23, 0 }
 0x243   : > { %3526 = vmatpush3.bf16.xpose.msra.mxu0 %v1159_v47 }
 0x244   : > { %3527 = vmatprep.subr.bf16.mxu0 %v3834_v3 }
 0x24b   : > { %3528 = vmatpush3.bf16.xpose.msra.mxu0 %v1162_v48 }
 0x24c   : > { %3529 = vmatprep.subr.bf16.mxu0 %v3834_v3 }
 0x253   : > { %3530 = vmatpush3.bf16.xpose.msra.mxu0 %v1165_v53 }
 0x254   : > { %3535 = vmatprep.subr.bf16.mxu0 %v3834_v3 }
 0x25a   : > { %3532 = vmatmul.mubr.msk.bf16.vlgmr.msra.gmra.mrb[4].mxu0 %vm1151_vm3, %v4128_v55 }
 0x25b   : > { %3543 = vmatprep.mubr.msk.bf16.mxu0 %vm3835_vm2, %v3834_v3 }
 0x2ab   : > { %v1528_v0 = vpop.permute.xlu1 %1527 }
 0x2b4   : > { %v1530_v1 = vpop.permute.xlu1 %1529 }
 0x32d   : > { %v1201_v56 = vpop.f32.mrb[4].mxu0 }
 0x32e   : > { %v3533_v24 = vpop.f32.mrb[5].mxu0  ;;  %v1208_v57 = vsel %vm1207_vm4, %v1201_v56, -inf }
 0x32f   : > { %1209 = vmax.xlane.f32.xlu0 %v1208_v57  ;;  %v1204_v58 = vpop.f32.mrb[6].mxu0  ;;  %v4207_v24 = vld [vmem:[%s4764_s20] ss:$8 sps:$4 sm:$0xff]   ;;  %v4214_v57 = vld [vmem:[%s4764_s20 + $0x14] ss:$8 sps:$4 sm:$0xff]  }
 0x330   : > { %v3534_v31 = vpop.f32.mrb[7].mxu0  ;;  %v4219_v58 = vld [vmem:[%s4764_s20 + $0x10] ss:$8 sps:$4 sm:$0xff]  }
 0x331   : > { %v4226_v31 = vld [vmem:[%s4764_s20 + $0x24] ss:$8 sps:$4 sm:$0xff]  }
 0x345   : > { %1525 = vrot.lane.b32.xlu0 %v4103_v28, %s3836_s7 }
 0x349   : > { %1633 = vrot.lane.b32.xlu0 %v4103_v28, %s3837_s27 }
 0x34d   : > { %1637 = vrot.lane.b32.xlu0 %v4112_v23, %s3837_s27 }
 0x351   : > { %1631 = vrot.lane.b32.xlu0 %v4128_v55, %s3837_s27 }
 0x355   : > { %1983 = vrot.lane.b32.xlu0 %v4103_v28, %s3838_s4 }
 0x3bc   : > { %v1210_v60 = vpop.xlane.xlu0 %1209 }
 0x3bd   : > { %v1211_v61 = vsub.f32 %v1201_v56, %v1210_v60  ;;  %v4202_v56 = vld [vmem:[%s4764_s20 + $0x4] ss:$8 sps:$4 sm:$0xff]   ;;  %v4231_v60 = vld [vmem:[%s4764_s20 + $0x20] ss:$8 sps:$4 sm:$0xff]  }
 0x3be   : > { %1311 = vmatprep.subr.bf16.mxu1 %v4202_v56 }
 0x3bf   : > { %v1212_v62 = vmul.f32 1.442695, %v1211_v61  ;;  %1312 = vmatpush1.bf16.msra.mxu1 %v4207_v24  ;;  %v4238_v61 = vld [vmem:[%s4764_s20 + $0x34] ss:$8 sps:$4 sm:$0xff]  }
 0x3c0   : > { %v1526_v63 = vpop.permute.xlu0 %1525  ;;  %1313 = vmatprep.subr.bf16.mxu1 %v4214_v57 }
 0x3c1   : > { %3782 = vpow2.f32 %v1212_v62  ;;  %3536 = vmatpush3.bf16.msra.mxu0 %v1526_v63  ;;  %v4243_v62 = vld [vmem:[%s4764_s20 + $0x30] ss:$8 sps:$4 sm:$0xff]   ;;  %v3840_v63 = vmov 0  }
 0x3c2   : > { %3537 = vmatprep.subr.bf16.mxu0 %v3834_v3  ;;  %1343 = vmatprep.mubr.bf16.mxu1 %v3840_v63 }
 0x3c3   : > { %1314 = vmatpush1.bf16.msra.mxu1 %v4219_v58 }
 0x3c4   : > { %v1634_v8 = vpop.permute.xlu0 %1633  ;;  %1315 = vmatprep.subr.bf16.mxu1 %v4226_v31 }
 0x3c5   : > { %3538 = vmatpush3.bf16.msra.mxu0 %v1528_v0  ;;  %v1645_v13 = vsel %vm1151_vm3, %v1634_v8, 0 }
 0x3c6   : > { %3539 = vmatprep.subr.bf16.mxu0 %v3834_v3 }
 0x3c7   : > { %1316 = vmatpush1.bf16.msra.mxu1 %v4231_v60 }
 0x3c8   : > { %v1638_v52 = vpop.permute.xlu0 %1637  ;;  %1317 = vmatprep.subr.bf16.mxu1 %v4238_v61 }
 0x3c9   : > { %3540 = vmatpush3.bf16.msra.mxu0 %v1530_v1  ;;  %v1651_v16 = vsel %vm1151_vm3, %v1638_v52, 0  ;;  %v4282_v52 = vld [vmem:[%s4763_s19] ss:$0 sm:$0xff] }
 0x3ca   : > { %3541 = vmatprep.subr.bf16.mxu0 %v3834_v3 }
 0x3cb   : > { %v3783_v2 = vpop.eup %3782  ;;  %1318 = vmatpush1.bf16.msra.mxu1 %v4243_v62 }
 0x3cc   : > { %v1214_v41 = vsel %vm1207_vm4, %v3783_v2, 0.0  ;;  %v1632_v20 = vpop.permute.xlu0 %1631  ;;  %1471 = vmatprep.subr.bf16.mxu1 %v3840_v63 }
 0x3cd   : > { %1215 = vadd.xlane.f32.xlu1 %v1214_v41 }
 0x3d0   : > { %v1984_v21 = vpop.permute.xlu0 %1983 }
 0x3de   : > { %1531 = vrot.lane.b32.xlu1 %v4110_v46, %s3836_s7 }
 0x3e2   : > { %1635 = vrot.lane.b32.xlu1 %v4101_v27, %s3837_s27 }
 0x3e6   : > { %1639 = vrot.lane.b32.xlu1 %v4110_v46, %s3837_s27 }
 0x45a   : > { %v1216_v32 = vpop.xlane.xlu1 %1215 }
 0x45b   : > { %3784 = vrcp.f32 %v1216_v32 }
 0x45e   : > { %v1532_v4 = vpop.permute.xlu1 %1531 }
 0x45f   : > { %3542 = vmatpush3.bf16.msra.mxu0 %v1532_v4 }
 0x460   : > { %3547 = vmatprep.subr.bf16.mxu0 %v3834_v3 }
 0x462   : > { %v1636_v59 = vpop.permute.xlu1 %1635 }
 0x463   : > { %v1648_v15 = vsel %vm1151_vm3, %v1636_v59, 0  ;;  %v4277_v59 = vld [vmem:[%s4762_s18] ss:$0 sm:$0xff] }
 0x465   : > { %v3785_v5 = vpop.eup %3784 }
 0x466   : > { %v4154_v51 = vmul.f32 %v3785_v5, %v3783_v2  ;;  %v1640_v18 = vpop.permute.xlu1 %1639  ;;  %v2039_v5 = vld [vmem:[%s4754_s10 + $0x4] sm:$0xf] }
 0x467   : > { %v1654_v19 = vsel %vm1151_vm3, %v1640_v18, 0  ;;  %v2044_v6 = vsel %vm1585_vm5, %v2039_v5, 0 }
 0x468   : > { %v1520_v42 = vpack.c.bf16 %v4154_v51, %v4154_v51  ;;  %v1219_v37 = vsel %vm1207_vm4, %v4154_v51, 0.0 }
 0x46a   : > { %3544 = vmatmul.mubr.msk.bf16.vlgmr.msra.gmra.mrb[8].mxu0 %vm1307_vm6, %v1520_v42 }
 0x46b   : > { %3548 = vmatpush3.bf16.msra.mxu0 %v1587_v7  ;;  %3549 = vmatprep.mubr.msk.bf16.mxu0 %vm3835_vm2, %v3834_v3 }
 0x46c   : > { %3553 = vmatprep.subr.bf16.mxu0 %v3834_v3 }
 0x53d   : > { %v1574_v9 = vpop.f32.mrb[8].mxu0 }
 0x53e   : > { %v1580_v10 = vpack.c.bf16 %v1574_v9, %v1574_v9  ;;  %v3545_v11 = vpop.f32.mrb[9].mxu0 }
 0x53f   : > { %v1577_v12 = vpop.f32.mrb[10].mxu0 }
 0x540   : > { %v3546_v14 = vpop.f32.mrb[11].mxu0  ;;  %3550 = vmatmul.mubr.msk.bf16.vlgmr.msra.gmra.mrb[12].mxu0 %vm1151_vm3, %v1580_v10 }
 0x541   : > { %3554 = vmatpush3.bf16.xpose.msra.mxu0 %v1645_v13  ;;  %3561 = vmatprep.mubr.msk.bf16.mxu0 %vm3835_vm2, %v3834_v3 }
 0x542   : > { %3555 = vmatprep.subr.bf16.mxu0 %v3834_v3 }
 0x549   : > { %3556 = vmatpush3.bf16.xpose.msra.mxu0 %v1648_v15 }
 0x54a   : > { %3557 = vmatprep.subr.bf16.mxu0 %v3834_v3 }
 0x551   : > { %3558 = vmatpush3.bf16.xpose.msra.mxu0 %v1651_v16 }
 0x552   : > { %3559 = vmatprep.subr.bf16.mxu0 %v3834_v3 }
 0x559   : > { %3560 = vmatpush3.bf16.xpose.msra.mxu0 %v1654_v19 }
 0x55a   : > { %3565 = vmatprep.subr.bf16.mxu0 %v3834_v3 }
 0x560   : > { %3562 = vmatmul.mubr.msk.bf16.vlgmr.msra.gmra.mrb[16].mxu0 %vm1151_vm3, %v1632_v20  ;;  %v3698_v20 = vld [vmem:[%s4766_s22] sm:$0xff]  }
 0x561   : > { %3566 = vmatpush3.bf16.msra.mxu0 %v1984_v21  ;;  %3573 = vmatprep.mubr.msk.bf16.mxu0 %vm3835_vm2, %v3834_v3  ;;  %v3699_v21 = vld [vmem:[%s4766_s22 + $0x8] sm:$0xff]  }
 0x562   : > { %3567 = vmatprep.subr.bf16.mxu0 %v3834_v3 }
 0x613   : > { %v4178_v22 = vpop.f32.mrb[12].mxu0 }
 0x614   : > { %v3551_v25 = vpop.f32.mrb[13].mxu0 }
 0x615   : > { %v1626_v26 = vpop.f32.mrb[14].mxu0  ;;  %v3700_v25 = vld [vmem:[%s4766_s22 + $0x10] sm:$0xff]  }
 0x616   : > { %v3552_v29 = vpop.f32.mrb[15].mxu0  ;;  %v3701_v26 = vld [vmem:[%s4766_s22 + $0x18] sm:$0xff]  }
 0x633   : > { %v1690_v30 = vpop.f32.mrb[16].mxu0 }
 0x634   : > { %v3563_v33 = vpop.f32.mrb[17].mxu0  ;;  %v1696_v34 = vsel %vm1207_vm4, %v1690_v30, -inf }
 0x635   : > { %1697 = vmax.xlane.f32.xlu1 %v1696_v34  ;;  %v1693_v35 = vpop.f32.mrb[18].mxu0 }
 0x636   : > { %v3564_v36 = vpop.f32.mrb[19].mxu0 }
 0x637   : > { %v3702_v36 = vld [vmem:[%s4766_s22 + $0x20] sm:$0xff]  }
 0x646   : > { %1985 = vrot.lane.b32.xlu1 %v4101_v27, %s3838_s4 }
 0x64a   : > { %1987 = vrot.lane.b32.xlu1 %v4112_v23, %s3838_s4 }
 0x66e   : > { %1220 = vadd.xlane.f32.xlu1 %v1219_v37  ;;  %v3703_v37 = vld [vmem:[%s4766_s22 + $0x28] sm:$0xff]  }
 0x6c2   : > { %v1698_v38 = vpop.xlane.xlu1 %1697 }
 0x6c3   : > { %v1699_v39 = vsub.f32 %v1690_v30, %v1698_v38  ;;  %v3704_v38 = vld [vmem:[%s4766_s22 + $0x30] sm:$0xff]  }
 0x6c5   : > { %v1700_v40 = vmul.f32 1.442695, %v1699_v39  ;;  %v3705_v39 = vld [vmem:[%s4766_s22 + $0x38] sm:$0xff]  }
 0x6c6   : > { %v1986_v43 = vpop.permute.xlu1 %1985 }
 0x6c7   : > { %3786 = vpow2.f32 %v1700_v40  ;;  %3568 = vmatpush3.bf16.msra.mxu0 %v1986_v43  ;;  %v3706_v40 = vld [vmem:[%s4766_s22 + $0x40] sm:$0xff]   ;;  %v3707_v43 = vld [vmem:[%s4766_s22 + $0x48] sm:$0xff]  }
 0x6c8   : > { %3569 = vmatprep.subr.bf16.mxu0 %v3834_v3 }
 0x6ca   : > { %v1988_v44 = vpop.permute.xlu1 %1987 }
 0x6cb   : > { %3570 = vmatpush3.bf16.msra.mxu0 %v1988_v44  ;;  %v3708_v44 = vld [vmem:[%s4766_s22 + $0x50] sm:$0xff]  }
 0x6cc   : > { %3571 = vmatprep.subr.bf16.mxu0 %v3834_v3 }
 0x6d1   : > { %v3787_v45 = vpop.eup %3786 }
 0x6d2   : > { %v1702_v47 = vsel %vm1207_vm4, %v3787_v45, 0.0 }
 0x6d3   : > { %1703 = vadd.xlane.f32.xlu0 %v1702_v47 }
 0x6e9   : > { %1989 = vrot.lane.b32.xlu0 %v4110_v46, %s3838_s4 }
 0x6ed   : > { %2089 = vrot.lane.b32.xlu0 %v4103_v28, %s3839_s5 }
 0x6f1   : > { %2091 = vrot.lane.b32.xlu0 %v4101_v27, %s3839_s5 }
 0x6f5   : > { %2093 = vrot.lane.b32.xlu0 %v4112_v23, %s3839_s5 }
 0x6f9   : > { %2095 = vrot.lane.b32.xlu0 %v4110_v46, %s3839_s5 }
 0x6fb   : > { %v1221_v48 = vpop.xlane.xlu1 %1220 }
 0x6fc   : > { %v1223_v49 = vmul.f32 0.015625, %v1221_v48 }
 0x6fd   : > { %2087 = vrot.lane.b32.xlu0 %v4128_v55, %s3839_s5  ;;  %s3842_s5 = smov 104  }
 0x6fe   : > { %v1224_v50 = vsub.f32 %v4154_v51, %v1223_v49 }
 0x700   : > { %v1225_v53 = vmul.f32 %v1224_v50, %v1224_v50 }
 0x702   : > { %v1226_v54 = vsel %vm1207_vm4, %v1225_v53, 0.0 }
 0x71c   : > { %1227 = vadd.xlane.f32.xlu0 %v1226_v54 }
 0x760   : > { %v1704_v0 = vpop.xlane.xlu0 %1703 }
 0x761   : > { %3788 = vrcp.f32 %v1704_v0 }
 0x764   : > { %v1990_v1 = vpop.permute.xlu0 %1989 }
 0x765   : > { %3572 = vmatpush3.bf16.msra.mxu0 %v1990_v1 }
 0x766   : > { %3577 = vmatprep.subr.bf16.mxu0 %v3834_v3 }
 0x768   : > { %v4264_v42 = vpop.permute.xlu0 %2089 }
 0x769   : > { %v2101_v53 = vsel %vm1151_vm3, %v4264_v42, 0 }
 0x76b   : > { %v3789_v2 = vpop.eup %3788 }
 0x76c   : > { %v4250_v41 = vmul.f32 %v3789_v2, %v3787_v45  ;;  %v4266_v7 = vpop.permute.xlu0 %2091  ;;  %v3709_v45 = vld [vmem:[%s4766_s22 + $0x58] sm:$0xff]  }
 0x76d   : > { %v2104_v0 = vsel %vm1151_vm3, %v4266_v7, 0 }
 0x76e   : > { %v1707_v32 = vsel %vm1207_vm4, %v4250_v41, 0.0  ;;  %v1982_v4 = vpack.c.bf16 %v4250_v41, %v4250_v41 }
 0x76f   : > { %1708 = vadd.xlane.f32.xlu1 %v1707_v32  ;;  %v1257_v32 = vlaneseq }
 0x770   : > { %3574 = vmatmul.mubr.msk.bf16.vlgmr.msra.gmra.mrb[20].mxu0 %vm1307_vm6, %v1982_v4  ;;  %v4268_v8 = vpop.permute.xlu0 %2093 }
 0x771   : > { %3579 = vmatprep.mubr.msk.bf16.mxu0 %vm3835_vm2, %v3834_v3  ;;  %3578 = vmatpush3.bf16.msra.mxu0 %v2044_v6  ;;  %v2107_v1 = vsel %vm1151_vm3, %v4268_v8, 0  ;;  %v1258_v4 = vshrl.u32 %v1257_v32, 7  ;;  %v1149_v6 = vld [vmem:[%s4765_s21] sm:$0x3]  ;;  %v3712_v32 = vld [vmem:[%s4766_s22 + $0x10] sm:$0xff]  }
 0x772   : > { %3583 = vmatprep.subr.bf16.mxu0 %v3834_v3 }
 0x773   : > { %v1259_v5 = vsub.s32 0, %v1258_v4  ;;  %v1263_v42 = vsub.s32 1, %v1258_v4  ;;  %v3713_v4 = vld [vmem:[%s4766_s22 + $0x18] sm:$0xff]  }
 0x774   : > { %v4270_v9 = vpop.permute.xlu0 %2095 }
 0x775   : > { %v2110_v2 = vsel %vm1151_vm3, %v4270_v9, 0  ;;  %v4361_v7 = vrot.slane %v1149_v6, %v1259_v5  ;;  %v4363_v8 = vrot.slane %v1149_v6, %v1263_v42  ;;  %v3714_v5 = vld [vmem:[%s4766_s22 + $0x20] sm:$0xff]   ;;  %v1629_v6 = vadd.f32 %v4178_v22, %v4003_v17  ;;  %v3716_v17 = vld [vmem:[%s4766_s22 + $0x30] sm:$0xff]   ;;  %v3717_v22 = vld [vmem:[%s4766_s22 + $0x38] sm:$0xff]  }
 0x778   : > { %v4272_v10 = vpop.permute.xlu0 %2087 }
 0x7a9   : > { %v1228_v11 = vpop.xlane.xlu0 %1227 }
 0x7aa   : > { %v1229_v12 = vmul.f32 0.015625, %v1228_v11 }
 0x7ac   : > { %v1230_v13 = vadd.f32 1e-05, %v1229_v12 }
 0x7ae   : > { %3790 = vrsqrt.f32 %v1230_v13 }
 0x7b8   : > { %v3791_v14 = vpop.eup %3790 }
 0x7b9   : > { %v1232_v15 = vmul.f32 %v3791_v14, %v1224_v50 }
 0x7bb   : > { %v1239_v16 = vmul.f32 %v4277_v59, %v1232_v15 }
 0x7bd   : > { %v1246_v18 = vadd.f32 %v4282_v52, %v1239_v16 }
 0x7bf   : > { %v1247_v19 = vpack.c.bf16 %v1246_v18, %v1246_v18 }
 0x7c1   : > { %3329 = vmatmul.mubr.msk.bf16.vlgmr.msra.gmra.mrb[8].mxu1 %vm1307_vm6, %v1247_v19 }
 0x7c2   : > { %1472 = vmatpush1.bf16.msra.mxu1 %v3698_v20 }
 0x7c3   : > { %1473 = vmatprep.subr.bf16.mxu1 %v3840_v63 }
 0x7c6   : > { %1474 = vmatpush1.bf16.msra.mxu1 %v3699_v21 }
 0x7c7   : > { %1475 = vmatprep.subr.bf16.mxu1 %v3840_v63 }
 0x7ca   : > { %1476 = vmatpush1.bf16.msra.mxu1 %v3700_v25 }
 0x7cb   : > { %1477 = vmatprep.subr.bf16.mxu1 %v3840_v63 }
 0x7ce   : > { %1478 = vmatpush1.bf16.msra.mxu1 %v3701_v26 }
 0x7cf   : > { %1479 = vmatprep.subr.bf16.mxu1 %v3840_v63 }
 0x7d2   : > { %1480 = vmatpush1.bf16.msra.mxu1 %v3702_v36 }
 0x7d3   : > { %1481 = vmatprep.subr.bf16.mxu1 %v3840_v63 }
 0x7d6   : > { %1482 = vmatpush1.bf16.msra.mxu1 %v3703_v37 }
 0x7d7   : > { %1483 = vmatprep.subr.bf16.mxu1 %v3840_v63 }
 0x7da   : > { %1484 = vmatpush1.bf16.msra.mxu1 %v3704_v38 }
 0x7db   : > { %1485 = vmatprep.subr.bf16.mxu1 %v3840_v63 }
 0x7de   : > { %1486 = vmatpush1.bf16.msra.mxu1 %v3705_v39 }
 0x7df   : > { %1487 = vmatprep.subr.bf16.mxu1 %v3840_v63 }
 0x7e2   : > { %1488 = vmatpush1.bf16.msra.mxu1 %v3706_v40 }
 0x7e3   : > { %1489 = vmatprep.subr.bf16.mxu1 %v3840_v63 }
 0x7e6   : > { %1490 = vmatpush1.bf16.msra.mxu1 %v3707_v43 }
 0x7e7   : > { %1491 = vmatprep.subr.bf16.mxu1 %v3840_v63 }
 0x7ea   : > { %1492 = vmatpush1.bf16.msra.mxu1 %v3708_v44 }
 0x7eb   : > { %1493 = vmatprep.subr.bf16.mxu1 %v3840_v63 }
 0x7ee   : > { %1494 = vmatpush1.bf16.msra.mxu1 %v3709_v45 }
 0x7ef   : > { %1774 = vmatprep.subr.bf16.mxu1 %v4202_v56 }
 0x7fc   : > { %v1709_v29 = vpop.xlane.xlu1 %1708 }
 0x7fd   : > { %v1710_v30 = vmul.f32 0.015625, %v1709_v29 }
 0x7ff   : > { %v4304_v33 = vsub.f32 %v4250_v41, %v1710_v30 }
 0x801   : > { %v1712_v34 = vmul.f32 %v4304_v33, %v4304_v33 }
 0x803   : > { %v1713_v35 = vsel %vm1207_vm4, %v1712_v34, 0.0 }
 0x804   : > { %1714 = vadd.xlane.f32.xlu1 %v1713_v35 }
 0x843   : > { %v2032_v47 = vpop.f32.mrb[20].mxu0 }
 0x844   : > { %v2038_v48 = vpack.c.bf16 %v2032_v47, %v2032_v47  ;;  %v3575_v49 = vpop.f32.mrb[21].mxu0 }
 0x845   : > { %v2035_v50 = vpop.f32.mrb[22].mxu0 }
 0x846   : > { %v3576_v54 = vpop.f32.mrb[23].mxu0  ;;  %3580 = vmatmul.mubr.msk.bf16.vlgmr.msra.gmra.mrb[24].mxu0 %vm1151_vm3, %v2038_v48 }
 0x847   : > { %3584 = vmatpush3.bf16.xpose.msra.mxu0 %v2101_v53  ;;  %3591 = vmatprep.mubr.msk.bf16.mxu0 %vm3835_vm2, %v3834_v3 }
 0x848   : > { %3585 = vmatprep.subr.bf16.mxu0 %v3834_v3 }
 0x84f   : > { %3586 = vmatpush3.bf16.xpose.msra.mxu0 %v2104_v0 }
 0x850   : > { %3587 = vmatprep.subr.bf16.mxu0 %v3834_v3 }
 0x857   : > { %3588 = vmatpush3.bf16.xpose.msra.mxu0 %v2107_v1 }
 0x858   : > { %3589 = vmatprep.subr.bf16.mxu0 %v3834_v3 }
 0x85f   : > { %3590 = vmatpush3.bf16.xpose.msra.mxu0 %v2110_v2  ;;  %v3711_v2 = vld [vmem:[%s4766_s22 + $0x8] sm:$0xff]  }
 0x860   : > { %2390 = vmatprep.subr.bf16.mxu0 %v3840_v63 }
 0x866   : > { %3592 = vmatmul.mubr.msk.bf16.vlgmr.msra.gmra.mrb[28].mxu0 %vm1151_vm3, %v4272_v10 }
 0x891   : > { %v1715_v26 = vpop.xlane.xlu1 %1714 }
 0x892   : > { %v1716_v35 = vmul.f32 0.015625, %v1715_v26 }
 0x894   : > { %v1345_v11 = vpop.f32.mrb[8].mxu1  ;;  %v1717_v36 = vadd.f32 1e-05, %v1716_v35 }
 0x895   : > { %v1346_v9 = vadd.f32 %v1345_v11, %v4361_v7  ;;  %v1347_v12 = vpop.f32.mrb[9].mxu1 }
 0x896   : > { %v1348_v13 = vadd.f32 %v1347_v12, %v4363_v8  ;;  %v1349_v14 = vpop.f32.mrb[10].mxu1  ;;  %v3715_v12 = vld [vmem:[%s4766_s22 + $0x28] sm:$0xff]  }
 0x897   : > { %v1354_v10 = vmul.f32 0.044715, %v1346_v9  ;;  %v1350_v15 = vpop.f32.mrb[11].mxu1  ;;  %v1352_v39 = vmul.f32 0.5, %v1346_v9 }
 0x898   : > { %v1355_v16 = vmul.f32 0.044715, %v1348_v13  ;;  %v1353_v43 = vmul.f32 0.5, %v1348_v13  ;;  %v3719_v15 = vld [vmem:[%s4766_s22 + $0x48] sm:$0xff]  }
 0x899   : > { %v1356_v18 = vmul.f32 %v1354_v10, %v1346_v9  ;;  %v3718_v10 = vld [vmem:[%s4766_s22 + $0x40] sm:$0xff]  }
 0x89a   : > { %v1357_v19 = vmul.f32 %v1355_v16, %v1348_v13  ;;  %v3720_v16 = vld [vmem:[%s4766_s22 + $0x50] sm:$0xff]  }
 0x89b   : > { %v1358_v20 = vmul.f32 %v1356_v18, %v1346_v9  ;;  %v3721_v18 = vld [vmem:[%s4766_s22 + $0x58] sm:$0xff]  }
 0x89c   : > { %v1359_v21 = vmul.f32 %v1357_v19, %v1348_v13 }
 0x89d   : > { %v1360_v25 = vadd.f32 %v1358_v20, %v1346_v9 }
 0x89e   : > { %v1361_v29 = vadd.f32 %v1359_v21, %v1348_v13 }
 0x89f   : > { %v1362_v30 = vmul.f32 0.7978846, %v1360_v25 }
 0x8a0   : > { %v1363_v34 = vmul.f32 0.7978846, %v1361_v29  ;;  %v4438_v29 = vld [vmem:[%s4767_s23] ss:$0 sm:$0xff] }
 0x8a1   : > { %3792 = vtanh.f32 %v1362_v30 }
 0x8a2   : > { %3794 = vtanh.f32 %v1363_v34 }
 0x8a3   : > { %3796 = vrsqrt.f32 %v1717_v36 }
 0x8ab   : > { %v3793_v37 = vpop.eup %3792 }
 0x8ac   : > { %v3795_v38 = vpop.eup %3794  ;;  %v1366_v40 = vadd.f32 1.0, %v3793_v37 }
 0x8ad   : > { %v1367_v44 = vadd.f32 1.0, %v3795_v38  ;;  %v3797_v50 = vpop.eup %3796 }
 0x8ae   : > { %v1368_v45 = vmul.f32 %v1366_v40, %v1352_v39  ;;  %v1719_v53 = vmul.f32 %v3797_v50, %v4304_v33  ;;  %v3710_v33 = vld [vmem:[%s4766_s22] sm:$0xff]  }
 0x8af   : > { %v1369_v47 = vmul.f32 %v1367_v44, %v1353_v43 }
 0x8b0   : > { %v1370_v49 = vpack.c.bf16 %v1368_v45, %v1368_v45  ;;  %v1720_v54 = vmul.f32 %v4277_v59, %v1719_v53 }
 0x8b1   : > { %v1371_v48 = vpack.c.bf16 %v1369_v47, %v1369_v47 }
 0x8b2   : > { %v1721_v0 = vadd.f32 %v4282_v52, %v1720_v54 }
 0x8b3   : > { %3342 = vmatprep.mubr.msk.bf16.mxu1 %vm1307_vm6, %v1371_v48 }
 0x8b4   : > { %1504 = vmatmul.mubr.bf16.vlgmr.msra.gmra.mrb[12].mxu1 %v1370_v49  ;;  %v1722_v1 = vpack.c.bf16 %v1721_v0, %v1721_v0 }
 0x8b5   : > { %1775 = vmatpush1.bf16.msra.mxu1 %v4207_v24  ;;  %1806 = vmatprep.mubr.bf16.mxu1 %v3840_v63 }
 0x8b6   : > { %1776 = vmatprep.subr.bf16.mxu1 %v4214_v57 }
 0x8b9   : > { %1777 = vmatpush1.bf16.msra.mxu1 %v4219_v58 }
 0x8ba   : > { %1778 = vmatprep.subr.bf16.mxu1 %v4226_v31 }
 0x8bd   : > { %1779 = vmatpush1.bf16.msra.mxu1 %v4231_v60 }
 0x8be   : > { %1780 = vmatprep.subr.bf16.mxu1 %v4238_v61 }
 0x8c1   : > { %1781 = vmatpush1.bf16.msra.mxu1 %v4243_v62 }
 0x8c2   : > { %1934 = vmatprep.subr.bf16.mxu1 %v3840_v63 }
 0x8c4   : > { %3355 = vmatmul.mubr.msk.bf16.vlgmr.msra.gmra.mrb[16].mxu1 %vm1307_vm6, %v1722_v1 }
 0x8c5   : > { %1935 = vmatpush1.bf16.msra.mxu1 %v3710_v33 }
 0x8c6   : > { %1936 = vmatprep.subr.bf16.mxu1 %v3840_v63 }
 0x8c9   : > { %1937 = vmatpush1.bf16.msra.mxu1 %v3711_v2 }
 0x8ca   : > { %1938 = vmatprep.subr.bf16.mxu1 %v3840_v63 }
 0x8cd   : > { %1939 = vmatpush1.bf16.msra.mxu1 %v3712_v32 }
 0x8ce   : > { %1940 = vmatprep.subr.bf16.mxu1 %v3840_v63 }
 0x8d1   : > { %1941 = vmatpush1.bf16.msra.mxu1 %v3713_v4 }
 0x8d2   : > { %1942 = vmatprep.subr.bf16.mxu1 %v3840_v63 }
 0x8d5   : > { %1943 = vmatpush1.bf16.msra.mxu1 %v3714_v5 }
 0x8d6   : > { %1944 = vmatprep.subr.bf16.mxu1 %v3840_v63 }
 0x8d9   : > { %1945 = vmatpush1.bf16.msra.mxu1 %v3715_v12 }
 0x8da   : > { %1946 = vmatprep.subr.bf16.mxu1 %v3840_v63 }
 0x8dd   : > { %1947 = vmatpush1.bf16.msra.mxu1 %v3716_v17 }
 0x8de   : > { %1948 = vmatprep.subr.bf16.mxu1 %v3840_v63 }
 0x8e1   : > { %1949 = vmatpush1.bf16.msra.mxu1 %v3717_v22 }
 0x8e2   : > { %1950 = vmatprep.subr.bf16.mxu1 %v3840_v63 }
 0x8e5   : > { %1951 = vmatpush1.bf16.msra.mxu1 %v3718_v10 }
 0x8e6   : > { %1952 = vmatprep.subr.bf16.mxu1 %v3840_v63 }
 0x8e9   : > { %1953 = vmatpush1.bf16.msra.mxu1 %v3719_v15 }
 0x8ea   : > { %1954 = vmatprep.subr.bf16.mxu1 %v3840_v63 }
 0x8ed   : > { %1955 = vmatpush1.bf16.msra.mxu1 %v3720_v16 }
 0x8ee   : > { %1956 = vmatprep.subr.bf16.mxu1 %v3840_v63 }
 0x8f1   : > { %1957 = vmatpush1.bf16.msra.mxu1 %v3721_v18 }
 0x8f2   : > { %2230 = vmatprep.subr.bf16.mxu1 %v4202_v56 }
 0x919   : > { %v2080_v42 = vpop.f32.mrb[24].mxu0 }
 0x91a   : > { %v4403_v11 = vadd.f32 %v2080_v42, %v1629_v6  ;;  %v3581_v9 = vpop.f32.mrb[25].mxu0 }
 0x91b   : > { %v2083_v13 = vpop.f32.mrb[26].mxu0 }
 0x91c   : > { %v3582_v14 = vpop.f32.mrb[27].mxu0 }
 0x939   : > { %v2146_v19 = vpop.f32.mrb[28].mxu0 }
 0x93a   : > { %v3593_v20 = vpop.f32.mrb[29].mxu0  ;;  %v2152_v21 = vsel %vm1207_vm4, %v2146_v19, -inf }
 0x93b   : > { %2153 = vmax.xlane.f32.xlu1 %v2152_v21  ;;  %v2149_v25 = vpop.f32.mrb[30].mxu0 }
 0x93c   : > { %v3594_v26 = vpop.f32.mrb[31].mxu0 }
 0x987   : > { %v1505_v30 = vpop.f32.mrb[12].mxu1 }
 0x988   : > { %v1511_v34 = vadd.f32 %v1505_v30, %v4154_v51  ;;  %v1507_v35 = vpop.f32.mrb[13].mxu1  ;;  %v3723_v30 = vld [vmem:[%s4766_s22 + $0x8] sm:$0xff]  }
 0x989   : > { %v1508_v56 = vpop.f32.mrb[14].mxu1  ;;  %v3725_v35 = vld [vmem:[%s4766_s22 + $0x18] sm:$0xff]  }
 0x98a   : > { %v1518_v36 = vadd.f32 %v4438_v29, %v1511_v34  ;;  %v1509_v37 = vpop.f32.mrb[15].mxu1  ;;  %v3724_v34 = vld [vmem:[%s4766_s22 + $0x10] sm:$0xff]  }
 0x98c   : > { %1519 = vst.msk [vmem:[%s4444_s28] sm:$0xf] %vm1207_vm4, %v1518_v36 }
 0x997   : > { %v1808_v38 = vpop.f32.mrb[16].mxu1 }
 0x998   : > { %v1809_v39 = vadd.f32 %v1808_v38, %v4361_v7  ;;  %v1810_v40 = vpop.f32.mrb[17].mxu1 }
 0x999   : > { %v1811_v43 = vadd.f32 %v1810_v40, %v4363_v8  ;;  %v1812_v51 = vpop.f32.mrb[18].mxu1 }
 0x99a   : > { %v1817_v44 = vmul.f32 0.044715, %v1809_v39  ;;  %v1813_v45 = vpop.f32.mrb[19].mxu1  ;;  %v1815_v4 = vmul.f32 0.5, %v1809_v39 }
 0x99b   : > { %v1818_v47 = vmul.f32 0.044715, %v1811_v43  ;;  %v1816_v6 = vmul.f32 0.5, %v1811_v43 }
 0x99c   : > { %v1819_v48 = vmul.f32 %v1817_v44, %v1809_v39 }
 0x99d   : > { %v1820_v49 = vmul.f32 %v1818_v47, %v1811_v43 }
 0x99e   : > { %v1821_v50 = vmul.f32 %v1819_v48, %v1809_v39 }
 0x99f   : > { %v1822_v53 = vmul.f32 %v1820_v49, %v1811_v43 }
 0x9a0   : > { %v1823_v54 = vadd.f32 %v1821_v50, %v1809_v39  ;;  %v3726_v50 = vld [vmem:[%s4766_s22 + $0x20] sm:$0xff]  }
 0x9a1   : > { %v1824_v0 = vadd.f32 %v1822_v53, %v1811_v43  ;;  %v3727_v53 = vld [vmem:[%s4766_s22 + $0x28] sm:$0xff]  }
 0x9a2   : > { %v1825_v1 = vmul.f32 0.7978846, %v1823_v54  ;;  %v3728_v54 = vld [vmem:[%s4766_s22 + $0x30] sm:$0xff]  }
 0x9a3   : > { %v1826_v33 = vmul.f32 0.7978846, %v1824_v0  ;;  %v2490_v0 = vld [vmem:[%s4754_s10 + $0x8] sm:$0xf] }
 0x9a4   : > { %3798 = vtanh.f32 %v1825_v1  ;;  %v2495_v1 = vsel %vm1585_vm5, %v2490_v0, 0 }
 0x9a5   : > { %3800 = vtanh.f32 %v1826_v33  ;;  %v3729_v33 = vld [vmem:[%s4766_s22 + $0x38] sm:$0xff]  }
 0x9ae   : > { %v3799_v2 = vpop.eup %3798 }
 0x9af   : > { %v3801_v32 = vpop.eup %3800  ;;  %v1829_v5 = vadd.f32 1.0, %v3799_v2  ;;  %v3730_v2 = vld [vmem:[%s4766_s22 + $0x40] sm:$0xff]  }
 0x9b0   : > { %v1830_v42 = vadd.f32 1.0, %v3801_v32  ;;  %v3731_v32 = vld [vmem:[%s4766_s22 + $0x48] sm:$0xff]  }
 0x9b1   : > { %v1831_v9 = vmul.f32 %v1829_v5, %v1815_v4  ;;  %v3732_v4 = vld [vmem:[%s4766_s22 + $0x50] sm:$0xff]   ;;  %v3733_v5 = vld [vmem:[%s4766_s22 + $0x58] sm:$0xff]  }
 0x9b2   : > { %v1832_v12 = vmul.f32 %v1830_v42, %v1816_v6 }
 0x9b3   : > { %v1833_v14 = vpack.c.bf16 %v1831_v9, %v1831_v9 }
 0x9b4   : > { %v1834_v13 = vpack.c.bf16 %v1832_v12, %v1832_v12 }
 0x9b6   : > { %3368 = vmatprep.mubr.msk.bf16.mxu1 %vm1307_vm6, %v1834_v13 }
 0x9b7   : > { %1967 = vmatmul.mubr.bf16.vlgmr.msra.gmra.mrb[20].mxu1 %v1833_v14 }
 0x9b8   : > { %2231 = vmatpush1.bf16.msra.mxu1 %v4207_v24  ;;  %2262 = vmatprep.mubr.bf16.mxu1 %v3840_v63 }
 0x9b9   : > { %2232 = vmatprep.subr.bf16.mxu1 %v4214_v57 }
 0x9bc   : > { %2233 = vmatpush1.bf16.msra.mxu1 %v4219_v58 }
 0x9bd   : > { %2234 = vmatprep.subr.bf16.mxu1 %v4226_v31 }
 0x9c0   : > { %2235 = vmatpush1.bf16.msra.mxu1 %v4231_v60 }
 0x9c1   : > { %2236 = vmatprep.subr.bf16.mxu1 %v4238_v61 }
 0x9c4   : > { %2237 = vmatpush1.bf16.msra.mxu1 %v4243_v62 }
 0x9c5   : > { %3595 = vmatprep.subr.bf16.mxu1 %v3834_v3 }
 0x9c8   : > { %v2154_v17 = vpop.xlane.xlu1 %2153 }
 0x9c9   : > { %v2155_v22 = vsub.f32 %v2146_v19, %v2154_v17 }
 0x9cb   : > { %v2156_v10 = vmul.f32 1.442695, %v2155_v22 }
 0x9cd   : > { %3802 = vpow2.f32 %v2156_v10 }
 0x9d7   : > { %v3803_v24 = vpop.eup %3802 }
 0x9d8   : > { %v2158_v15 = vsel %vm1207_vm4, %v3803_v24, 0.0 }
 0x9d9   : > { %2159 = vadd.xlane.f32.xlu1 %v2158_v15 }
 0xa66   : > { %v2160_v57 = vpop.xlane.xlu1 %2159 }
 0xa67   : > { %3804 = vrcp.f32 %v2160_v57 }
 0xa71   : > { %v3805_v58 = vpop.eup %3804 }
 0xa72   : > { %v4462_v31 = vmul.f32 %v3805_v58, %v3803_v24 }
 0xa74   : > { %v2163_v60 = vsel %vm1207_vm4, %v4462_v31, 0.0  ;;  %v2433_v49 = vpack.c.bf16 %v4462_v31, %v4462_v31 }
 0xa75   : > { %2164 = vadd.xlane.f32.xlu0 %v2163_v60 }
 0xa8a   : > { %v4466_v61 = vpop.f32.mrb[20].mxu1 }
 0xa8b   : > { %v1970_v62 = vpop.f32.mrb[21].mxu1  ;;  %2434 = vrot.lane.b32.xlu0 %v4103_v28, %s3841_s9 }
 0xa8c   : > { %v1971_v16 = vpop.f32.mrb[22].mxu1 }
 0xa8d   : > { %v1972_v18 = vpop.f32.mrb[23].mxu1 }
 0xa8f   : > { %2540 = vrot.lane.b32.xlu0 %v4103_v28, %s3842_s5 }
 0xa93   : > { %2544 = vrot.lane.b32.xlu0 %v4112_v23, %s3842_s5 }
 0xa97   : > { %2538 = vrot.lane.b32.xlu0 %v4128_v55, %s3842_s5  ;;  %v3722_v55 = vld [vmem:[%s4766_s22] sm:$0xff]  }
 0xa98   : > { %2391 = vmatpush1.bf16.msra.mxu0 %v3722_v55 }
 0xa99   : > { %2392 = vmatprep.subr.bf16.mxu0 %v3840_v63 }
 0xa9c   : > { %2393 = vmatpush1.bf16.msra.mxu0 %v3723_v30 }
 0xa9d   : > { %2394 = vmatprep.subr.bf16.mxu0 %v3840_v63 }
 0xaa0   : > { %2395 = vmatpush1.bf16.msra.mxu0 %v3724_v34 }
 0xaa1   : > { %2396 = vmatprep.subr.bf16.mxu0 %v3840_v63 }
 0xaa4   : > { %2397 = vmatpush1.bf16.msra.mxu0 %v3725_v35 }
 0xaa5   : > { %2398 = vmatprep.subr.bf16.mxu0 %v3840_v63 }
 0xaa8   : > { %2399 = vmatpush1.bf16.msra.mxu0 %v3726_v50 }
 0xaa9   : > { %2400 = vmatprep.subr.bf16.mxu0 %v3840_v63 }
 0xaac   : > { %2401 = vmatpush1.bf16.msra.mxu0 %v3727_v53 }
 0xaad   : > { %2402 = vmatprep.subr.bf16.mxu0 %v3840_v63 }
 0xab0   : > { %2403 = vmatpush1.bf16.msra.mxu0 %v3728_v54 }
 0xab1   : > { %2404 = vmatprep.subr.bf16.mxu0 %v3840_v63 }
 0xab4   : > { %2405 = vmatpush1.bf16.msra.mxu0 %v3729_v33 }
 0xab5   : > { %2406 = vmatprep.subr.bf16.mxu0 %v3840_v63 }
 0xab8   : > { %2407 = vmatpush1.bf16.msra.mxu0 %v3730_v2 }
 0xab9   : > { %2408 = vmatprep.subr.bf16.mxu0 %v3840_v63 }
 0xabc   : > { %2409 = vmatpush1.bf16.msra.mxu0 %v3731_v32 }
 0xabd   : > { %2410 = vmatprep.subr.bf16.mxu0 %v3840_v63 }
 0xac0   : > { %2411 = vmatpush1.bf16.msra.mxu0 %v3732_v4 }
 0xac1   : > { %2412 = vmatprep.subr.bf16.mxu0 %v3840_v63 }
 0xac4   : > { %2413 = vmatpush1.bf16.msra.mxu0 %v3733_v5 }
 0xb02   : > { %v2165_v19 = vpop.xlane.xlu0 %2164 }
 0xb03   : > { %v2166_v20 = vmul.f32 0.015625, %v2165_v19 }
 0xb05   : > { %v2167_v21 = vsub.f32 %v4462_v31, %v2166_v20 }
 0xb06   : > { %v2435_v44 = vpop.permute.xlu0 %2434 }
 0xb07   : > { %v2168_v25 = vmul.f32 %v2167_v21, %v2167_v21 }
 0xb09   : > { %v2169_v26 = vsel %vm1207_vm4, %v2168_v25, 0.0 }
 0xb0a   : > { %2170 = vadd.xlane.f32.xlu1 %v2169_v26  ;;  %v2541_v18 = vpop.permute.xlu0 %2540 }
 0xb0b   : > { %v2552_v26 = vsel %vm1151_vm3, %v2541_v18, 0  ;;  %v3736_v18 = vld [vmem:[%s4764_s20 + $0x4] ss:$8 sps:$4 sm:$0xff]  }
 0xb0c   : > { %2681 = vmatprep.subr.bf16.mxu0 %v3736_v18 }
 0xb1b   : > { %2436 = vrot.lane.b32.xlu1 %v4101_v27, %s3841_s9 }
 0xb1f   : > { %2438 = vrot.lane.b32.xlu1 %v4112_v23, %s3841_s9 }
 0xb23   : > { %2440 = vrot.lane.b32.xlu1 %v4110_v46, %s3841_s9 }
 0xb27   : > { %2542 = vrot.lane.b32.xlu1 %v4101_v27, %s3842_s5 }
 0xb2b   : > { %2546 = vrot.lane.b32.xlu1 %v4110_v46, %s3842_s5  ;;  %s3843_s5 = smov 72  }
 0xb97   : > { %v2171_v56 = vpop.xlane.xlu1 %2170 }
 0xb98   : > { %v2172_v36 = vmul.f32 0.015625, %v2171_v56 }
 0xb9a   : > { %v2173_v37 = vadd.f32 1e-05, %v2172_v36 }
 0xb9b   : > { %v2437_v45 = vpop.permute.xlu1 %2436 }
 0xb9c   : > { %3806 = vrsqrt.f32 %v2173_v37 }
 0xb9f   : > { %v2439_v47 = vpop.permute.xlu1 %2438 }
 0xba3   : > { %v2441_v48 = vpop.permute.xlu1 %2440 }
 0xba6   : > { %v3807_v38 = vpop.eup %3806 }
 0xba7   : > { %v2175_v39 = vmul.f32 %v3807_v38, %v2167_v21  ;;  %v2543_v35 = vpop.permute.xlu1 %2542 }
 0xba9   : > { %v2176_v40 = vmul.f32 %v4277_v59, %v2175_v39 }
 0xbab   : > { %v2177_v43 = vadd.f32 %v4282_v52, %v2176_v40  ;;  %v2555_v40 = vsel %vm1151_vm3, %v2543_v35, 0  ;;  %v3748_v35 = vld [vmem:[%s4766_s22 + $0x10] sm:$0xff]  }
 0xbad   : > { %v2178_v51 = vpack.c.bf16 %v2177_v43, %v2177_v43 }
 0xbaf   : > { %3380 = vmatmul.mubr.msk.bf16.vlgmr.msra.gmra.mrb[24].mxu1 %vm1307_vm6, %v2178_v51 }
 0xbb0   : > { %3596 = vmatpush3.bf16.msra.mxu1 %v2435_v44  ;;  %3603 = vmatprep.mubr.msk.bf16.mxu1 %vm3835_vm2, %v3834_v3 }
 0xbb1   : > { %3597 = vmatprep.subr.bf16.mxu1 %v3834_v3 }
 0xbb4   : > { %3598 = vmatpush3.bf16.msra.mxu1 %v2437_v45  ;;  %v2545_v45 = vpop.permute.xlu0 %2544 }
 0xbb5   : > { %3599 = vmatprep.subr.bf16.mxu1 %v3834_v3 }
 0xbb8   : > { %3600 = vmatpush3.bf16.msra.mxu1 %v2439_v47  ;;  %v2558_v47 = vsel %vm1151_vm3, %v2545_v45, 0  ;;  %v2539_v50 = vpop.permute.xlu0 %2538 }
 0xbb9   : > { %3601 = vmatprep.subr.bf16.mxu1 %v3834_v3 }
 0xbbc   : > { %3602 = vmatpush3.bf16.msra.mxu1 %v2441_v48  ;;  %v2547_v48 = vpop.permute.xlu1 %2546 }
 0xbbd   : > { %3607 = vmatprep.subr.bf16.mxu1 %v3834_v3 }
 0xbbf   : > { %3604 = vmatmul.mubr.msk.bf16.vlgmr.msra.gmra.mrb[28].mxu1 %vm1307_vm6, %v2433_v49  ;;  %v2561_v49 = vsel %vm1151_vm3, %v2547_v48, 0 }
 0xbc0   : > { %3609 = vmatprep.mubr.msk.bf16.mxu1 %vm3835_vm2, %v3834_v3  ;;  %3608 = vmatpush3.bf16.msra.mxu1 %v2495_v1 }
 0xbc1   : > { %3613 = vmatprep.subr.bf16.mxu1 %v3834_v3 }
 0xc82   : > { %v2264_v6 = vpop.f32.mrb[24].mxu1 }
 0xc83   : > { %v2265_v42 = vadd.f32 %v2264_v6, %v4361_v7  ;;  %v2266_v9 = vpop.f32.mrb[25].mxu1 }
 0xc84   : > { %v2267_v12 = vadd.f32 %v2266_v9, %v4363_v8  ;;  %v2268_v13 = vpop.f32.mrb[26].mxu1 }
 0xc85   : > { %v2273_v14 = vmul.f32 0.044715, %v2265_v42  ;;  %v2269_v17 = vpop.f32.mrb[27].mxu1  ;;  %v2271_v56 = vmul.f32 0.5, %v2265_v42 }
 0xc86   : > { %v2274_v22 = vmul.f32 0.044715, %v2267_v12  ;;  %v2272_v37 = vmul.f32 0.5, %v2267_v12 }
 0xc87   : > { %v2275_v10 = vmul.f32 %v2273_v14, %v2265_v42 }
 0xc88   : > { %v2276_v24 = vmul.f32 %v2274_v22, %v2267_v12 }
 0xc89   : > { %v2277_v15 = vmul.f32 %v2275_v10, %v2265_v42 }
 0xc8a   : > { %v2278_v57 = vmul.f32 %v2276_v24, %v2267_v12 }
 0xc8b   : > { %v2279_v58 = vadd.f32 %v2277_v15, %v2265_v42 }
 0xc8c   : > { %v2280_v60 = vadd.f32 %v2278_v57, %v2267_v12 }
 0xc8d   : > { %v2281_v62 = vmul.f32 0.7978846, %v2279_v58 }
 0xc8e   : > { %v2282_v16 = vmul.f32 0.7978846, %v2280_v60 }
 0xc8f   : > { %3808 = vtanh.f32 %v2281_v62 }
 0xc90   : > { %3810 = vtanh.f32 %v2282_v16 }
 0xc92   : > { %v2483_v19 = vpop.f32.mrb[28].mxu1 }
 0xc93   : > { %v2489_v20 = vpack.c.bf16 %v2483_v19, %v2483_v19  ;;  %v3605_v21 = vpop.f32.mrb[29].mxu1  ;;  %v3734_v19 = vld [vmem:[%s4764_s20] ss:$8 sps:$4 sm:$0xff]  }
 0xc94   : > { %v2486_v25 = vpop.f32.mrb[30].mxu1  ;;  %v3737_v21 = vld [vmem:[%s4764_s20 + $0x10] ss:$8 sps:$4 sm:$0xff]  }
 0xc95   : > { %v3606_v55 = vpop.f32.mrb[31].mxu1  ;;  %3610 = vmatmul.mubr.msk.bf16.vlgmr.msra.gmra.mrb[32].mxu1 %vm1151_vm3, %v2489_v20  ;;  %v3739_v20 = vld [vmem:[%s4764_s20 + $0x14] ss:$8 sps:$4 sm:$0xff]   ;;  %v3742_v25 = vld [vmem:[%s4764_s20 + $0x24] ss:$8 sps:$4 sm:$0xff]  }
 0xc96   : > { %3614 = vmatpush3.bf16.xpose.msra.mxu1 %v2552_v26  ;;  %3621 = vmatprep.mubr.msk.bf16.mxu1 %vm3835_vm2, %v3834_v3  ;;  %v3740_v26 = vld [vmem:[%s4764_s20 + $0x20] ss:$8 sps:$4 sm:$0xff]   ;;  %v3745_v55 = vld [vmem:[%s4764_s20 + $0x34] ss:$8 sps:$4 sm:$0xff]  }
 0xc97   : > { %3615 = vmatprep.subr.bf16.mxu1 %v3834_v3 }
 0xc99   : > { %v3809_v30 = vpop.eup %3808 }
 0xc9a   : > { %v3811_v34 = vpop.eup %3810  ;;  %v2285_v36 = vadd.f32 1.0, %v3809_v30  ;;  %v3746_v30 = vld [vmem:[%s4766_s22] sm:$0xff]  }
 0xc9b   : > { %v2286_v38 = vadd.f32 1.0, %v3811_v34  ;;  %v3747_v34 = vld [vmem:[%s4766_s22 + $0x8] sm:$0xff]  }
 0xc9c   : > { %v2287_v39 = vmul.f32 %v2285_v36, %v2271_v56  ;;  %v3749_v56 = vld [vmem:[%s4766_s22 + $0x18] sm:$0xff]  }
 0xc9d   : > { %v2288_v43 = vmul.f32 %v2286_v38, %v2272_v37 }
 0xc9e   : > { %3616 = vmatpush3.bf16.xpose.msra.mxu1 %v2555_v40  ;;  %v2289_v44 = vpack.c.bf16 %v2287_v39, %v2287_v39 }
 0xc9f   : > { %v2290_v51 = vpack.c.bf16 %v2288_v43, %v2288_v43  ;;  %3617 = vmatprep.subr.bf16.mxu1 %v3834_v3 }
 0xca1   : > { %3393 = vmatprep.mubr.msk.bf16.mxu0 %vm1307_vm6, %v2290_v51 }
 0xca2   : > { %2423 = vmatmul.mubr.bf16.vlgmr.msra.gmra.mrb[32].mxu0 %v2289_v44 }
 0xca3   : > { %2713 = vmatprep.mubr.bf16.mxu0 %v3840_v63  ;;  %2682 = vmatpush1.bf16.msra.mxu0 %v3734_v19 }
 0xca4   : > { %2683 = vmatprep.subr.bf16.mxu0 %v3739_v20 }
 0xca6   : > { %3618 = vmatpush3.bf16.xpose.msra.mxu1 %v2558_v47 }
 0xca7   : > { %3619 = vmatprep.subr.bf16.mxu1 %v3834_v3  ;;  %2684 = vmatpush1.bf16.msra.mxu0 %v3737_v21 }
 0xca8   : > { %2685 = vmatprep.subr.bf16.mxu0 %v3742_v25 }
 0xcab   : > { %2686 = vmatpush1.bf16.msra.mxu0 %v3740_v26 }
 0xcac   : > { %2687 = vmatprep.subr.bf16.mxu0 %v3745_v55 }
 0xcae   : > { %3620 = vmatpush3.bf16.xpose.msra.mxu1 %v2561_v49  ;;  %v3750_v49 = vld [vmem:[%s4766_s22 + $0x20] sm:$0xff]  }
 0xcaf   : > { %2841 = vmatprep.subr.bf16.mxu1 %v3840_v63 }
 0xcb5   : > { %3622 = vmatmul.mubr.msk.bf16.vlgmr.msra.gmra.mrb[36].mxu1 %vm1151_vm3, %v2539_v50  ;;  %v3751_v50 = vld [vmem:[%s4766_s22 + $0x28] sm:$0xff]  }
 0xcb6   : > { %2842 = vmatpush1.bf16.msra.mxu1 %v3746_v30 }
 0xcb7   : > { %2843 = vmatprep.subr.bf16.mxu1 %v3840_v63 }
 0xcba   : > { %2844 = vmatpush1.bf16.msra.mxu1 %v3747_v34  ;;  %v3421_v34 = vld [vmem:[%s4755_s11] ss:$0 sm:$0xff] }
 0xcbb   : > { %2845 = vmatprep.subr.bf16.mxu1 %v3840_v63 }
 0xcbe   : > { %2846 = vmatpush1.bf16.msra.mxu1 %v3748_v35 }
 0xcbf   : > { %2847 = vmatprep.subr.bf16.mxu1 %v3840_v63 }
 0xcc2   : > { %2848 = vmatpush1.bf16.msra.mxu1 %v3749_v56 }
 0xcc3   : > { %2849 = vmatprep.subr.bf16.mxu1 %v3840_v63 }
 0xcc6   : > { %2850 = vmatpush1.bf16.msra.mxu1 %v3750_v49 }
 0xcc7   : > { %2851 = vmatprep.subr.bf16.mxu1 %v3840_v63 }
 0xcca   : > { %2852 = vmatpush1.bf16.msra.mxu1 %v3751_v50 }
 0xccb   : > { %2853 = vmatprep.subr.bf16.mxu1 %v3840_v63 }
 0xd68   : > { %v2531_v53 = vpop.f32.mrb[32].mxu1 }
 0xd69   : > { %v4562_v54 = vadd.f32 %v2531_v53, %v4403_v11  ;;  %v3611_v0 = vpop.f32.mrb[33].mxu1  ;;  %v3752_v53 = vld [vmem:[%s4766_s22 + $0x30] sm:$0xff]  }
 0xd6a   : > { %v2534_v1 = vpop.f32.mrb[34].mxu1  ;;  %2854 = vmatpush1.bf16.msra.mxu1 %v3752_v53  ;;  %v2945_v0 = vld [vmem:[%s4754_s10 + $0xc] sm:$0xf] }
 0xd6b   : > { %v3612_v33 = vpop.f32.mrb[35].mxu1  ;;  %v3753_v1 = vld [vmem:[%s4766_s22 + $0x38] sm:$0xff]   ;;  %2855 = vmatprep.subr.bf16.mxu1 %v3840_v63 }
 0xd6c   : > { %v2950_v33 = vsel %vm1585_vm5, %v2945_v0, 0  ;;  %v3758_v0 = vld [vmem:[%s4758_s14] sm:$0xff]  }
 0xd6e   : > { %2856 = vmatpush1.bf16.msra.mxu1 %v3753_v1  ;;  %v3759_v1 = vld [vmem:[%s4758_s14 + $0x8] sm:$0xff]  }
 0xd6f   : > { %2857 = vmatprep.subr.bf16.mxu1 %v3840_v63 }
 0xd75   : > { %v2424_v2 = vpop.f32.mrb[32].mxu0 }
 0xd76   : > { %v2430_v32 = vadd.f32 %v2424_v2, %v4462_v31  ;;  %v2426_v4 = vpop.f32.mrb[33].mxu0  ;;  %v3754_v2 = vld [vmem:[%s4766_s22 + $0x40] sm:$0xff]  }
 0xd77   : > { %v2427_v5 = vpop.f32.mrb[34].mxu0  ;;  %2858 = vmatpush1.bf16.msra.mxu1 %v3754_v2  ;;  %v3756_v4 = vld [vmem:[%s4766_s22 + $0x50] sm:$0xff]  }
 0xd78   : > { %v2431_v6 = vadd.f32 %v4438_v29, %v2430_v32  ;;  %v2428_v42 = vpop.f32.mrb[35].mxu0  ;;  %2859 = vmatprep.subr.bf16.mxu1 %v3840_v63  ;;  %v3755_v32 = vld [vmem:[%s4766_s22 + $0x48] sm:$0xff]   ;;  %v3757_v5 = vld [vmem:[%s4766_s22 + $0x58] sm:$0xff]  }
 0xd7a   : > { %2432 = vst.msk [vmem:[%s4444_s28 + $0x4] sm:$0xf] %vm1207_vm4, %v2431_v6 }
 0xd7b   : > { %2860 = vmatpush1.bf16.msra.mxu1 %v3755_v32  ;;  %v3422_v32 = vld [vmem:[%s4756_s12] ss:$0 sm:$0xff] }
 0xd7c   : > { %2861 = vmatprep.subr.bf16.mxu1 %v3840_v63 }
 0xd7f   : > { %2862 = vmatpush1.bf16.msra.mxu1 %v3756_v4 }
 0xd80   : > { %2863 = vmatprep.subr.bf16.mxu1 %v3840_v63 }
 0xd83   : > { %2864 = vmatpush1.bf16.msra.mxu1 %v3757_v5  ;;  %v3423_v5 = vld [vmem:[%s4757_s13] ss:$0 sm:$0xff] }
 0xd88   : > { %v2597_v9 = vpop.f32.mrb[36].mxu1 }
 0xd89   : > { %v3623_v12 = vpop.f32.mrb[37].mxu1  ;;  %v2603_v13 = vsel %vm1207_vm4, %v2597_v9, -inf }
 0xd8a   : > { %2604 = vmax.xlane.f32.xlu1 %v2603_v13  ;;  %v2600_v11 = vpop.f32.mrb[38].mxu1 }
 0xd8b   : > { %v3624_v14 = vpop.f32.mrb[39].mxu1 }
 0xd9b   : > { %2889 = vrot.lane.b32.xlu1 %v4103_v28, %s3843_s5 }
 0xd9f   : > { %2893 = vrot.lane.b32.xlu1 %v4112_v23, %s3843_s5 }
 0xda3   : > { %2895 = vrot.lane.b32.xlu1 %v4110_v46, %s3843_s5 }
 0xe17   : > { %v2605_v31 = vpop.xlane.xlu1 %2604 }
 0xe18   : > { %v2606_v17 = vsub.f32 %v2597_v9, %v2605_v31 }
 0xe1a   : > { %v2607_v22 = vmul.f32 1.442695, %v2606_v17 }
 0xe1b   : > { %v2890_v45 = vpop.permute.xlu1 %2889 }
 0xe1c   : > { %3812 = vpow2.f32 %v2607_v22 }
 0xe1f   : > { %v2894_v48 = vpop.permute.xlu1 %2893 }
 0xe26   : > { %v3813_v10 = vpop.eup %3812 }
 0xe27   : > { %v2609_v24 = vsel %vm1207_vm4, %v3813_v10, 0.0 }
 0xe28   : > { %2610 = vadd.xlane.f32.xlu0 %v2609_v24 }
 0xeb5   : > { %v2611_v15 = vpop.xlane.xlu0 %2610 }
 0xeb6   : > { %3814 = vrcp.f32 %v2611_v15 }
 0xec0   : > { %v3815_v57 = vpop.eup %3814 }
 0xec1   : > { %v4573_v58 = vmul.f32 %v3815_v57, %v3813_v10 }
 0xec3   : > { %v2614_v28 = vsel %vm1207_vm4, %v4573_v58, 0.0 }
 0xec4   : > { %2615 = vadd.xlane.f32.xlu0 %v2614_v28 }
 0xf51   : > { %v2616_v23 = vpop.xlane.xlu0 %2615 }
 0xf52   : > { %v2617_v60 = vmul.f32 0.015625, %v2616_v23 }
 0xf54   : > { %v2618_v46 = vsub.f32 %v4573_v58, %v2617_v60 }
 0xf56   : > { %v2619_v62 = vmul.f32 %v2618_v46, %v2618_v46 }
 0xf58   : > { %v2620_v16 = vsel %vm1207_vm4, %v2619_v62, 0.0 }
 0xf59   : > { %2621 = vadd.xlane.f32.xlu0 %v2620_v16 }
 0xf6f   : > { %2891 = vrot.lane.b32.xlu0 %v4101_v27, %s3843_s5  ;;  %v3743_v27 = vld [vmem:[%s4764_s20 + $0x30] ss:$8 sps:$4 sm:$0xff]  }
 0xf70   : > { %2688 = vmatpush1.bf16.msra.mxu0 %v3743_v27 }
 0xf71   : > { %3625 = vmatprep.subr.bf16.mxu0 %v3834_v3 }
 0xfe6   : > { %v2622_v36 = vpop.xlane.xlu0 %2621 }
 0xfe7   : > { %v2623_v37 = vmul.f32 0.015625, %v2622_v36 }
 0xfe9   : > { %v2624_v38 = vadd.f32 1e-05, %v2623_v37 }
 0xfea   : > { %v2892_v47 = vpop.permute.xlu0 %2891 }
 0xfeb   : > { %3816 = vrsqrt.f32 %v2624_v38 }
 0xff5   : > { %v3817_v39 = vpop.eup %3816 }
 0xff6   : > { %v2626_v40 = vmul.f32 %v3817_v39, %v2618_v46 }
 0xff8   : > { %v2627_v43 = vmul.f32 %v4277_v59, %v2626_v40  ;;  %v2896_v59 = vpop.permute.xlu1 %2895 }
 0xffa   : > { %v2628_v51 = vadd.f32 %v4282_v52, %v2627_v43  ;;  %v2888_v52 = vpack.c.bf16 %v4573_v58, %v4573_v58 }
 0xffc   : > { %v2629_v44 = vpack.c.bf16 %v2628_v51, %v2628_v51 }
 0xffe   : > { %3405 = vmatmul.mubr.msk.bf16.vlgmr.msra.gmra.mrb[36].mxu0 %vm1307_vm6, %v2629_v44 }
 0xfff   : > { %3626 = vmatpush3.bf16.msra.mxu0 %v2890_v45  ;;  %3633 = vmatprep.mubr.msk.bf16.mxu0 %vm3835_vm2, %v3834_v3 }
0x1000   : > { %3627 = vmatprep.subr.bf16.mxu0 %v3834_v3 }
0x1003   : > { %3628 = vmatpush3.bf16.msra.mxu0 %v2892_v47 }
0x1004   : > { %3629 = vmatprep.subr.bf16.mxu0 %v3834_v3 }
0x1007   : > { %3630 = vmatpush3.bf16.msra.mxu0 %v2894_v48 }
0x1008   : > { %3631 = vmatprep.subr.bf16.mxu0 %v3834_v3 }
0x100b   : > { %3632 = vmatpush3.bf16.msra.mxu0 %v2896_v59 }
0x100c   : > { %3637 = vmatprep.subr.bf16.mxu0 %v3834_v3 }
0x100e   : > { %3634 = vmatmul.mubr.msk.bf16.vlgmr.msra.gmra.mrb[40].mxu0 %vm1307_vm6, %v2888_v52 }
0x100f   : > { %3639 = vmatprep.mubr.msk.bf16.mxu0 %vm3835_vm2, %v3834_v3  ;;  %3638 = vmatpush3.bf16.msra.mxu0 %v2950_v33 }
0x1010   : > { %3643 = vmatprep.subr.bf16.mxu0 %v3834_v3 }
0x10d1   : > { %v2715_v6 = vpop.f32.mrb[36].mxu0 }
0x10d2   : > { %v2716_v42 = vadd.f32 %v2715_v6, %v4361_v7  ;;  %v2717_v9 = vpop.f32.mrb[37].mxu0 }
0x10d3   : > { %v2718_v12 = vadd.f32 %v2717_v9, %v4363_v8  ;;  %v2719_v13 = vpop.f32.mrb[38].mxu0 }
0x10d4   : > { %v2724_v11 = vmul.f32 0.044715, %v2716_v42  ;;  %v2720_v14 = vpop.f32.mrb[39].mxu0  ;;  %v2722_v18 = vmul.f32 0.5, %v2716_v42  ;;  %v3761_v13 = vld [vmem:[%s4760_s16 + $0x8] sm:$0xff]  }
0x10d5   : > { %v2725_v31 = vmul.f32 0.044715, %v2718_v12  ;;  %v2723_v20 = vmul.f32 0.5, %v2718_v12  ;;  %v3763_v14 = vld [vmem:[%s4760_s16 + $0x18] sm:$0xff]  }
0x10d6   : > { %v2726_v17 = vmul.f32 %v2724_v11, %v2716_v42  ;;  %v3762_v11 = vld [vmem:[%s4760_s16 + $0x10] sm:$0xff]  }
0x10d7   : > { %v2727_v22 = vmul.f32 %v2725_v31, %v2718_v12  ;;  %v3424_v31 = vld [vmem:[%s4759_s15] ss:$0 sm:$0xff] }
0x10d8   : > { %v2728_v10 = vmul.f32 %v2726_v17, %v2716_v42 }
0x10d9   : > { %v2729_v24 = vmul.f32 %v2727_v22, %v2718_v12 }
0x10da   : > { %v2730_v15 = vadd.f32 %v2728_v10, %v2716_v42 }
0x10db   : > { %v2731_v57 = vadd.f32 %v2729_v24, %v2718_v12  ;;  %v3760_v12 = vld [vmem:[%s4760_s16] sm:$0xff]  }
0x10dc   : > { %v2732_v28 = vmul.f32 0.7978846, %v2730_v15 }
0x10dd   : > { %v2733_v23 = vmul.f32 0.7978846, %v2731_v57 }
0x10de   : > { %3818 = vtanh.f32 %v2732_v28 }
0x10df   : > { %3820 = vtanh.f32 %v2733_v23 }
0x10e1   : > { %v2938_v63 = vpop.f32.mrb[40].mxu0 }
0x10e2   : > { %v2944_v60 = vpack.c.bf16 %v2938_v63, %v2938_v63  ;;  %v3635_v7 = vpop.f32.mrb[41].mxu0 }
0x10e3   : > { %v2941_v46 = vpop.f32.mrb[42].mxu0 }
0x10e4   : > { %v3636_v62 = vpop.f32.mrb[43].mxu0  ;;  %3640 = vmatmul.mubr.msk.bf16.vlgmr.msra.gmra.mrb[44].mxu0 %vm1151_vm3, %v2944_v60 }
0x10e5   : > { %3647 = vmatprep.mubr.msk.bf16.mxu0 %vm3835_vm2, %v3834_v3  ;;  %3644 = vmatpush3.bf16.msra.mxu0 %v3758_v0 }
0x10e6   : > { %3645 = vmatprep.subr.bf16.mxu0 %v3834_v3 }
0x10e8   : > { %v3819_v8 = vpop.eup %3818 }
0x10e9   : > { %v3821_v16 = vpop.eup %3820  ;;  %v2736_v19 = vadd.f32 1.0, %v3819_v8  ;;  %3646 = vmatpush3.bf16.msra.mxu0 %v3759_v1 }
0x10ea   : > { %v2737_v21 = vadd.f32 1.0, %v3821_v16  ;;  %3651 = vmatprep.subr.bf16.mxu0 %v3834_v3 }
0x10eb   : > { %v2738_v25 = vmul.f32 %v2736_v19, %v2722_v18  ;;  %v3433_v18 = vld [vmem:[%s4761_s17] ss:$0 sm:$0xff] }
0x10ec   : > { %v2739_v26 = vmul.f32 %v2737_v21, %v2723_v20 }
0x10ed   : > { %v2740_v55 = vpack.c.bf16 %v2738_v25, %v2738_v25 }
0x10ee   : > { %v2741_v27 = vpack.c.bf16 %v2739_v26, %v2739_v26 }
0x10f0   : > { %3418 = vmatprep.mubr.msk.bf16.mxu1 %vm1307_vm6, %v2741_v27 }
0x10f1   : > { %2874 = vmatmul.mubr.bf16.vlgmr.msra.gmra.mrb[40].mxu1 %v2740_v55 }
0x11b7   : > { %v2986_v30 = vpop.f32.mrb[44].mxu0 }
0x11b8   : > { %v2992_v35 = vadd.f32 %v2986_v30, %v4562_v54  ;;  %v3641_v56 = vpop.f32.mrb[45].mxu0 }
0x11b9   : > { %v2989_v36 = vpop.f32.mrb[46].mxu0 }
0x11ba   : > { %v4681_v37 = vadd.f32 %v3421_v34, %v2992_v35  ;;  %v3642_v38 = vpop.f32.mrb[47].mxu0 }
0x11bc   : > { %v3003_v39 = vsel %vm806_vm1, %v4681_v37, 0.0 }
0x11bd   : > { %3004 = vadd.xlane.f32.xlu1 %v3003_v39 }
0x11c4   : > { %v2875_v40 = vpop.f32.mrb[40].mxu1 }
0x11c5   : > { %v2877_v43 = vpop.f32.mrb[41].mxu1  ;;  %v2881_v45 = vadd.f32 %v2875_v40, %v4573_v58  ;;  %v1974_v58 = vadd.f32 %v4466_v61, %v4250_v41 }
0x11c6   : > { %v2878_v51 = vpop.f32.mrb[42].mxu1 }
0x11c7   : > { %v2879_v44 = vpop.f32.mrb[43].mxu1  ;;  %v2882_v47 = vadd.f32 %v4438_v29, %v2881_v45  ;;  %v1975_v53 = vadd.f32 %v4438_v29, %v1974_v58 }
0x11ce   : > { %2884 = vrot.lane.b32.xlu1 %v2882_v47, %s3844_s8 }
0x124a   : > { %v3005_v54 = vpop.xlane.xlu1 %3004 }
0x124b   : > { %v3006_v48 = vmul.f32 0.03125, %v3005_v54 }
0x124d   : > { %v3007_v59 = vsub.f32 %v4681_v37, %v3006_v48 }
0x124e   : > { %v2885_v52 = vpop.permute.xlu1 %2884 }
0x124f   : > { %2887 = vst.msk [vmem:[%s4444_s28 + $0x4] sm:$0xf] %vm1980_vm7, %v2885_v52  ;;  %v3008_v49 = vmul.f32 %v3007_v59, %v3007_v59 }
0x1251   : > { %v3009_v50 = vsel %vm806_vm1, %v3008_v49, 0.0 }
0x1252   : > { %3010 = vadd.xlane.f32.xlu0 %v3009_v50 }
0x1268   : > { %1977 = vrot.lane.b32.xlu0 %v1975_v53, %s3844_s8 }
0x12df   : > { %v3011_v33 = vpop.xlane.xlu0 %3010 }
0x12e0   : > { %v3012_v2 = vmul.f32 0.03125, %v3011_v33 }
0x12e2   : > { %v3013_v41 = vadd.f32 1e-05, %v3012_v2 }
0x12e3   : > { %v1978_v61 = vpop.permute.xlu0 %1977 }
0x12e4   : > { %3822 = vrsqrt.f32 %v3013_v41  ;;  %1981 = vst.msk [vmem:[%s4444_s28] sm:$0xf] %vm1980_vm7, %v1978_v61  ;;  %s4793_s28 = sshll.u32 %s4795_s2, 1 }
0x12e5   : > { %s792_s4 = scalar_lea.vmem %s4769_s25, %s4793_s28 }
0x12ee   : > { %v3823_v29 = vpop.eup %3822 }
0x12ef   : > { %v3015_v4 = vmul.f32 %v3823_v29, %v3007_v59 }
0x12f1   : > { %v3022_v6 = vmul.f32 %v3422_v32, %v3015_v4 }
0x12f3   : > { %v3029_v42 = vadd.f32 %v3423_v5, %v3022_v6 }
0x12f5   : > { %v3030_v9 = vpack.c.bf16 %v3029_v42, %v3029_v42 }
0x12f7   : > { %3648 = vmatmul.mubr.msk.bf16.vlgmr.msra.gmra.mrb[48].mxu0 %vm837_vm0, %v3030_v9 }
0x12f8   : > { %3659 = vmatprep.mubr.msk.bf16.mxu0 %vm3835_vm2, %v3834_v3  ;;  %3652 = vmatpush3.bf16.msra.mxu0 %v3760_v12 }
0x12f9   : > { %3653 = vmatprep.subr.bf16.mxu0 %v3834_v3 }
0x12fc   : > { %3654 = vmatpush3.bf16.msra.mxu0 %v3761_v13 }
0x12fd   : > { %3655 = vmatprep.subr.bf16.mxu0 %v3834_v3 }
0x1300   : > { %3656 = vmatpush3.bf16.msra.mxu0 %v3762_v11 }
0x1301   : > { %3657 = vmatprep.subr.bf16.mxu0 %v3834_v3 }
0x1304   : > { %3658 = vmatpush3.bf16.msra.mxu0 %v3763_v14 }
0x13ca   : > { %v3091_v17 = vpop.f32.mrb[48].mxu0 }
0x13cb   : > { %v3092_v22 = vadd.f32 %v3424_v31, %v3091_v17  ;;  %v3649_v10 = vpop.f32.mrb[49].mxu0 }
0x13cc   : > { %v3094_v24 = vpop.f32.mrb[50].mxu0 }
0x13cd   : > { %v3098_v15 = vmul.f32 0.044715, %v3092_v22  ;;  %v3650_v57 = vpop.f32.mrb[51].mxu0  ;;  %v3097_v46 = vmul.f32 0.5, %v3092_v22 }
0x13cf   : > { %v3099_v28 = vmul.f32 %v3098_v15, %v3092_v22 }
0x13d1   : > { %v3100_v23 = vmul.f32 %v3099_v28, %v3092_v22 }
0x13d3   : > { %v3101_v63 = vadd.f32 %v3100_v23, %v3092_v22 }
0x13d5   : > { %v3102_v60 = vmul.f32 0.7978846, %v3101_v63 }
0x13d7   : > { %3824 = vtanh.f32 %v3102_v60 }
0x13e1   : > { %v3825_v7 = vpop.eup %3824 }
0x13e2   : > { %v3104_v3 = vadd.f32 1.0, %v3825_v7 }
0x13e4   : > { %v3105_v62 = vmul.f32 %v3104_v3, %v3097_v46 }
0x13e6   : > { %v3106_v8 = vpack.c.bf16 %v3105_v62, %v3105_v62 }
0x13e8   : > { %3660 = vmatmul.mubr.msk.bf16.vlgmr.msra.gmra.mrb[52].mxu0 %vm1307_vm6, %v3106_v8 }
0x14bb   : > { %v3176_v16 = vpop.f32.mrb[52].mxu0 }
0x14bc   : > { %v3182_v19 = vadd.f32 %v3176_v16, %v4681_v37  ;;  %v3661_v20 = vpop.f32.mrb[53].mxu0 }
0x14bd   : > { %v3179_v21 = vpop.f32.mrb[54].mxu0 }
0x14be   : > { %v3190_v25 = vadd.f32 %v3433_v18, %v3182_v19  ;;  %v3662_v26 = vpop.f32.mrb[55].mxu0 }
0x14c0   : > { %v3191_v27 = vpack.c.bf16 %v3190_v25, %v3190_v25 }
0x14c2   : > { %3193 = vst.msk [vmem:[%s792_s4] sm:$0x3] %vm3192_vm8, %v3191_v27 }
0x14c3 PF: > { %s36_s29 = sadd.s32 1, %s3832_s29  }
0x14c4   : > { %p33_p4 = scmp.ge.s32.totalorder %s36_s29, 4  }
0x14c6   :  { %35 = sbr.rel (!%p33_p4) target bundleno = 11 (0xb), region = 161 }

// kernel: _lambda_.11
= control target key start
LH: loop header
LB: loop body
LE: loop exit
PB: predicated region body
PF: predicated region fallthrough
CT: control target
= control target key end

     0   :  { %s4932_s0 = inlined_call_operand.vmem [shape: bf16[2,4,32], index: 0, kind: input, shape index: {}]   ;;  %s4933_s1 = inlined_call_operand.vmem [shape: f32[2,64,32], index: 1, kind: input, shape index: {}]   ;;  %s4934_s2 = inlined_call_operand.vmem [shape: f32[1,32], index: 2, kind: input, shape index: {}]   ;;  %s4935_s3 = inlined_call_operand.vmem [shape: f32[1,32], index: 3, kind: input, shape index: {}]   ;;  %s4936_s4 = inlined_call_operand.vmem [shape: f32[1,32], index: 4, kind: input, shape index: {}]   ;;  %s4937_s5 = inlined_call_operand.vmem [shape: f32[1,32], index: 5, kind: input, shape index: {}]   ;;  %s4938_s6 = inlined_call_operand.vmem [shape: bf16[32,32], index: 6, kind: input, shape index: {}]   ;;  %s4939_s7 = inlined_call_operand.vmem [shape: f32[1,32], index: 7, kind: input, shape index: {}]   ;;  %s4940_s8 = inlined_call_operand.vmem [shape: bf16[32,64], index: 8, kind: input, shape index: {}]   ;;  %s4941_s9 = inlined_call_operand.vmem [shape: f32[1,64], index: 9, kind: input, shape index: {}]   ;;  %s4942_s10 = inlined_call_operand.vmem [shape: bf16[32,32], index: 10, kind: input, shape index: {}]   ;;  %s4943_s11 = inlined_call_operand.vmem [shape: f32[1,32], index: 11, kind: input, shape index: {}]   ;;  %s4944_s12 = inlined_call_operand.vmem [shape: f32[1,32], index: 12, kind: input, shape index: {}]   ;;  %s4945_s13 = inlined_call_operand.vmem [shape: f32[1,32], index: 13, kind: input, shape index: {}]   ;;  %s4946_s14 = inlined_call_operand.vmem [shape: bf16[32,64], index: 14, kind: input, shape index: {}]   ;;  %s4947_s15 = inlined_call_operand.vmem [shape: f32[1,64], index: 15, kind: input, shape index: {}]   ;;  %s4948_s16 = inlined_call_operand.vmem [shape: bf16[64,32], index: 16, kind: input, shape index: {}]   ;;  %s4949_s17 = inlined_call_operand.vmem [shape: f32[1,32], index: 17, kind: input, shape index: {}]   ;;  %s4950_s18 = inlined_call_operand.vmem [shape: f32[1,64], index: 18, kind: input, shape index: {}]   ;;  %s4951_s19 = inlined_call_operand.vmem [shape: f32[1,64], index: 19, kind: input, shape index: {}]   ;;  %s4952_s20 = inlined_call_operand.vmem [shape: bf16[64,192], index: 20, kind: input, shape index: {}]   ;;  %s4953_s21 = inlined_call_operand.vmem [shape: f32[1,192], index: 21, kind: input, shape index: {}]   ;;  %s4954_s22 = inlined_call_operand.vmem [shape: bf16[192,64], index: 22, kind: input, shape index: {}]   ;;  %s4955_s23 = inlined_call_operand.vmem [shape: f32[1,64], index: 23, kind: input, shape index: {}]   ;;  %s4956_s24 = inlined_call_operand.vmem [shape: f32[2,4,256], index: 24, kind: output, shape index: {0}]   ;;  %s4957_s25 = inlined_call_operand.hbm [shape: bf16[2,4,32], index: 25, kind: output, shape index: {1}]  }
   0x1   :  { %4966 = sst [smem:[#allocation10_spill]] %s4932_s0 }
   0x2   :  { %4967 = sst [smem:[#allocation11_spill]] %s4933_s1 }
   0x3   :  { %4968 = sst [smem:[#allocation12_spill]] %s4934_s2 }
   0x4   :  { %4969 = sst [smem:[#allocation13_spill]] %s4935_s3 }
   0x5   :  { %4970 = sst [smem:[#allocation14_spill]] %s4936_s4 }
   0x6   :  { %4971 = sst [smem:[#allocation15_spill]] %s4937_s5 }
   0x7   :  { %4972 = sst [smem:[#allocation16_spill]] %s4938_s6 }
   0x8   :  { %4973 = sst [smem:[#allocation17_spill]] %s4939_s7 }
   0x9   :  { %4974 = sst [smem:[#allocation18_spill]] %s4940_s8 }
   0xa   :  { %4975 = sst [smem:[#allocation19_spill]] %s4941_s9 }
   0xb   :  { %4976 = sst [smem:[#allocation20_spill]] %s4950_s18 }
   0xc   :  { %31 = vsyncpa [#allocation3], 0 }
   0xd   :  { %33 = vsyncpa [#allocation3 + $0x1], 0  ;;  %s4084_s29 = smov 0   ;;  %s4086_s2 = smov 0  }
   0xe   :  { %s4088_s6 = smov 0   ;;  %s4090_s30 = smov 0  }
   0xf LB: > { %4977 = sst [smem:[#allocation5_spill]] %s3928_s29  ;;  %s4105_s7 = sadd.s32 4294967295, %s3940_s30   ;;  %s3940_s30 = sphi %s4090_s30, %s4997_s30   ;;  %s3936_s6 = sphi %s4088_s6, %s4999_s6   ;;  %s3932_s2 = sphi %s4086_s2, %s5001_s2   ;;  %s3928_s29 = sphi %s4084_s29, %s5000_s29  }
  0x10   : > { %4978 = sst [smem:[#allocation6_spill]] %s3936_s6  ;;  %s3312_s3 = sadd.s32 4294967294, %s3940_s30  }
  0x11   : > { %s4109_s26 = sadd.s32 1, %s3940_s30   ;;  %s586_s1 = sadd.s32 1, %s3936_s6 }
  0x12   : > { %4979 = sst [smem:[#allocation7_spill]] %s4109_s26  ;;  %s583_s8 = ssub.s32 %s3940_s30, %s4109_s26 }
  0x13   : > { %p596_p0 = scmp.ne.s32.totalorder %s3936_s6, %s3932_s2  ;;  %p584_p1 = scmp.eq.s32.totalorder %s583_s8, 0 }
  0x14   : > { %p597_p2 = scmp.eq.s32.totalorder %s4105_s7, 1  ;;  %p602_p3 = scmp.ne.s32.totalorder %s3932_s2, %s3928_s29 }
  0x15   : > { %p603_p4 = scmp.eq.s32.totalorder %s3312_s3, 1  ;;  %p3315_p7 = scmp.ge.s32.totalorder %s3940_s30, 1 }
  0x16   : > { %s4120_s27 = scalar_select %p584_p1, %s3936_s6, %s586_s1  }
  0x17   : > { %p4122_p5 = por %p597_p2, %p596_p0  ;;  %p4126_p6 = por %p603_p4, %p602_p3 }
  0x18   : > { %4980 = sst [smem:[#allocation8_spill]] %s4120_s27  ;;  %p702_p8 = scmp.lt.s32.totalorder %s3940_s30, 3 }
  0x19   : > { %s4982_s28 = scalar_select %p4126_p6, 1, 0 }
  0x1a   : > { %p703_p9 = pnand %p3315_p7, %p702_p8 }
  0x1b   : > { %4983 = sst [smem:[#allocation9_spill]] %s4982_s28  ;;  %p779_p10 = scmp.lt.s32.totalorder (!%p703_p9), %s4105_s7, 1  ;;  %vm837_vm0 = vcmask (!%p703_p9), 261120   ;;  %vm806_vm1 = vcmask (!%p703_p9), 257024   ;;  %vm3943_vm2 = vmmov (!%p703_p9), 0   ;;  %vm1151_vm3 = vcmask (!%p703_p9), 64512  }
  0x1c   : > { %706 = sbr.rel (%p703_p9) target bundleno = 5341 (0x14dd), region = 116  ;;  %s4984_s8 = sld [smem:[#allocation11_spill]] (!%p703_p9)  ;;  %vm1207_vm4 = vcmask (!%p703_p9), 519168   ;;  %vm1585_vm5 = vcmask (!%p703_p9), 1043456   ;;  %vm1307_vm6 = vcmask (!%p703_p9), 523264   ;;  %vm1980_vm7 = vcmask (!%p703_p9), 1043968  }
  0x1d   : > { %s4985_s28 = sld [smem:[#allocation10_spill]] (!%p703_p9)  ;;  %s4987_s3 = sld [smem:[#allocation16_spill]] (!%p703_p9)  ;;  %vm3192_vm8 = vcmask (!%p703_p9), 254976  }
  0x1e   : > { %s4986_s26 = sld [smem:[#allocation18_spill]] (!%p703_p9)  ;;  %s4992_s1 = sld [smem:[#allocation19_spill]] (!%p703_p9) }
  0x1f   : > { %s4994_s18 = sld [smem:[#allocation20_spill]] (!%p703_p9)  ;;  %s3951_s6 = smov (!%p703_p9), 72  }
  0x23   : > { %s4134_s9 = scalar_select %p779_p10, %s4105_s7, 1 }
  0x25   : > { %s3457_s5 = sshll.u32 %s4134_s9, 6  ;;  %s3317_s0 = sshll.u32 %s4134_s9, 1 }
  0x26   : > { %s787_s27 = scalar_lea.vmem %s4984_s8, %s3457_s5  ;;  %s782_s29 = scalar_lea.vmem %s4985_s28, %s3317_s0 }
  0x27   : > { %v796_v0 = vld [vmem:[%s787_s27] sm:$0xff]  ;;  %v798_v1 = vld [vmem:[%s787_s27 + $0x10] sm:$0xff]  ;;  %v797_v2 = vld [vmem:[%s787_s27 + $0x8] sm:$0xff]  ;;  %s4989_s0 = sld [smem:[#allocation15_spill]]  ;;  %s4991_s28 = sld [smem:[#allocation13_spill]] }
  0x28   : > { %v838_v3 = vsel %vm837_vm0, %v796_v0, 0.0  ;;  %v844_v4 = vsel %vm837_vm0, %v798_v1, 0.0  ;;  %v841_v5 = vsel %vm837_vm0, %v797_v2, 0.0  ;;  %v799_v6 = vld [vmem:[%s787_s27 + $0x18] sm:$0xff]  ;;  %v800_v7 = vld [vmem:[%s787_s27 + $0x20] sm:$0xff]  ;;  %v801_v8 = vld [vmem:[%s787_s27 + $0x28] sm:$0xff] }
  0x29   : > { %839 = vadd.xlane.f32.xlu0 %v838_v3  ;;  %845 = vadd.xlane.f32.xlu1 %v844_v4  ;;  %v847_v9 = vsel %vm837_vm0, %v799_v6, 0.0  ;;  %v850_v10 = vsel %vm837_vm0, %v800_v7, 0.0  ;;  %v853_v11 = vsel %vm837_vm0, %v801_v8, 0.0  ;;  %v802_v12 = vld [vmem:[%s787_s27 + $0x30] sm:$0xff]  ;;  %v803_v13 = vld [vmem:[%s787_s27 + $0x38] sm:$0xff]  ;;  %v3942_v3 = vmov 0.0  }
  0x2a   : > { %v856_v14 = vsel %vm837_vm0, %v802_v12, 0.0  ;;  %v859_v15 = vsel %vm837_vm0, %v803_v13, 0.0  ;;  %v794_v16 = vld [vmem:[%s782_s29] sm:$0x3]  ;;  %3524 = vmatprep.subr.bf16.mxu0 %v3942_v3  ;;  %v3737_v4 = vld [vmem:[%s4987_s3 + $0x8] sm:$0xff]   ;;  %3528 = vmatprep.mubr.msk.bf16.mxu0 %vm3943_vm2, %v3942_v3  ;;  %s4988_s27 = sld [smem:[#allocation14_spill]] }
  0x2b   : > { %v4152_v17 = vunpack.c.l.bf16 %v794_v16  ;;  %s4990_s29 = sld [smem:[#allocation12_spill]]  ;;  %s3944_s8 = smov 96  }
  0x2c   : > { %s3946_s5 = smov 88  }
  0x2d   : > { %842 = vadd.xlane.f32.xlu0 %v841_v5  ;;  %848 = vadd.xlane.f32.xlu1 %v847_v9  ;;  %v807_v18 = vsel %vm806_vm1, %v4152_v17, 0.0 }
  0x31   : > { %851 = vadd.xlane.f32.xlu0 %v850_v10  ;;  %854 = vadd.xlane.f32.xlu1 %v853_v11 }
  0x35   : > { %857 = vadd.xlane.f32.xlu0 %v856_v14  ;;  %860 = vadd.xlane.f32.xlu1 %v859_v15 }
  0x39   : > { %808 = vadd.xlane.f32.xlu0 %v807_v18 }
  0xb6   : > { %v840_v19 = vpop.xlane.xlu0 %839  ;;  %v846_v20 = vpop.xlane.xlu1 %845 }
  0xb7   : > { %v862_v21 = vmul.f32 0.03125, %v840_v19  ;;  %v864_v22 = vmul.f32 0.03125, %v846_v20 }
  0xb9   : > { %v4156_v23 = vsub.f32 %v796_v0, %v862_v21  ;;  %v4158_v24 = vsub.f32 %v798_v1, %v864_v22  ;;  %v3734_v0 = vld [vmem:[%s4986_s26] sm:$0xff]   ;;  %v3735_v1 = vld [vmem:[%s4986_s26 + $0x8] sm:$0xff]  }
  0xba   : > { %v843_v25 = vpop.xlane.xlu0 %842  ;;  %v849_v26 = vpop.xlane.xlu1 %848  ;;  %3532 = vmatprep.subr.bf16.mxu1 %v3734_v0 }
  0xbb   : > { %v863_v27 = vmul.f32 0.03125, %v843_v25  ;;  %v865_v28 = vmul.f32 0.03125, %v849_v26  ;;  %v878_v29 = vmul.f32 %v4156_v23, %v4156_v23  ;;  %v880_v30 = vmul.f32 %v4158_v24, %v4158_v24  ;;  %3533 = vmatpush3.bf16.msra.mxu1 %v3734_v0 }
  0xbc   : > { %3534 = vmatprep.subr.bf16.mxu1 %v3735_v1 }
  0xbd   : > { %v4164_v31 = vsub.f32 %v797_v2, %v863_v27  ;;  %v4166_v32 = vsub.f32 %v799_v6, %v865_v28  ;;  %v886_v33 = vsel %vm837_vm0, %v878_v29, 0.0  ;;  %v892_v36 = vsel %vm837_vm0, %v880_v30, 0.0  ;;  %v3736_v2 = vld [vmem:[%s4987_s3] sm:$0xff]  }
  0xbe   : > { %887 = vadd.xlane.f32.xlu1 %v886_v33  ;;  %v852_v34 = vpop.xlane.xlu0 %851  ;;  %v855_v35 = vpop.xlane.xlu1 %854  ;;  %3525 = vmatpush3.bf16.msra.mxu0 %v3736_v2 }
  0xbf   : > { %v866_v37 = vmul.f32 0.03125, %v852_v34  ;;  %v867_v38 = vmul.f32 0.03125, %v855_v35  ;;  %v879_v39 = vmul.f32 %v4164_v31, %v4164_v31  ;;  %v881_v40 = vmul.f32 %v4166_v32, %v4166_v32  ;;  %3535 = vmatpush3.bf16.msra.mxu1 %v3735_v1  ;;  %3526 = vmatprep.subr.bf16.mxu0 %v3942_v3 }
  0xc1   : > { %v4174_v41 = vsub.f32 %v800_v7, %v866_v37  ;;  %v4176_v42 = vsub.f32 %v801_v8, %v867_v38  ;;  %v889_v43 = vsel %vm837_vm0, %v879_v39, 0.0  ;;  %v895_v46 = vsel %vm837_vm0, %v881_v40, 0.0  ;;  %v3324_v37 = vld [vmem:[%s4988_s27] ss:$0 sm:$0xff]  ;;  %s4993_s27 = sld [smem:[#allocation17_spill]] }
  0xc2   : > { %893 = vadd.xlane.f32.xlu1 %v892_v36  ;;  %v858_v44 = vpop.xlane.xlu0 %857  ;;  %890 = vadd.xlane.f32.xlu0 %v889_v43  ;;  %v861_v45 = vpop.xlane.xlu1 %860 }
  0xc3   : > { %v868_v47 = vmul.f32 0.03125, %v858_v44  ;;  %v869_v48 = vmul.f32 0.03125, %v861_v45  ;;  %v882_v49 = vmul.f32 %v4174_v41, %v4174_v41  ;;  %v883_v50 = vmul.f32 %v4176_v42, %v4176_v42  ;;  %3527 = vmatpush3.bf16.msra.mxu0 %v3737_v4 }
  0xc4   : > { %3544 = vmatprep.subr.bf16.mxu0 %v3942_v3 }
  0xc5   : > { %v4184_v51 = vsub.f32 %v802_v12, %v868_v47  ;;  %v4186_v52 = vsub.f32 %v803_v13, %v869_v48  ;;  %v898_v53 = vsel %vm837_vm0, %v882_v49, 0.0  ;;  %v901_v57 = vsel %vm837_vm0, %v883_v50, 0.0 }
  0xc6   : > { %899 = vadd.xlane.f32.xlu1 %v898_v53  ;;  %896 = vadd.xlane.f32.xlu0 %v895_v46  ;;  %v809_v54 = vpop.xlane.xlu0 %808 }
  0xc7   : > { %v811_v55 = vmul.f32 0.03125, %v809_v54  ;;  %v884_v56 = vmul.f32 %v4184_v51, %v4184_v51  ;;  %v885_v58 = vmul.f32 %v4186_v52, %v4186_v52 }
  0xc9   : > { %v4195_v59 = vsub.f32 %v4152_v17, %v811_v55  ;;  %v904_v60 = vsel %vm837_vm0, %v884_v56, 0.0  ;;  %v907_v61 = vsel %vm837_vm0, %v885_v58, 0.0 }
  0xca   : > { %905 = vadd.xlane.f32.xlu1 %v904_v60  ;;  %902 = vadd.xlane.f32.xlu0 %v901_v57 }
  0xcb   : > { %v813_v62 = vmul.f32 %v4195_v59, %v4195_v59 }
  0xcd   : > { %v814_v63 = vsel %vm806_vm1, %v813_v62, 0.0 }
  0xce   : > { %908 = vadd.xlane.f32.xlu0 %v907_v61  ;;  %815 = vadd.xlane.f32.xlu1 %v814_v63 }
 0x14b   : > { %v888_v5 = vpop.xlane.xlu1 %887 }
 0x14c   : > { %v910_v6 = vmul.f32 0.03125, %v888_v5 }
 0x14e   : > { %v918_v7 = vadd.f32 1e-05, %v910_v6 }
 0x14f   : > { %v894_v8 = vpop.xlane.xlu1 %893  ;;  %v891_v9 = vpop.xlane.xlu0 %890 }
 0x150   : > { %3816 = vrsqrt.f32 %v918_v7  ;;  %v912_v10 = vmul.f32 0.03125, %v894_v8  ;;  %v911_v11 = vmul.f32 0.03125, %v891_v9  ;;  %v3323_v7 = vld [vmem:[%s4991_s28] ss:$0 sm:$0xff]  ;;  %s3945_s28 = smov 120  }
 0x152   : > { %v920_v12 = vadd.f32 1e-05, %v912_v10  ;;  %v919_v13 = vadd.f32 1e-05, %v911_v11 }
 0x153   : > { %v900_v14 = vpop.xlane.xlu1 %899  ;;  %v897_v15 = vpop.xlane.xlu0 %896 }
 0x154   : > { %3818 = vrsqrt.f32 %v920_v12  ;;  %v914_v16 = vmul.f32 0.03125, %v900_v14  ;;  %v913_v18 = vmul.f32 0.03125, %v897_v15 }
 0x155   : > { %3820 = vrsqrt.f32 %v919_v13 }
 0x156   : > { %v922_v19 = vadd.f32 1e-05, %v914_v16  ;;  %v921_v20 = vadd.f32 1e-05, %v913_v18  ;;  %v3330_v16 = vld [vmem:[%s4992_s1] ss:$0 sm:$0xff] }
 0x157   : > { %v906_v21 = vpop.xlane.xlu1 %905  ;;  %v903_v22 = vpop.xlane.xlu0 %902  ;;  %s3950_s1 = smov 104  }
 0x158   : > { %3822 = vrsqrt.f32 %v922_v19  ;;  %v916_v25 = vmul.f32 0.03125, %v906_v21  ;;  %v915_v26 = vmul.f32 0.03125, %v903_v22 }
 0x159   : > { %3824 = vrsqrt.f32 %v921_v20 }
 0x15a   : > { %v3817_v27 = vpop.eup %3816  ;;  %v924_v28 = vadd.f32 1e-05, %v916_v25  ;;  %v923_v29 = vadd.f32 1e-05, %v915_v26 }
 0x15b   : > { %v816_v30 = vpop.xlane.xlu1 %815  ;;  %v909_v33 = vpop.xlane.xlu0 %908  ;;  %v934_v36 = vmul.f32 %v3817_v27, %v4156_v23  ;;  %v3325_v23 = vld [vmem:[%s4989_s0] ss:$0 sm:$0xff] }
 0x15c   : > { %3826 = vrsqrt.f32 %v924_v28  ;;  %v817_v34 = vmul.f32 0.03125, %v816_v30  ;;  %v917_v35 = vmul.f32 0.03125, %v909_v33 }
 0x15d   : > { %3828 = vrsqrt.f32 %v923_v29  ;;  %v948_v46 = vmul.f32 %v3324_v37, %v934_v36 }
 0x15e   : > { %v3819_v38 = vpop.eup %3818  ;;  %v818_v39 = vadd.f32 1e-05, %v817_v34  ;;  %v925_v40 = vadd.f32 1e-05, %v917_v35 }
 0x15f   : > { %v3821_v43 = vpop.eup %3820  ;;  %v936_v44 = vmul.f32 %v3819_v38, %v4158_v24  ;;  %v962_v55 = vadd.f32 %v3325_v23, %v948_v46 }
 0x160   : > { %3830 = vrsqrt.f32 %v818_v39  ;;  %v935_v45 = vmul.f32 %v3821_v43, %v4164_v31 }
 0x161   : > { %3832 = vrsqrt.f32 %v925_v40  ;;  %v950_v50 = vmul.f32 %v3324_v37, %v936_v44 }
 0x162   : > { %v3823_v47 = vpop.eup %3822  ;;  %v949_v48 = vmul.f32 %v3324_v37, %v935_v45 }
 0x163   : > { %v3825_v49 = vpop.eup %3824  ;;  %v938_v53 = vmul.f32 %v3823_v47, %v4174_v41  ;;  %v964_v60 = vadd.f32 %v3325_v23, %v950_v50 }
 0x164   : > { %v937_v54 = vmul.f32 %v3825_v49, %v4166_v32  ;;  %v963_v56 = vadd.f32 %v3325_v23, %v949_v48  ;;  %v3322_v32 = vld [vmem:[%s4990_s29] ss:$0 sm:$0xff]  ;;  %s3458_s29 = sshll.u32 %s4134_s9, 3  ;;  %s3949_s9 = smov 80  }
 0x165   : > { %v952_v0 = vmul.f32 %v3324_v37, %v938_v53  ;;  %v3326_v49 = vld [vmem:[%s4993_s27] ss:$0 sm:$0xff]  ;;  %s4593_s0 = scalar_lea.vmem %s4956_s24, %s3458_s29 }
 0x166   : > { %v3827_v24 = vpop.eup %3826  ;;  %v1037_v57 = vpack.c.bf16 %v963_v56, %v962_v55  ;;  %v951_v58 = vmul.f32 %v3324_v37, %v937_v54 }
 0x167   : > { %v3829_v31 = vpop.eup %3828  ;;  %v940_v61 = vmul.f32 %v3827_v24, %v4184_v51  ;;  %v966_v51 = vadd.f32 %v3325_v23, %v952_v0 }
 0x168   : > { %v939_v62 = vmul.f32 %v3829_v31, %v4176_v42  ;;  %3536 = vmatprep.mubr.msk.bf16.mxu1 %vm837_vm0, %v1037_v57  ;;  %v965_v63 = vadd.f32 %v3325_v23, %v951_v58 }
 0x169   : > { %v954_v8 = vmul.f32 %v3324_v37, %v940_v61 }
 0x16a   : > { %v3831_v1 = vpop.eup %3830  ;;  %v1038_v2 = vpack.c.bf16 %v965_v63, %v964_v60  ;;  %v953_v41 = vmul.f32 %v3324_v37, %v939_v62 }
 0x16b   : > { %v3833_v4 = vpop.eup %3832  ;;  %v820_v5 = vmul.f32 %v3831_v1, %v4195_v59  ;;  %v968_v13 = vadd.f32 %v3325_v23, %v954_v8 }
 0x16c   : > { %v941_v6 = vmul.f32 %v3833_v4, %v4186_v52  ;;  %3537 = vmatmul.mubr.msk.bf16.vlgmr.msra.gmra.mrb[0].mxu1 %vm837_vm0, %v1038_v2  ;;  %v967_v42 = vadd.f32 %v3325_v23, %v953_v41 }
 0x16d   : > { %v827_v9 = vmul.f32 %v3322_v32, %v820_v5 }
 0x16e   : > { %v1039_v10 = vpack.c.bf16 %v967_v42, %v966_v51  ;;  %v955_v11 = vmul.f32 %v3324_v37, %v941_v6  ;;  %v1581_v6 = vld [vmem:[%s4942_s10] sm:$0xf] }
 0x16f   : > { %v834_v12 = vadd.f32 %v3323_v7, %v827_v9  ;;  %v1587_v7 = vsel %vm1585_vm5, %v1581_v6, 0 }
 0x170   : > { %3540 = vmatprep.mubr.msk.bf16.mxu1 %vm837_vm0, %v1039_v10  ;;  %v969_v14 = vadd.f32 %v3325_v23, %v955_v11 }
 0x171   : > { %v970_v59 = vpack.c.bf16 %v834_v12, %v834_v12 }
 0x172   : > { %v1040_v15 = vpack.c.bf16 %v969_v14, %v968_v13 }
 0x173   : > { %3529 = vmatmul.mubr.msk.bf16.vlgmr.msra.gmra.mrb[0].mxu0 %vm837_vm0, %v970_v59 }
 0x174   : > { %3541 = vmatmul.mubr.msk.bf16.gmra.mrb[4].mxu1 %vm837_vm0, %v1040_v15  ;;  %3552 = vmatprep.mubr.msk.bf16.mxu0 %vm3943_vm2, %v3942_v3 }
 0x23f   : > { %v3538_v52 = vpop.f32.mrb[0].mxu1 }
 0x240   : > { %v1110_v18 = vpop.f32.mrb[1].mxu1  ;;  %v1119_v20 = vadd.f32 %v3538_v52, %v3330_v16 }
 0x241   : > { %v3539_v19 = vpop.f32.mrb[2].mxu1  ;;  %v1111_v25 = vadd.f32 %v3330_v16, %v1110_v18 }
 0x242   : > { %v1122_v21 = vadd.f32 %v3539_v19, %v3330_v16  ;;  %v1113_v22 = vpop.f32.mrb[3].mxu1 }
 0x243   : > { %v1114_v26 = vadd.f32 %v3330_v16, %v1113_v22 }
 0x244   : > { %v4250_v27 = vpack.c.bf16 %v1122_v21, %v1119_v20 }
 0x245   : > { %v4252_v28 = vpack.c.bf16 %v1114_v26, %v1111_v25 }
 0x246   : > { %1527 = vrot.lane.b32.xlu1 %v4250_v27, %s3944_s8  ;;  %v1031_v29 = vpop.f32.mrb[0].mxu0  ;;  %v1159_v47 = vsel %vm1151_vm3, %v4250_v27, 0 }
 0x247   : > { %v3542_v30 = vpop.f32.mrb[4].mxu1  ;;  %v3530_v33 = vpop.f32.mrb[1].mxu0  ;;  %v1156_v34 = vsel %vm1151_vm3, %v4252_v28, 0  ;;  %v1032_v50 = vadd.f32 %v3326_v49, %v1031_v29 }
 0x248   : > { %v1126_v35 = vpop.f32.mrb[5].mxu1  ;;  %3545 = vmatpush3.bf16.xpose.msra.mxu0 %v1156_v34  ;;  %v1034_v36 = vpop.f32.mrb[2].mxu0  ;;  %v1135_v39 = vadd.f32 %v3542_v30, %v3330_v16 }
 0x249   : > { %v3543_v37 = vpop.f32.mrb[6].mxu1  ;;  %v3531_v38 = vpop.f32.mrb[3].mxu0  ;;  %3546 = vmatprep.subr.bf16.mxu0 %v3942_v3  ;;  %v1127_v44 = vadd.f32 %v3330_v16, %v1126_v35  ;;  %v1141_v54 = vmul.f32 0.35355338, %v1032_v50 }
 0x24a   : > { %v1138_v40 = vadd.f32 %v3543_v37, %v3330_v16  ;;  %v1129_v43 = vpop.f32.mrb[7].mxu1 }
 0x24b   : > { %v1130_v45 = vadd.f32 %v3330_v16, %v1129_v43  ;;  %v4277_v55 = vpack.c.bf16 %v1141_v54, %v1141_v54 }
 0x24c   : > { %v4259_v46 = vpack.c.bf16 %v1138_v40, %v1135_v39 }
 0x24d   : > { %v4261_v23 = vpack.c.bf16 %v1130_v45, %v1127_v44 }
 0x24e   : > { %v1165_v53 = vsel %vm1151_vm3, %v4259_v46, 0 }
 0x24f   : > { %1529 = vrot.lane.b32.xlu1 %v4261_v23, %s3944_s8  ;;  %v1162_v48 = vsel %vm1151_vm3, %v4261_v23, 0 }
 0x250   : > { %3547 = vmatpush3.bf16.xpose.msra.mxu0 %v1159_v47 }
 0x251   : > { %3548 = vmatprep.subr.bf16.mxu0 %v3942_v3 }
 0x258   : > { %3549 = vmatpush3.bf16.xpose.msra.mxu0 %v1162_v48 }
 0x259   : > { %3550 = vmatprep.subr.bf16.mxu0 %v3942_v3 }
 0x260   : > { %3551 = vmatpush3.bf16.xpose.msra.mxu0 %v1165_v53 }
 0x261   : > { %3556 = vmatprep.subr.bf16.mxu0 %v3942_v3 }
 0x267   : > { %3553 = vmatmul.mubr.msk.bf16.vlgmr.msra.gmra.mrb[4].mxu0 %vm1151_vm3, %v4277_v55 }
 0x268   : > { %3564 = vmatprep.mubr.msk.bf16.mxu0 %vm3943_vm2, %v3942_v3 }
 0x2b8   : > { %v1528_v0 = vpop.permute.xlu1 %1527 }
 0x2c1   : > { %v1530_v1 = vpop.permute.xlu1 %1529 }
 0x33a   : > { %v1201_v56 = vpop.f32.mrb[4].mxu0 }
 0x33b   : > { %v3554_v24 = vpop.f32.mrb[5].mxu0  ;;  %v1208_v57 = vsel %vm1207_vm4, %v1201_v56, -inf }
 0x33c   : > { %1209 = vmax.xlane.f32.xlu0 %v1208_v57  ;;  %v1204_v58 = vpop.f32.mrb[6].mxu0  ;;  %v4356_v24 = vld [vmem:[%s4952_s20] ss:$8 sps:$4 sm:$0xff]   ;;  %v4363_v57 = vld [vmem:[%s4952_s20 + $0x14] ss:$8 sps:$4 sm:$0xff]  }
 0x33d   : > { %v3555_v31 = vpop.f32.mrb[7].mxu0  ;;  %v4368_v58 = vld [vmem:[%s4952_s20 + $0x10] ss:$8 sps:$4 sm:$0xff]  }
 0x33e   : > { %v4375_v31 = vld [vmem:[%s4952_s20 + $0x24] ss:$8 sps:$4 sm:$0xff]  }
 0x352   : > { %1525 = vrot.lane.b32.xlu0 %v4252_v28, %s3944_s8 }
 0x356   : > { %1633 = vrot.lane.b32.xlu0 %v4252_v28, %s3945_s28 }
 0x35a   : > { %1637 = vrot.lane.b32.xlu0 %v4261_v23, %s3945_s28 }
 0x35e   : > { %1631 = vrot.lane.b32.xlu0 %v4277_v55, %s3945_s28 }
 0x362   : > { %1983 = vrot.lane.b32.xlu0 %v4252_v28, %s3946_s5 }
 0x3c9   : > { %v1210_v60 = vpop.xlane.xlu0 %1209 }
 0x3ca   : > { %v1211_v61 = vsub.f32 %v1201_v56, %v1210_v60  ;;  %v4351_v56 = vld [vmem:[%s4952_s20 + $0x4] ss:$8 sps:$4 sm:$0xff]   ;;  %v4380_v60 = vld [vmem:[%s4952_s20 + $0x20] ss:$8 sps:$4 sm:$0xff]  }
 0x3cb   : > { %1311 = vmatprep.subr.bf16.mxu1 %v4351_v56 }
 0x3cc   : > { %v1212_v62 = vmul.f32 1.442695, %v1211_v61  ;;  %1312 = vmatpush1.bf16.msra.mxu1 %v4356_v24  ;;  %v4387_v61 = vld [vmem:[%s4952_s20 + $0x34] ss:$8 sps:$4 sm:$0xff]  }
 0x3cd   : > { %v1526_v63 = vpop.permute.xlu0 %1525  ;;  %1313 = vmatprep.subr.bf16.mxu1 %v4363_v57 }
 0x3ce   : > { %3834 = vpow2.f32 %v1212_v62  ;;  %3557 = vmatpush3.bf16.msra.mxu0 %v1526_v63  ;;  %v4392_v62 = vld [vmem:[%s4952_s20 + $0x30] ss:$8 sps:$4 sm:$0xff]   ;;  %v3948_v63 = vmov 0  }
 0x3cf   : > { %3558 = vmatprep.subr.bf16.mxu0 %v3942_v3  ;;  %1343 = vmatprep.mubr.bf16.mxu1 %v3948_v63 }
 0x3d0   : > { %1314 = vmatpush1.bf16.msra.mxu1 %v4368_v58 }
 0x3d1   : > { %v1634_v8 = vpop.permute.xlu0 %1633  ;;  %1315 = vmatprep.subr.bf16.mxu1 %v4375_v31 }
 0x3d2   : > { %3559 = vmatpush3.bf16.msra.mxu0 %v1528_v0  ;;  %v1645_v13 = vsel %vm1151_vm3, %v1634_v8, 0 }
 0x3d3   : > { %3560 = vmatprep.subr.bf16.mxu0 %v3942_v3 }
 0x3d4   : > { %1316 = vmatpush1.bf16.msra.mxu1 %v4380_v60 }
 0x3d5   : > { %v1638_v52 = vpop.permute.xlu0 %1637  ;;  %1317 = vmatprep.subr.bf16.mxu1 %v4387_v61 }
 0x3d6   : > { %3561 = vmatpush3.bf16.msra.mxu0 %v1530_v1  ;;  %v1651_v16 = vsel %vm1151_vm3, %v1638_v52, 0  ;;  %v4431_v52 = vld [vmem:[%s4951_s19] ss:$0 sm:$0xff] }
 0x3d7   : > { %3562 = vmatprep.subr.bf16.mxu0 %v3942_v3 }
 0x3d8   : > { %v3835_v2 = vpop.eup %3834  ;;  %1318 = vmatpush1.bf16.msra.mxu1 %v4392_v62 }
 0x3d9   : > { %v1214_v41 = vsel %vm1207_vm4, %v3835_v2, 0.0  ;;  %v1632_v20 = vpop.permute.xlu0 %1631  ;;  %1471 = vmatprep.subr.bf16.mxu1 %v3948_v63 }
 0x3da   : > { %1215 = vadd.xlane.f32.xlu1 %v1214_v41 }
 0x3dd   : > { %v1984_v21 = vpop.permute.xlu0 %1983 }
 0x3eb   : > { %1531 = vrot.lane.b32.xlu1 %v4259_v46, %s3944_s8  ;;  %s3947_s8 = smov 112  }
 0x3ef   : > { %1635 = vrot.lane.b32.xlu1 %v4250_v27, %s3945_s28 }
 0x3f3   : > { %1639 = vrot.lane.b32.xlu1 %v4259_v46, %s3945_s28 }
 0x467   : > { %v1216_v32 = vpop.xlane.xlu1 %1215 }
 0x468   : > { %3836 = vrcp.f32 %v1216_v32 }
 0x46b   : > { %v1532_v4 = vpop.permute.xlu1 %1531 }
 0x46c   : > { %3563 = vmatpush3.bf16.msra.mxu0 %v1532_v4 }
 0x46d   : > { %3568 = vmatprep.subr.bf16.mxu0 %v3942_v3 }
 0x46f   : > { %v1636_v59 = vpop.permute.xlu1 %1635 }
 0x470   : > { %v1648_v15 = vsel %vm1151_vm3, %v1636_v59, 0  ;;  %v4426_v59 = vld [vmem:[%s4994_s18] ss:$0 sm:$0xff] }
 0x472   : > { %v3837_v5 = vpop.eup %3836 }
 0x473   : > { %v4303_v51 = vmul.f32 %v3837_v5, %v3835_v2  ;;  %v1640_v18 = vpop.permute.xlu1 %1639  ;;  %v2039_v5 = vld [vmem:[%s4942_s10 + $0x4] sm:$0xf] }
 0x474   : > { %v1654_v19 = vsel %vm1151_vm3, %v1640_v18, 0  ;;  %v2044_v6 = vsel %vm1585_vm5, %v2039_v5, 0 }
 0x475   : > { %v1520_v42 = vpack.c.bf16 %v4303_v51, %v4303_v51  ;;  %v1219_v37 = vsel %vm1207_vm4, %v4303_v51, 0.0 }
 0x477   : > { %3565 = vmatmul.mubr.msk.bf16.vlgmr.msra.gmra.mrb[8].mxu0 %vm1307_vm6, %v1520_v42 }
 0x478   : > { %3569 = vmatpush3.bf16.msra.mxu0 %v1587_v7  ;;  %3570 = vmatprep.mubr.msk.bf16.mxu0 %vm3943_vm2, %v3942_v3 }
 0x479   : > { %3574 = vmatprep.subr.bf16.mxu0 %v3942_v3 }
 0x54a   : > { %v1574_v9 = vpop.f32.mrb[8].mxu0 }
 0x54b   : > { %v1580_v10 = vpack.c.bf16 %v1574_v9, %v1574_v9  ;;  %v3566_v11 = vpop.f32.mrb[9].mxu0 }
 0x54c   : > { %v1577_v12 = vpop.f32.mrb[10].mxu0 }
 0x54d   : > { %v3567_v14 = vpop.f32.mrb[11].mxu0  ;;  %3571 = vmatmul.mubr.msk.bf16.vlgmr.msra.gmra.mrb[12].mxu0 %vm1151_vm3, %v1580_v10 }
 0x54e   : > { %3575 = vmatpush3.bf16.xpose.msra.mxu0 %v1645_v13  ;;  %3582 = vmatprep.mubr.msk.bf16.mxu0 %vm3943_vm2, %v3942_v3 }
 0x54f   : > { %3576 = vmatprep.subr.bf16.mxu0 %v3942_v3 }
 0x556   : > { %3577 = vmatpush3.bf16.xpose.msra.mxu0 %v1648_v15 }
 0x557   : > { %3578 = vmatprep.subr.bf16.mxu0 %v3942_v3 }
 0x55e   : > { %3579 = vmatpush3.bf16.xpose.msra.mxu0 %v1651_v16 }
 0x55f   : > { %3580 = vmatprep.subr.bf16.mxu0 %v3942_v3 }
 0x566   : > { %3581 = vmatpush3.bf16.xpose.msra.mxu0 %v1654_v19 }
 0x567   : > { %3586 = vmatprep.subr.bf16.mxu0 %v3942_v3 }
 0x56d   : > { %3583 = vmatmul.mubr.msk.bf16.vlgmr.msra.gmra.mrb[16].mxu0 %vm1151_vm3, %v1632_v20  ;;  %v3750_v20 = vld [vmem:[%s4954_s22] sm:$0xff]  }
 0x56e   : > { %3587 = vmatpush3.bf16.msra.mxu0 %v1984_v21  ;;  %3594 = vmatprep.mubr.msk.bf16.mxu0 %vm3943_vm2, %v3942_v3  ;;  %v3751_v21 = vld [vmem:[%s4954_s22 + $0x8] sm:$0xff]  }
 0x56f   : > { %3588 = vmatprep.subr.bf16.mxu0 %v3942_v3 }
 0x620   : > { %v4327_v22 = vpop.f32.mrb[12].mxu0 }
 0x621   : > { %v3572_v25 = vpop.f32.mrb[13].mxu0 }
 0x622   : > { %v1626_v26 = vpop.f32.mrb[14].mxu0  ;;  %v3752_v25 = vld [vmem:[%s4954_s22 + $0x10] sm:$0xff]  }
 0x623   : > { %v3573_v29 = vpop.f32.mrb[15].mxu0  ;;  %v3753_v26 = vld [vmem:[%s4954_s22 + $0x18] sm:$0xff]  }
 0x640   : > { %v1690_v30 = vpop.f32.mrb[16].mxu0 }
 0x641   : > { %v3584_v33 = vpop.f32.mrb[17].mxu0  ;;  %v1696_v34 = vsel %vm1207_vm4, %v1690_v30, -inf }
 0x642   : > { %1697 = vmax.xlane.f32.xlu1 %v1696_v34  ;;  %v1693_v35 = vpop.f32.mrb[18].mxu0 }
 0x643   : > { %v3585_v36 = vpop.f32.mrb[19].mxu0 }
 0x644   : > { %v3754_v36 = vld [vmem:[%s4954_s22 + $0x20] sm:$0xff]  }
 0x653   : > { %1985 = vrot.lane.b32.xlu1 %v4250_v27, %s3946_s5 }
 0x657   : > { %1987 = vrot.lane.b32.xlu1 %v4261_v23, %s3946_s5 }
 0x67b   : > { %1220 = vadd.xlane.f32.xlu1 %v1219_v37  ;;  %v3755_v37 = vld [vmem:[%s4954_s22 + $0x28] sm:$0xff]  }
 0x6cf   : > { %v1698_v38 = vpop.xlane.xlu1 %1697 }
 0x6d0   : > { %v1699_v39 = vsub.f32 %v1690_v30, %v1698_v38  ;;  %v3756_v38 = vld [vmem:[%s4954_s22 + $0x30] sm:$0xff]  }
 0x6d2   : > { %v1700_v40 = vmul.f32 1.442695, %v1699_v39  ;;  %v3757_v39 = vld [vmem:[%s4954_s22 + $0x38] sm:$0xff]  }
 0x6d3   : > { %v1986_v43 = vpop.permute.xlu1 %1985 }
 0x6d4   : > { %3838 = vpow2.f32 %v1700_v40  ;;  %3589 = vmatpush3.bf16.msra.mxu0 %v1986_v43  ;;  %v3758_v40 = vld [vmem:[%s4954_s22 + $0x40] sm:$0xff]   ;;  %v3759_v43 = vld [vmem:[%s4954_s22 + $0x48] sm:$0xff]  }
 0x6d5   : > { %3590 = vmatprep.subr.bf16.mxu0 %v3942_v3 }
 0x6d7   : > { %v1988_v44 = vpop.permute.xlu1 %1987 }
 0x6d8   : > { %3591 = vmatpush3.bf16.msra.mxu0 %v1988_v44  ;;  %v3760_v44 = vld [vmem:[%s4954_s22 + $0x50] sm:$0xff]  }
 0x6d9   : > { %3592 = vmatprep.subr.bf16.mxu0 %v3942_v3 }
 0x6de   : > { %v3839_v45 = vpop.eup %3838 }
 0x6df   : > { %v1702_v47 = vsel %vm1207_vm4, %v3839_v45, 0.0 }
 0x6e0   : > { %1703 = vadd.xlane.f32.xlu0 %v1702_v47 }
 0x6f6   : > { %1989 = vrot.lane.b32.xlu0 %v4259_v46, %s3946_s5 }
 0x6fa   : > { %2089 = vrot.lane.b32.xlu0 %v4252_v28, %s3947_s8 }
 0x6fe   : > { %2091 = vrot.lane.b32.xlu0 %v4250_v27, %s3947_s8 }
 0x702   : > { %2093 = vrot.lane.b32.xlu0 %v4261_v23, %s3947_s8 }
 0x706   : > { %2095 = vrot.lane.b32.xlu0 %v4259_v46, %s3947_s8 }
 0x708   : > { %v1221_v48 = vpop.xlane.xlu1 %1220 }
 0x709   : > { %v1223_v49 = vmul.f32 0.015625, %v1221_v48 }
 0x70a   : > { %2087 = vrot.lane.b32.xlu0 %v4277_v55, %s3947_s8  ;;  %s3454_s8 = sshll.u32 %s4105_s7, 5  ;;  %s3953_s7 = smov [#allocation2]  }
 0x70b   : > { %v1224_v50 = vsub.f32 %v4303_v51, %v1223_v49  ;;  %s4890_s18 = scalar_lea.hbm %s4957_s25, %s3454_s8 }
 0x70d   : > { %v1225_v53 = vmul.f32 %v1224_v50, %v1224_v50 }
 0x70f   : > { %v1226_v54 = vsel %vm1207_vm4, %v1225_v53, 0.0 }
 0x729   : > { %1227 = vadd.xlane.f32.xlu0 %v1226_v54 }
 0x76d   : > { %v1704_v0 = vpop.xlane.xlu0 %1703 }
 0x76e   : > { %3840 = vrcp.f32 %v1704_v0 }
 0x771   : > { %v1990_v1 = vpop.permute.xlu0 %1989 }
 0x772   : > { %3593 = vmatpush3.bf16.msra.mxu0 %v1990_v1 }
 0x773   : > { %3598 = vmatprep.subr.bf16.mxu0 %v3942_v3 }
 0x775   : > { %v4413_v42 = vpop.permute.xlu0 %2089 }
 0x776   : > { %v2101_v53 = vsel %vm1151_vm3, %v4413_v42, 0 }
 0x778   : > { %v3841_v2 = vpop.eup %3840 }
 0x779   : > { %v4399_v41 = vmul.f32 %v3841_v2, %v3839_v45  ;;  %v4415_v7 = vpop.permute.xlu0 %2091  ;;  %v3761_v45 = vld [vmem:[%s4954_s22 + $0x58] sm:$0xff]  }
 0x77a   : > { %v2104_v0 = vsel %vm1151_vm3, %v4415_v7, 0 }
 0x77b   : > { %v1707_v32 = vsel %vm1207_vm4, %v4399_v41, 0.0  ;;  %v1982_v4 = vpack.c.bf16 %v4399_v41, %v4399_v41 }
 0x77c   : > { %1708 = vadd.xlane.f32.xlu1 %v1707_v32  ;;  %v1257_v32 = vlaneseq }
 0x77d   : > { %3595 = vmatmul.mubr.msk.bf16.vlgmr.msra.gmra.mrb[20].mxu0 %vm1307_vm6, %v1982_v4  ;;  %v4417_v8 = vpop.permute.xlu0 %2093 }
 0x77e   : > { %3600 = vmatprep.mubr.msk.bf16.mxu0 %vm3943_vm2, %v3942_v3  ;;  %3599 = vmatpush3.bf16.msra.mxu0 %v2044_v6  ;;  %v2107_v1 = vsel %vm1151_vm3, %v4417_v8, 0  ;;  %v1258_v4 = vshrl.u32 %v1257_v32, 7  ;;  %v1149_v6 = vld [vmem:[%s4953_s21] sm:$0x3]  ;;  %v3764_v32 = vld [vmem:[%s4954_s22 + $0x10] sm:$0xff]  }
 0x77f   : > { %3604 = vmatprep.subr.bf16.mxu0 %v3942_v3 }
 0x780   : > { %v1259_v5 = vsub.s32 0, %v1258_v4  ;;  %v1263_v42 = vsub.s32 1, %v1258_v4  ;;  %v3765_v4 = vld [vmem:[%s4954_s22 + $0x18] sm:$0xff]  }
 0x781   : > { %v4419_v9 = vpop.permute.xlu0 %2095 }
 0x782   : > { %v2110_v2 = vsel %vm1151_vm3, %v4419_v9, 0  ;;  %v4510_v7 = vrot.slane %v1149_v6, %v1259_v5  ;;  %v4512_v8 = vrot.slane %v1149_v6, %v1263_v42  ;;  %v3766_v5 = vld [vmem:[%s4954_s22 + $0x20] sm:$0xff]   ;;  %v1629_v6 = vadd.f32 %v4327_v22, %v4152_v17  ;;  %v3768_v17 = vld [vmem:[%s4954_s22 + $0x30] sm:$0xff]   ;;  %v3769_v22 = vld [vmem:[%s4954_s22 + $0x38] sm:$0xff]  }
 0x785   : > { %v4421_v10 = vpop.permute.xlu0 %2087 }
 0x7b6   : > { %v1228_v11 = vpop.xlane.xlu0 %1227 }
 0x7b7   : > { %v1229_v12 = vmul.f32 0.015625, %v1228_v11 }
 0x7b9   : > { %v1230_v13 = vadd.f32 1e-05, %v1229_v12 }
 0x7bb   : > { %3842 = vrsqrt.f32 %v1230_v13 }
 0x7c5   : > { %v3843_v14 = vpop.eup %3842 }
 0x7c6   : > { %v1232_v15 = vmul.f32 %v3843_v14, %v1224_v50 }
 0x7c8   : > { %v1239_v16 = vmul.f32 %v4426_v59, %v1232_v15 }
 0x7ca   : > { %v1246_v18 = vadd.f32 %v4431_v52, %v1239_v16 }
 0x7cc   : > { %v1247_v19 = vpack.c.bf16 %v1246_v18, %v1246_v18 }
 0x7ce   : > { %3348 = vmatmul.mubr.msk.bf16.vlgmr.msra.gmra.mrb[8].mxu1 %vm1307_vm6, %v1247_v19 }
 0x7cf   : > { %1472 = vmatpush1.bf16.msra.mxu1 %v3750_v20 }
 0x7d0   : > { %1473 = vmatprep.subr.bf16.mxu1 %v3948_v63 }
 0x7d3   : > { %1474 = vmatpush1.bf16.msra.mxu1 %v3751_v21 }
 0x7d4   : > { %1475 = vmatprep.subr.bf16.mxu1 %v3948_v63 }
 0x7d7   : > { %1476 = vmatpush1.bf16.msra.mxu1 %v3752_v25 }
 0x7d8   : > { %1477 = vmatprep.subr.bf16.mxu1 %v3948_v63 }
 0x7db   : > { %1478 = vmatpush1.bf16.msra.mxu1 %v3753_v26 }
 0x7dc   : > { %1479 = vmatprep.subr.bf16.mxu1 %v3948_v63 }
 0x7df   : > { %1480 = vmatpush1.bf16.msra.mxu1 %v3754_v36 }
 0x7e0   : > { %1481 = vmatprep.subr.bf16.mxu1 %v3948_v63 }
 0x7e3   : > { %1482 = vmatpush1.bf16.msra.mxu1 %v3755_v37 }
 0x7e4   : > { %1483 = vmatprep.subr.bf16.mxu1 %v3948_v63 }
 0x7e7   : > { %1484 = vmatpush1.bf16.msra.mxu1 %v3756_v38 }
 0x7e8   : > { %1485 = vmatprep.subr.bf16.mxu1 %v3948_v63 }
 0x7eb   : > { %1486 = vmatpush1.bf16.msra.mxu1 %v3757_v39 }
 0x7ec   : > { %1487 = vmatprep.subr.bf16.mxu1 %v3948_v63 }
 0x7ef   : > { %1488 = vmatpush1.bf16.msra.mxu1 %v3758_v40 }
 0x7f0   : > { %1489 = vmatprep.subr.bf16.mxu1 %v3948_v63 }
 0x7f3   : > { %1490 = vmatpush1.bf16.msra.mxu1 %v3759_v43 }
 0x7f4   : > { %1491 = vmatprep.subr.bf16.mxu1 %v3948_v63 }
 0x7f7   : > { %1492 = vmatpush1.bf16.msra.mxu1 %v3760_v44 }
 0x7f8   : > { %1493 = vmatprep.subr.bf16.mxu1 %v3948_v63 }
 0x7fb   : > { %1494 = vmatpush1.bf16.msra.mxu1 %v3761_v45 }
 0x7fc   : > { %1774 = vmatprep.subr.bf16.mxu1 %v4351_v56 }
 0x809   : > { %v1709_v29 = vpop.xlane.xlu1 %1708 }
 0x80a   : > { %v1710_v30 = vmul.f32 0.015625, %v1709_v29 }
 0x80c   : > { %v4453_v33 = vsub.f32 %v4399_v41, %v1710_v30 }
 0x80e   : > { %v1712_v34 = vmul.f32 %v4453_v33, %v4453_v33 }
 0x810   : > { %v1713_v35 = vsel %vm1207_vm4, %v1712_v34, 0.0 }
 0x811   : > { %1714 = vadd.xlane.f32.xlu1 %v1713_v35 }
 0x850   : > { %v2032_v47 = vpop.f32.mrb[20].mxu0 }
 0x851   : > { %v2038_v48 = vpack.c.bf16 %v2032_v47, %v2032_v47  ;;  %v3596_v49 = vpop.f32.mrb[21].mxu0 }
 0x852   : > { %v2035_v50 = vpop.f32.mrb[22].mxu0 }
 0x853   : > { %v3597_v54 = vpop.f32.mrb[23].mxu0  ;;  %3601 = vmatmul.mubr.msk.bf16.vlgmr.msra.gmra.mrb[24].mxu0 %vm1151_vm3, %v2038_v48 }
 0x854   : > { %3605 = vmatpush3.bf16.xpose.msra.mxu0 %v2101_v53  ;;  %3612 = vmatprep.mubr.msk.bf16.mxu0 %vm3943_vm2, %v3942_v3 }
 0x855   : > { %3606 = vmatprep.subr.bf16.mxu0 %v3942_v3 }
 0x85c   : > { %3607 = vmatpush3.bf16.xpose.msra.mxu0 %v2104_v0 }
 0x85d   : > { %3608 = vmatprep.subr.bf16.mxu0 %v3942_v3 }
 0x864   : > { %3609 = vmatpush3.bf16.xpose.msra.mxu0 %v2107_v1 }
 0x865   : > { %3610 = vmatprep.subr.bf16.mxu0 %v3942_v3 }
 0x86c   : > { %3611 = vmatpush3.bf16.xpose.msra.mxu0 %v2110_v2  ;;  %v3763_v2 = vld [vmem:[%s4954_s22 + $0x8] sm:$0xff]  }
 0x86d   : > { %2390 = vmatprep.subr.bf16.mxu0 %v3948_v63 }
 0x873   : > { %3613 = vmatmul.mubr.msk.bf16.vlgmr.msra.gmra.mrb[28].mxu0 %vm1151_vm3, %v4421_v10 }
 0x89e   : > { %v1715_v26 = vpop.xlane.xlu1 %1714 }
 0x89f   : > { %v1716_v35 = vmul.f32 0.015625, %v1715_v26 }
 0x8a1   : > { %v1345_v11 = vpop.f32.mrb[8].mxu1  ;;  %v1717_v36 = vadd.f32 1e-05, %v1716_v35 }
 0x8a2   : > { %v1346_v9 = vadd.f32 %v1345_v11, %v4510_v7  ;;  %v1347_v12 = vpop.f32.mrb[9].mxu1 }
 0x8a3   : > { %v1348_v13 = vadd.f32 %v1347_v12, %v4512_v8  ;;  %v1349_v14 = vpop.f32.mrb[10].mxu1  ;;  %v3767_v12 = vld [vmem:[%s4954_s22 + $0x28] sm:$0xff]  }
 0x8a4   : > { %v1354_v10 = vmul.f32 0.044715, %v1346_v9  ;;  %v1350_v15 = vpop.f32.mrb[11].mxu1  ;;  %v1352_v39 = vmul.f32 0.5, %v1346_v9 }
 0x8a5   : > { %v1355_v16 = vmul.f32 0.044715, %v1348_v13  ;;  %v1353_v43 = vmul.f32 0.5, %v1348_v13  ;;  %v3771_v15 = vld [vmem:[%s4954_s22 + $0x48] sm:$0xff]  }
 0x8a6   : > { %v1356_v18 = vmul.f32 %v1354_v10, %v1346_v9  ;;  %v3770_v10 = vld [vmem:[%s4954_s22 + $0x40] sm:$0xff]  }
 0x8a7   : > { %v1357_v19 = vmul.f32 %v1355_v16, %v1348_v13  ;;  %v3772_v16 = vld [vmem:[%s4954_s22 + $0x50] sm:$0xff]  }
 0x8a8   : > { %v1358_v20 = vmul.f32 %v1356_v18, %v1346_v9  ;;  %v3773_v18 = vld [vmem:[%s4954_s22 + $0x58] sm:$0xff]  }
 0x8a9   : > { %v1359_v21 = vmul.f32 %v1357_v19, %v1348_v13 }
 0x8aa   : > { %v1360_v25 = vadd.f32 %v1358_v20, %v1346_v9 }
 0x8ab   : > { %v1361_v29 = vadd.f32 %v1359_v21, %v1348_v13 }
 0x8ac   : > { %v1362_v30 = vmul.f32 0.7978846, %v1360_v25 }
 0x8ad   : > { %v1363_v34 = vmul.f32 0.7978846, %v1361_v29  ;;  %v4587_v29 = vld [vmem:[%s4955_s23] ss:$0 sm:$0xff] }
 0x8ae   : > { %3844 = vtanh.f32 %v1362_v30 }
 0x8af   : > { %3846 = vtanh.f32 %v1363_v34 }
 0x8b0   : > { %3848 = vrsqrt.f32 %v1717_v36 }
 0x8b8   : > { %v3845_v37 = vpop.eup %3844 }
 0x8b9   : > { %v3847_v38 = vpop.eup %3846  ;;  %v1366_v40 = vadd.f32 1.0, %v3845_v37 }
 0x8ba   : > { %v1367_v44 = vadd.f32 1.0, %v3847_v38  ;;  %v3849_v50 = vpop.eup %3848 }
 0x8bb   : > { %v1368_v45 = vmul.f32 %v1366_v40, %v1352_v39  ;;  %v1719_v53 = vmul.f32 %v3849_v50, %v4453_v33  ;;  %v3762_v33 = vld [vmem:[%s4954_s22] sm:$0xff]  }
 0x8bc   : > { %v1369_v47 = vmul.f32 %v1367_v44, %v1353_v43 }
 0x8bd   : > { %v1370_v49 = vpack.c.bf16 %v1368_v45, %v1368_v45  ;;  %v1720_v54 = vmul.f32 %v4426_v59, %v1719_v53 }
 0x8be   : > { %v1371_v48 = vpack.c.bf16 %v1369_v47, %v1369_v47 }
 0x8bf   : > { %v1721_v0 = vadd.f32 %v4431_v52, %v1720_v54 }
 0x8c0   : > { %3361 = vmatprep.mubr.msk.bf16.mxu1 %vm1307_vm6, %v1371_v48 }
 0x8c1   : > { %1504 = vmatmul.mubr.bf16.vlgmr.msra.gmra.mrb[12].mxu1 %v1370_v49  ;;  %v1722_v1 = vpack.c.bf16 %v1721_v0, %v1721_v0 }
 0x8c2   : > { %1775 = vmatpush1.bf16.msra.mxu1 %v4356_v24  ;;  %1806 = vmatprep.mubr.bf16.mxu1 %v3948_v63 }
 0x8c3   : > { %1776 = vmatprep.subr.bf16.mxu1 %v4363_v57 }
 0x8c6   : > { %1777 = vmatpush1.bf16.msra.mxu1 %v4368_v58 }
 0x8c7   : > { %1778 = vmatprep.subr.bf16.mxu1 %v4375_v31 }
 0x8ca   : > { %1779 = vmatpush1.bf16.msra.mxu1 %v4380_v60 }
 0x8cb   : > { %1780 = vmatprep.subr.bf16.mxu1 %v4387_v61 }
 0x8ce   : > { %1781 = vmatpush1.bf16.msra.mxu1 %v4392_v62 }
 0x8cf   : > { %1934 = vmatprep.subr.bf16.mxu1 %v3948_v63 }
 0x8d1   : > { %3374 = vmatmul.mubr.msk.bf16.vlgmr.msra.gmra.mrb[16].mxu1 %vm1307_vm6, %v1722_v1 }
 0x8d2   : > { %1935 = vmatpush1.bf16.msra.mxu1 %v3762_v33 }
 0x8d3   : > { %1936 = vmatprep.subr.bf16.mxu1 %v3948_v63 }
 0x8d6   : > { %1937 = vmatpush1.bf16.msra.mxu1 %v3763_v2 }
 0x8d7   : > { %1938 = vmatprep.subr.bf16.mxu1 %v3948_v63 }
 0x8da   : > { %1939 = vmatpush1.bf16.msra.mxu1 %v3764_v32 }
 0x8db   : > { %1940 = vmatprep.subr.bf16.mxu1 %v3948_v63 }
 0x8de   : > { %1941 = vmatpush1.bf16.msra.mxu1 %v3765_v4 }
 0x8df   : > { %1942 = vmatprep.subr.bf16.mxu1 %v3948_v63 }
 0x8e2   : > { %1943 = vmatpush1.bf16.msra.mxu1 %v3766_v5 }
 0x8e3   : > { %1944 = vmatprep.subr.bf16.mxu1 %v3948_v63 }
 0x8e6   : > { %1945 = vmatpush1.bf16.msra.mxu1 %v3767_v12 }
 0x8e7   : > { %1946 = vmatprep.subr.bf16.mxu1 %v3948_v63 }
 0x8ea   : > { %1947 = vmatpush1.bf16.msra.mxu1 %v3768_v17 }
 0x8eb   : > { %1948 = vmatprep.subr.bf16.mxu1 %v3948_v63 }
 0x8ee   : > { %1949 = vmatpush1.bf16.msra.mxu1 %v3769_v22 }
 0x8ef   : > { %1950 = vmatprep.subr.bf16.mxu1 %v3948_v63 }
 0x8f2   : > { %1951 = vmatpush1.bf16.msra.mxu1 %v3770_v10 }
 0x8f3   : > { %1952 = vmatprep.subr.bf16.mxu1 %v3948_v63 }
 0x8f6   : > { %1953 = vmatpush1.bf16.msra.mxu1 %v3771_v15 }
 0x8f7   : > { %1954 = vmatprep.subr.bf16.mxu1 %v3948_v63 }
 0x8fa   : > { %1955 = vmatpush1.bf16.msra.mxu1 %v3772_v16 }
 0x8fb   : > { %1956 = vmatprep.subr.bf16.mxu1 %v3948_v63 }
 0x8fe   : > { %1957 = vmatpush1.bf16.msra.mxu1 %v3773_v18 }
 0x8ff   : > { %2230 = vmatprep.subr.bf16.mxu1 %v4351_v56 }
 0x926   : > { %v2080_v42 = vpop.f32.mrb[24].mxu0 }
 0x927   : > { %v4552_v11 = vadd.f32 %v2080_v42, %v1629_v6  ;;  %v3602_v9 = vpop.f32.mrb[25].mxu0 }
 0x928   : > { %v2083_v13 = vpop.f32.mrb[26].mxu0 }
 0x929   : > { %v3603_v14 = vpop.f32.mrb[27].mxu0 }
 0x946   : > { %v2146_v19 = vpop.f32.mrb[28].mxu0 }
 0x947   : > { %v3614_v20 = vpop.f32.mrb[29].mxu0  ;;  %v2152_v21 = vsel %vm1207_vm4, %v2146_v19, -inf }
 0x948   : > { %2153 = vmax.xlane.f32.xlu1 %v2152_v21  ;;  %v2149_v25 = vpop.f32.mrb[30].mxu0 }
 0x949   : > { %v3615_v26 = vpop.f32.mrb[31].mxu0 }
 0x994   : > { %v1505_v30 = vpop.f32.mrb[12].mxu1 }
 0x995   : > { %v1511_v34 = vadd.f32 %v1505_v30, %v4303_v51  ;;  %v1507_v35 = vpop.f32.mrb[13].mxu1  ;;  %v3775_v30 = vld [vmem:[%s4954_s22 + $0x8] sm:$0xff]  }
 0x996   : > { %v1508_v56 = vpop.f32.mrb[14].mxu1  ;;  %v3777_v35 = vld [vmem:[%s4954_s22 + $0x18] sm:$0xff]  }
 0x997   : > { %v1518_v36 = vadd.f32 %v4587_v29, %v1511_v34  ;;  %v1509_v37 = vpop.f32.mrb[15].mxu1  ;;  %v3776_v34 = vld [vmem:[%s4954_s22 + $0x10] sm:$0xff]  }
 0x999   : > { %1519 = vst.msk [vmem:[%s4593_s0] sm:$0xf] %vm1207_vm4, %v1518_v36 }
 0x9a4   : > { %v1808_v38 = vpop.f32.mrb[16].mxu1 }
 0x9a5   : > { %v1809_v39 = vadd.f32 %v1808_v38, %v4510_v7  ;;  %v1810_v40 = vpop.f32.mrb[17].mxu1 }
 0x9a6   : > { %v1811_v43 = vadd.f32 %v1810_v40, %v4512_v8  ;;  %v1812_v51 = vpop.f32.mrb[18].mxu1 }
 0x9a7   : > { %v1817_v44 = vmul.f32 0.044715, %v1809_v39  ;;  %v1813_v45 = vpop.f32.mrb[19].mxu1  ;;  %v1815_v4 = vmul.f32 0.5, %v1809_v39 }
 0x9a8   : > { %v1818_v47 = vmul.f32 0.044715, %v1811_v43  ;;  %v1816_v6 = vmul.f32 0.5, %v1811_v43 }
 0x9a9   : > { %v1819_v48 = vmul.f32 %v1817_v44, %v1809_v39 }
 0x9aa   : > { %v1820_v49 = vmul.f32 %v1818_v47, %v1811_v43 }
 0x9ab   : > { %v1821_v50 = vmul.f32 %v1819_v48, %v1809_v39 }
 0x9ac   : > { %v1822_v53 = vmul.f32 %v1820_v49, %v1811_v43 }
 0x9ad   : > { %v1823_v54 = vadd.f32 %v1821_v50, %v1809_v39  ;;  %v3778_v50 = vld [vmem:[%s4954_s22 + $0x20] sm:$0xff]  }
 0x9ae   : > { %v1824_v0 = vadd.f32 %v1822_v53, %v1811_v43  ;;  %v3779_v53 = vld [vmem:[%s4954_s22 + $0x28] sm:$0xff]  }
 0x9af   : > { %v1825_v1 = vmul.f32 0.7978846, %v1823_v54  ;;  %v3780_v54 = vld [vmem:[%s4954_s22 + $0x30] sm:$0xff]  }
 0x9b0   : > { %v1826_v33 = vmul.f32 0.7978846, %v1824_v0  ;;  %v2490_v0 = vld [vmem:[%s4942_s10 + $0x8] sm:$0xf] }
 0x9b1   : > { %3850 = vtanh.f32 %v1825_v1  ;;  %v2495_v1 = vsel %vm1585_vm5, %v2490_v0, 0 }
 0x9b2   : > { %3852 = vtanh.f32 %v1826_v33  ;;  %v3781_v33 = vld [vmem:[%s4954_s22 + $0x38] sm:$0xff]  }
 0x9bb   : > { %v3851_v2 = vpop.eup %3850 }
 0x9bc   : > { %v3853_v32 = vpop.eup %3852  ;;  %v1829_v5 = vadd.f32 1.0, %v3851_v2  ;;  %v3782_v2 = vld [vmem:[%s4954_s22 + $0x40] sm:$0xff]  }
 0x9bd   : > { %v1830_v42 = vadd.f32 1.0, %v3853_v32  ;;  %v3783_v32 = vld [vmem:[%s4954_s22 + $0x48] sm:$0xff]  }
 0x9be   : > { %v1831_v9 = vmul.f32 %v1829_v5, %v1815_v4  ;;  %v3784_v4 = vld [vmem:[%s4954_s22 + $0x50] sm:$0xff]   ;;  %v3785_v5 = vld [vmem:[%s4954_s22 + $0x58] sm:$0xff]  }
 0x9bf   : > { %v1832_v12 = vmul.f32 %v1830_v42, %v1816_v6 }
 0x9c0   : > { %v1833_v14 = vpack.c.bf16 %v1831_v9, %v1831_v9 }
 0x9c1   : > { %v1834_v13 = vpack.c.bf16 %v1832_v12, %v1832_v12 }
 0x9c3   : > { %3387 = vmatprep.mubr.msk.bf16.mxu1 %vm1307_vm6, %v1834_v13 }
 0x9c4   : > { %1967 = vmatmul.mubr.bf16.vlgmr.msra.gmra.mrb[20].mxu1 %v1833_v14 }
 0x9c5   : > { %2231 = vmatpush1.bf16.msra.mxu1 %v4356_v24  ;;  %2262 = vmatprep.mubr.bf16.mxu1 %v3948_v63 }
 0x9c6   : > { %2232 = vmatprep.subr.bf16.mxu1 %v4363_v57 }
 0x9c9   : > { %2233 = vmatpush1.bf16.msra.mxu1 %v4368_v58 }
 0x9ca   : > { %2234 = vmatprep.subr.bf16.mxu1 %v4375_v31 }
 0x9cd   : > { %2235 = vmatpush1.bf16.msra.mxu1 %v4380_v60 }
 0x9ce   : > { %2236 = vmatprep.subr.bf16.mxu1 %v4387_v61 }
 0x9d1   : > { %2237 = vmatpush1.bf16.msra.mxu1 %v4392_v62 }
 0x9d2   : > { %3616 = vmatprep.subr.bf16.mxu1 %v3942_v3 }
 0x9d5   : > { %v2154_v17 = vpop.xlane.xlu1 %2153 }
 0x9d6   : > { %v2155_v22 = vsub.f32 %v2146_v19, %v2154_v17 }
 0x9d8   : > { %v2156_v10 = vmul.f32 1.442695, %v2155_v22 }
 0x9da   : > { %3854 = vpow2.f32 %v2156_v10 }
 0x9e4   : > { %v3855_v24 = vpop.eup %3854 }
 0x9e5   : > { %v2158_v15 = vsel %vm1207_vm4, %v3855_v24, 0.0 }
 0x9e6   : > { %2159 = vadd.xlane.f32.xlu1 %v2158_v15 }
 0xa73   : > { %v2160_v57 = vpop.xlane.xlu1 %2159 }
 0xa74   : > { %3856 = vrcp.f32 %v2160_v57 }
 0xa7e   : > { %v3857_v58 = vpop.eup %3856 }
 0xa7f   : > { %v4611_v31 = vmul.f32 %v3857_v58, %v3855_v24 }
 0xa81   : > { %v2163_v60 = vsel %vm1207_vm4, %v4611_v31, 0.0  ;;  %v2433_v49 = vpack.c.bf16 %v4611_v31, %v4611_v31 }
 0xa82   : > { %2164 = vadd.xlane.f32.xlu0 %v2163_v60 }
 0xa97   : > { %v4615_v61 = vpop.f32.mrb[20].mxu1 }
 0xa98   : > { %v1970_v62 = vpop.f32.mrb[21].mxu1  ;;  %2434 = vrot.lane.b32.xlu0 %v4252_v28, %s3949_s9 }
 0xa99   : > { %v1971_v16 = vpop.f32.mrb[22].mxu1 }
 0xa9a   : > { %v1972_v18 = vpop.f32.mrb[23].mxu1 }
 0xa9c   : > { %2540 = vrot.lane.b32.xlu0 %v4252_v28, %s3950_s1 }
 0xaa0   : > { %2544 = vrot.lane.b32.xlu0 %v4261_v23, %s3950_s1 }
 0xaa4   : > { %2538 = vrot.lane.b32.xlu0 %v4277_v55, %s3950_s1  ;;  %v3774_v55 = vld [vmem:[%s4954_s22] sm:$0xff]  }
 0xaa5   : > { %2391 = vmatpush1.bf16.msra.mxu0 %v3774_v55 }
 0xaa6   : > { %2392 = vmatprep.subr.bf16.mxu0 %v3948_v63 }
 0xaa9   : > { %2393 = vmatpush1.bf16.msra.mxu0 %v3775_v30 }
 0xaaa   : > { %2394 = vmatprep.subr.bf16.mxu0 %v3948_v63 }
 0xaad   : > { %2395 = vmatpush1.bf16.msra.mxu0 %v3776_v34 }
 0xaae   : > { %2396 = vmatprep.subr.bf16.mxu0 %v3948_v63 }
 0xab1   : > { %2397 = vmatpush1.bf16.msra.mxu0 %v3777_v35 }
 0xab2   : > { %2398 = vmatprep.subr.bf16.mxu0 %v3948_v63 }
 0xab5   : > { %2399 = vmatpush1.bf16.msra.mxu0 %v3778_v50 }
 0xab6   : > { %2400 = vmatprep.subr.bf16.mxu0 %v3948_v63 }
 0xab9   : > { %2401 = vmatpush1.bf16.msra.mxu0 %v3779_v53 }
 0xaba   : > { %2402 = vmatprep.subr.bf16.mxu0 %v3948_v63 }
 0xabd   : > { %2403 = vmatpush1.bf16.msra.mxu0 %v3780_v54 }
 0xabe   : > { %2404 = vmatprep.subr.bf16.mxu0 %v3948_v63 }
 0xac1   : > { %2405 = vmatpush1.bf16.msra.mxu0 %v3781_v33 }
 0xac2   : > { %2406 = vmatprep.subr.bf16.mxu0 %v3948_v63 }
 0xac5   : > { %2407 = vmatpush1.bf16.msra.mxu0 %v3782_v2 }
 0xac6   : > { %2408 = vmatprep.subr.bf16.mxu0 %v3948_v63 }
 0xac9   : > { %2409 = vmatpush1.bf16.msra.mxu0 %v3783_v32 }
 0xaca   : > { %2410 = vmatprep.subr.bf16.mxu0 %v3948_v63 }
 0xacd   : > { %2411 = vmatpush1.bf16.msra.mxu0 %v3784_v4 }
 0xace   : > { %2412 = vmatprep.subr.bf16.mxu0 %v3948_v63 }
 0xad1   : > { %2413 = vmatpush1.bf16.msra.mxu0 %v3785_v5 }
 0xb0f   : > { %v2165_v19 = vpop.xlane.xlu0 %2164 }
 0xb10   : > { %v2166_v20 = vmul.f32 0.015625, %v2165_v19 }
 0xb12   : > { %v2167_v21 = vsub.f32 %v4611_v31, %v2166_v20 }
 0xb13   : > { %v2435_v44 = vpop.permute.xlu0 %2434 }
 0xb14   : > { %v2168_v25 = vmul.f32 %v2167_v21, %v2167_v21 }
 0xb16   : > { %v2169_v26 = vsel %vm1207_vm4, %v2168_v25, 0.0 }
 0xb17   : > { %2170 = vadd.xlane.f32.xlu1 %v2169_v26  ;;  %v2541_v18 = vpop.permute.xlu0 %2540 }
 0xb18   : > { %v2552_v26 = vsel %vm1151_vm3, %v2541_v18, 0  ;;  %v3788_v18 = vld [vmem:[%s4952_s20 + $0x4] ss:$8 sps:$4 sm:$0xff]  }
 0xb19   : > { %2681 = vmatprep.subr.bf16.mxu0 %v3788_v18 }
 0xb28   : > { %2436 = vrot.lane.b32.xlu1 %v4250_v27, %s3949_s9 }
 0xb2c   : > { %2438 = vrot.lane.b32.xlu1 %v4261_v23, %s3949_s9 }
 0xb30   : > { %2440 = vrot.lane.b32.xlu1 %v4259_v46, %s3949_s9  ;;  %s776_s9 = sand.u32 1, %s3932_s2  }
 0xb31   : > { %s3200_s5 = scalar_lea.sflag [#allocation3], %s776_s9 }
 0xb34   : > { %2542 = vrot.lane.b32.xlu1 %v4250_v27, %s3950_s1 }
 0xb38   : > { %2546 = vrot.lane.b32.xlu1 %v4259_v46, %s3950_s1  ;;  %s3952_s1 = smov 64  }
 0xba4   : > { %v2171_v56 = vpop.xlane.xlu1 %2170 }
 0xba5   : > { %v2172_v36 = vmul.f32 0.015625, %v2171_v56 }
 0xba7   : > { %v2173_v37 = vadd.f32 1e-05, %v2172_v36 }
 0xba8   : > { %v2437_v45 = vpop.permute.xlu1 %2436 }
 0xba9   : > { %3858 = vrsqrt.f32 %v2173_v37 }
 0xbac   : > { %v2439_v47 = vpop.permute.xlu1 %2438 }
 0xbb0   : > { %v2441_v48 = vpop.permute.xlu1 %2440 }
 0xbb3   : > { %v3859_v38 = vpop.eup %3858 }
 0xbb4   : > { %v2175_v39 = vmul.f32 %v3859_v38, %v2167_v21  ;;  %v2543_v35 = vpop.permute.xlu1 %2542 }
 0xbb6   : > { %v2176_v40 = vmul.f32 %v4426_v59, %v2175_v39 }
 0xbb8   : > { %v2177_v43 = vadd.f32 %v4431_v52, %v2176_v40  ;;  %v2555_v40 = vsel %vm1151_vm3, %v2543_v35, 0  ;;  %v3800_v35 = vld [vmem:[%s4954_s22 + $0x10] sm:$0xff]  }
 0xbba   : > { %v2178_v51 = vpack.c.bf16 %v2177_v43, %v2177_v43 }
 0xbbc   : > { %3399 = vmatmul.mubr.msk.bf16.vlgmr.msra.gmra.mrb[24].mxu1 %vm1307_vm6, %v2178_v51 }
 0xbbd   : > { %3617 = vmatpush3.bf16.msra.mxu1 %v2435_v44  ;;  %3624 = vmatprep.mubr.msk.bf16.mxu1 %vm3943_vm2, %v3942_v3 }
 0xbbe   : > { %3618 = vmatprep.subr.bf16.mxu1 %v3942_v3 }
 0xbc1   : > { %3619 = vmatpush3.bf16.msra.mxu1 %v2437_v45  ;;  %v2545_v45 = vpop.permute.xlu0 %2544 }
 0xbc2   : > { %3620 = vmatprep.subr.bf16.mxu1 %v3942_v3 }
 0xbc5   : > { %3621 = vmatpush3.bf16.msra.mxu1 %v2439_v47  ;;  %v2558_v47 = vsel %vm1151_vm3, %v2545_v45, 0  ;;  %v2539_v50 = vpop.permute.xlu0 %2538 }
 0xbc6   : > { %3622 = vmatprep.subr.bf16.mxu1 %v3942_v3 }
 0xbc9   : > { %3623 = vmatpush3.bf16.msra.mxu1 %v2441_v48  ;;  %v2547_v48 = vpop.permute.xlu1 %2546 }
 0xbca   : > { %3628 = vmatprep.subr.bf16.mxu1 %v3942_v3 }
 0xbcc   : > { %3625 = vmatmul.mubr.msk.bf16.vlgmr.msra.gmra.mrb[28].mxu1 %vm1307_vm6, %v2433_v49  ;;  %v2561_v49 = vsel %vm1151_vm3, %v2547_v48, 0 }
 0xbcd   : > { %3630 = vmatprep.mubr.msk.bf16.mxu1 %vm3943_vm2, %v3942_v3  ;;  %3629 = vmatpush3.bf16.msra.mxu1 %v2495_v1 }
 0xbce   : > { %3634 = vmatprep.subr.bf16.mxu1 %v3942_v3 }
 0xc8f   : > { %v2264_v6 = vpop.f32.mrb[24].mxu1 }
 0xc90   : > { %v2265_v42 = vadd.f32 %v2264_v6, %v4510_v7  ;;  %v2266_v9 = vpop.f32.mrb[25].mxu1 }
 0xc91   : > { %v2267_v12 = vadd.f32 %v2266_v9, %v4512_v8  ;;  %v2268_v13 = vpop.f32.mrb[26].mxu1 }
 0xc92   : > { %v2273_v14 = vmul.f32 0.044715, %v2265_v42  ;;  %v2269_v17 = vpop.f32.mrb[27].mxu1  ;;  %v2271_v56 = vmul.f32 0.5, %v2265_v42 }
 0xc93   : > { %v2274_v22 = vmul.f32 0.044715, %v2267_v12  ;;  %v2272_v37 = vmul.f32 0.5, %v2267_v12 }
 0xc94   : > { %v2275_v10 = vmul.f32 %v2273_v14, %v2265_v42 }
 0xc95   : > { %v2276_v24 = vmul.f32 %v2274_v22, %v2267_v12 }
 0xc96   : > { %v2277_v15 = vmul.f32 %v2275_v10, %v2265_v42 }
 0xc97   : > { %v2278_v57 = vmul.f32 %v2276_v24, %v2267_v12 }
 0xc98   : > { %v2279_v58 = vadd.f32 %v2277_v15, %v2265_v42 }
 0xc99   : > { %v2280_v60 = vadd.f32 %v2278_v57, %v2267_v12 }
 0xc9a   : > { %v2281_v62 = vmul.f32 0.7978846, %v2279_v58 }
 0xc9b   : > { %v2282_v16 = vmul.f32 0.7978846, %v2280_v60 }
 0xc9c   : > { %3860 = vtanh.f32 %v2281_v62 }
 0xc9d   : > { %3862 = vtanh.f32 %v2282_v16 }
 0xc9f   : > { %v2483_v19 = vpop.f32.mrb[28].mxu1 }
 0xca0   : > { %v2489_v20 = vpack.c.bf16 %v2483_v19, %v2483_v19  ;;  %v3626_v21 = vpop.f32.mrb[29].mxu1  ;;  %v3786_v19 = vld [vmem:[%s4952_s20] ss:$8 sps:$4 sm:$0xff]  }
 0xca1   : > { %v2486_v25 = vpop.f32.mrb[30].mxu1  ;;  %v3789_v21 = vld [vmem:[%s4952_s20 + $0x10] ss:$8 sps:$4 sm:$0xff]  }
 0xca2   : > { %v3627_v55 = vpop.f32.mrb[31].mxu1  ;;  %3631 = vmatmul.mubr.msk.bf16.vlgmr.msra.gmra.mrb[32].mxu1 %vm1151_vm3, %v2489_v20  ;;  %v3791_v20 = vld [vmem:[%s4952_s20 + $0x14] ss:$8 sps:$4 sm:$0xff]   ;;  %v3794_v25 = vld [vmem:[%s4952_s20 + $0x24] ss:$8 sps:$4 sm:$0xff]  }
 0xca3   : > { %3635 = vmatpush3.bf16.xpose.msra.mxu1 %v2552_v26  ;;  %3642 = vmatprep.mubr.msk.bf16.mxu1 %vm3943_vm2, %v3942_v3  ;;  %v3792_v26 = vld [vmem:[%s4952_s20 + $0x20] ss:$8 sps:$4 sm:$0xff]   ;;  %v3797_v55 = vld [vmem:[%s4952_s20 + $0x34] ss:$8 sps:$4 sm:$0xff]  }
 0xca4   : > { %3636 = vmatprep.subr.bf16.mxu1 %v3942_v3 }
 0xca6   : > { %v3861_v30 = vpop.eup %3860 }
 0xca7   : > { %v3863_v34 = vpop.eup %3862  ;;  %v2285_v36 = vadd.f32 1.0, %v3861_v30  ;;  %v3798_v30 = vld [vmem:[%s4954_s22] sm:$0xff]  }
 0xca8   : > { %v2286_v38 = vadd.f32 1.0, %v3863_v34  ;;  %v3799_v34 = vld [vmem:[%s4954_s22 + $0x8] sm:$0xff]  }
 0xca9   : > { %v2287_v39 = vmul.f32 %v2285_v36, %v2271_v56  ;;  %v3801_v56 = vld [vmem:[%s4954_s22 + $0x18] sm:$0xff]  }
 0xcaa   : > { %v2288_v43 = vmul.f32 %v2286_v38, %v2272_v37 }
 0xcab   : > { %3637 = vmatpush3.bf16.xpose.msra.mxu1 %v2555_v40  ;;  %v2289_v44 = vpack.c.bf16 %v2287_v39, %v2287_v39 }
 0xcac   : > { %v2290_v51 = vpack.c.bf16 %v2288_v43, %v2288_v43  ;;  %3638 = vmatprep.subr.bf16.mxu1 %v3942_v3 }
 0xcae   : > { %3412 = vmatprep.mubr.msk.bf16.mxu0 %vm1307_vm6, %v2290_v51 }
 0xcaf   : > { %2423 = vmatmul.mubr.bf16.vlgmr.msra.gmra.mrb[32].mxu0 %v2289_v44 }
 0xcb0   : > { %2713 = vmatprep.mubr.bf16.mxu0 %v3948_v63  ;;  %2682 = vmatpush1.bf16.msra.mxu0 %v3786_v19 }
 0xcb1   : > { %2683 = vmatprep.subr.bf16.mxu0 %v3791_v20 }
 0xcb3   : > { %3639 = vmatpush3.bf16.xpose.msra.mxu1 %v2558_v47 }
 0xcb4   : > { %3640 = vmatprep.subr.bf16.mxu1 %v3942_v3  ;;  %2684 = vmatpush1.bf16.msra.mxu0 %v3789_v21 }
 0xcb5   : > { %2685 = vmatprep.subr.bf16.mxu0 %v3794_v25 }
 0xcb8   : > { %2686 = vmatpush1.bf16.msra.mxu0 %v3792_v26 }
 0xcb9   : > { %2687 = vmatprep.subr.bf16.mxu0 %v3797_v55 }
 0xcbb   : > { %3641 = vmatpush3.bf16.xpose.msra.mxu1 %v2561_v49  ;;  %v3802_v49 = vld [vmem:[%s4954_s22 + $0x20] sm:$0xff]  }
 0xcbc   : > { %2841 = vmatprep.subr.bf16.mxu1 %v3948_v63 }
 0xcc2   : > { %3643 = vmatmul.mubr.msk.bf16.vlgmr.msra.gmra.mrb[36].mxu1 %vm1151_vm3, %v2539_v50  ;;  %v3803_v50 = vld [vmem:[%s4954_s22 + $0x28] sm:$0xff]  }
 0xcc3   : > { %2842 = vmatpush1.bf16.msra.mxu1 %v3798_v30 }
 0xcc4   : > { %2843 = vmatprep.subr.bf16.mxu1 %v3948_v63 }
 0xcc7   : > { %2844 = vmatpush1.bf16.msra.mxu1 %v3799_v34  ;;  %v3440_v34 = vld [vmem:[%s4943_s11] ss:$0 sm:$0xff] }
 0xcc8   : > { %2845 = vmatprep.subr.bf16.mxu1 %v3948_v63 }
 0xccb   : > { %2846 = vmatpush1.bf16.msra.mxu1 %v3800_v35 }
 0xccc   : > { %2847 = vmatprep.subr.bf16.mxu1 %v3948_v63 }
 0xccf   : > { %2848 = vmatpush1.bf16.msra.mxu1 %v3801_v56 }
 0xcd0   : > { %2849 = vmatprep.subr.bf16.mxu1 %v3948_v63 }
 0xcd3   : > { %2850 = vmatpush1.bf16.msra.mxu1 %v3802_v49 }
 0xcd4   : > { %2851 = vmatprep.subr.bf16.mxu1 %v3948_v63 }
 0xcd7   : > { %2852 = vmatpush1.bf16.msra.mxu1 %v3803_v50 }
 0xcd8   : > { %2853 = vmatprep.subr.bf16.mxu1 %v3948_v63 }
 0xd75   : > { %v2531_v53 = vpop.f32.mrb[32].mxu1 }
 0xd76   : > { %v4711_v54 = vadd.f32 %v2531_v53, %v4552_v11  ;;  %v3632_v0 = vpop.f32.mrb[33].mxu1  ;;  %v3804_v53 = vld [vmem:[%s4954_s22 + $0x30] sm:$0xff]  }
 0xd77   : > { %v2534_v1 = vpop.f32.mrb[34].mxu1  ;;  %2854 = vmatpush1.bf16.msra.mxu1 %v3804_v53  ;;  %v2945_v0 = vld [vmem:[%s4942_s10 + $0xc] sm:$0xf] }
 0xd78   : > { %v3633_v33 = vpop.f32.mrb[35].mxu1  ;;  %v3805_v1 = vld [vmem:[%s4954_s22 + $0x38] sm:$0xff]   ;;  %2855 = vmatprep.subr.bf16.mxu1 %v3948_v63 }
 0xd79   : > { %v2950_v33 = vsel %vm1585_vm5, %v2945_v0, 0  ;;  %v3810_v0 = vld [vmem:[%s4946_s14] sm:$0xff]  }
 0xd7b   : > { %2856 = vmatpush1.bf16.msra.mxu1 %v3805_v1  ;;  %v3811_v1 = vld [vmem:[%s4946_s14 + $0x8] sm:$0xff]  }
 0xd7c   : > { %2857 = vmatprep.subr.bf16.mxu1 %v3948_v63 }
 0xd82   : > { %v2424_v2 = vpop.f32.mrb[32].mxu0 }
 0xd83   : > { %v2430_v32 = vadd.f32 %v2424_v2, %v4611_v31  ;;  %v2426_v4 = vpop.f32.mrb[33].mxu0  ;;  %v3806_v2 = vld [vmem:[%s4954_s22 + $0x40] sm:$0xff]  }
 0xd84   : > { %v2427_v5 = vpop.f32.mrb[34].mxu0  ;;  %2858 = vmatpush1.bf16.msra.mxu1 %v3806_v2  ;;  %v3808_v4 = vld [vmem:[%s4954_s22 + $0x50] sm:$0xff]  }
 0xd85   : > { %v2431_v6 = vadd.f32 %v4587_v29, %v2430_v32  ;;  %v2428_v42 = vpop.f32.mrb[35].mxu0  ;;  %2859 = vmatprep.subr.bf16.mxu1 %v3948_v63  ;;  %v3807_v32 = vld [vmem:[%s4954_s22 + $0x48] sm:$0xff]   ;;  %v3809_v5 = vld [vmem:[%s4954_s22 + $0x58] sm:$0xff]  }
 0xd87   : > { %2432 = vst.msk [vmem:[%s4593_s0 + $0x4] sm:$0xf] %vm1207_vm4, %v2431_v6 }
 0xd88   : > { %2860 = vmatpush1.bf16.msra.mxu1 %v3807_v32  ;;  %v3441_v32 = vld [vmem:[%s4944_s12] ss:$0 sm:$0xff] }
 0xd89   : > { %2861 = vmatprep.subr.bf16.mxu1 %v3948_v63 }
 0xd8c   : > { %2862 = vmatpush1.bf16.msra.mxu1 %v3808_v4 }
 0xd8d   : > { %2863 = vmatprep.subr.bf16.mxu1 %v3948_v63 }
 0xd90   : > { %2864 = vmatpush1.bf16.msra.mxu1 %v3809_v5  ;;  %v3442_v5 = vld [vmem:[%s4945_s13] ss:$0 sm:$0xff] }
 0xd95   : > { %v2597_v9 = vpop.f32.mrb[36].mxu1 }
 0xd96   : > { %v3644_v12 = vpop.f32.mrb[37].mxu1  ;;  %v2603_v13 = vsel %vm1207_vm4, %v2597_v9, -inf }
 0xd97   : > { %2604 = vmax.xlane.f32.xlu1 %v2603_v13  ;;  %v2600_v11 = vpop.f32.mrb[38].mxu1 }
 0xd98   : > { %v3645_v14 = vpop.f32.mrb[39].mxu1 }
 0xda8   : > { %2889 = vrot.lane.b32.xlu1 %v4252_v28, %s3951_s6 }
 0xdac   : > { %2893 = vrot.lane.b32.xlu1 %v4261_v23, %s3951_s6 }
 0xdb0   : > { %2895 = vrot.lane.b32.xlu1 %v4259_v46, %s3951_s6 }
 0xe24   : > { %v2605_v31 = vpop.xlane.xlu1 %2604 }
 0xe25   : > { %v2606_v17 = vsub.f32 %v2597_v9, %v2605_v31 }
 0xe27   : > { %v2607_v22 = vmul.f32 1.442695, %v2606_v17 }
 0xe28   : > { %v2890_v45 = vpop.permute.xlu1 %2889 }
 0xe29   : > { %3864 = vpow2.f32 %v2607_v22 }
 0xe2c   : > { %v2894_v48 = vpop.permute.xlu1 %2893 }
 0xe33   : > { %v3865_v10 = vpop.eup %3864 }
 0xe34   : > { %v2609_v24 = vsel %vm1207_vm4, %v3865_v10, 0.0 }
 0xe35   : > { %2610 = vadd.xlane.f32.xlu0 %v2609_v24 }
 0xec2   : > { %v2611_v15 = vpop.xlane.xlu0 %2610 }
 0xec3   : > { %3866 = vrcp.f32 %v2611_v15 }
 0xecd   : > { %v3867_v57 = vpop.eup %3866 }
 0xece   : > { %v4722_v58 = vmul.f32 %v3867_v57, %v3865_v10 }
 0xed0   : > { %v2614_v28 = vsel %vm1207_vm4, %v4722_v58, 0.0 }
 0xed1   : > { %2615 = vadd.xlane.f32.xlu0 %v2614_v28 }
 0xf5e   : > { %v2616_v23 = vpop.xlane.xlu0 %2615 }
 0xf5f   : > { %v2617_v60 = vmul.f32 0.015625, %v2616_v23 }
 0xf61   : > { %v2618_v46 = vsub.f32 %v4722_v58, %v2617_v60 }
 0xf63   : > { %v2619_v62 = vmul.f32 %v2618_v46, %v2618_v46 }
 0xf65   : > { %v2620_v16 = vsel %vm1207_vm4, %v2619_v62, 0.0 }
 0xf66   : > { %2621 = vadd.xlane.f32.xlu0 %v2620_v16 }
 0xf7c   : > { %2891 = vrot.lane.b32.xlu0 %v4250_v27, %s3951_s6  ;;  %v3795_v27 = vld [vmem:[%s4952_s20 + $0x30] ss:$8 sps:$4 sm:$0xff]   ;;  %s3316_s6 = sshll.u32 %s776_s9, 1 }
 0xf7d   : > { %2688 = vmatpush1.bf16.msra.mxu0 %v3795_v27  ;;  %s778_s3 = scalar_lea.vmem [#allocation2], %s3316_s6  ;;  %s3882_s6 = sshll.u32 %s3953_s7, 4  ;;  %s3883_s6 = int_to_ptr.vmem [resolvable:$false] %s3882_s6 }
 0xf7e   : > { %3646 = vmatprep.subr.bf16.mxu0 %v3942_v3  ;;  %s3216_s29 = sshll.u32 %s778_s3, 4  ;;  %s4892_s29 = int_to_ptr.vmem [resolvable:$true] %s3216_s29 }
 0xf7f   : > { %p3885_p0 = scmp.lt.s32.totalorder %s4892_s29, %s3883_s6 }
 0xff3   : > { %v2622_v36 = vpop.xlane.xlu0 %2621 }
 0xff4   : > { %v2623_v37 = vmul.f32 0.015625, %v2622_v36 }
 0xff6   : > { %v2624_v38 = vadd.f32 1e-05, %v2623_v37 }
 0xff7   : > { %v2892_v47 = vpop.permute.xlu0 %2891 }
 0xff8   : > { %3868 = vrsqrt.f32 %v2624_v38 }
0x1002   : > { %v3869_v39 = vpop.eup %3868 }
0x1003   : > { %v2626_v40 = vmul.f32 %v3869_v39, %v2618_v46 }
0x1005   : > { %v2627_v43 = vmul.f32 %v4426_v59, %v2626_v40  ;;  %v2896_v59 = vpop.permute.xlu1 %2895 }
0x1007   : > { %v2628_v51 = vadd.f32 %v4431_v52, %v2627_v43  ;;  %v2888_v52 = vpack.c.bf16 %v4722_v58, %v4722_v58 }
0x1009   : > { %v2629_v44 = vpack.c.bf16 %v2628_v51, %v2628_v51 }
0x100b   : > { %3424 = vmatmul.mubr.msk.bf16.vlgmr.msra.gmra.mrb[36].mxu0 %vm1307_vm6, %v2629_v44 }
0x100c   : > { %3647 = vmatpush3.bf16.msra.mxu0 %v2890_v45  ;;  %3654 = vmatprep.mubr.msk.bf16.mxu0 %vm3943_vm2, %v3942_v3 }
0x100d   : > { %3648 = vmatprep.subr.bf16.mxu0 %v3942_v3 }
0x1010   : > { %3649 = vmatpush3.bf16.msra.mxu0 %v2892_v47 }
0x1011   : > { %3650 = vmatprep.subr.bf16.mxu0 %v3942_v3 }
0x1014   : > { %3651 = vmatpush3.bf16.msra.mxu0 %v2894_v48 }
0x1015   : > { %3652 = vmatprep.subr.bf16.mxu0 %v3942_v3 }
0x1018   : > { %3653 = vmatpush3.bf16.msra.mxu0 %v2896_v59 }
0x1019   : > { %3658 = vmatprep.subr.bf16.mxu0 %v3942_v3 }
0x101b   : > { %3655 = vmatmul.mubr.msk.bf16.vlgmr.msra.gmra.mrb[40].mxu0 %vm1307_vm6, %v2888_v52 }
0x101c   : > { %3660 = vmatprep.mubr.msk.bf16.mxu0 %vm3943_vm2, %v3942_v3  ;;  %3659 = vmatpush3.bf16.msra.mxu0 %v2950_v33 }
0x101d   : > { %3664 = vmatprep.subr.bf16.mxu0 %v3942_v3 }
0x10de   : > { %v2715_v6 = vpop.f32.mrb[36].mxu0 }
0x10df   : > { %v2716_v42 = vadd.f32 %v2715_v6, %v4510_v7  ;;  %v2717_v9 = vpop.f32.mrb[37].mxu0 }
0x10e0   : > { %v2718_v12 = vadd.f32 %v2717_v9, %v4512_v8  ;;  %v2719_v13 = vpop.f32.mrb[38].mxu0 }
0x10e1   : > { %v2724_v11 = vmul.f32 0.044715, %v2716_v42  ;;  %v2720_v14 = vpop.f32.mrb[39].mxu0  ;;  %v2722_v18 = vmul.f32 0.5, %v2716_v42  ;;  %v3813_v13 = vld [vmem:[%s4948_s16 + $0x8] sm:$0xff]  }
0x10e2   : > { %v2725_v31 = vmul.f32 0.044715, %v2718_v12  ;;  %v2723_v20 = vmul.f32 0.5, %v2718_v12  ;;  %v3815_v14 = vld [vmem:[%s4948_s16 + $0x18] sm:$0xff]  }
0x10e3   : > { %v2726_v17 = vmul.f32 %v2724_v11, %v2716_v42  ;;  %v3814_v11 = vld [vmem:[%s4948_s16 + $0x10] sm:$0xff]  }
0x10e4   : > { %v2727_v22 = vmul.f32 %v2725_v31, %v2718_v12  ;;  %v3443_v31 = vld [vmem:[%s4947_s15] ss:$0 sm:$0xff] }
0x10e5   : > { %v2728_v10 = vmul.f32 %v2726_v17, %v2716_v42 }
0x10e6   : > { %v2729_v24 = vmul.f32 %v2727_v22, %v2718_v12 }
0x10e7   : > { %v2730_v15 = vadd.f32 %v2728_v10, %v2716_v42 }
0x10e8   : > { %v2731_v57 = vadd.f32 %v2729_v24, %v2718_v12  ;;  %v3812_v12 = vld [vmem:[%s4948_s16] sm:$0xff]  }
0x10e9   : > { %v2732_v28 = vmul.f32 0.7978846, %v2730_v15 }
0x10ea   : > { %v2733_v23 = vmul.f32 0.7978846, %v2731_v57 }
0x10eb   : > { %3870 = vtanh.f32 %v2732_v28 }
0x10ec   : > { %3872 = vtanh.f32 %v2733_v23 }
0x10ee   : > { %v2938_v63 = vpop.f32.mrb[40].mxu0 }
0x10ef   : > { %v2944_v60 = vpack.c.bf16 %v2938_v63, %v2938_v63  ;;  %v3656_v7 = vpop.f32.mrb[41].mxu0 }
0x10f0   : > { %v2941_v46 = vpop.f32.mrb[42].mxu0 }
0x10f1   : > { %v3657_v62 = vpop.f32.mrb[43].mxu0  ;;  %3661 = vmatmul.mubr.msk.bf16.vlgmr.msra.gmra.mrb[44].mxu0 %vm1151_vm3, %v2944_v60 }
0x10f2   : > { %3668 = vmatprep.mubr.msk.bf16.mxu0 %vm3943_vm2, %v3942_v3  ;;  %3665 = vmatpush3.bf16.msra.mxu0 %v3810_v0 }
0x10f3   : > { %3666 = vmatprep.subr.bf16.mxu0 %v3942_v3 }
0x10f5   : > { %v3871_v8 = vpop.eup %3870 }
0x10f6   : > { %v3873_v16 = vpop.eup %3872  ;;  %v2736_v19 = vadd.f32 1.0, %v3871_v8  ;;  %3667 = vmatpush3.bf16.msra.mxu0 %v3811_v1 }
0x10f7   : > { %v2737_v21 = vadd.f32 1.0, %v3873_v16  ;;  %3672 = vmatprep.subr.bf16.mxu0 %v3942_v3 }
0x10f8   : > { %v2738_v25 = vmul.f32 %v2736_v19, %v2722_v18  ;;  %v3452_v18 = vld [vmem:[%s4949_s17] ss:$0 sm:$0xff] }
0x10f9   : > { %v2739_v26 = vmul.f32 %v2737_v21, %v2723_v20 }
0x10fa   : > { %v2740_v55 = vpack.c.bf16 %v2738_v25, %v2738_v25 }
0x10fb   : > { %v2741_v27 = vpack.c.bf16 %v2739_v26, %v2739_v26 }
0x10fd   : > { %3437 = vmatprep.mubr.msk.bf16.mxu1 %vm1307_vm6, %v2741_v27 }
0x10fe   : > { %2874 = vmatmul.mubr.bf16.vlgmr.msra.gmra.mrb[40].mxu1 %v2740_v55 }
0x11c4   : > { %v2986_v30 = vpop.f32.mrb[44].mxu0 }
0x11c5   : > { %v2992_v35 = vadd.f32 %v2986_v30, %v4711_v54  ;;  %v3662_v56 = vpop.f32.mrb[45].mxu0 }
0x11c6   : > { %v2989_v36 = vpop.f32.mrb[46].mxu0 }
0x11c7   : > { %v4830_v37 = vadd.f32 %v3440_v34, %v2992_v35  ;;  %v3663_v38 = vpop.f32.mrb[47].mxu0 }
0x11c9   : > { %v3003_v39 = vsel %vm806_vm1, %v4830_v37, 0.0 }
0x11ca   : > { %3004 = vadd.xlane.f32.xlu1 %v3003_v39 }
0x11d1   : > { %v2875_v40 = vpop.f32.mrb[40].mxu1 }
0x11d2   : > { %v2877_v43 = vpop.f32.mrb[41].mxu1  ;;  %v2881_v45 = vadd.f32 %v2875_v40, %v4722_v58  ;;  %v1974_v58 = vadd.f32 %v4615_v61, %v4399_v41 }
0x11d3   : > { %v2878_v51 = vpop.f32.mrb[42].mxu1 }
0x11d4   : > { %v2879_v44 = vpop.f32.mrb[43].mxu1  ;;  %v2882_v47 = vadd.f32 %v4587_v29, %v2881_v45  ;;  %v1975_v53 = vadd.f32 %v4587_v29, %v1974_v58 }
0x11db   : > { %2884 = vrot.lane.b32.xlu1 %v2882_v47, %s3952_s1 }
0x1257   : > { %v3005_v54 = vpop.xlane.xlu1 %3004 }
0x1258   : > { %v3006_v48 = vmul.f32 0.03125, %v3005_v54 }
0x125a   : > { %v3007_v59 = vsub.f32 %v4830_v37, %v3006_v48 }
0x125b   : > { %v2885_v52 = vpop.permute.xlu1 %2884 }
0x125c   : > { %2887 = vst.msk [vmem:[%s4593_s0 + $0x4] sm:$0xf] %vm1980_vm7, %v2885_v52  ;;  %v3008_v49 = vmul.f32 %v3007_v59, %v3007_v59 }
0x125e   : > { %v3009_v50 = vsel %vm806_vm1, %v3008_v49, 0.0 }
0x125f   : > { %3010 = vadd.xlane.f32.xlu0 %v3009_v50 }
0x1275   : > { %1977 = vrot.lane.b32.xlu0 %v1975_v53, %s3952_s1  ;;  %s3884_s1 = scalar_lea.vmem %s3883_s6, 64 }
0x12ec   : > { %v3011_v33 = vpop.xlane.xlu0 %3010 }
0x12ed   : > { %v3012_v2 = vmul.f32 0.03125, %v3011_v33 }
0x12ef   : > { %v3013_v41 = vadd.f32 1e-05, %v3012_v2 }
0x12f0   : > { %v1978_v61 = vpop.permute.xlu0 %1977 }
0x12f1   : > { %3874 = vrsqrt.f32 %v3013_v41  ;;  %1981 = vst.msk [vmem:[%s4593_s0] sm:$0xf] %vm1980_vm7, %v1978_v61  ;;  %s3878_s0 = scalar_lea.vmem %s4892_s29, 32 }
0x12f2   : > { %p3879_p11 = scmp.ne.s32.totalorder %s4892_s29, %s3878_s0  ;;  %p3886_p1 = scmp.lt.s32.totalorder %s3884_s1, %s3878_s0 }
0x12f4   : > { %p3880_p12 = pnand %p3879_p11, %p4122_p5  ;;  %p3887_p2 = por %p3886_p1, %p3885_p0 }
0x12f6   : > { %p3881_p13 = pneg %p3880_p12 }
0x12f8   : > { %p3888_p3 = pnand %p3887_p2, %p3881_p13 }
0x12fb   : > { %v3875_v29 = vpop.eup %3874 }
0x12fc   : > { %v3015_v4 = vmul.f32 %v3875_v29, %v3007_v59 }
0x12fe   : > { %v3022_v6 = vmul.f32 %v3441_v32, %v3015_v4 }
0x1300   : > { %v3029_v42 = vadd.f32 %v3442_v5, %v3022_v6 }
0x1302   : > { %v3030_v9 = vpack.c.bf16 %v3029_v42, %v3029_v42 }
0x1304   : > { %3669 = vmatmul.mubr.msk.bf16.vlgmr.msra.gmra.mrb[48].mxu0 %vm837_vm0, %v3030_v9 }
0x1305   : > { %3680 = vmatprep.mubr.msk.bf16.mxu0 %vm3943_vm2, %v3942_v3  ;;  %3673 = vmatpush3.bf16.msra.mxu0 %v3812_v12 }
0x1306   : > { %3674 = vmatprep.subr.bf16.mxu0 %v3942_v3 }
0x1309   : > { %3675 = vmatpush3.bf16.msra.mxu0 %v3813_v13 }
0x130a   : > { %3676 = vmatprep.subr.bf16.mxu0 %v3942_v3 }
0x130d   : > { %3677 = vmatpush3.bf16.msra.mxu0 %v3814_v11 }
0x130e   : > { %3678 = vmatprep.subr.bf16.mxu0 %v3942_v3 }
0x1311   : > { %3679 = vmatpush3.bf16.msra.mxu0 %v3815_v14 }
0x13d7   : > { %v3091_v17 = vpop.f32.mrb[48].mxu0 }
0x13d8   : > { %v3092_v22 = vadd.f32 %v3443_v31, %v3091_v17  ;;  %v3670_v10 = vpop.f32.mrb[49].mxu0 }
0x13d9   : > { %v3094_v24 = vpop.f32.mrb[50].mxu0 }
0x13da   : > { %v3098_v15 = vmul.f32 0.044715, %v3092_v22  ;;  %v3671_v57 = vpop.f32.mrb[51].mxu0  ;;  %v3097_v3 = vmul.f32 0.5, %v3092_v22 }
0x13dc   : > { %v3099_v28 = vmul.f32 %v3098_v15, %v3092_v22 }
0x13de   : > { %v3100_v23 = vmul.f32 %v3099_v28, %v3092_v22 }
0x13e0   : > { %v3101_v63 = vadd.f32 %v3100_v23, %v3092_v22 }
0x13e2   : > { %v3102_v60 = vmul.f32 0.7978846, %v3101_v63 }
0x13e4   : > { %3876 = vtanh.f32 %v3102_v60 }
0x13ee   : > { %v3877_v7 = vpop.eup %3876 }
0x13ef   : > { %v3104_v46 = vadd.f32 1.0, %v3877_v7 }
0x13f1   : > { %v3105_v62 = vmul.f32 %v3104_v46, %v3097_v3 }
0x13f3   : > { %v3106_v8 = vpack.c.bf16 %v3105_v62, %v3105_v62 }
0x13f5   : > { %3681 = vmatmul.mubr.msk.bf16.vlgmr.msra.gmra.mrb[52].mxu0 %vm1307_vm6, %v3106_v8 }
0x14c8   : > { %v3176_v16 = vpop.f32.mrb[52].mxu0 }
0x14c9   : > { %v3182_v19 = vadd.f32 %v3176_v16, %v4830_v37  ;;  %v3682_v20 = vpop.f32.mrb[53].mxu0 }
0x14ca   : > { %v3179_v21 = vpop.f32.mrb[54].mxu0 }
0x14cb   : > { %v3190_v25 = vadd.f32 %v3452_v18, %v3182_v19  ;;  %v3683_v26 = vpop.f32.mrb[55].mxu0 }
0x14cd   : > { %v3191_v27 = vpack.c.bf16 %v3190_v25, %v3190_v25 }
0x14cf   : > { %3193 = vst.msk [vmem:[%s778_s3] sm:$0x3] %vm3192_vm8, %v3191_v27 }
0x14d0   : > { %3891 = shalt.err (!%p3888_p3)
}
0x14d1   : > { %s3892_s9 = scalar_lea.hbm %s4890_s18, 32  ;;  %s3896_s27 = scalar_lea.hbm %s4957_s25, 64 }
0x14d2   : > { %p3893_p4 = scmp.ne.s32.totalorder %s4890_s18, %s3892_s9  ;;  %p3897_p9 = scmp.lt.u32.totalorder %s4890_s18, %s4957_s25 }
0x14d3   : > { %p3898_p10 = scmp.lt.u32.totalorder %s3896_s27, %s3892_s9  ;;  %p3900_p12 = scmp.lt.u32.totalorder %s3892_s9, %s4890_s18 }
0x14d4   : > { %p3894_p7 = pnand %p3893_p4, %p4122_p5 }
0x14d5   : > { %p3899_p11 = por %p3898_p10, %p3897_p9 }
0x14d6   : > { %p3895_p8 = pneg %p3894_p7 }
0x14d7   : > { %p3901_p13 = por %p3900_p12, %p3899_p11 }
0x14d9   : > { %p3902_p0 = pnand %p3901_p13, %p3895_p8 }
0x14db   : > { %3905 = shalt.err (!%p3902_p0)
}
0x14dc   : > { %3684 = dma.vmem_to_hbm [thread:$0]  (%p4122_p5), %s4892_s29, 32, %s4890_s18, %s3200_s5  }
0x14dd PF: > { %s4995_s0 = sld [smem:[#allocation5_spill]]  ;;  %p3690_p1 = scmp.ge.s32.totalorder %s3940_s30, 2 }
0x14df   : > { %p3687_p2 = pnand %p3690_p1, %p4126_p6 }
0x14e3   : > { %s3236_s1 = sand.u32 1, %s4995_s0  }
0x14e4   : > { %s3237_s8 = scalar_lea.sflag [#allocation3], %s3236_s1 }
0x14e5   : > { %3923 = dma.done.wait (!%p3687_p2), %s3237_s8, 32  }
0x14e6   : > { %3925 = vsyncadd (!%p3687_p2), %s3237_s8, 4294967264  ;;  %s4997_s30 = sld [smem:[#allocation7_spill]]  ;;  %s4998_s9 = sld [smem:[#allocation6_spill]] }
0x14e7   : > { %s4999_s6 = sld [smem:[#allocation8_spill]]  ;;  %s5000_s29 = smov %s3932_s2 }
0x14ec   : > { %p36_p3 = scmp.ge.s32.totalorder %s4997_s30, 4   ;;  %s5001_s2 = smov %s4998_s9 }
0x14ee   :  { %38 = sbr.rel (!%p36_p3) target bundleno = 15 (0xf), region = 166 }
0x14f5   :  { %3242 = vsyncpa [#allocation3], 1 }
0x14f6   :  { %3244 = vsyncpa [#allocation3 + $0x1], 1 }

</bundles_post_ra>
